<compile_context>
chip_gen: v7x
topology: tpu7x:2x2x1
jax: 0.10.0
libtpu: 0.0.40
codegen_flags: <defaults>
</compile_context>

<pallas_src>
import functools

import jax
import jax.numpy as jnp
from jax.experimental import pallas as pl
from jax.experimental.pallas import tpu as pltpu


CPAD = 128                      # channel pad -> lane-dense (128-lane) tiles
COMPUTE_DTYPE = jnp.bfloat16    # MXU operand dtype (accumulation stays f32)
BN_EPS = 1e-5
TILE_N = 1                      # batch images per grid step (re-derive for VMEM budget)
VMEM_LIMIT = 32 * 1024 * 1024   # TODO(synk): re-derive per generation (v7x: 64 MiB VMEM)


def _round_up(x, m):
    return (x + m - 1) // m * m


# ---------------------------------------------------------------------------
# Pass 1: 3x3 "same" conv + per-channel partial sum / sum-of-squares
# ---------------------------------------------------------------------------
def _conv3x3_stats_kernel(x_ref, w_ref, y_ref, stats_ref, xpad_ref, acc_ref,
                          *, tn, h, w, cin):
    """x_ref:(TN,H,W,Cin)  w_ref:(9,CPAD,CPAD)  y_ref:(TN,H,W,CPAD) f32
       stats_ref:(2,CPAD) grid-resident [sum; sumsq]
       xpad_ref:(ROWS_X,CPAD) f32 scratch (zero halo + zero channel pad)
       acc_ref:(M_ACC,CPAD) f32 scratch accumulator over the padded grid."""
    hp, wp = h + 2, w + 2
    m_acc = acc_ref.shape[0]

    # Init once per pallas_call: halo rows / padded channels / tail of the
    # scratch stay zero forever; stats output starts at zero.
    @pl.when(pl.program_id(0) == 0)
    def _():
        xpad_ref[...] = jnp.zeros_like(xpad_ref)
        stats_ref[...] = jnp.zeros_like(stats_ref)

    # Scatter this tile into the interior of the flattened padded image:
    # row(n, i, j) = (n*Hp + i)*Wp + j ; interior is i, j in [1, H+1).
    for n in range(tn):
        for i in range(h):
            r0 = ((n * hp) + i + 1) * wp + 1
            xpad_ref[pl.ds(r0, w), pl.ds(0, cin)] = x_ref[n, i].astype(xpad_ref.dtype)

    # 9 taps = 9 contiguous sublane(row)-shifted slices -> MXU matmuls,
    # accumulated in the f32 VMEM scratch (no per-tap 4D slice+reshape copies).
    for k in range(9):
        dh, dw = k // 3, k % 3
        xs = xpad_ref[pl.ds(dh * wp + dw, m_acc), :].astype(COMPUTE_DTYPE)
        t = jnp.dot(xs, w_ref[k], preferred_element_type=jnp.float32)
        if k == 0:
            acc_ref[...] = t
        else:
            acc_ref[...] += t

    # Crop the padded-grid accumulator back to the valid (H, W) output rows.
    for n in range(tn):
        for i in range(h):
            y_ref[n, i] = acc_ref[pl.ds((n * hp + i) * wp, w), :]

    # Per-channel partial statistics over the VALID outputs only (global BN
    # statistics are finalized in pass 2 after the whole grid has run).
    yv = y_ref[...].reshape(tn * h * w, CPAD)
    stats_ref[0:1, :] += jnp.sum(yv, axis=0, keepdims=True)
    stats_ref[1:2, :] += jnp.sum(yv * yv, axis=0, keepdims=True)


# ---------------------------------------------------------------------------
# Pass 2: BatchNorm finalize (batch statistics, biased variance) + ReLU
# ---------------------------------------------------------------------------
def _bn_relu_kernel(y_ref, stats_ref, g_ref, b_ref, o_ref, *, count):
    inv_n = 1.0 / count
    mean = stats_ref[0:1, :] * inv_n                          # (1, CPAD)
    var = stats_ref[1:2, :] * inv_n - mean * mean             # biased variance
    scale = g_ref[...] * jax.lax.rsqrt(var + BN_EPS)          # (1, CPAD)
    shift = b_ref[...] - mean * scale
    o = y_ref[...] * scale.reshape(1, 1, 1, CPAD) + shift.reshape(1, 1, 1, CPAD)
    o_ref[...] = jnp.maximum(o, 0.0).astype(o_ref.dtype)


# ---------------------------------------------------------------------------
# Wrappers
# ---------------------------------------------------------------------------
def _pack_conv_weights(w_oihw):
    """PyTorch OIHW (Cout, Cin, 3, 3) -> (9, CPAD, CPAD) tap-major, zero channel pad."""
    cout, cin = w_oihw.shape[0], w_oihw.shape[1]
    wt = jnp.transpose(w_oihw, (2, 3, 1, 0))                  # (3, 3, Cin, Cout)
    wt = jnp.pad(wt, ((0, 0), (0, 0), (0, CPAD - cin), (0, CPAD - cout)))
    return wt.reshape(9, CPAD, CPAD).astype(COMPUTE_DTYPE)


def _pad_vec(v):
    return jnp.pad(v.astype(jnp.float32), (0, CPAD - v.shape[0])).reshape(1, CPAD)


def conv3x3_bn_relu(x_nhwc, w9, gamma_p, beta_p, *, tile_n=TILE_N,
                    out_dtype=jnp.float32):
    """Fused 3x3 conv (stride 1, pad 1) + BN (batch stats) + ReLU.
    x_nhwc: (N, H, W, C) with C = real Cin or CPAD.  Returns (N, H, W, CPAD);
    channels >= Cout are exactly zero."""
    n, h, w, cin = x_nhwc.shape
    assert n % tile_n == 0
    hp, wp = h + 2, w + 2
    m_acc = _round_up(tile_n * hp * wp, 8)
    rows_x = _round_up(m_acc + 2 * wp + 2, 8)
    grid = (n // tile_n,)

    conv_kern = functools.partial(_conv3x3_stats_kernel, tn=tile_n, h=h, w=w, cin=cin)
    y, stats = pl.pallas_call(
        conv_kern,
        grid=grid,
        in_specs=[
            pl.BlockSpec((tile_n, h, w, cin), lambda i: (i, 0, 0, 0)),
            pl.BlockSpec((9, CPAD, CPAD), lambda i: (0, 0, 0)),
        ],
        out_specs=[
            pl.BlockSpec((tile_n, h, w, CPAD), lambda i: (i, 0, 0, 0)),
            pl.BlockSpec((2, CPAD), lambda i: (0, 0)),       # grid-resident accumulator
        ],
        out_shape=[
            jax.ShapeDtypeStruct((n, h, w, CPAD), jnp.float32),
            jax.ShapeDtypeStruct((2, CPAD), jnp.float32),
        ],
        scratch_shapes=[
            pltpu.VMEM((rows_x, CPAD), jnp.float32),          # padded input image
            pltpu.VMEM((m_acc, CPAD), jnp.float32),           # conv accumulator
        ],
        compiler_params=pltpu.CompilerParams(
            # stats block is revisited every step -> reduction axis is arbitrary
            dimension_semantics=("arbitrary",),
            vmem_limit_bytes=VMEM_LIMIT,
        ),
    )(x_nhwc, w9)

    bn_kern = functools.partial(_bn_relu_kernel, count=float(n * h * w))
    out = pl.pallas_call(
        bn_kern,
        grid=grid,
        in_specs=[
            pl.BlockSpec((tile_n, h, w, CPAD), lambda i: (i, 0, 0, 0)),
            pl.BlockSpec((2, CPAD), lambda i: (0, 0)),
            pl.BlockSpec((1, CPAD), lambda i: (0, 0)),
            pl.BlockSpec((1, CPAD), lambda i: (0, 0)),
        ],
        out_specs=pl.BlockSpec((tile_n, h, w, CPAD), lambda i: (i, 0, 0, 0)),
        out_shape=jax.ShapeDtypeStruct((n, h, w, CPAD), out_dtype),
        compiler_params=pltpu.CompilerParams(
            dimension_semantics=("parallel",),                # elementwise -> megacore
            vmem_limit_bytes=VMEM_LIMIT,
        ),
    )(y, stats, gamma_p, beta_p)
    return out


def baseline_basic_block(x_nchw, params):
    """out = relu(bn1(conv1(x))); out = relu(bn2(conv2(out))).  NCHW in/out."""
    cout2 = params["w2"].shape[0]

    # Glue (hoisted, once per call): layout + weight/param packing.
    x = jnp.transpose(x_nchw, (0, 2, 3, 1)).astype(jnp.float32)   # NCHW -> NHWC
    w1 = _pack_conv_weights(params["w1"])
    w2 = _pack_conv_weights(params["w2"])
    g1, b1 = _pad_vec(params["g1"]), _pad_vec(params["b1"])
    g2, b2 = _pad_vec(params["g2"]), _pad_vec(params["b2"])

    # Layer 1: inter-layer activation stays channel-padded NHWC bf16 in HBM.
    h1 = conv3x3_bn_relu(x, w1, g1, b1, out_dtype=COMPUTE_DTYPE)
    # Layer 2: final activation in f32.
    h2 = conv3x3_bn_relu(h1, w2, g2, b2, out_dtype=jnp.float32)

    out = h2[..., :cout2]                                         # drop channel pad
    return jnp.transpose(out, (0, 3, 1, 2))                       # NHWC -> NCHW


# ---------------------------------------------------------------------------
# Pure-JAX reference (f32) of the same forward, for a numeric sanity check.
# ---------------------------------------------------------------------------
def _reference_forward(x_nchw, params):
    def conv_bn_relu_ref(x, w_oihw, g, b):
        y = jax.lax.conv_general_dilated(
            x, w_oihw, window_strides=(1, 1), padding=((1, 1), (1, 1)),
            dimension_numbers=("NCHW", "OIHW", "NCHW"))
        mean = jnp.mean(y, axis=(0, 2, 3), keepdims=True)
        var = jnp.mean((y - mean) ** 2, axis=(0, 2, 3), keepdims=True)
        y = (y - mean) * jax.lax.rsqrt(var + BN_EPS)
        y = y * g.reshape(1, -1, 1, 1) + b.reshape(1, -1, 1, 1)
        return jnp.maximum(y, 0.0)

    out = conv_bn_relu_ref(x_nchw, params["w1"], params["g1"], params["b1"])
    out = conv_bn_relu_ref(out, params["w2"], params["g2"], params["b2"])
    return out


if __name__ == "__main__":
    # Small, module-consistent shapes: batch=2, in_planes=4, planes=4, 16x16.
    N, in_planes, planes, H, W = 2, 4, 4, 16, 16

    key = jax.random.PRNGKey(0)
    kx, kw1, kw2, kg1, kb1, kg2, kb2 = jax.random.split(key, 7)

    x = jax.random.normal(kx, (N, in_planes, H, W), dtype=jnp.float32)
    params = {
        "w1": 0.1 * jax.random.normal(kw1, (planes, in_planes, 3, 3), dtype=jnp.float32),
        "w2": 0.1 * jax.random.normal(kw2, (planes, planes, 3, 3), dtype=jnp.float32),
        "g1": 1.0 + 0.1 * jax.random.normal(kg1, (planes,), dtype=jnp.float32),
        "b1": 0.1 * jax.random.normal(kb1, (planes,), dtype=jnp.float32),
        "g2": 1.0 + 0.1 * jax.random.normal(kg2, (planes,), dtype=jnp.float32),
        "b2": 0.1 * jax.random.normal(kb2, (planes,), dtype=jnp.float32),
    }

    fwd = jax.jit(baseline_basic_block)
    out = jax.block_until_ready(fwd(x, params))
    ref = jax.block_until_ready(_reference_forward(x, params))

    assert out.shape == (N, planes, H, W)
    # Loose tolerance: bf16 MXU operands (f32 accumulation / f32 BN) across two
    # conv+BN layers vs. an all-f32 reference; structural bugs would be O(1) off.
    assert jnp.allclose(out, ref, atol=5e-2, rtol=5e-2), \
        f"max abs err {jnp.max(jnp.abs(out - ref))}"

    print("KERNEL_OK")
</pallas_src>

<mosaic_0001>
module attributes {stable_mosaic.version = 11 : i64} {
  func.func @_bn_relu_kernel(%arg0: i32, %arg1: memref<1x16x16x128xf32, #tpu.memory_space<vmem>>, %arg2: memref<2x128xf32, #tpu.memory_space<vmem>>, %arg3: memref<1x128xf32, #tpu.memory_space<vmem>>, %arg4: memref<1x128xf32, #tpu.memory_space<vmem>>, %arg5: memref<1x16x16x128xbf16, #tpu.memory_space<vmem>>) attributes {dimension_semantics = [#tpu.dimension_semantics<parallel>], iteration_bounds = array<i64: 2>, scalar_prefetch = 0 : i64, scratch_operands = 0 : i64, tpu.core_type = #tpu.core_type<tc>, window_params = [{transform_indices = @transform_0, window_bounds = array<i64: 1, 16, 16, 128>}, {pipeline_mode = #tpu.pipeline_mode<synchronous>, transform_indices = @transform_1, window_bounds = array<i64: 2, 128>}, {pipeline_mode = #tpu.pipeline_mode<synchronous>, transform_indices = @transform_2, window_bounds = array<i64: 1, 128>}, {pipeline_mode = #tpu.pipeline_mode<synchronous>, transform_indices = @transform_3, window_bounds = array<i64: 1, 128>}, {transform_indices = @transform_4, window_bounds = array<i64: 1, 16, 16, 128>}]} {
    %c0 = arith.constant 0 : index
    %c0_0 = arith.constant 0 : index
    %0 = vector.load %arg2[%c0, %c0_0] : memref<2x128xf32, #tpu.memory_space<vmem>>, vector<1x128xf32>
    %cst = arith.constant 0.001953125 : f32
    %1 = vector.broadcast %cst : f32 to vector<1x128xf32>
    %2 = arith.mulf %0, %1 : vector<1x128xf32>
    %c1 = arith.constant 1 : index
    %c0_1 = arith.constant 0 : index
    %3 = vector.load %arg2[%c1, %c0_1] : memref<2x128xf32, #tpu.memory_space<vmem>>, vector<1x128xf32>
    %cst_2 = arith.constant 0.001953125 : f32
    %4 = vector.broadcast %cst_2 : f32 to vector<1x128xf32>
    %5 = arith.mulf %3, %4 : vector<1x128xf32>
    %6 = arith.mulf %2, %2 : vector<1x128xf32>
    %7 = arith.subf %5, %6 : vector<1x128xf32>
    %c0_3 = arith.constant 0 : index
    %c0_4 = arith.constant 0 : index
    %8 = vector.load %arg3[%c0_3, %c0_4] : memref<1x128xf32, #tpu.memory_space<vmem>>, vector<1x128xf32>
    %cst_5 = arith.constant 9.99999974E-6 : f32
    %9 = vector.broadcast %cst_5 : f32 to vector<1x128xf32>
    %10 = arith.addf %7, %9 : vector<1x128xf32>
    %11 = math.rsqrt %10 : vector<1x128xf32>
    %12 = arith.mulf %8, %11 : vector<1x128xf32>
    %c0_6 = arith.constant 0 : index
    %c0_7 = arith.constant 0 : index
    %13 = vector.load %arg4[%c0_6, %c0_7] : memref<1x128xf32, #tpu.memory_space<vmem>>, vector<1x128xf32>
    %14 = arith.mulf %2, %12 : vector<1x128xf32>
    %15 = arith.subf %13, %14 : vector<1x128xf32>
    %c0_8 = arith.constant 0 : index
    %c0_9 = arith.constant 0 : index
    %c0_10 = arith.constant 0 : index
    %c0_11 = arith.constant 0 : index
    %16 = vector.load %arg1[%c0_8, %c0_9, %c0_10, %c0_11] : memref<1x16x16x128xf32, #tpu.memory_space<vmem>>, vector<1x16x16x128xf32>
    %17 = vector.shape_cast %12 : vector<1x128xf32> to vector<1x1x1x128xf32>
    %18 = vector.broadcast %17 : vector<1x1x1x128xf32> to vector<1x16x16x128xf32>
    %19 = arith.mulf %16, %18 : vector<1x16x16x128xf32>
    %20 = vector.shape_cast %15 : vector<1x128xf32> to vector<1x1x1x128xf32>
    %21 = vector.broadcast %20 : vector<1x1x1x128xf32> to vector<1x16x16x128xf32>
    %22 = arith.addf %19, %21 : vector<1x16x16x128xf32>
    %cst_12 = arith.constant 0.000000e+00 : f32
    %23 = vector.broadcast %cst_12 : f32 to vector<1x16x16x128xf32>
    %24 = arith.maximumf %22, %23 : vector<1x16x16x128xf32>
    %25 = arith.truncf %24 : vector<1x16x16x128xf32> to vector<1x16x16x128xbf16>
    %c0_13 = arith.constant 0 : index
    %c0_14 = arith.constant 0 : index
    %c0_15 = arith.constant 0 : index
    %c0_16 = arith.constant 0 : index
    %26 = vector.load %arg5[%c0_13, %c0_14, %c0_15, %c0_16] : memref<1x16x16x128xbf16, #tpu.memory_space<vmem>>, vector<1x16x16x128xbf16>
    tpu.vector_store %arg5[%c0_13, %c0_14, %c0_15, %c0_16], %25 {strides = array<i32>} : memref<1x16x16x128xbf16, #tpu.memory_space<vmem>>, vector<1x16x16x128xbf16>,
    return
  }
  func.func @transform_0(%arg0: i32) -> (i32, i32, i32, i32) {
    %c0_i32 = arith.constant 0 : i32
    %c0_i32_0 = arith.constant 0 : i32
    %c0_i32_1 = arith.constant 0 : i32
    %c0_i32_2 = arith.constant 0 : i32
    return %arg0, %c0_i32, %c0_i32_0, %c0_i32_1 : i32, i32, i32, i32
  }
  func.func @transform_1(%arg0: i32) -> (i32, i32) {
    %c0_i32 = arith.constant 0 : i32
    %c0_i32_0 = arith.constant 0 : i32
    %c0_i32_1 = arith.constant 0 : i32
    return %c0_i32, %c0_i32_0 : i32, i32
  }
  func.func @transform_2(%arg0: i32) -> (i32, i32) {
    %c0_i32 = arith.constant 0 : i32
    %c0_i32_0 = arith.constant 0 : i32
    %c0_i32_1 = arith.constant 0 : i32
    return %c0_i32, %c0_i32_0 : i32, i32
  }
  func.func @transform_3(%arg0: i32) -> (i32, i32) {
    %c0_i32 = arith.constant 0 : i32
    %c0_i32_0 = arith.constant 0 : i32
    %c0_i32_1 = arith.constant 0 : i32
    return %c0_i32, %c0_i32_0 : i32, i32
  }
  func.func @transform_4(%arg0: i32) -> (i32, i32, i32, i32) {
    %c0_i32 = arith.constant 0 : i32
    %c0_i32_0 = arith.constant 0 : i32
    %c0_i32_1 = arith.constant 0 : i32
    %c0_i32_2 = arith.constant 0 : i32
    return %arg0, %c0_i32, %c0_i32_0, %c0_i32_1 : i32, i32, i32, i32
  }
}

module attributes {stable_mosaic.version = 11 : i64} {
  func.func @_bn_relu_kernel(%arg0: i32, %arg1: memref<1x16x16x128xf32, #tpu.memory_space<vmem>>, %arg2: memref<2x128xf32, #tpu.memory_space<vmem>>, %arg3: memref<1x128xf32, #tpu.memory_space<vmem>>, %arg4: memref<1x128xf32, #tpu.memory_space<vmem>>, %arg5: memref<1x16x16x128xf32, #tpu.memory_space<vmem>>) attributes {dimension_semantics = [#tpu.dimension_semantics<parallel>], iteration_bounds = array<i64: 2>, scalar_prefetch = 0 : i64, scratch_operands = 0 : i64, tpu.core_type = #tpu.core_type<tc>, window_params = [{transform_indices = @transform_0, window_bounds = array<i64: 1, 16, 16, 128>}, {pipeline_mode = #tpu.pipeline_mode<synchronous>, transform_indices = @transform_1, window_bounds = array<i64: 2, 128>}, {pipeline_mode = #tpu.pipeline_mode<synchronous>, transform_indices = @transform_2, window_bounds = array<i64: 1, 128>}, {pipeline_mode = #tpu.pipeline_mode<synchronous>, transform_indices = @transform_3, window_bounds = array<i64: 1, 128>}, {transform_indices = @transform_4, window_bounds = array<i64: 1, 16, 16, 128>}]} {
    %c0 = arith.constant 0 : index
    %c0_0 = arith.constant 0 : index
    %0 = vector.load %arg2[%c0, %c0_0] : memref<2x128xf32, #tpu.memory_space<vmem>>, vector<1x128xf32>
    %cst = arith.constant 0.001953125 : f32
    %1 = vector.broadcast %cst : f32 to vector<1x128xf32>
    %2 = arith.mulf %0, %1 : vector<1x128xf32>
    %c1 = arith.constant 1 : index
    %c0_1 = arith.constant 0 : index
    %3 = vector.load %arg2[%c1, %c0_1] : memref<2x128xf32, #tpu.memory_space<vmem>>, vector<1x128xf32>
    %cst_2 = arith.constant 0.001953125 : f32
    %4 = vector.broadcast %cst_2 : f32 to vector<1x128xf32>
    %5 = arith.mulf %3, %4 : vector<1x128xf32>
    %6 = arith.mulf %2, %2 : vector<1x128xf32>
    %7 = arith.subf %5, %6 : vector<1x128xf32>
    %c0_3 = arith.constant 0 : index
    %c0_4 = arith.constant 0 : index
    %8 = vector.load %arg3[%c0_3, %c0_4] : memref<1x128xf32, #tpu.memory_space<vmem>>, vector<1x128xf32>
    %cst_5 = arith.constant 9.99999974E-6 : f32
    %9 = vector.broadcast %cst_5 : f32 to vector<1x128xf32>
    %10 = arith.addf %7, %9 : vector<1x128xf32>
    %11 = math.rsqrt %10 : vector<1x128xf32>
    %12 = arith.mulf %8, %11 : vector<1x128xf32>
    %c0_6 = arith.constant 0 : index
    %c0_7 = arith.constant 0 : index
    %13 = vector.load %arg4[%c0_6, %c0_7] : memref<1x128xf32, #tpu.memory_space<vmem>>, vector<1x128xf32>
    %14 = arith.mulf %2, %12 : vector<1x128xf32>
    %15 = arith.subf %13, %14 : vector<1x128xf32>
    %c0_8 = arith.constant 0 : index
    %c0_9 = arith.constant 0 : index
    %c0_10 = arith.constant 0 : index
    %c0_11 = arith.constant 0 : index
    %16 = vector.load %arg1[%c0_8, %c0_9, %c0_10, %c0_11] : memref<1x16x16x128xf32, #tpu.memory_space<vmem>>, vector<1x16x16x128xf32>
    %17 = vector.shape_cast %12 : vector<1x128xf32> to vector<1x1x1x128xf32>
    %18 = vector.broadcast %17 : vector<1x1x1x128xf32> to vector<1x16x16x128xf32>
    %19 = arith.mulf %16, %18 : vector<1x16x16x128xf32>
    %20 = vector.shape_cast %15 : vector<1x128xf32> to vector<1x1x1x128xf32>
    %21 = vector.broadcast %20 : vector<1x1x1x128xf32> to vector<1x16x16x128xf32>
    %22 = arith.addf %19, %21 : vector<1x16x16x128xf32>
    %cst_12 = arith.constant 0.000000e+00 : f32
    %23 = vector.broadcast %cst_12 : f32 to vector<1x16x16x128xf32>
    %24 = arith.maximumf %22, %23 : vector<1x16x16x128xf32>
    %c0_13 = arith.constant 0 : index
    %c0_14 = arith.constant 0 : index
    %c0_15 = arith.constant 0 : index
    %c0_16 = arith.constant 0 : index
    %25 = vector.load %arg5[%c0_13, %c0_14, %c0_15, %c0_16] : memref<1x16x16x128xf32, #tpu.memory_space<vmem>>, vector<1x16x16x128xf32>
    tpu.vector_store %arg5[%c0_13, %c0_14, %c0_15, %c0_16], %24 {strides = array<i32>} : memref<1x16x16x128xf32, #tpu.memory_space<vmem>>, vector<1x16x16x128xf32>,
    return
  }
  func.func @transform_0(%arg0: i32) -> (i32, i32, i32, i32) {
    %c0_i32 = arith.constant 0 : i32
    %c0_i32_0 = arith.constant 0 : i32
    %c0_i32_1 = arith.constant 0 : i32
    %c0_i32_2 = arith.constant 0 : i32
    return %arg0, %c0_i32, %c0_i32_0, %c0_i32_1 : i32, i32, i32, i32
  }
  func.func @transform_1(%arg0: i32) -> (i32, i32) {
    %c0_i32 = arith.constant 0 : i32
    %c0_i32_0 = arith.constant 0 : i32
    %c0_i32_1 = arith.constant 0 : i32
    return %c0_i32, %c0_i32_0 : i32, i32
  }
  func.func @transform_2(%arg0: i32) -> (i32, i32) {
    %c0_i32 = arith.constant 0 : i32
    %c0_i32_0 = arith.constant 0 : i32
    %c0_i32_1 = arith.constant 0 : i32
    return %c0_i32, %c0_i32_0 : i32, i32
  }
  func.func @transform_3(%arg0: i32) -> (i32, i32) {
    %c0_i32 = arith.constant 0 : i32
    %c0_i32_0 = arith.constant 0 : i32
    %c0_i32_1 = arith.constant 0 : i32
    return %c0_i32, %c0_i32_0 : i32, i32
  }
  func.func @transform_4(%arg0: i32) -> (i32, i32, i32, i32) {
    %c0_i32 = arith.constant 0 : i32
    %c0_i32_0 = arith.constant 0 : i32
    %c0_i32_1 = arith.constant 0 : i32
    %c0_i32_2 = arith.constant 0 : i32
    return %arg0, %c0_i32, %c0_i32_0, %c0_i32_1 : i32, i32, i32, i32
  }
}

module attributes {stable_mosaic.version = 11 : i64} {
  func.func @_conv3x3_stats_kernel(%arg0: i32, %arg1: memref<1x16x16x4xf32, #tpu.memory_space<vmem>>, %arg2: memref<9x128x128xbf16, #tpu.memory_space<vmem>>, %arg3: memref<1x16x16x128xf32, #tpu.memory_space<vmem>>, %arg4: memref<2x128xf32, #tpu.memory_space<vmem>>, %arg5: memref<368x128xf32, #tpu.memory_space<vmem>>, %arg6: memref<328x128xf32, #tpu.memory_space<vmem>>) attributes {dimension_semantics = [#tpu.dimension_semantics<arbitrary>], iteration_bounds = array<i64: 2>, scalar_prefetch = 0 : i64, scratch_operands = 2 : i64, tpu.core_type = #tpu.core_type<tc>, window_params = [{transform_indices = @transform_0, window_bounds = array<i64: 1, 16, 16, 4>}, {pipeline_mode = #tpu.pipeline_mode<synchronous>, transform_indices = @transform_1, window_bounds = array<i64: 9, 128, 128>}, {transform_indices = @transform_2, window_bounds = array<i64: 1, 16, 16, 128>}, {pipeline_mode = #tpu.pipeline_mode<synchronous>, transform_indices = @transform_3, window_bounds = array<i64: 2, 128>}]} {
    %c0_i32 = arith.constant 0 : i32
    %0 = arith.cmpi eq, %arg0, %c0_i32 : i32
    %1 = arith.extui %0 : i1 to i32
    %c0_i32_0 = arith.constant 0 : i32
    %2 = arith.cmpi ne, %1, %c0_i32_0 : i32
    scf.if %2 {
      %cst_245 = arith.constant 0.000000e+00 : f32
      %198 = vector.broadcast %cst_245 : f32 to vector<368x128xf32>
      %c0_246 = arith.constant 0 : index
      %c0_247 = arith.constant 0 : index
      %199 = vector.load %arg5[%c0_246, %c0_247] : memref<368x128xf32, #tpu.memory_space<vmem>>, vector<368x128xf32>
      tpu.vector_store %arg5[%c0_246, %c0_247], %198 {strides = array<i32>} : memref<368x128xf32, #tpu.memory_space<vmem>>, vector<368x128xf32>,
      %cst_248 = arith.constant 0.000000e+00 : f32
      %200 = vector.broadcast %cst_248 : f32 to vector<2x128xf32>
      %c0_249 = arith.constant 0 : index
      %c0_250 = arith.constant 0 : index
      %201 = vector.load %arg4[%c0_249, %c0_250] : memref<2x128xf32, #tpu.memory_space<vmem>>, vector<2x128xf32>
      tpu.vector_store %arg4[%c0_249, %c0_250], %200 {strides = array<i32>} : memref<2x128xf32, #tpu.memory_space<vmem>>, vector<2x128xf32>,
    } else {
    }
    %c0 = arith.constant 0 : index
    %c0_1 = arith.constant 0 : index
    %c0_2 = arith.constant 0 : index
    %c0_3 = arith.constant 0 : index
    %3 = vector.load %arg1[%c0, %c0_1, %c0_2, %c0_3] : memref<1x16x16x4xf32, #tpu.memory_space<vmem>>, vector<1x1x16x4xf32>
    %4 = vector.shape_cast %3 : vector<1x1x16x4xf32> to vector<16x4xf32>
    %c19 = arith.constant 19 : index
    %c0_4 = arith.constant 0 : index
    %5 = vector.load %arg5[%c19, %c0_4] : memref<368x128xf32, #tpu.memory_space<vmem>>, vector<16x4xf32>
    tpu.vector_store %arg5[%c19, %c0_4], %4 {strides = array<i32>} : memref<368x128xf32, #tpu.memory_space<vmem>>, vector<16x4xf32>,
    %c0_5 = arith.constant 0 : index
    %c1 = arith.constant 1 : index
    %c0_6 = arith.constant 0 : index
    %c0_7 = arith.constant 0 : index
    %6 = vector.load %arg1[%c0_5, %c1, %c0_6, %c0_7] : memref<1x16x16x4xf32, #tpu.memory_space<vmem>>, vector<1x1x16x4xf32>
    %7 = vector.shape_cast %6 : vector<1x1x16x4xf32> to vector<16x4xf32>
    %c37 = arith.constant 37 : index
    %c0_8 = arith.constant 0 : index
    %8 = vector.load %arg5[%c37, %c0_8] : memref<368x128xf32, #tpu.memory_space<vmem>>, vector<16x4xf32>
    tpu.vector_store %arg5[%c37, %c0_8], %7 {strides = array<i32>} : memref<368x128xf32, #tpu.memory_space<vmem>>, vector<16x4xf32>,
    %c0_9 = arith.constant 0 : index
    %c2 = arith.constant 2 : index
    %c0_10 = arith.constant 0 : index
    %c0_11 = arith.constant 0 : index
    %9 = vector.load %arg1[%c0_9, %c2, %c0_10, %c0_11] : memref<1x16x16x4xf32, #tpu.memory_space<vmem>>, vector<1x1x16x4xf32>
    %10 = vector.shape_cast %9 : vector<1x1x16x4xf32> to vector<16x4xf32>
    %c55 = arith.constant 55 : index
    %c0_12 = arith.constant 0 : index
    %11 = vector.load %arg5[%c55, %c0_12] : memref<368x128xf32, #tpu.memory_space<vmem>>, vector<16x4xf32>
    tpu.vector_store %arg5[%c55, %c0_12], %10 {strides = array<i32>} : memref<368x128xf32, #tpu.memory_space<vmem>>, vector<16x4xf32>,
    %c0_13 = arith.constant 0 : index
    %c3 = arith.constant 3 : index
    %c0_14 = arith.constant 0 : index
    %c0_15 = arith.constant 0 : index
    %12 = vector.load %arg1[%c0_13, %c3, %c0_14, %c0_15] : memref<1x16x16x4xf32, #tpu.memory_space<vmem>>, vector<1x1x16x4xf32>
    %13 = vector.shape_cast %12 : vector<1x1x16x4xf32> to vector<16x4xf32>
    %c73 = arith.constant 73 : index
    %c0_16 = arith.constant 0 : index
    %14 = vector.load %arg5[%c73, %c0_16] : memref<368x128xf32, #tpu.memory_space<vmem>>, vector<16x4xf32>
    tpu.vector_store %arg5[%c73, %c0_16], %13 {strides = array<i32>} : memref<368x128xf32, #tpu.memory_space<vmem>>, vector<16x4xf32>,
    %c0_17 = arith.constant 0 : index
    %c4 = arith.constant 4 : index
    %c0_18 = arith.constant 0 : index
    %c0_19 = arith.constant 0 : index
    %15 = vector.load %arg1[%c0_17, %c4, %c0_18, %c0_19] : memref<1x16x16x4xf32, #tpu.memory_space<vmem>>, vector<1x1x16x4xf32>
    %16 = vector.shape_cast %15 : vector<1x1x16x4xf32> to vector<16x4xf32>
    %c91 = arith.constant 91 : index
    %c0_20 = arith.constant 0 : index
    %17 = vector.load %arg5[%c91, %c0_20] : memref<368x128xf32, #tpu.memory_space<vmem>>, vector<16x4xf32>
    tpu.vector_store %arg5[%c91, %c0_20], %16 {strides = array<i32>} : memref<368x128xf32, #tpu.memory_space<vmem>>, vector<16x4xf32>,
    %c0_21 = arith.constant 0 : index
    %c5 = arith.constant 5 : index
    %c0_22 = arith.constant 0 : index
    %c0_23 = arith.constant 0 : index
    %18 = vector.load %arg1[%c0_21, %c5, %c0_22, %c0_23] : memref<1x16x16x4xf32, #tpu.memory_space<vmem>>, vector<1x1x16x4xf32>
    %19 = vector.shape_cast %18 : vector<1x1x16x4xf32> to vector<16x4xf32>
    %c109 = arith.constant 109 : index
    %c0_24 = arith.constant 0 : index
    %20 = vector.load %arg5[%c109, %c0_24] : memref<368x128xf32, #tpu.memory_space<vmem>>, vector<16x4xf32>
    tpu.vector_store %arg5[%c109, %c0_24], %19 {strides = array<i32>} : memref<368x128xf32, #tpu.memory_space<vmem>>, vector<16x4xf32>,
    %c0_25 = arith.constant 0 : index
    %c6 = arith.constant 6 : index
    %c0_26 = arith.constant 0 : index
    %c0_27 = arith.constant 0 : index
    %21 = vector.load %arg1[%c0_25, %c6, %c0_26, %c0_27] : memref<1x16x16x4xf32, #tpu.memory_space<vmem>>, vector<1x1x16x4xf32>
    %22 = vector.shape_cast %21 : vector<1x1x16x4xf32> to vector<16x4xf32>
    %c127 = arith.constant 127 : index
    %c0_28 = arith.constant 0 : index
    %23 = vector.load %arg5[%c127, %c0_28] : memref<368x128xf32, #tpu.memory_space<vmem>>, vector<16x4xf32>
    tpu.vector_store %arg5[%c127, %c0_28], %22 {strides = array<i32>} : memref<368x128xf32, #tpu.memory_space<vmem>>, vector<16x4xf32>,
    %c0_29 = arith.constant 0 : index
    %c7 = arith.constant 7 : index
    %c0_30 = arith.constant 0 : index
    %c0_31 = arith.constant 0 : index
    %24 = vector.load %arg1[%c0_29, %c7, %c0_30, %c0_31] : memref<1x16x16x4xf32, #tpu.memory_space<vmem>>, vector<1x1x16x4xf32>
    %25 = vector.shape_cast %24 : vector<1x1x16x4xf32> to vector<16x4xf32>
    %c145 = arith.constant 145 : index
    %c0_32 = arith.constant 0 : index
    %26 = vector.load %arg5[%c145, %c0_32] : memref<368x128xf32, #tpu.memory_space<vmem>>, vector<16x4xf32>
    tpu.vector_store %arg5[%c145, %c0_32], %25 {strides = array<i32>} : memref<368x128xf32, #tpu.memory_space<vmem>>, vector<16x4xf32>,
    %c0_33 = arith.constant 0 : index
    %c8 = arith.constant 8 : index
    %c0_34 = arith.constant 0 : index
    %c0_35 = arith.constant 0 : index
    %27 = vector.load %arg1[%c0_33, %c8, %c0_34, %c0_35] : memref<1x16x16x4xf32, #tpu.memory_space<vmem>>, vector<1x1x16x4xf32>
    %28 = vector.shape_cast %27 : vector<1x1x16x4xf32> to vector<16x4xf32>
    %c163 = arith.constant 163 : index
    %c0_36 = arith.constant 0 : index
    %29 = vector.load %arg5[%c163, %c0_36] : memref<368x128xf32, #tpu.memory_space<vmem>>, vector<16x4xf32>
    tpu.vector_store %arg5[%c163, %c0_36], %28 {strides = array<i32>} : memref<368x128xf32, #tpu.memory_space<vmem>>, vector<16x4xf32>,
    %c0_37 = arith.constant 0 : index
    %c9 = arith.constant 9 : index
    %c0_38 = arith.constant 0 : index
    %c0_39 = arith.constant 0 : index
    %30 = vector.load %arg1[%c0_37, %c9, %c0_38, %c0_39] : memref<1x16x16x4xf32, #tpu.memory_space<vmem>>, vector<1x1x16x4xf32>
    %31 = vector.shape_cast %30 : vector<1x1x16x4xf32> to vector<16x4xf32>
    %c181 = arith.constant 181 : index
    %c0_40 = arith.constant 0 : index
    %32 = vector.load %arg5[%c181, %c0_40] : memref<368x128xf32, #tpu.memory_space<vmem>>, vector<16x4xf32>
    tpu.vector_store %arg5[%c181, %c0_40], %31 {strides = array<i32>} : memref<368x128xf32, #tpu.memory_space<vmem>>, vector<16x4xf32>,
    %c0_41 = arith.constant 0 : index
    %c10 = arith.constant 10 : index
    %c0_42 = arith.constant 0 : index
    %c0_43 = arith.constant 0 : index
    %33 = vector.load %arg1[%c0_41, %c10, %c0_42, %c0_43] : memref<1x16x16x4xf32, #tpu.memory_space<vmem>>, vector<1x1x16x4xf32>
    %34 = vector.shape_cast %33 : vector<1x1x16x4xf32> to vector<16x4xf32>
    %c199 = arith.constant 199 : index
    %c0_44 = arith.constant 0 : index
    %35 = vector.load %arg5[%c199, %c0_44] : memref<368x128xf32, #tpu.memory_space<vmem>>, vector<16x4xf32>
    tpu.vector_store %arg5[%c199, %c0_44], %34 {strides = array<i32>} : memref<368x128xf32, #tpu.memory_space<vmem>>, vector<16x4xf32>,
    %c0_45 = arith.constant 0 : index
    %c11 = arith.constant 11 : index
    %c0_46 = arith.constant 0 : index
    %c0_47 = arith.constant 0 : index
    %36 = vector.load %arg1[%c0_45, %c11, %c0_46, %c0_47] : memref<1x16x16x4xf32, #tpu.memory_space<vmem>>, vector<1x1x16x4xf32>
    %37 = vector.shape_cast %36 : vector<1x1x16x4xf32> to vector<16x4xf32>
    %c217 = arith.constant 217 : index
    %c0_48 = arith.constant 0 : index
    %38 = vector.load %arg5[%c217, %c0_48] : memref<368x128xf32, #tpu.memory_space<vmem>>, vector<16x4xf32>
    tpu.vector_store %arg5[%c217, %c0_48], %37 {strides = array<i32>} : memref<368x128xf32, #tpu.memory_space<vmem>>, vector<16x4xf32>,
    %c0_49 = arith.constant 0 : index
    %c12 = arith.constant 12 : index
    %c0_50 = arith.constant 0 : index
    %c0_51 = arith.constant 0 : index
    %39 = vector.load %arg1[%c0_49, %c12, %c0_50, %c0_51] : memref<1x16x16x4xf32, #tpu.memory_space<vmem>>, vector<1x1x16x4xf32>
    %40 = vector.shape_cast %39 : vector<1x1x16x4xf32> to vector<16x4xf32>
    %c235 = arith.constant 235 : index
    %c0_52 = arith.constant 0 : index
    %41 = vector.load %arg5[%c235, %c0_52] : memref<368x128xf32, #tpu.memory_space<vmem>>, vector<16x4xf32>
    tpu.vector_store %arg5[%c235, %c0_52], %40 {strides = array<i32>} : memref<368x128xf32, #tpu.memory_space<vmem>>, vector<16x4xf32>,
    %c0_53 = arith.constant 0 : index
    %c13 = arith.constant 13 : index
    %c0_54 = arith.constant 0 : index
    %c0_55 = arith.constant 0 : index
    %42 = vector.load %arg1[%c0_53, %c13, %c0_54, %c0_55] : memref<1x16x16x4xf32, #tpu.memory_space<vmem>>, vector<1x1x16x4xf32>
    %43 = vector.shape_cast %42 : vector<1x1x16x4xf32> to vector<16x4xf32>
    %c253 = arith.constant 253 : index
    %c0_56 = arith.constant 0 : index
    %44 = vector.load %arg5[%c253, %c0_56] : memref<368x128xf32, #tpu.memory_space<vmem>>, vector<16x4xf32>
    tpu.vector_store %arg5[%c253, %c0_56], %43 {strides = array<i32>} : memref<368x128xf32, #tpu.memory_space<vmem>>, vector<16x4xf32>,
    %c0_57 = arith.constant 0 : index
    %c14 = arith.constant 14 : index
    %c0_58 = arith.constant 0 : index
    %c0_59 = arith.constant 0 : index
    %45 = vector.load %arg1[%c0_57, %c14, %c0_58, %c0_59] : memref<1x16x16x4xf32, #tpu.memory_space<vmem>>, vector<1x1x16x4xf32>
    %46 = vector.shape_cast %45 : vector<1x1x16x4xf32> to vector<16x4xf32>
    %c271 = arith.constant 271 : index
    %c0_60 = arith.constant 0 : index
    %47 = vector.load %arg5[%c271, %c0_60] : memref<368x128xf32, #tpu.memory_space<vmem>>, vector<16x4xf32>
    tpu.vector_store %arg5[%c271, %c0_60], %46 {strides = array<i32>} : memref<368x128xf32, #tpu.memory_space<vmem>>, vector<16x4xf32>,
    %c0_61 = arith.constant 0 : index
    %c15 = arith.constant 15 : index
    %c0_62 = arith.constant 0 : index
    %c0_63 = arith.constant 0 : index
    %48 = vector.load %arg1[%c0_61, %c15, %c0_62, %c0_63] : memref<1x16x16x4xf32, #tpu.memory_space<vmem>>, vector<1x1x16x4xf32>
    %49 = vector.shape_cast %48 : vector<1x1x16x4xf32> to vector<16x4xf32>
    %c289 = arith.constant 289 : index
    %c0_64 = arith.constant 0 : index
    %50 = vector.load %arg5[%c289, %c0_64] : memref<368x128xf32, #tpu.memory_space<vmem>>, vector<16x4xf32>
    tpu.vector_store %arg5[%c289, %c0_64], %49 {strides = array<i32>} : memref<368x128xf32, #tpu.memory_space<vmem>>, vector<16x4xf32>,
    %c0_65 = arith.constant 0 : index
    %c0_66 = arith.constant 0 : index
    %51 = vector.load %arg5[%c0_65, %c0_66] : memref<368x128xf32, #tpu.memory_space<vmem>>, vector<328x128xf32>
    %52 = arith.truncf %51 : vector<328x128xf32> to vector<328x128xbf16>
    %c0_67 = arith.constant 0 : index
    %c0_68 = arith.constant 0 : index
    %c0_69 = arith.constant 0 : index
    %53 = vector.load %arg2[%c0_67, %c0_68, %c0_69] : memref<9x128x128xbf16, #tpu.memory_space<vmem>>, vector<1x128x128xbf16>
    %54 = vector.shape_cast %53 : vector<1x128x128xbf16> to vector<128x128xbf16>
    %cst = arith.constant dense<0.000000e+00> : vector<328x128xf32>
    %55 = tpu.matmul %52, %54, %cst {dimension_numbers = #tpu.dot_dimension_numbers<[1], [0], [0], [1], [0, 0, 1, 1], [], []>} : vector<328x128xbf16>, vector<128x128xbf16>, vector<328x128xf32> -> vector<328x128xf32>
    %c0_70 = arith.constant 0 : index
    %c0_71 = arith.constant 0 : index
    %56 = vector.load %arg6[%c0_70, %c0_71] : memref<328x128xf32, #tpu.memory_space<vmem>>, vector<328x128xf32>
    tpu.vector_store %arg6[%c0_70, %c0_71], %55 {strides = array<i32>} : memref<328x128xf32, #tpu.memory_space<vmem>>, vector<328x128xf32>,
    %c1_72 = arith.constant 1 : index
    %c0_73 = arith.constant 0 : index
    %57 = vector.load %arg5[%c1_72, %c0_73] : memref<368x128xf32, #tpu.memory_space<vmem>>, vector<328x128xf32>
    %58 = arith.truncf %57 : vector<328x128xf32> to vector<328x128xbf16>
    %c1_74 = arith.constant 1 : index
    %c0_75 = arith.constant 0 : index
    %c0_76 = arith.constant 0 : index
    %59 = vector.load %arg2[%c1_74, %c0_75, %c0_76] : memref<9x128x128xbf16, #tpu.memory_space<vmem>>, vector<1x128x128xbf16>
    %60 = vector.shape_cast %59 : vector<1x128x128xbf16> to vector<128x128xbf16>
    %cst_77 = arith.constant dense<0.000000e+00> : vector<328x128xf32>
    %61 = tpu.matmul %58, %60, %cst_77 {dimension_numbers = #tpu.dot_dimension_numbers<[1], [0], [0], [1], [0, 0, 1, 1], [], []>} : vector<328x128xbf16>, vector<128x128xbf16>, vector<328x128xf32> -> vector<328x128xf32>
    %c0_78 = arith.constant 0 : index
    %c0_79 = arith.constant 0 : index
    %62 = vector.load %arg6[%c0_78, %c0_79] : memref<328x128xf32, #tpu.memory_space<vmem>>, vector<328x128xf32>
    %63 = arith.addf %62, %61 : vector<328x128xf32>
    %c0_80 = arith.constant 0 : index
    %c0_81 = arith.constant 0 : index
    %64 = vector.load %arg6[%c0_80, %c0_81] : memref<328x128xf32, #tpu.memory_space<vmem>>, vector<328x128xf32>
    tpu.vector_store %arg6[%c0_80, %c0_81], %63 {strides = array<i32>} : memref<328x128xf32, #tpu.memory_space<vmem>>, vector<328x128xf32>,
    %c2_82 = arith.constant 2 : index
    %c0_83 = arith.constant 0 : index
    %65 = vector.load %arg5[%c2_82, %c0_83] : memref<368x128xf32, #tpu.memory_space<vmem>>, vector<328x128xf32>
    %66 = arith.truncf %65 : vector<328x128xf32> to vector<328x128xbf16>
    %c2_84 = arith.constant 2 : index
    %c0_85 = arith.constant 0 : index
    %c0_86 = arith.constant 0 : index
    %67 = vector.load %arg2[%c2_84, %c0_85, %c0_86] : memref<9x128x128xbf16, #tpu.memory_space<vmem>>, vector<1x128x128xbf16>
    %68 = vector.shape_cast %67 : vector<1x128x128xbf16> to vector<128x128xbf16>
    %cst_87 = arith.constant dense<0.000000e+00> : vector<328x128xf32>
    %69 = tpu.matmul %66, %68, %cst_87 {dimension_numbers = #tpu.dot_dimension_numbers<[1], [0], [0], [1], [0, 0, 1, 1], [], []>} : vector<328x128xbf16>, vector<128x128xbf16>, vector<328x128xf32> -> vector<328x128xf32>
    %c0_88 = arith.constant 0 : index
    %c0_89 = arith.constant 0 : index
    %70 = vector.load %arg6[%c0_88, %c0_89] : memref<328x128xf32, #tpu.memory_space<vmem>>, vector<328x128xf32>
    %71 = arith.addf %70, %69 : vector<328x128xf32>
    %c0_90 = arith.constant 0 : index
    %c0_91 = arith.constant 0 : index
    %72 = vector.load %arg6[%c0_90, %c0_91] : memref<328x128xf32, #tpu.memory_space<vmem>>, vector<328x128xf32>
    tpu.vector_store %arg6[%c0_90, %c0_91], %71 {strides = array<i32>} : memref<328x128xf32, #tpu.memory_space<vmem>>, vector<328x128xf32>,
    %c18 = arith.constant 18 : index
    %c0_92 = arith.constant 0 : index
    %73 = vector.load %arg5[%c18, %c0_92] : memref<368x128xf32, #tpu.memory_space<vmem>>, vector<328x128xf32>
    %74 = arith.truncf %73 : vector<328x128xf32> to vector<328x128xbf16>
    %c3_93 = arith.constant 3 : index
    %c0_94 = arith.constant 0 : index
    %c0_95 = arith.constant 0 : index
    %75 = vector.load %arg2[%c3_93, %c0_94, %c0_95] : memref<9x128x128xbf16, #tpu.memory_space<vmem>>, vector<1x128x128xbf16>
    %76 = vector.shape_cast %75 : vector<1x128x128xbf16> to vector<128x128xbf16>
    %cst_96 = arith.constant dense<0.000000e+00> : vector<328x128xf32>
    %77 = tpu.matmul %74, %76, %cst_96 {dimension_numbers = #tpu.dot_dimension_numbers<[1], [0], [0], [1], [0, 0, 1, 1], [], []>} : vector<328x128xbf16>, vector<128x128xbf16>, vector<328x128xf32> -> vector<328x128xf32>
    %c0_97 = arith.constant 0 : index
    %c0_98 = arith.constant 0 : index
    %78 = vector.load %arg6[%c0_97, %c0_98] : memref<328x128xf32, #tpu.memory_space<vmem>>, vector<328x128xf32>
    %79 = arith.addf %78, %77 : vector<328x128xf32>
    %c0_99 = arith.constant 0 : index
    %c0_100 = arith.constant 0 : index
    %80 = vector.load %arg6[%c0_99, %c0_100] : memref<328x128xf32, #tpu.memory_space<vmem>>, vector<328x128xf32>
    tpu.vector_store %arg6[%c0_99, %c0_100], %79 {strides = array<i32>} : memref<328x128xf32, #tpu.memory_space<vmem>>, vector<328x128xf32>,
    %c19_101 = arith.constant 19 : index
    %c0_102 = arith.constant 0 : index
    %81 = vector.load %arg5[%c19_101, %c0_102] : memref<368x128xf32, #tpu.memory_space<vmem>>, vector<328x128xf32>
    %82 = arith.truncf %81 : vector<328x128xf32> to vector<328x128xbf16>
    %c4_103 = arith.constant 4 : index
    %c0_104 = arith.constant 0 : index
    %c0_105 = arith.constant 0 : index
    %83 = vector.load %arg2[%c4_103, %c0_104, %c0_105] : memref<9x128x128xbf16, #tpu.memory_space<vmem>>, vector<1x128x128xbf16>
    %84 = vector.shape_cast %83 : vector<1x128x128xbf16> to vector<128x128xbf16>
    %cst_106 = arith.constant dense<0.000000e+00> : vector<328x128xf32>
    %85 = tpu.matmul %82, %84, %cst_106 {dimension_numbers = #tpu.dot_dimension_numbers<[1], [0], [0], [1], [0, 0, 1, 1], [], []>} : vector<328x128xbf16>, vector<128x128xbf16>, vector<328x128xf32> -> vector<328x128xf32>
    %c0_107 = arith.constant 0 : index
    %c0_108 = arith.constant 0 : index
    %86 = vector.load %arg6[%c0_107, %c0_108] : memref<328x128xf32, #tpu.memory_space<vmem>>, vector<328x128xf32>
    %87 = arith.addf %86, %85 : vector<328x128xf32>
    %c0_109 = arith.constant 0 : index
    %c0_110 = arith.constant 0 : index
    %88 = vector.load %arg6[%c0_109, %c0_110] : memref<328x128xf32, #tpu.memory_space<vmem>>, vector<328x128xf32>
    tpu.vector_store %arg6[%c0_109, %c0_110], %87 {strides = array<i32>} : memref<328x128xf32, #tpu.memory_space<vmem>>, vector<328x128xf32>,
    %c20 = arith.constant 20 : index
    %c0_111 = arith.constant 0 : index
    %89 = vector.load %arg5[%c20, %c0_111] : memref<368x128xf32, #tpu.memory_space<vmem>>, vector<328x128xf32>
    %90 = arith.truncf %89 : vector<328x128xf32> to vector<328x128xbf16>
    %c5_112 = arith.constant 5 : index
    %c0_113 = arith.constant 0 : index
    %c0_114 = arith.constant 0 : index
    %91 = vector.load %arg2[%c5_112, %c0_113, %c0_114] : memref<9x128x128xbf16, #tpu.memory_space<vmem>>, vector<1x128x128xbf16>
    %92 = vector.shape_cast %91 : vector<1x128x128xbf16> to vector<128x128xbf16>
    %cst_115 = arith.constant dense<0.000000e+00> : vector<328x128xf32>
    %93 = tpu.matmul %90, %92, %cst_115 {dimension_numbers = #tpu.dot_dimension_numbers<[1], [0], [0], [1], [0, 0, 1, 1], [], []>} : vector<328x128xbf16>, vector<128x128xbf16>, vector<328x128xf32> -> vector<328x128xf32>
    %c0_116 = arith.constant 0 : index
    %c0_117 = arith.constant 0 : index
    %94 = vector.load %arg6[%c0_116, %c0_117] : memref<328x128xf32, #tpu.memory_space<vmem>>, vector<328x128xf32>
    %95 = arith.addf %94, %93 : vector<328x128xf32>
    %c0_118 = arith.constant 0 : index
    %c0_119 = arith.constant 0 : index
    %96 = vector.load %arg6[%c0_118, %c0_119] : memref<328x128xf32, #tpu.memory_space<vmem>>, vector<328x128xf32>
    tpu.vector_store %arg6[%c0_118, %c0_119], %95 {strides = array<i32>} : memref<328x128xf32, #tpu.memory_space<vmem>>, vector<328x128xf32>,
    %c36 = arith.constant 36 : index
    %c0_120 = arith.constant 0 : index
    %97 = vector.load %arg5[%c36, %c0_120] : memref<368x128xf32, #tpu.memory_space<vmem>>, vector<328x128xf32>
    %98 = arith.truncf %97 : vector<328x128xf32> to vector<328x128xbf16>
    %c6_121 = arith.constant 6 : index
    %c0_122 = arith.constant 0 : index
    %c0_123 = arith.constant 0 : index
    %99 = vector.load %arg2[%c6_121, %c0_122, %c0_123] : memref<9x128x128xbf16, #tpu.memory_space<vmem>>, vector<1x128x128xbf16>
    %100 = vector.shape_cast %99 : vector<1x128x128xbf16> to vector<128x128xbf16>
    %cst_124 = arith.constant dense<0.000000e+00> : vector<328x128xf32>
    %101 = tpu.matmul %98, %100, %cst_124 {dimension_numbers = #tpu.dot_dimension_numbers<[1], [0], [0], [1], [0, 0, 1, 1], [], []>} : vector<328x128xbf16>, vector<128x128xbf16>, vector<328x128xf32> -> vector<328x128xf32>
    %c0_125 = arith.constant 0 : index
    %c0_126 = arith.constant 0 : index
    %102 = vector.load %arg6[%c0_125, %c0_126] : memref<328x128xf32, #tpu.memory_space<vmem>>, vector<328x128xf32>
    %103 = arith.addf %102, %101 : vector<328x128xf32>
    %c0_127 = arith.constant 0 : index
    %c0_128 = arith.constant 0 : index
    %104 = vector.load %arg6[%c0_127, %c0_128] : memref<328x128xf32, #tpu.memory_space<vmem>>, vector<328x128xf32>
    tpu.vector_store %arg6[%c0_127, %c0_128], %103 {strides = array<i32>} : memref<328x128xf32, #tpu.memory_space<vmem>>, vector<328x128xf32>,
    %c37_129 = arith.constant 37 : index
    %c0_130 = arith.constant 0 : index
    %105 = vector.load %arg5[%c37_129, %c0_130] : memref<368x128xf32, #tpu.memory_space<vmem>>, vector<328x128xf32>
    %106 = arith.truncf %105 : vector<328x128xf32> to vector<328x128xbf16>
    %c7_131 = arith.constant 7 : index
    %c0_132 = arith.constant 0 : index
    %c0_133 = arith.constant 0 : index
    %107 = vector.load %arg2[%c7_131, %c0_132, %c0_133] : memref<9x128x128xbf16, #tpu.memory_space<vmem>>, vector<1x128x128xbf16>
    %108 = vector.shape_cast %107 : vector<1x128x128xbf16> to vector<128x128xbf16>
    %cst_134 = arith.constant dense<0.000000e+00> : vector<328x128xf32>
    %109 = tpu.matmul %106, %108, %cst_134 {dimension_numbers = #tpu.dot_dimension_numbers<[1], [0], [0], [1], [0, 0, 1, 1], [], []>} : vector<328x128xbf16>, vector<128x128xbf16>, vector<328x128xf32> -> vector<328x128xf32>
    %c0_135 = arith.constant 0 : index
    %c0_136 = arith.constant 0 : index
    %110 = vector.load %arg6[%c0_135, %c0_136] : memref<328x128xf32, #tpu.memory_space<vmem>>, vector<328x128xf32>
    %111 = arith.addf %110, %109 : vector<328x128xf32>
    %c0_137 = arith.constant 0 : index
    %c0_138 = arith.constant 0 : index
    %112 = vector.load %arg6[%c0_137, %c0_138] : memref<328x128xf32, #tpu.memory_space<vmem>>, vector<328x128xf32>
    tpu.vector_store %arg6[%c0_137, %c0_138], %111 {strides = array<i32>} : memref<328x128xf32, #tpu.memory_space<vmem>>, vector<328x128xf32>,
    %c38 = arith.constant 38 : index
    %c0_139 = arith.constant 0 : index
    %113 = vector.load %arg5[%c38, %c0_139] : memref<368x128xf32, #tpu.memory_space<vmem>>, vector<328x128xf32>
    %114 = arith.truncf %113 : vector<328x128xf32> to vector<328x128xbf16>
    %c8_140 = arith.constant 8 : index
    %c0_141 = arith.constant 0 : index
    %c0_142 = arith.constant 0 : index
    %115 = vector.load %arg2[%c8_140, %c0_141, %c0_142] : memref<9x128x128xbf16, #tpu.memory_space<vmem>>, vector<1x128x128xbf16>
    %116 = vector.shape_cast %115 : vector<1x128x128xbf16> to vector<128x128xbf16>
    %cst_143 = arith.constant dense<0.000000e+00> : vector<328x128xf32>
    %117 = tpu.matmul %114, %116, %cst_143 {dimension_numbers = #tpu.dot_dimension_numbers<[1], [0], [0], [1], [0, 0, 1, 1], [], []>} : vector<328x128xbf16>, vector<128x128xbf16>, vector<328x128xf32> -> vector<328x128xf32>
    %c0_144 = arith.constant 0 : index
    %c0_145 = arith.constant 0 : index
    %118 = vector.load %arg6[%c0_144, %c0_145] : memref<328x128xf32, #tpu.memory_space<vmem>>, vector<328x128xf32>
    %119 = arith.addf %118, %117 : vector<328x128xf32>
    %c0_146 = arith.constant 0 : index
    %c0_147 = arith.constant 0 : index
    %120 = vector.load %arg6[%c0_146, %c0_147] : memref<328x128xf32, #tpu.memory_space<vmem>>, vector<328x128xf32>
    tpu.vector_store %arg6[%c0_146, %c0_147], %119 {strides = array<i32>} : memref<328x128xf32, #tpu.memory_space<vmem>>, vector<328x128xf32>,
    %c0_148 = arith.constant 0 : index
    %c0_149 = arith.constant 0 : index
    %121 = vector.load %arg6[%c0_148, %c0_149] : memref<328x128xf32, #tpu.memory_space<vmem>>, vector<16x128xf32>
    %c0_150 = arith.constant 0 : index
    %c0_151 = arith.constant 0 : index
    %c0_152 = arith.constant 0 : index
    %c0_153 = arith.constant 0 : index
    %122 = vector.load %arg3[%c0_150, %c0_151, %c0_152, %c0_153] : memref<1x16x16x128xf32, #tpu.memory_space<vmem>>, vector<1x1x16x128xf32>
    %123 = vector.shape_cast %122 : vector<1x1x16x128xf32> to vector<16x128xf32>
    %124 = vector.shape_cast %121 : vector<16x128xf32> to vector<1x1x16x128xf32>
    tpu.vector_store %arg3[%c0_150, %c0_151, %c0_152, %c0_153], %124 {strides = array<i32>} : memref<1x16x16x128xf32, #tpu.memory_space<vmem>>, vector<1x1x16x128xf32>,
    %c18_154 = arith.constant 18 : index
    %c0_155 = arith.constant 0 : index
    %125 = vector.load %arg6[%c18_154, %c0_155] : memref<328x128xf32, #tpu.memory_space<vmem>>, vector<16x128xf32>
    %c0_156 = arith.constant 0 : index
    %c1_157 = arith.constant 1 : index
    %c0_158 = arith.constant 0 : index
    %c0_159 = arith.constant 0 : index
    %126 = vector.load %arg3[%c0_156, %c1_157, %c0_158, %c0_159] : memref<1x16x16x128xf32, #tpu.memory_space<vmem>>, vector<1x1x16x128xf32>
    %127 = vector.shape_cast %126 : vector<1x1x16x128xf32> to vector<16x128xf32>
    %128 = vector.shape_cast %125 : vector<16x128xf32> to vector<1x1x16x128xf32>
    tpu.vector_store %arg3[%c0_156, %c1_157, %c0_158, %c0_159], %128 {strides = array<i32>} : memref<1x16x16x128xf32, #tpu.memory_space<vmem>>, vector<1x1x16x128xf32>,
    %c36_160 = arith.constant 36 : index
    %c0_161 = arith.constant 0 : index
    %129 = vector.load %arg6[%c36_160, %c0_161] : memref<328x128xf32, #tpu.memory_space<vmem>>, vector<16x128xf32>
    %c0_162 = arith.constant 0 : index
    %c2_163 = arith.constant 2 : index
    %c0_164 = arith.constant 0 : index
    %c0_165 = arith.constant 0 : index
    %130 = vector.load %arg3[%c0_162, %c2_163, %c0_164, %c0_165] : memref<1x16x16x128xf32, #tpu.memory_space<vmem>>, vector<1x1x16x128xf32>
    %131 = vector.shape_cast %130 : vector<1x1x16x128xf32> to vector<16x128xf32>
    %132 = vector.shape_cast %129 : vector<16x128xf32> to vector<1x1x16x128xf32>
    tpu.vector_store %arg3[%c0_162, %c2_163, %c0_164, %c0_165], %132 {strides = array<i32>} : memref<1x16x16x128xf32, #tpu.memory_space<vmem>>, vector<1x1x16x128xf32>,
    %c54 = arith.constant 54 : index
    %c0_166 = arith.constant 0 : index
    %133 = vector.load %arg6[%c54, %c0_166] : memref<328x128xf32, #tpu.memory_space<vmem>>, vector<16x128xf32>
    %c0_167 = arith.constant 0 : index
    %c3_168 = arith.constant 3 : index
    %c0_169 = arith.constant 0 : index
    %c0_170 = arith.constant 0 : index
    %134 = vector.load %arg3[%c0_167, %c3_168, %c0_169, %c0_170] : memref<1x16x16x128xf32, #tpu.memory_space<vmem>>, vector<1x1x16x128xf32>
    %135 = vector.shape_cast %134 : vector<1x1x16x128xf32> to vector<16x128xf32>
    %136 = vector.shape_cast %133 : vector<16x128xf32> to vector<1x1x16x128xf32>
    tpu.vector_store %arg3[%c0_167, %c3_168, %c0_169, %c0_170], %136 {strides = array<i32>} : memref<1x16x16x128xf32, #tpu.memory_space<vmem>>, vector<1x1x16x128xf32>,
    %c72 = arith.constant 72 : index
    %c0_171 = arith.constant 0 : index
    %137 = vector.load %arg6[%c72, %c0_171] : memref<328x128xf32, #tpu.memory_space<vmem>>, vector<16x128xf32>
    %c0_172 = arith.constant 0 : index
    %c4_173 = arith.constant 4 : index
    %c0_174 = arith.constant 0 : index
    %c0_175 = arith.constant 0 : index
    %138 = vector.load %arg3[%c0_172, %c4_173, %c0_174, %c0_175] : memref<1x16x16x128xf32, #tpu.memory_space<vmem>>, vector<1x1x16x128xf32>
    %139 = vector.shape_cast %138 : vector<1x1x16x128xf32> to vector<16x128xf32>
    %140 = vector.shape_cast %137 : vector<16x128xf32> to vector<1x1x16x128xf32>
    tpu.vector_store %arg3[%c0_172, %c4_173, %c0_174, %c0_175], %140 {strides = array<i32>} : memref<1x16x16x128xf32, #tpu.memory_space<vmem>>, vector<1x1x16x128xf32>,
    %c90 = arith.constant 90 : index
    %c0_176 = arith.constant 0 : index
    %141 = vector.load %arg6[%c90, %c0_176] : memref<328x128xf32, #tpu.memory_space<vmem>>, vector<16x128xf32>
    %c0_177 = arith.constant 0 : index
    %c5_178 = arith.constant 5 : index
    %c0_179 = arith.constant 0 : index
    %c0_180 = arith.constant 0 : index
    %142 = vector.load %arg3[%c0_177, %c5_178, %c0_179, %c0_180] : memref<1x16x16x128xf32, #tpu.memory_space<vmem>>, vector<1x1x16x128xf32>
    %143 = vector.shape_cast %142 : vector<1x1x16x128xf32> to vector<16x128xf32>
    %144 = vector.shape_cast %141 : vector<16x128xf32> to vector<1x1x16x128xf32>
    tpu.vector_store %arg3[%c0_177, %c5_178, %c0_179, %c0_180], %144 {strides = array<i32>} : memref<1x16x16x128xf32, #tpu.memory_space<vmem>>, vector<1x1x16x128xf32>,
    %c108 = arith.constant 108 : index
    %c0_181 = arith.constant 0 : index
    %145 = vector.load %arg6[%c108, %c0_181] : memref<328x128xf32, #tpu.memory_space<vmem>>, vector<16x128xf32>
    %c0_182 = arith.constant 0 : index
    %c6_183 = arith.constant 6 : index
    %c0_184 = arith.constant 0 : index
    %c0_185 = arith.constant 0 : index
    %146 = vector.load %arg3[%c0_182, %c6_183, %c0_184, %c0_185] : memref<1x16x16x128xf32, #tpu.memory_space<vmem>>, vector<1x1x16x128xf32>
    %147 = vector.shape_cast %146 : vector<1x1x16x128xf32> to vector<16x128xf32>
    %148 = vector.shape_cast %145 : vector<16x128xf32> to vector<1x1x16x128xf32>
    tpu.vector_store %arg3[%c0_182, %c6_183, %c0_184, %c0_185], %148 {strides = array<i32>} : memref<1x16x16x128xf32, #tpu.memory_space<vmem>>, vector<1x1x16x128xf32>,
    %c126 = arith.constant 126 : index
    %c0_186 = arith.constant 0 : index
    %149 = vector.load %arg6[%c126, %c0_186] : memref<328x128xf32, #tpu.memory_space<vmem>>, vector<16x128xf32>
    %c0_187 = arith.constant 0 : index
    %c7_188 = arith.constant 7 : index
    %c0_189 = arith.constant 0 : index
    %c0_190 = arith.constant 0 : index
    %150 = vector.load %arg3[%c0_187, %c7_188, %c0_189, %c0_190] : memref<1x16x16x128xf32, #tpu.memory_space<vmem>>, vector<1x1x16x128xf32>
    %151 = vector.shape_cast %150 : vector<1x1x16x128xf32> to vector<16x128xf32>
    %152 = vector.shape_cast %149 : vector<16x128xf32> to vector<1x1x16x128xf32>
    tpu.vector_store %arg3[%c0_187, %c7_188, %c0_189, %c0_190], %152 {strides = array<i32>} : memref<1x16x16x128xf32, #tpu.memory_space<vmem>>, vector<1x1x16x128xf32>,
    %c144 = arith.constant 144 : index
    %c0_191 = arith.constant 0 : index
    %153 = vector.load %arg6[%c144, %c0_191] : memref<328x128xf32, #tpu.memory_space<vmem>>, vector<16x128xf32>
    %c0_192 = arith.constant 0 : index
    %c8_193 = arith.constant 8 : index
    %c0_194 = arith.constant 0 : index
    %c0_195 = arith.constant 0 : index
    %154 = vector.load %arg3[%c0_192, %c8_193, %c0_194, %c0_195] : memref<1x16x16x128xf32, #tpu.memory_space<vmem>>, vector<1x1x16x128xf32>
    %155 = vector.shape_cast %154 : vector<1x1x16x128xf32> to vector<16x128xf32>
    %156 = vector.shape_cast %153 : vector<16x128xf32> to vector<1x1x16x128xf32>
    tpu.vector_store %arg3[%c0_192, %c8_193, %c0_194, %c0_195], %156 {strides = array<i32>} : memref<1x16x16x128xf32, #tpu.memory_space<vmem>>, vector<1x1x16x128xf32>,
    %c162 = arith.constant 162 : index
    %c0_196 = arith.constant 0 : index
    %157 = vector.load %arg6[%c162, %c0_196] : memref<328x128xf32, #tpu.memory_space<vmem>>, vector<16x128xf32>
    %c0_197 = arith.constant 0 : index
    %c9_198 = arith.constant 9 : index
    %c0_199 = arith.constant 0 : index
    %c0_200 = arith.constant 0 : index
    %158 = vector.load %arg3[%c0_197, %c9_198, %c0_199, %c0_200] : memref<1x16x16x128xf32, #tpu.memory_space<vmem>>, vector<1x1x16x128xf32>
    %159 = vector.shape_cast %158 : vector<1x1x16x128xf32> to vector<16x128xf32>
    %160 = vector.shape_cast %157 : vector<16x128xf32> to vector<1x1x16x128xf32>
    tpu.vector_store %arg3[%c0_197, %c9_198, %c0_199, %c0_200], %160 {strides = array<i32>} : memref<1x16x16x128xf32, #tpu.memory_space<vmem>>, vector<1x1x16x128xf32>,
    %c180 = arith.constant 180 : index
    %c0_201 = arith.constant 0 : index
    %161 = vector.load %arg6[%c180, %c0_201] : memref<328x128xf32, #tpu.memory_space<vmem>>, vector<16x128xf32>
    %c0_202 = arith.constant 0 : index
    %c10_203 = arith.constant 10 : index
    %c0_204 = arith.constant 0 : index
    %c0_205 = arith.constant 0 : index
    %162 = vector.load %arg3[%c0_202, %c10_203, %c0_204, %c0_205] : memref<1x16x16x128xf32, #tpu.memory_space<vmem>>, vector<1x1x16x128xf32>
    %163 = vector.shape_cast %162 : vector<1x1x16x128xf32> to vector<16x128xf32>
    %164 = vector.shape_cast %161 : vector<16x128xf32> to vector<1x1x16x128xf32>
    tpu.vector_store %arg3[%c0_202, %c10_203, %c0_204, %c0_205], %164 {strides = array<i32>} : memref<1x16x16x128xf32, #tpu.memory_space<vmem>>, vector<1x1x16x128xf32>,
    %c198 = arith.constant 198 : index
    %c0_206 = arith.constant 0 : index
    %165 = vector.load %arg6[%c198, %c0_206] : memref<328x128xf32, #tpu.memory_space<vmem>>, vector<16x128xf32>
    %c0_207 = arith.constant 0 : index
    %c11_208 = arith.constant 11 : index
    %c0_209 = arith.constant 0 : index
    %c0_210 = arith.constant 0 : index
    %166 = vector.load %arg3[%c0_207, %c11_208, %c0_209, %c0_210] : memref<1x16x16x128xf32, #tpu.memory_space<vmem>>, vector<1x1x16x128xf32>
    %167 = vector.shape_cast %166 : vector<1x1x16x128xf32> to vector<16x128xf32>
    %168 = vector.shape_cast %165 : vector<16x128xf32> to vector<1x1x16x128xf32>
    tpu.vector_store %arg3[%c0_207, %c11_208, %c0_209, %c0_210], %168 {strides = array<i32>} : memref<1x16x16x128xf32, #tpu.memory_space<vmem>>, vector<1x1x16x128xf32>,
    %c216 = arith.constant 216 : index
    %c0_211 = arith.constant 0 : index
    %169 = vector.load %arg6[%c216, %c0_211] : memref<328x128xf32, #tpu.memory_space<vmem>>, vector<16x128xf32>
    %c0_212 = arith.constant 0 : index
    %c12_213 = arith.constant 12 : index
    %c0_214 = arith.constant 0 : index
    %c0_215 = arith.constant 0 : index
    %170 = vector.load %arg3[%c0_212, %c12_213, %c0_214, %c0_215] : memref<1x16x16x128xf32, #tpu.memory_space<vmem>>, vector<1x1x16x128xf32>
    %171 = vector.shape_cast %170 : vector<1x1x16x128xf32> to vector<16x128xf32>
    %172 = vector.shape_cast %169 : vector<16x128xf32> to vector<1x1x16x128xf32>
    tpu.vector_store %arg3[%c0_212, %c12_213, %c0_214, %c0_215], %172 {strides = array<i32>} : memref<1x16x16x128xf32, #tpu.memory_space<vmem>>, vector<1x1x16x128xf32>,
    %c234 = arith.constant 234 : index
    %c0_216 = arith.constant 0 : index
    %173 = vector.load %arg6[%c234, %c0_216] : memref<328x128xf32, #tpu.memory_space<vmem>>, vector<16x128xf32>
    %c0_217 = arith.constant 0 : index
    %c13_218 = arith.constant 13 : index
    %c0_219 = arith.constant 0 : index
    %c0_220 = arith.constant 0 : index
    %174 = vector.load %arg3[%c0_217, %c13_218, %c0_219, %c0_220] : memref<1x16x16x128xf32, #tpu.memory_space<vmem>>, vector<1x1x16x128xf32>
    %175 = vector.shape_cast %174 : vector<1x1x16x128xf32> to vector<16x128xf32>
    %176 = vector.shape_cast %173 : vector<16x128xf32> to vector<1x1x16x128xf32>
    tpu.vector_store %arg3[%c0_217, %c13_218, %c0_219, %c0_220], %176 {strides = array<i32>} : memref<1x16x16x128xf32, #tpu.memory_space<vmem>>, vector<1x1x16x128xf32>,
    %c252 = arith.constant 252 : index
    %c0_221 = arith.constant 0 : index
    %177 = vector.load %arg6[%c252, %c0_221] : memref<328x128xf32, #tpu.memory_space<vmem>>, vector<16x128xf32>
    %c0_222 = arith.constant 0 : index
    %c14_223 = arith.constant 14 : index
    %c0_224 = arith.constant 0 : index
    %c0_225 = arith.constant 0 : index
    %178 = vector.load %arg3[%c0_222, %c14_223, %c0_224, %c0_225] : memref<1x16x16x128xf32, #tpu.memory_space<vmem>>, vector<1x1x16x128xf32>
    %179 = vector.shape_cast %178 : vector<1x1x16x128xf32> to vector<16x128xf32>
    %180 = vector.shape_cast %177 : vector<16x128xf32> to vector<1x1x16x128xf32>
    tpu.vector_store %arg3[%c0_222, %c14_223, %c0_224, %c0_225], %180 {strides = array<i32>} : memref<1x16x16x128xf32, #tpu.memory_space<vmem>>, vector<1x1x16x128xf32>,
    %c270 = arith.constant 270 : index
    %c0_226 = arith.constant 0 : index
    %181 = vector.load %arg6[%c270, %c0_226] : memref<328x128xf32, #tpu.memory_space<vmem>>, vector<16x128xf32>
    %c0_227 = arith.constant 0 : index
    %c15_228 = arith.constant 15 : index
    %c0_229 = arith.constant 0 : index
    %c0_230 = arith.constant 0 : index
    %182 = vector.load %arg3[%c0_227, %c15_228, %c0_229, %c0_230] : memref<1x16x16x128xf32, #tpu.memory_space<vmem>>, vector<1x1x16x128xf32>
    %183 = vector.shape_cast %182 : vector<1x1x16x128xf32> to vector<16x128xf32>
    %184 = vector.shape_cast %181 : vector<16x128xf32> to vector<1x1x16x128xf32>
    tpu.vector_store %arg3[%c0_227, %c15_228, %c0_229, %c0_230], %184 {strides = array<i32>} : memref<1x16x16x128xf32, #tpu.memory_space<vmem>>, vector<1x1x16x128xf32>,
    %c0_231 = arith.constant 0 : index
    %c0_232 = arith.constant 0 : index
    %c0_233 = arith.constant 0 : index
    %c0_234 = arith.constant 0 : index
    %185 = vector.load %arg3[%c0_231, %c0_232, %c0_233, %c0_234] : memref<1x16x16x128xf32, #tpu.memory_space<vmem>>, vector<1x16x16x128xf32>
    %186 = vector.shape_cast %185 : vector<1x16x16x128xf32> to vector<256x128xf32>
    %c0_235 = arith.constant 0 : index
    %c0_236 = arith.constant 0 : index
    %187 = vector.load %arg4[%c0_235, %c0_236] : memref<2x128xf32, #tpu.memory_space<vmem>>, vector<1x128xf32>
    %cst_237 = arith.constant dense<0.000000e+00> : vector<128xf32>
    %188 = vector.multi_reduction <add>, %186, %cst_237 [0] : vector<256x128xf32> to vector<128xf32>
    %189 = vector.shape_cast %188 : vector<128xf32> to vector<1x128xf32>
    %190 = arith.addf %187, %189 : vector<1x128xf32>
    %c0_238 = arith.constant 0 : index
    %c0_239 = arith.constant 0 : index
    %191 = vector.load %arg4[%c0_238, %c0_239] : memref<2x128xf32, #tpu.memory_space<vmem>>, vector<1x128xf32>
    tpu.vector_store %arg4[%c0_238, %c0_239], %190 {strides = array<i32>} : memref<2x128xf32, #tpu.memory_space<vmem>>, vector<1x128xf32>,
    %c1_240 = arith.constant 1 : index
    %c0_241 = arith.constant 0 : index
    %192 = vector.load %arg4[%c1_240, %c0_241] : memref<2x128xf32, #tpu.memory_space<vmem>>, vector<1x128xf32>
    %193 = arith.mulf %186, %186 : vector<256x128xf32>
    %cst_242 = arith.constant dense<0.000000e+00> : vector<128xf32>
    %194 = vector.multi_reduction <add>, %193, %cst_242 [0] : vector<256x128xf32> to vector<128xf32>
    %195 = vector.shape_cast %194 : vector<128xf32> to vector<1x128xf32>
    %196 = arith.addf %192, %195 : vector<1x128xf32>
    %c1_243 = arith.constant 1 : index
    %c0_244 = arith.constant 0 : index
    %197 = vector.load %arg4[%c1_243, %c0_244] : memref<2x128xf32, #tpu.memory_space<vmem>>, vector<1x128xf32>
    tpu.vector_store %arg4[%c1_243, %c0_244], %196 {strides = array<i32>} : memref<2x128xf32, #tpu.memory_space<vmem>>, vector<1x128xf32>,
    return
  }
  func.func @transform_0(%arg0: i32) -> (i32, i32, i32, i32) {
    %c0_i32 = arith.constant 0 : i32
    %c0_i32_0 = arith.constant 0 : i32
    %c0_i32_1 = arith.constant 0 : i32
    %c0_i32_2 = arith.constant 0 : i32
    return %arg0, %c0_i32, %c0_i32_0, %c0_i32_1 : i32, i32, i32, i32
  }
  func.func @transform_1(%arg0: i32) -> (i32, i32, i32) {
    %c0_i32 = arith.constant 0 : i32
    %c0_i32_0 = arith.constant 0 : i32
    %c0_i32_1 = arith.constant 0 : i32
    %c0_i32_2 = arith.constant 0 : i32
    return %c0_i32, %c0_i32_0, %c0_i32_1 : i32, i32, i32
  }
  func.func @transform_2(%arg0: i32) -> (i32, i32, i32, i32) {
    %c0_i32 = arith.constant 0 : i32
    %c0_i32_0 = arith.constant 0 : i32
    %c0_i32_1 = arith.constant 0 : i32
    %c0_i32_2 = arith.constant 0 : i32
    return %arg0, %c0_i32, %c0_i32_0, %c0_i32_1 : i32, i32, i32, i32
  }
  func.func @transform_3(%arg0: i32) -> (i32, i32) {
    %c0_i32 = arith.constant 0 : i32
    %c0_i32_0 = arith.constant 0 : i32
    %c0_i32_1 = arith.constant 0 : i32
    return %c0_i32, %c0_i32_0 : i32, i32
  }
}

module attributes {stable_mosaic.version = 11 : i64} {
  func.func @_conv3x3_stats_kernel(%arg0: i32, %arg1: memref<1x16x16x128xbf16, #tpu.memory_space<vmem>>, %arg2: memref<9x128x128xbf16, #tpu.memory_space<vmem>>, %arg3: memref<1x16x16x128xf32, #tpu.memory_space<vmem>>, %arg4: memref<2x128xf32, #tpu.memory_space<vmem>>, %arg5: memref<368x128xf32, #tpu.memory_space<vmem>>, %arg6: memref<328x128xf32, #tpu.memory_space<vmem>>) attributes {dimension_semantics = [#tpu.dimension_semantics<arbitrary>], iteration_bounds = array<i64: 2>, scalar_prefetch = 0 : i64, scratch_operands = 2 : i64, tpu.core_type = #tpu.core_type<tc>, window_params = [{transform_indices = @transform_0, window_bounds = array<i64: 1, 16, 16, 128>}, {pipeline_mode = #tpu.pipeline_mode<synchronous>, transform_indices = @transform_1, window_bounds = array<i64: 9, 128, 128>}, {transform_indices = @transform_2, window_bounds = array<i64: 1, 16, 16, 128>}, {pipeline_mode = #tpu.pipeline_mode<synchronous>, transform_indices = @transform_3, window_bounds = array<i64: 2, 128>}]} {
    %c0_i32 = arith.constant 0 : i32
    %0 = arith.cmpi eq, %arg0, %c0_i32 : i32
    %1 = arith.extui %0 : i1 to i32
    %c0_i32_0 = arith.constant 0 : i32
    %2 = arith.cmpi ne, %1, %c0_i32_0 : i32
    scf.if %2 {
      %cst_245 = arith.constant 0.000000e+00 : f32
      %214 = vector.broadcast %cst_245 : f32 to vector<368x128xf32>
      %c0_246 = arith.constant 0 : index
      %c0_247 = arith.constant 0 : index
      %215 = vector.load %arg5[%c0_246, %c0_247] : memref<368x128xf32, #tpu.memory_space<vmem>>, vector<368x128xf32>
      tpu.vector_store %arg5[%c0_246, %c0_247], %214 {strides = array<i32>} : memref<368x128xf32, #tpu.memory_space<vmem>>, vector<368x128xf32>,
      %cst_248 = arith.constant 0.000000e+00 : f32
      %216 = vector.broadcast %cst_248 : f32 to vector<2x128xf32>
      %c0_249 = arith.constant 0 : index
      %c0_250 = arith.constant 0 : index
      %217 = vector.load %arg4[%c0_249, %c0_250] : memref<2x128xf32, #tpu.memory_space<vmem>>, vector<2x128xf32>
      tpu.vector_store %arg4[%c0_249, %c0_250], %216 {strides = array<i32>} : memref<2x128xf32, #tpu.memory_space<vmem>>, vector<2x128xf32>,
    } else {
    }
    %c0 = arith.constant 0 : index
    %c0_1 = arith.constant 0 : index
    %c0_2 = arith.constant 0 : index
    %c0_3 = arith.constant 0 : index
    %3 = vector.load %arg1[%c0, %c0_1, %c0_2, %c0_3] : memref<1x16x16x128xbf16, #tpu.memory_space<vmem>>, vector<1x1x16x128xbf16>
    %4 = vector.shape_cast %3 : vector<1x1x16x128xbf16> to vector<16x128xbf16>
    %5 = arith.extf %4 : vector<16x128xbf16> to vector<16x128xf32>
    %c19 = arith.constant 19 : index
    %c0_4 = arith.constant 0 : index
    %6 = vector.load %arg5[%c19, %c0_4] : memref<368x128xf32, #tpu.memory_space<vmem>>, vector<16x128xf32>
    tpu.vector_store %arg5[%c19, %c0_4], %5 {strides = array<i32>} : memref<368x128xf32, #tpu.memory_space<vmem>>, vector<16x128xf32>,
    %c0_5 = arith.constant 0 : index
    %c1 = arith.constant 1 : index
    %c0_6 = arith.constant 0 : index
    %c0_7 = arith.constant 0 : index
    %7 = vector.load %arg1[%c0_5, %c1, %c0_6, %c0_7] : memref<1x16x16x128xbf16, #tpu.memory_space<vmem>>, vector<1x1x16x128xbf16>
    %8 = vector.shape_cast %7 : vector<1x1x16x128xbf16> to vector<16x128xbf16>
    %9 = arith.extf %8 : vector<16x128xbf16> to vector<16x128xf32>
    %c37 = arith.constant 37 : index
    %c0_8 = arith.constant 0 : index
    %10 = vector.load %arg5[%c37, %c0_8] : memref<368x128xf32, #tpu.memory_space<vmem>>, vector<16x128xf32>
    tpu.vector_store %arg5[%c37, %c0_8], %9 {strides = array<i32>} : memref<368x128xf32, #tpu.memory_space<vmem>>, vector<16x128xf32>,
    %c0_9 = arith.constant 0 : index
    %c2 = arith.constant 2 : index
    %c0_10 = arith.constant 0 : index
    %c0_11 = arith.constant 0 : index
    %11 = vector.load %arg1[%c0_9, %c2, %c0_10, %c0_11] : memref<1x16x16x128xbf16, #tpu.memory_space<vmem>>, vector<1x1x16x128xbf16>
    %12 = vector.shape_cast %11 : vector<1x1x16x128xbf16> to vector<16x128xbf16>
    %13 = arith.extf %12 : vector<16x128xbf16> to vector<16x128xf32>
    %c55 = arith.constant 55 : index
    %c0_12 = arith.constant 0 : index
    %14 = vector.load %arg5[%c55, %c0_12] : memref<368x128xf32, #tpu.memory_space<vmem>>, vector<16x128xf32>
    tpu.vector_store %arg5[%c55, %c0_12], %13 {strides = array<i32>} : memref<368x128xf32, #tpu.memory_space<vmem>>, vector<16x128xf32>,
    %c0_13 = arith.constant 0 : index
    %c3 = arith.constant 3 : index
    %c0_14 = arith.constant 0 : index
    %c0_15 = arith.constant 0 : index
    %15 = vector.load %arg1[%c0_13, %c3, %c0_14, %c0_15] : memref<1x16x16x128xbf16, #tpu.memory_space<vmem>>, vector<1x1x16x128xbf16>
    %16 = vector.shape_cast %15 : vector<1x1x16x128xbf16> to vector<16x128xbf16>
    %17 = arith.extf %16 : vector<16x128xbf16> to vector<16x128xf32>
    %c73 = arith.constant 73 : index
    %c0_16 = arith.constant 0 : index
    %18 = vector.load %arg5[%c73, %c0_16] : memref<368x128xf32, #tpu.memory_space<vmem>>, vector<16x128xf32>
    tpu.vector_store %arg5[%c73, %c0_16], %17 {strides = array<i32>} : memref<368x128xf32, #tpu.memory_space<vmem>>, vector<16x128xf32>,
    %c0_17 = arith.constant 0 : index
    %c4 = arith.constant 4 : index
    %c0_18 = arith.constant 0 : index
    %c0_19 = arith.constant 0 : index
    %19 = vector.load %arg1[%c0_17, %c4, %c0_18, %c0_19] : memref<1x16x16x128xbf16, #tpu.memory_space<vmem>>, vector<1x1x16x128xbf16>
    %20 = vector.shape_cast %19 : vector<1x1x16x128xbf16> to vector<16x128xbf16>
    %21 = arith.extf %20 : vector<16x128xbf16> to vector<16x128xf32>
    %c91 = arith.constant 91 : index
    %c0_20 = arith.constant 0 : index
    %22 = vector.load %arg5[%c91, %c0_20] : memref<368x128xf32, #tpu.memory_space<vmem>>, vector<16x128xf32>
    tpu.vector_store %arg5[%c91, %c0_20], %21 {strides = array<i32>} : memref<368x128xf32, #tpu.memory_space<vmem>>, vector<16x128xf32>,
    %c0_21 = arith.constant 0 : index
    %c5 = arith.constant 5 : index
    %c0_22 = arith.constant 0 : index
    %c0_23 = arith.constant 0 : index
    %23 = vector.load %arg1[%c0_21, %c5, %c0_22, %c0_23] : memref<1x16x16x128xbf16, #tpu.memory_space<vmem>>, vector<1x1x16x128xbf16>
    %24 = vector.shape_cast %23 : vector<1x1x16x128xbf16> to vector<16x128xbf16>
    %25 = arith.extf %24 : vector<16x128xbf16> to vector<16x128xf32>
    %c109 = arith.constant 109 : index
    %c0_24 = arith.constant 0 : index
    %26 = vector.load %arg5[%c109, %c0_24] : memref<368x128xf32, #tpu.memory_space<vmem>>, vector<16x128xf32>
    tpu.vector_store %arg5[%c109, %c0_24], %25 {strides = array<i32>} : memref<368x128xf32, #tpu.memory_space<vmem>>, vector<16x128xf32>,
    %c0_25 = arith.constant 0 : index
    %c6 = arith.constant 6 : index
    %c0_26 = arith.constant 0 : index
    %c0_27 = arith.constant 0 : index
    %27 = vector.load %arg1[%c0_25, %c6, %c0_26, %c0_27] : memref<1x16x16x128xbf16, #tpu.memory_space<vmem>>, vector<1x1x16x128xbf16>
    %28 = vector.shape_cast %27 : vector<1x1x16x128xbf16> to vector<16x128xbf16>
    %29 = arith.extf %28 : vector<16x128xbf16> to vector<16x128xf32>
    %c127 = arith.constant 127 : index
    %c0_28 = arith.constant 0 : index
    %30 = vector.load %arg5[%c127, %c0_28] : memref<368x128xf32, #tpu.memory_space<vmem>>, vector<16x128xf32>
    tpu.vector_store %arg5[%c127, %c0_28], %29 {strides = array<i32>} : memref<368x128xf32, #tpu.memory_space<vmem>>, vector<16x128xf32>,
    %c0_29 = arith.constant 0 : index
    %c7 = arith.constant 7 : index
    %c0_30 = arith.constant 0 : index
    %c0_31 = arith.constant 0 : index
    %31 = vector.load %arg1[%c0_29, %c7, %c0_30, %c0_31] : memref<1x16x16x128xbf16, #tpu.memory_space<vmem>>, vector<1x1x16x128xbf16>
    %32 = vector.shape_cast %31 : vector<1x1x16x128xbf16> to vector<16x128xbf16>
    %33 = arith.extf %32 : vector<16x128xbf16> to vector<16x128xf32>
    %c145 = arith.constant 145 : index
    %c0_32 = arith.constant 0 : index
    %34 = vector.load %arg5[%c145, %c0_32] : memref<368x128xf32, #tpu.memory_space<vmem>>, vector<16x128xf32>
    tpu.vector_store %arg5[%c145, %c0_32], %33 {strides = array<i32>} : memref<368x128xf32, #tpu.memory_space<vmem>>, vector<16x128xf32>,
    %c0_33 = arith.constant 0 : index
    %c8 = arith.constant 8 : index
    %c0_34 = arith.constant 0 : index
    %c0_35 = arith.constant 0 : index
    %35 = vector.load %arg1[%c0_33, %c8, %c0_34, %c0_35] : memref<1x16x16x128xbf16, #tpu.memory_space<vmem>>, vector<1x1x16x128xbf16>
    %36 = vector.shape_cast %35 : vector<1x1x16x128xbf16> to vector<16x128xbf16>
    %37 = arith.extf %36 : vector<16x128xbf16> to vector<16x128xf32>
    %c163 = arith.constant 163 : index
    %c0_36 = arith.constant 0 : index
    %38 = vector.load %arg5[%c163, %c0_36] : memref<368x128xf32, #tpu.memory_space<vmem>>, vector<16x128xf32>
    tpu.vector_store %arg5[%c163, %c0_36], %37 {strides = array<i32>} : memref<368x128xf32, #tpu.memory_space<vmem>>, vector<16x128xf32>,
    %c0_37 = arith.constant 0 : index
    %c9 = arith.constant 9 : index
    %c0_38 = arith.constant 0 : index
    %c0_39 = arith.constant 0 : index
    %39 = vector.load %arg1[%c0_37, %c9, %c0_38, %c0_39] : memref<1x16x16x128xbf16, #tpu.memory_space<vmem>>, vector<1x1x16x128xbf16>
    %40 = vector.shape_cast %39 : vector<1x1x16x128xbf16> to vector<16x128xbf16>
    %41 = arith.extf %40 : vector<16x128xbf16> to vector<16x128xf32>
    %c181 = arith.constant 181 : index
    %c0_40 = arith.constant 0 : index
    %42 = vector.load %arg5[%c181, %c0_40] : memref<368x128xf32, #tpu.memory_space<vmem>>, vector<16x128xf32>
    tpu.vector_store %arg5[%c181, %c0_40], %41 {strides = array<i32>} : memref<368x128xf32, #tpu.memory_space<vmem>>, vector<16x128xf32>,
    %c0_41 = arith.constant 0 : index
    %c10 = arith.constant 10 : index
    %c0_42 = arith.constant 0 : index
    %c0_43 = arith.constant 0 : index
    %43 = vector.load %arg1[%c0_41, %c10, %c0_42, %c0_43] : memref<1x16x16x128xbf16, #tpu.memory_space<vmem>>, vector<1x1x16x128xbf16>
    %44 = vector.shape_cast %43 : vector<1x1x16x128xbf16> to vector<16x128xbf16>
    %45 = arith.extf %44 : vector<16x128xbf16> to vector<16x128xf32>
    %c199 = arith.constant 199 : index
    %c0_44 = arith.constant 0 : index
    %46 = vector.load %arg5[%c199, %c0_44] : memref<368x128xf32, #tpu.memory_space<vmem>>, vector<16x128xf32>
    tpu.vector_store %arg5[%c199, %c0_44], %45 {strides = array<i32>} : memref<368x128xf32, #tpu.memory_space<vmem>>, vector<16x128xf32>,
    %c0_45 = arith.constant 0 : index
    %c11 = arith.constant 11 : index
    %c0_46 = arith.constant 0 : index
    %c0_47 = arith.constant 0 : index
    %47 = vector.load %arg1[%c0_45, %c11, %c0_46, %c0_47] : memref<1x16x16x128xbf16, #tpu.memory_space<vmem>>, vector<1x1x16x128xbf16>
    %48 = vector.shape_cast %47 : vector<1x1x16x128xbf16> to vector<16x128xbf16>
    %49 = arith.extf %48 : vector<16x128xbf16> to vector<16x128xf32>
    %c217 = arith.constant 217 : index
    %c0_48 = arith.constant 0 : index
    %50 = vector.load %arg5[%c217, %c0_48] : memref<368x128xf32, #tpu.memory_space<vmem>>, vector<16x128xf32>
    tpu.vector_store %arg5[%c217, %c0_48], %49 {strides = array<i32>} : memref<368x128xf32, #tpu.memory_space<vmem>>, vector<16x128xf32>,
    %c0_49 = arith.constant 0 : index
    %c12 = arith.constant 12 : index
    %c0_50 = arith.constant 0 : index
    %c0_51 = arith.constant 0 : index
    %51 = vector.load %arg1[%c0_49, %c12, %c0_50, %c0_51] : memref<1x16x16x128xbf16, #tpu.memory_space<vmem>>, vector<1x1x16x128xbf16>
    %52 = vector.shape_cast %51 : vector<1x1x16x128xbf16> to vector<16x128xbf16>
    %53 = arith.extf %52 : vector<16x128xbf16> to vector<16x128xf32>
    %c235 = arith.constant 235 : index
    %c0_52 = arith.constant 0 : index
    %54 = vector.load %arg5[%c235, %c0_52] : memref<368x128xf32, #tpu.memory_space<vmem>>, vector<16x128xf32>
    tpu.vector_store %arg5[%c235, %c0_52], %53 {strides = array<i32>} : memref<368x128xf32, #tpu.memory_space<vmem>>, vector<16x128xf32>,
    %c0_53 = arith.constant 0 : index
    %c13 = arith.constant 13 : index
    %c0_54 = arith.constant 0 : index
    %c0_55 = arith.constant 0 : index
    %55 = vector.load %arg1[%c0_53, %c13, %c0_54, %c0_55] : memref<1x16x16x128xbf16, #tpu.memory_space<vmem>>, vector<1x1x16x128xbf16>
    %56 = vector.shape_cast %55 : vector<1x1x16x128xbf16> to vector<16x128xbf16>
    %57 = arith.extf %56 : vector<16x128xbf16> to vector<16x128xf32>
    %c253 = arith.constant 253 : index
    %c0_56 = arith.constant 0 : index
    %58 = vector.load %arg5[%c253, %c0_56] : memref<368x128xf32, #tpu.memory_space<vmem>>, vector<16x128xf32>
    tpu.vector_store %arg5[%c253, %c0_56], %57 {strides = array<i32>} : memref<368x128xf32, #tpu.memory_space<vmem>>, vector<16x128xf32>,
    %c0_57 = arith.constant 0 : index
    %c14 = arith.constant 14 : index
    %c0_58 = arith.constant 0 : index
    %c0_59 = arith.constant 0 : index
    %59 = vector.load %arg1[%c0_57, %c14, %c0_58, %c0_59] : memref<1x16x16x128xbf16, #tpu.memory_space<vmem>>, vector<1x1x16x128xbf16>
    %60 = vector.shape_cast %59 : vector<1x1x16x128xbf16> to vector<16x128xbf16>
    %61 = arith.extf %60 : vector<16x128xbf16> to vector<16x128xf32>
    %c271 = arith.constant 271 : index
    %c0_60 = arith.constant 0 : index
    %62 = vector.load %arg5[%c271, %c0_60] : memref<368x128xf32, #tpu.memory_space<vmem>>, vector<16x128xf32>
    tpu.vector_store %arg5[%c271, %c0_60], %61 {strides = array<i32>} : memref<368x128xf32, #tpu.memory_space<vmem>>, vector<16x128xf32>,
    %c0_61 = arith.constant 0 : index
    %c15 = arith.constant 15 : index
    %c0_62 = arith.constant 0 : index
    %c0_63 = arith.constant 0 : index
    %63 = vector.load %arg1[%c0_61, %c15, %c0_62, %c0_63] : memref<1x16x16x128xbf16, #tpu.memory_space<vmem>>, vector<1x1x16x128xbf16>
    %64 = vector.shape_cast %63 : vector<1x1x16x128xbf16> to vector<16x128xbf16>
    %65 = arith.extf %64 : vector<16x128xbf16> to vector<16x128xf32>
    %c289 = arith.constant 289 : index
    %c0_64 = arith.constant 0 : index
    %66 = vector.load %arg5[%c289, %c0_64] : memref<368x128xf32, #tpu.memory_space<vmem>>, vector<16x128xf32>
    tpu.vector_store %arg5[%c289, %c0_64], %65 {strides = array<i32>} : memref<368x128xf32, #tpu.memory_space<vmem>>, vector<16x128xf32>,
    %c0_65 = arith.constant 0 : index
    %c0_66 = arith.constant 0 : index
    %67 = vector.load %arg5[%c0_65, %c0_66] : memref<368x128xf32, #tpu.memory_space<vmem>>, vector<328x128xf32>
    %68 = arith.truncf %67 : vector<328x128xf32> to vector<328x128xbf16>
    %c0_67 = arith.constant 0 : index
    %c0_68 = arith.constant 0 : index
    %c0_69 = arith.constant 0 : index
    %69 = vector.load %arg2[%c0_67, %c0_68, %c0_69] : memref<9x128x128xbf16, #tpu.memory_space<vmem>>, vector<1x128x128xbf16>
    %70 = vector.shape_cast %69 : vector<1x128x128xbf16> to vector<128x128xbf16>
    %cst = arith.constant dense<0.000000e+00> : vector<328x128xf32>
    %71 = tpu.matmul %68, %70, %cst {dimension_numbers = #tpu.dot_dimension_numbers<[1], [0], [0], [1], [0, 0, 1, 1], [], []>} : vector<328x128xbf16>, vector<128x128xbf16>, vector<328x128xf32> -> vector<328x128xf32>
    %c0_70 = arith.constant 0 : index
    %c0_71 = arith.constant 0 : index
    %72 = vector.load %arg6[%c0_70, %c0_71] : memref<328x128xf32, #tpu.memory_space<vmem>>, vector<328x128xf32>
    tpu.vector_store %arg6[%c0_70, %c0_71], %71 {strides = array<i32>} : memref<328x128xf32, #tpu.memory_space<vmem>>, vector<328x128xf32>,
    %c1_72 = arith.constant 1 : index
    %c0_73 = arith.constant 0 : index
    %73 = vector.load %arg5[%c1_72, %c0_73] : memref<368x128xf32, #tpu.memory_space<vmem>>, vector<328x128xf32>
    %74 = arith.truncf %73 : vector<328x128xf32> to vector<328x128xbf16>
    %c1_74 = arith.constant 1 : index
    %c0_75 = arith.constant 0 : index
    %c0_76 = arith.constant 0 : index
    %75 = vector.load %arg2[%c1_74, %c0_75, %c0_76] : memref<9x128x128xbf16, #tpu.memory_space<vmem>>, vector<1x128x128xbf16>
    %76 = vector.shape_cast %75 : vector<1x128x128xbf16> to vector<128x128xbf16>
    %cst_77 = arith.constant dense<0.000000e+00> : vector<328x128xf32>
    %77 = tpu.matmul %74, %76, %cst_77 {dimension_numbers = #tpu.dot_dimension_numbers<[1], [0], [0], [1], [0, 0, 1, 1], [], []>} : vector<328x128xbf16>, vector<128x128xbf16>, vector<328x128xf32> -> vector<328x128xf32>
    %c0_78 = arith.constant 0 : index
    %c0_79 = arith.constant 0 : index
    %78 = vector.load %arg6[%c0_78, %c0_79] : memref<328x128xf32, #tpu.memory_space<vmem>>, vector<328x128xf32>
    %79 = arith.addf %78, %77 : vector<328x128xf32>
    %c0_80 = arith.constant 0 : index
    %c0_81 = arith.constant 0 : index
    %80 = vector.load %arg6[%c0_80, %c0_81] : memref<328x128xf32, #tpu.memory_space<vmem>>, vector<328x128xf32>
    tpu.vector_store %arg6[%c0_80, %c0_81], %79 {strides = array<i32>} : memref<328x128xf32, #tpu.memory_space<vmem>>, vector<328x128xf32>,
    %c2_82 = arith.constant 2 : index
    %c0_83 = arith.constant 0 : index
    %81 = vector.load %arg5[%c2_82, %c0_83] : memref<368x128xf32, #tpu.memory_space<vmem>>, vector<328x128xf32>
    %82 = arith.truncf %81 : vector<328x128xf32> to vector<328x128xbf16>
    %c2_84 = arith.constant 2 : index
    %c0_85 = arith.constant 0 : index
    %c0_86 = arith.constant 0 : index
    %83 = vector.load %arg2[%c2_84, %c0_85, %c0_86] : memref<9x128x128xbf16, #tpu.memory_space<vmem>>, vector<1x128x128xbf16>
    %84 = vector.shape_cast %83 : vector<1x128x128xbf16> to vector<128x128xbf16>
    %cst_87 = arith.constant dense<0.000000e+00> : vector<328x128xf32>
    %85 = tpu.matmul %82, %84, %cst_87 {dimension_numbers = #tpu.dot_dimension_numbers<[1], [0], [0], [1], [0, 0, 1, 1], [], []>} : vector<328x128xbf16>, vector<128x128xbf16>, vector<328x128xf32> -> vector<328x128xf32>
    %c0_88 = arith.constant 0 : index
    %c0_89 = arith.constant 0 : index
    %86 = vector.load %arg6[%c0_88, %c0_89] : memref<328x128xf32, #tpu.memory_space<vmem>>, vector<328x128xf32>
    %87 = arith.addf %86, %85 : vector<328x128xf32>
    %c0_90 = arith.constant 0 : index
    %c0_91 = arith.constant 0 : index
    %88 = vector.load %arg6[%c0_90, %c0_91] : memref<328x128xf32, #tpu.memory_space<vmem>>, vector<328x128xf32>
    tpu.vector_store %arg6[%c0_90, %c0_91], %87 {strides = array<i32>} : memref<328x128xf32, #tpu.memory_space<vmem>>, vector<328x128xf32>,
    %c18 = arith.constant 18 : index
    %c0_92 = arith.constant 0 : index
    %89 = vector.load %arg5[%c18, %c0_92] : memref<368x128xf32, #tpu.memory_space<vmem>>, vector<328x128xf32>
    %90 = arith.truncf %89 : vector<328x128xf32> to vector<328x128xbf16>
    %c3_93 = arith.constant 3 : index
    %c0_94 = arith.constant 0 : index
    %c0_95 = arith.constant 0 : index
    %91 = vector.load %arg2[%c3_93, %c0_94, %c0_95] : memref<9x128x128xbf16, #tpu.memory_space<vmem>>, vector<1x128x128xbf16>
    %92 = vector.shape_cast %91 : vector<1x128x128xbf16> to vector<128x128xbf16>
    %cst_96 = arith.constant dense<0.000000e+00> : vector<328x128xf32>
    %93 = tpu.matmul %90, %92, %cst_96 {dimension_numbers = #tpu.dot_dimension_numbers<[1], [0], [0], [1], [0, 0, 1, 1], [], []>} : vector<328x128xbf16>, vector<128x128xbf16>, vector<328x128xf32> -> vector<328x128xf32>
    %c0_97 = arith.constant 0 : index
    %c0_98 = arith.constant 0 : index
    %94 = vector.load %arg6[%c0_97, %c0_98] : memref<328x128xf32, #tpu.memory_space<vmem>>, vector<328x128xf32>
    %95 = arith.addf %94, %93 : vector<328x128xf32>
    %c0_99 = arith.constant 0 : index
    %c0_100 = arith.constant 0 : index
    %96 = vector.load %arg6[%c0_99, %c0_100] : memref<328x128xf32, #tpu.memory_space<vmem>>, vector<328x128xf32>
    tpu.vector_store %arg6[%c0_99, %c0_100], %95 {strides = array<i32>} : memref<328x128xf32, #tpu.memory_space<vmem>>, vector<328x128xf32>,
    %c19_101 = arith.constant 19 : index
    %c0_102 = arith.constant 0 : index
    %97 = vector.load %arg5[%c19_101, %c0_102] : memref<368x128xf32, #tpu.memory_space<vmem>>, vector<328x128xf32>
    %98 = arith.truncf %97 : vector<328x128xf32> to vector<328x128xbf16>
    %c4_103 = arith.constant 4 : index
    %c0_104 = arith.constant 0 : index
    %c0_105 = arith.constant 0 : index
    %99 = vector.load %arg2[%c4_103, %c0_104, %c0_105] : memref<9x128x128xbf16, #tpu.memory_space<vmem>>, vector<1x128x128xbf16>
    %100 = vector.shape_cast %99 : vector<1x128x128xbf16> to vector<128x128xbf16>
    %cst_106 = arith.constant dense<0.000000e+00> : vector<328x128xf32>
    %101 = tpu.matmul %98, %100, %cst_106 {dimension_numbers = #tpu.dot_dimension_numbers<[1], [0], [0], [1], [0, 0, 1, 1], [], []>} : vector<328x128xbf16>, vector<128x128xbf16>, vector<328x128xf32> -> vector<328x128xf32>
    %c0_107 = arith.constant 0 : index
    %c0_108 = arith.constant 0 : index
    %102 = vector.load %arg6[%c0_107, %c0_108] : memref<328x128xf32, #tpu.memory_space<vmem>>, vector<328x128xf32>
    %103 = arith.addf %102, %101 : vector<328x128xf32>
    %c0_109 = arith.constant 0 : index
    %c0_110 = arith.constant 0 : index
    %104 = vector.load %arg6[%c0_109, %c0_110] : memref<328x128xf32, #tpu.memory_space<vmem>>, vector<328x128xf32>
    tpu.vector_store %arg6[%c0_109, %c0_110], %103 {strides = array<i32>} : memref<328x128xf32, #tpu.memory_space<vmem>>, vector<328x128xf32>,
    %c20 = arith.constant 20 : index
    %c0_111 = arith.constant 0 : index
    %105 = vector.load %arg5[%c20, %c0_111] : memref<368x128xf32, #tpu.memory_space<vmem>>, vector<328x128xf32>
    %106 = arith.truncf %105 : vector<328x128xf32> to vector<328x128xbf16>
    %c5_112 = arith.constant 5 : index
    %c0_113 = arith.constant 0 : index
    %c0_114 = arith.constant 0 : index
    %107 = vector.load %arg2[%c5_112, %c0_113, %c0_114] : memref<9x128x128xbf16, #tpu.memory_space<vmem>>, vector<1x128x128xbf16>
    %108 = vector.shape_cast %107 : vector<1x128x128xbf16> to vector<128x128xbf16>
    %cst_115 = arith.constant dense<0.000000e+00> : vector<328x128xf32>
    %109 = tpu.matmul %106, %108, %cst_115 {dimension_numbers = #tpu.dot_dimension_numbers<[1], [0], [0], [1], [0, 0, 1, 1], [], []>} : vector<328x128xbf16>, vector<128x128xbf16>, vector<328x128xf32> -> vector<328x128xf32>
    %c0_116 = arith.constant 0 : index
    %c0_117 = arith.constant 0 : index
    %110 = vector.load %arg6[%c0_116, %c0_117] : memref<328x128xf32, #tpu.memory_space<vmem>>, vector<328x128xf32>
    %111 = arith.addf %110, %109 : vector<328x128xf32>
    %c0_118 = arith.constant 0 : index
    %c0_119 = arith.constant 0 : index
    %112 = vector.load %arg6[%c0_118, %c0_119] : memref<328x128xf32, #tpu.memory_space<vmem>>, vector<328x128xf32>
    tpu.vector_store %arg6[%c0_118, %c0_119], %111 {strides = array<i32>} : memref<328x128xf32, #tpu.memory_space<vmem>>, vector<328x128xf32>,
    %c36 = arith.constant 36 : index
    %c0_120 = arith.constant 0 : index
    %113 = vector.load %arg5[%c36, %c0_120] : memref<368x128xf32, #tpu.memory_space<vmem>>, vector<328x128xf32>
    %114 = arith.truncf %113 : vector<328x128xf32> to vector<328x128xbf16>
    %c6_121 = arith.constant 6 : index
    %c0_122 = arith.constant 0 : index
    %c0_123 = arith.constant 0 : index
    %115 = vector.load %arg2[%c6_121, %c0_122, %c0_123] : memref<9x128x128xbf16, #tpu.memory_space<vmem>>, vector<1x128x128xbf16>
    %116 = vector.shape_cast %115 : vector<1x128x128xbf16> to vector<128x128xbf16>
    %cst_124 = arith.constant dense<0.000000e+00> : vector<328x128xf32>
    %117 = tpu.matmul %114, %116, %cst_124 {dimension_numbers = #tpu.dot_dimension_numbers<[1], [0], [0], [1], [0, 0, 1, 1], [], []>} : vector<328x128xbf16>, vector<128x128xbf16>, vector<328x128xf32> -> vector<328x128xf32>
    %c0_125 = arith.constant 0 : index
    %c0_126 = arith.constant 0 : index
    %118 = vector.load %arg6[%c0_125, %c0_126] : memref<328x128xf32, #tpu.memory_space<vmem>>, vector<328x128xf32>
    %119 = arith.addf %118, %117 : vector<328x128xf32>
    %c0_127 = arith.constant 0 : index
    %c0_128 = arith.constant 0 : index
    %120 = vector.load %arg6[%c0_127, %c0_128] : memref<328x128xf32, #tpu.memory_space<vmem>>, vector<328x128xf32>
    tpu.vector_store %arg6[%c0_127, %c0_128], %119 {strides = array<i32>} : memref<328x128xf32, #tpu.memory_space<vmem>>, vector<328x128xf32>,
    %c37_129 = arith.constant 37 : index
    %c0_130 = arith.constant 0 : index
    %121 = vector.load %arg5[%c37_129, %c0_130] : memref<368x128xf32, #tpu.memory_space<vmem>>, vector<328x128xf32>
    %122 = arith.truncf %121 : vector<328x128xf32> to vector<328x128xbf16>
    %c7_131 = arith.constant 7 : index
    %c0_132 = arith.constant 0 : index
    %c0_133 = arith.constant 0 : index
    %123 = vector.load %arg2[%c7_131, %c0_132, %c0_133] : memref<9x128x128xbf16, #tpu.memory_space<vmem>>, vector<1x128x128xbf16>
    %124 = vector.shape_cast %123 : vector<1x128x128xbf16> to vector<128x128xbf16>
    %cst_134 = arith.constant dense<0.000000e+00> : vector<328x128xf32>
    %125 = tpu.matmul %122, %124, %cst_134 {dimension_numbers = #tpu.dot_dimension_numbers<[1], [0], [0], [1], [0, 0, 1, 1], [], []>} : vector<328x128xbf16>, vector<128x128xbf16>, vector<328x128xf32> -> vector<328x128xf32>
    %c0_135 = arith.constant 0 : index
    %c0_136 = arith.constant 0 : index
    %126 = vector.load %arg6[%c0_135, %c0_136] : memref<328x128xf32, #tpu.memory_space<vmem>>, vector<328x128xf32>
    %127 = arith.addf %126, %125 : vector<328x128xf32>
    %c0_137 = arith.constant 0 : index
    %c0_138 = arith.constant 0 : index
    %128 = vector.load %arg6[%c0_137, %c0_138] : memref<328x128xf32, #tpu.memory_space<vmem>>, vector<328x128xf32>
    tpu.vector_store %arg6[%c0_137, %c0_138], %127 {strides = array<i32>} : memref<328x128xf32, #tpu.memory_space<vmem>>, vector<328x128xf32>,
    %c38 = arith.constant 38 : index
    %c0_139 = arith.constant 0 : index
    %129 = vector.load %arg5[%c38, %c0_139] : memref<368x128xf32, #tpu.memory_space<vmem>>, vector<328x128xf32>
    %130 = arith.truncf %129 : vector<328x128xf32> to vector<328x128xbf16>
    %c8_140 = arith.constant 8 : index
    %c0_141 = arith.constant 0 : index
    %c0_142 = arith.constant 0 : index
    %131 = vector.load %arg2[%c8_140, %c0_141, %c0_142] : memref<9x128x128xbf16, #tpu.memory_space<vmem>>, vector<1x128x128xbf16>
    %132 = vector.shape_cast %131 : vector<1x128x128xbf16> to vector<128x128xbf16>
    %cst_143 = arith.constant dense<0.000000e+00> : vector<328x128xf32>
    %133 = tpu.matmul %130, %132, %cst_143 {dimension_numbers = #tpu.dot_dimension_numbers<[1], [0], [0], [1], [0, 0, 1, 1], [], []>} : vector<328x128xbf16>, vector<128x128xbf16>, vector<328x128xf32> -> vector<328x128xf32>
    %c0_144 = arith.constant 0 : index
    %c0_145 = arith.constant 0 : index
    %134 = vector.load %arg6[%c0_144, %c0_145] : memref<328x128xf32, #tpu.memory_space<vmem>>, vector<328x128xf32>
    %135 = arith.addf %134, %133 : vector<328x128xf32>
    %c0_146 = arith.constant 0 : index
    %c0_147 = arith.constant 0 : index
    %136 = vector.load %arg6[%c0_146, %c0_147] : memref<328x128xf32, #tpu.memory_space<vmem>>, vector<328x128xf32>
    tpu.vector_store %arg6[%c0_146, %c0_147], %135 {strides = array<i32>} : memref<328x128xf32, #tpu.memory_space<vmem>>, vector<328x128xf32>,
    %c0_148 = arith.constant 0 : index
    %c0_149 = arith.constant 0 : index
    %137 = vector.load %arg6[%c0_148, %c0_149] : memref<328x128xf32, #tpu.memory_space<vmem>>, vector<16x128xf32>
    %c0_150 = arith.constant 0 : index
    %c0_151 = arith.constant 0 : index
    %c0_152 = arith.constant 0 : index
    %c0_153 = arith.constant 0 : index
    %138 = vector.load %arg3[%c0_150, %c0_151, %c0_152, %c0_153] : memref<1x16x16x128xf32, #tpu.memory_space<vmem>>, vector<1x1x16x128xf32>
    %139 = vector.shape_cast %138 : vector<1x1x16x128xf32> to vector<16x128xf32>
    %140 = vector.shape_cast %137 : vector<16x128xf32> to vector<1x1x16x128xf32>
    tpu.vector_store %arg3[%c0_150, %c0_151, %c0_152, %c0_153], %140 {strides = array<i32>} : memref<1x16x16x128xf32, #tpu.memory_space<vmem>>, vector<1x1x16x128xf32>,
    %c18_154 = arith.constant 18 : index
    %c0_155 = arith.constant 0 : index
    %141 = vector.load %arg6[%c18_154, %c0_155] : memref<328x128xf32, #tpu.memory_space<vmem>>, vector<16x128xf32>
    %c0_156 = arith.constant 0 : index
    %c1_157 = arith.constant 1 : index
    %c0_158 = arith.constant 0 : index
    %c0_159 = arith.constant 0 : index
    %142 = vector.load %arg3[%c0_156, %c1_157, %c0_158, %c0_159] : memref<1x16x16x128xf32, #tpu.memory_space<vmem>>, vector<1x1x16x128xf32>
    %143 = vector.shape_cast %142 : vector<1x1x16x128xf32> to vector<16x128xf32>
    %144 = vector.shape_cast %141 : vector<16x128xf32> to vector<1x1x16x128xf32>
    tpu.vector_store %arg3[%c0_156, %c1_157, %c0_158, %c0_159], %144 {strides = array<i32>} : memref<1x16x16x128xf32, #tpu.memory_space<vmem>>, vector<1x1x16x128xf32>,
    %c36_160 = arith.constant 36 : index
    %c0_161 = arith.constant 0 : index
    %145 = vector.load %arg6[%c36_160, %c0_161] : memref<328x128xf32, #tpu.memory_space<vmem>>, vector<16x128xf32>
    %c0_162 = arith.constant 0 : index
    %c2_163 = arith.constant 2 : index
    %c0_164 = arith.constant 0 : index
    %c0_165 = arith.constant 0 : index
    %146 = vector.load %arg3[%c0_162, %c2_163, %c0_164, %c0_165] : memref<1x16x16x128xf32, #tpu.memory_space<vmem>>, vector<1x1x16x128xf32>
    %147 = vector.shape_cast %146 : vector<1x1x16x128xf32> to vector<16x128xf32>
    %148 = vector.shape_cast %145 : vector<16x128xf32> to vector<1x1x16x128xf32>
    tpu.vector_store %arg3[%c0_162, %c2_163, %c0_164, %c0_165], %148 {strides = array<i32>} : memref<1x16x16x128xf32, #tpu.memory_space<vmem>>, vector<1x1x16x128xf32>,
    %c54 = arith.constant 54 : index
    %c0_166 = arith.constant 0 : index
    %149 = vector.load %arg6[%c54, %c0_166] : memref<328x128xf32, #tpu.memory_space<vmem>>, vector<16x128xf32>
    %c0_167 = arith.constant 0 : index
    %c3_168 = arith.constant 3 : index
    %c0_169 = arith.constant 0 : index
    %c0_170 = arith.constant 0 : index
    %150 = vector.load %arg3[%c0_167, %c3_168, %c0_169, %c0_170] : memref<1x16x16x128xf32, #tpu.memory_space<vmem>>, vector<1x1x16x128xf32>
    %151 = vector.shape_cast %150 : vector<1x1x16x128xf32> to vector<16x128xf32>
    %152 = vector.shape_cast %149 : vector<16x128xf32> to vector<1x1x16x128xf32>
    tpu.vector_store %arg3[%c0_167, %c3_168, %c0_169, %c0_170], %152 {strides = array<i32>} : memref<1x16x16x128xf32, #tpu.memory_space<vmem>>, vector<1x1x16x128xf32>,
    %c72 = arith.constant 72 : index
    %c0_171 = arith.constant 0 : index
    %153 = vector.load %arg6[%c72, %c0_171] : memref<328x128xf32, #tpu.memory_space<vmem>>, vector<16x128xf32>
    %c0_172 = arith.constant 0 : index
    %c4_173 = arith.constant 4 : index
    %c0_174 = arith.constant 0 : index
    %c0_175 = arith.constant 0 : index
    %154 = vector.load %arg3[%c0_172, %c4_173, %c0_174, %c0_175] : memref<1x16x16x128xf32, #tpu.memory_space<vmem>>, vector<1x1x16x128xf32>
    %155 = vector.shape_cast %154 : vector<1x1x16x128xf32> to vector<16x128xf32>
    %156 = vector.shape_cast %153 : vector<16x128xf32> to vector<1x1x16x128xf32>
    tpu.vector_store %arg3[%c0_172, %c4_173, %c0_174, %c0_175], %156 {strides = array<i32>} : memref<1x16x16x128xf32, #tpu.memory_space<vmem>>, vector<1x1x16x128xf32>,
    %c90 = arith.constant 90 : index
    %c0_176 = arith.constant 0 : index
    %157 = vector.load %arg6[%c90, %c0_176] : memref<328x128xf32, #tpu.memory_space<vmem>>, vector<16x128xf32>
    %c0_177 = arith.constant 0 : index
    %c5_178 = arith.constant 5 : index
    %c0_179 = arith.constant 0 : index
    %c0_180 = arith.constant 0 : index
    %158 = vector.load %arg3[%c0_177, %c5_178, %c0_179, %c0_180] : memref<1x16x16x128xf32, #tpu.memory_space<vmem>>, vector<1x1x16x128xf32>
    %159 = vector.shape_cast %158 : vector<1x1x16x128xf32> to vector<16x128xf32>
    %160 = vector.shape_cast %157 : vector<16x128xf32> to vector<1x1x16x128xf32>
    tpu.vector_store %arg3[%c0_177, %c5_178, %c0_179, %c0_180], %160 {strides = array<i32>} : memref<1x16x16x128xf32, #tpu.memory_space<vmem>>, vector<1x1x16x128xf32>,
    %c108 = arith.constant 108 : index
    %c0_181 = arith.constant 0 : index
    %161 = vector.load %arg6[%c108, %c0_181] : memref<328x128xf32, #tpu.memory_space<vmem>>, vector<16x128xf32>
    %c0_182 = arith.constant 0 : index
    %c6_183 = arith.constant 6 : index
    %c0_184 = arith.constant 0 : index
    %c0_185 = arith.constant 0 : index
    %162 = vector.load %arg3[%c0_182, %c6_183, %c0_184, %c0_185] : memref<1x16x16x128xf32, #tpu.memory_space<vmem>>, vector<1x1x16x128xf32>
    %163 = vector.shape_cast %162 : vector<1x1x16x128xf32> to vector<16x128xf32>
    %164 = vector.shape_cast %161 : vector<16x128xf32> to vector<1x1x16x128xf32>
    tpu.vector_store %arg3[%c0_182, %c6_183, %c0_184, %c0_185], %164 {strides = array<i32>} : memref<1x16x16x128xf32, #tpu.memory_space<vmem>>, vector<1x1x16x128xf32>,
    %c126 = arith.constant 126 : index
    %c0_186 = arith.constant 0 : index
    %165 = vector.load %arg6[%c126, %c0_186] : memref<328x128xf32, #tpu.memory_space<vmem>>, vector<16x128xf32>
    %c0_187 = arith.constant 0 : index
    %c7_188 = arith.constant 7 : index
    %c0_189 = arith.constant 0 : index
    %c0_190 = arith.constant 0 : index
    %166 = vector.load %arg3[%c0_187, %c7_188, %c0_189, %c0_190] : memref<1x16x16x128xf32, #tpu.memory_space<vmem>>, vector<1x1x16x128xf32>
    %167 = vector.shape_cast %166 : vector<1x1x16x128xf32> to vector<16x128xf32>
    %168 = vector.shape_cast %165 : vector<16x128xf32> to vector<1x1x16x128xf32>
    tpu.vector_store %arg3[%c0_187, %c7_188, %c0_189, %c0_190], %168 {strides = array<i32>} : memref<1x16x16x128xf32, #tpu.memory_space<vmem>>, vector<1x1x16x128xf32>,
    %c144 = arith.constant 144 : index
    %c0_191 = arith.constant 0 : index
    %169 = vector.load %arg6[%c144, %c0_191] : memref<328x128xf32, #tpu.memory_space<vmem>>, vector<16x128xf32>
    %c0_192 = arith.constant 0 : index
    %c8_193 = arith.constant 8 : index
    %c0_194 = arith.constant 0 : index
    %c0_195 = arith.constant 0 : index
    %170 = vector.load %arg3[%c0_192, %c8_193, %c0_194, %c0_195] : memref<1x16x16x128xf32, #tpu.memory_space<vmem>>, vector<1x1x16x128xf32>
    %171 = vector.shape_cast %170 : vector<1x1x16x128xf32> to vector<16x128xf32>
    %172 = vector.shape_cast %169 : vector<16x128xf32> to vector<1x1x16x128xf32>
    tpu.vector_store %arg3[%c0_192, %c8_193, %c0_194, %c0_195], %172 {strides = array<i32>} : memref<1x16x16x128xf32, #tpu.memory_space<vmem>>, vector<1x1x16x128xf32>,
    %c162 = arith.constant 162 : index
    %c0_196 = arith.constant 0 : index
    %173 = vector.load %arg6[%c162, %c0_196] : memref<328x128xf32, #tpu.memory_space<vmem>>, vector<16x128xf32>
    %c0_197 = arith.constant 0 : index
    %c9_198 = arith.constant 9 : index
    %c0_199 = arith.constant 0 : index
    %c0_200 = arith.constant 0 : index
    %174 = vector.load %arg3[%c0_197, %c9_198, %c0_199, %c0_200] : memref<1x16x16x128xf32, #tpu.memory_space<vmem>>, vector<1x1x16x128xf32>
    %175 = vector.shape_cast %174 : vector<1x1x16x128xf32> to vector<16x128xf32>
    %176 = vector.shape_cast %173 : vector<16x128xf32> to vector<1x1x16x128xf32>
    tpu.vector_store %arg3[%c0_197, %c9_198, %c0_199, %c0_200], %176 {strides = array<i32>} : memref<1x16x16x128xf32, #tpu.memory_space<vmem>>, vector<1x1x16x128xf32>,
    %c180 = arith.constant 180 : index
    %c0_201 = arith.constant 0 : index
    %177 = vector.load %arg6[%c180, %c0_201] : memref<328x128xf32, #tpu.memory_space<vmem>>, vector<16x128xf32>
    %c0_202 = arith.constant 0 : index
    %c10_203 = arith.constant 10 : index
    %c0_204 = arith.constant 0 : index
    %c0_205 = arith.constant 0 : index
    %178 = vector.load %arg3[%c0_202, %c10_203, %c0_204, %c0_205] : memref<1x16x16x128xf32, #tpu.memory_space<vmem>>, vector<1x1x16x128xf32>
    %179 = vector.shape_cast %178 : vector<1x1x16x128xf32> to vector<16x128xf32>
    %180 = vector.shape_cast %177 : vector<16x128xf32> to vector<1x1x16x128xf32>
    tpu.vector_store %arg3[%c0_202, %c10_203, %c0_204, %c0_205], %180 {strides = array<i32>} : memref<1x16x16x128xf32, #tpu.memory_space<vmem>>, vector<1x1x16x128xf32>,
    %c198 = arith.constant 198 : index
    %c0_206 = arith.constant 0 : index
    %181 = vector.load %arg6[%c198, %c0_206] : memref<328x128xf32, #tpu.memory_space<vmem>>, vector<16x128xf32>
    %c0_207 = arith.constant 0 : index
    %c11_208 = arith.constant 11 : index
    %c0_209 = arith.constant 0 : index
    %c0_210 = arith.constant 0 : index
    %182 = vector.load %arg3[%c0_207, %c11_208, %c0_209, %c0_210] : memref<1x16x16x128xf32, #tpu.memory_space<vmem>>, vector<1x1x16x128xf32>
    %183 = vector.shape_cast %182 : vector<1x1x16x128xf32> to vector<16x128xf32>
    %184 = vector.shape_cast %181 : vector<16x128xf32> to vector<1x1x16x128xf32>
    tpu.vector_store %arg3[%c0_207, %c11_208, %c0_209, %c0_210], %184 {strides = array<i32>} : memref<1x16x16x128xf32, #tpu.memory_space<vmem>>, vector<1x1x16x128xf32>,
    %c216 = arith.constant 216 : index
    %c0_211 = arith.constant 0 : index
    %185 = vector.load %arg6[%c216, %c0_211] : memref<328x128xf32, #tpu.memory_space<vmem>>, vector<16x128xf32>
    %c0_212 = arith.constant 0 : index
    %c12_213 = arith.constant 12 : index
    %c0_214 = arith.constant 0 : index
    %c0_215 = arith.constant 0 : index
    %186 = vector.load %arg3[%c0_212, %c12_213, %c0_214, %c0_215] : memref<1x16x16x128xf32, #tpu.memory_space<vmem>>, vector<1x1x16x128xf32>
    %187 = vector.shape_cast %186 : vector<1x1x16x128xf32> to vector<16x128xf32>
    %188 = vector.shape_cast %185 : vector<16x128xf32> to vector<1x1x16x128xf32>
    tpu.vector_store %arg3[%c0_212, %c12_213, %c0_214, %c0_215], %188 {strides = array<i32>} : memref<1x16x16x128xf32, #tpu.memory_space<vmem>>, vector<1x1x16x128xf32>,
    %c234 = arith.constant 234 : index
    %c0_216 = arith.constant 0 : index
    %189 = vector.load %arg6[%c234, %c0_216] : memref<328x128xf32, #tpu.memory_space<vmem>>, vector<16x128xf32>
    %c0_217 = arith.constant 0 : index
    %c13_218 = arith.constant 13 : index
    %c0_219 = arith.constant 0 : index
    %c0_220 = arith.constant 0 : index
    %190 = vector.load %arg3[%c0_217, %c13_218, %c0_219, %c0_220] : memref<1x16x16x128xf32, #tpu.memory_space<vmem>>, vector<1x1x16x128xf32>
    %191 = vector.shape_cast %190 : vector<1x1x16x128xf32> to vector<16x128xf32>
    %192 = vector.shape_cast %189 : vector<16x128xf32> to vector<1x1x16x128xf32>
    tpu.vector_store %arg3[%c0_217, %c13_218, %c0_219, %c0_220], %192 {strides = array<i32>} : memref<1x16x16x128xf32, #tpu.memory_space<vmem>>, vector<1x1x16x128xf32>,
    %c252 = arith.constant 252 : index
    %c0_221 = arith.constant 0 : index
    %193 = vector.load %arg6[%c252, %c0_221] : memref<328x128xf32, #tpu.memory_space<vmem>>, vector<16x128xf32>
    %c0_222 = arith.constant 0 : index
    %c14_223 = arith.constant 14 : index
    %c0_224 = arith.constant 0 : index
    %c0_225 = arith.constant 0 : index
    %194 = vector.load %arg3[%c0_222, %c14_223, %c0_224, %c0_225] : memref<1x16x16x128xf32, #tpu.memory_space<vmem>>, vector<1x1x16x128xf32>
    %195 = vector.shape_cast %194 : vector<1x1x16x128xf32> to vector<16x128xf32>
    %196 = vector.shape_cast %193 : vector<16x128xf32> to vector<1x1x16x128xf32>
    tpu.vector_store %arg3[%c0_222, %c14_223, %c0_224, %c0_225], %196 {strides = array<i32>} : memref<1x16x16x128xf32, #tpu.memory_space<vmem>>, vector<1x1x16x128xf32>,
    %c270 = arith.constant 270 : index
    %c0_226 = arith.constant 0 : index
    %197 = vector.load %arg6[%c270, %c0_226] : memref<328x128xf32, #tpu.memory_space<vmem>>, vector<16x128xf32>
    %c0_227 = arith.constant 0 : index
    %c15_228 = arith.constant 15 : index
    %c0_229 = arith.constant 0 : index
    %c0_230 = arith.constant 0 : index
    %198 = vector.load %arg3[%c0_227, %c15_228, %c0_229, %c0_230] : memref<1x16x16x128xf32, #tpu.memory_space<vmem>>, vector<1x1x16x128xf32>
    %199 = vector.shape_cast %198 : vector<1x1x16x128xf32> to vector<16x128xf32>
    %200 = vector.shape_cast %197 : vector<16x128xf32> to vector<1x1x16x128xf32>
    tpu.vector_store %arg3[%c0_227, %c15_228, %c0_229, %c0_230], %200 {strides = array<i32>} : memref<1x16x16x128xf32, #tpu.memory_space<vmem>>, vector<1x1x16x128xf32>,
    %c0_231 = arith.constant 0 : index
    %c0_232 = arith.constant 0 : index
    %c0_233 = arith.constant 0 : index
    %c0_234 = arith.constant 0 : index
    %201 = vector.load %arg3[%c0_231, %c0_232, %c0_233, %c0_234] : memref<1x16x16x128xf32, #tpu.memory_space<vmem>>, vector<1x16x16x128xf32>
    %202 = vector.shape_cast %201 : vector<1x16x16x128xf32> to vector<256x128xf32>
    %c0_235 = arith.constant 0 : index
    %c0_236 = arith.constant 0 : index
    %203 = vector.load %arg4[%c0_235, %c0_236] : memref<2x128xf32, #tpu.memory_space<vmem>>, vector<1x128xf32>
    %cst_237 = arith.constant dense<0.000000e+00> : vector<128xf32>
    %204 = vector.multi_reduction <add>, %202, %cst_237 [0] : vector<256x128xf32> to vector<128xf32>
    %205 = vector.shape_cast %204 : vector<128xf32> to vector<1x128xf32>
    %206 = arith.addf %203, %205 : vector<1x128xf32>
    %c0_238 = arith.constant 0 : index
    %c0_239 = arith.constant 0 : index
    %207 = vector.load %arg4[%c0_238, %c0_239] : memref<2x128xf32, #tpu.memory_space<vmem>>, vector<1x128xf32>
    tpu.vector_store %arg4[%c0_238, %c0_239], %206 {strides = array<i32>} : memref<2x128xf32, #tpu.memory_space<vmem>>, vector<1x128xf32>,
    %c1_240 = arith.constant 1 : index
    %c0_241 = arith.constant 0 : index
    %208 = vector.load %arg4[%c1_240, %c0_241] : memref<2x128xf32, #tpu.memory_space<vmem>>, vector<1x128xf32>
    %209 = arith.mulf %202, %202 : vector<256x128xf32>
    %cst_242 = arith.constant dense<0.000000e+00> : vector<128xf32>
    %210 = vector.multi_reduction <add>, %209, %cst_242 [0] : vector<256x128xf32> to vector<128xf32>
    %211 = vector.shape_cast %210 : vector<128xf32> to vector<1x128xf32>
    %212 = arith.addf %208, %211 : vector<1x128xf32>
    %c1_243 = arith.constant 1 : index
    %c0_244 = arith.constant 0 : index
    %213 = vector.load %arg4[%c1_243, %c0_244] : memref<2x128xf32, #tpu.memory_space<vmem>>, vector<1x128xf32>
    tpu.vector_store %arg4[%c1_243, %c0_244], %212 {strides = array<i32>} : memref<2x128xf32, #tpu.memory_space<vmem>>, vector<1x128xf32>,
    return
  }
  func.func @transform_0(%arg0: i32) -> (i32, i32, i32, i32) {
    %c0_i32 = arith.constant 0 : i32
    %c0_i32_0 = arith.constant 0 : i32
    %c0_i32_1 = arith.constant 0 : i32
    %c0_i32_2 = arith.constant 0 : i32
    return %arg0, %c0_i32, %c0_i32_0, %c0_i32_1 : i32, i32, i32, i32
  }
  func.func @transform_1(%arg0: i32) -> (i32, i32, i32) {
    %c0_i32 = arith.constant 0 : i32
    %c0_i32_0 = arith.constant 0 : i32
    %c0_i32_1 = arith.constant 0 : i32
    %c0_i32_2 = arith.constant 0 : i32
    return %c0_i32, %c0_i32_0, %c0_i32_1 : i32, i32, i32
  }
  func.func @transform_2(%arg0: i32) -> (i32, i32, i32, i32) {
    %c0_i32 = arith.constant 0 : i32
    %c0_i32_0 = arith.constant 0 : i32
    %c0_i32_1 = arith.constant 0 : i32
    %c0_i32_2 = arith.constant 0 : i32
    return %arg0, %c0_i32, %c0_i32_0, %c0_i32_1 : i32, i32, i32, i32
  }
  func.func @transform_3(%arg0: i32) -> (i32, i32) {
    %c0_i32 = arith.constant 0 : i32
    %c0_i32_0 = arith.constant 0 : i32
    %c0_i32_1 = arith.constant 0 : i32
    return %c0_i32, %c0_i32_0 : i32, i32
  }
}

</mosaic_0001>

<bundles_post_ra>
// kernel: baseline_basic_block.7
= control target key start
LH: loop header
LB: loop body
LE: loop exit
PB: predicated region body
PF: predicated region fallthrough
CT: control target
= control target key end

     0   :  { %s494_s15 = smov 0   ;;  %s666_s0 = inlined_call_operand.vmem [shape: f32[2,16,16,128], index: 0, kind: input, shape index: {}]   ;;  %s667_s1 = inlined_call_operand.vmem [shape: f32[2,128], index: 1, kind: input, shape index: {}]   ;;  %s668_s2 = inlined_call_operand.vmem [shape: f32[1,128], index: 2, kind: input, shape index: {}]   ;;  %s669_s3 = inlined_call_operand.vmem [shape: f32[1,128], index: 3, kind: input, shape index: {}]   ;;  %s670_s4 = inlined_call_operand.vmem [shape: f32[2,16,16,128], index: 4, kind: output, shape index: {}]  }
   0x1 LB: > { %s438_s16 = sadd.s32 4294967295, %s467_s15   ;;  %p442_p0 = scmp.ge.s32.totalorder %s467_s15, 1  ;;  %s467_s15 = sphi %s494_s15, %s14_s15  }
   0x2   : > { %p162_p1 = scmp.lt.s32.totalorder %s467_s15, 3 }
   0x4   : > { %p163_p2 = pnand %p442_p0, %p162_p1 }
   0x5   : > { %v198_v0 = vld [vmem:[%s667_s1] sm:$0x1] (!%p163_p2)  ;;  %v200_v1 = vld [vmem:[%s667_s1 + $0x1] sm:$0x1] (!%p163_p2)  ;;  %p188_p3 = scmp.lt.s32.totalorder (!%p163_p2), %s438_s16, 1  ;;  %v244_v7 = vlaneseq (!%p163_p2) }
   0x6   : > { %166 = sbr.rel (%p163_p2) target bundleno = 59 (0x3b), region = 36  ;;  %v199_v2 = vmul.f32 (!%p163_p2), 0.001953125, %v198_v0  ;;  %v201_v3 = vmul.f32 (!%p163_p2), 0.001953125, %v200_v1  ;;  %v204_v9 = vld [vmem:[%s668_s2] sm:$0x1] (!%p163_p2) }
   0x7   : > { %v245_v8 = vshrl.u32 (!%p163_p2), %v244_v7, 7  ;;  %v208_v13 = vld [vmem:[%s669_s3] sm:$0x1] (!%p163_p2) }
   0x8   : > { %v202_v4 = vmul.f32 (!%p163_p2), %v199_v2, %v199_v2 }
   0x9   : > { %v246_v10 = vsub.s32 (!%p163_p2), 0, %v245_v8 }
   0xa   : > { %v203_v5 = vsub.f32 (!%p163_p2), %v201_v3, %v202_v4 }
   0xc   : > { %v205_v6 = vadd.f32 (!%p163_p2), 1e-05, %v203_v5 }
   0xd   : > { %s672_s16 = smov (!%p188_p3, %s438_s16), 1 }
   0xe   : > { %459 = vrsqrt.f32 %v205_v6  ;;  %s449_s21 = sshll.u32 %s672_s16, 8 }
   0xf   : > { %s516_s24 = scalar_lea.vmem %s666_s0, %s449_s21  ;;  %s565_s5 = scalar_lea.vmem %s670_s4, %s449_s21 }
  0x10   : > { %v211_v14 = vld [vmem:[%s516_s24] sm:$0xff]  ;;  %v212_v15 = vld [vmem:[%s516_s24 + $0x8] sm:$0xff]  ;;  %v213_v16 = vld [vmem:[%s516_s24 + $0x10] sm:$0xff] }
  0x11   : > { %v214_v17 = vld [vmem:[%s516_s24 + $0x18] sm:$0xff]  ;;  %v215_v18 = vld [vmem:[%s516_s24 + $0x20] sm:$0xff]  ;;  %v216_v21 = vld [vmem:[%s516_s24 + $0x28] sm:$0xff] }
  0x12   : > { %v217_v22 = vld [vmem:[%s516_s24 + $0x30] sm:$0xff]  ;;  %v218_v23 = vld [vmem:[%s516_s24 + $0x38] sm:$0xff]  ;;  %v219_v24 = vld [vmem:[%s516_s24 + $0x40] sm:$0xff] }
  0x13   : > { %v220_v25 = vld [vmem:[%s516_s24 + $0x48] sm:$0xff]  ;;  %v221_v26 = vld [vmem:[%s516_s24 + $0x50] sm:$0xff]  ;;  %v222_v31 = vld [vmem:[%s516_s24 + $0x58] sm:$0xff] }
  0x14   : > { %v223_v32 = vld [vmem:[%s516_s24 + $0x60] sm:$0xff]  ;;  %v224_v33 = vld [vmem:[%s516_s24 + $0x68] sm:$0xff]  ;;  %v225_v58 = vld [vmem:[%s516_s24 + $0x70] sm:$0xff] }
  0x15   : > { %v226_v59 = vld [vmem:[%s516_s24 + $0x78] sm:$0xff]  ;;  %v227_v4 = vld [vmem:[%s516_s24 + $0x80] sm:$0xff] }
  0x18   : > { %v460_v11 = vpop.eup %459 }
  0x19   : > { %v207_v12 = vmul.f32 %v460_v11, %v204_v9  ;;  %v228_v9 = vld [vmem:[%s516_s24 + $0x88] sm:$0xff]  ;;  %v230_v11 = vld [vmem:[%s516_s24 + $0x98] sm:$0xff] }
  0x1b   : > { %v209_v19 = vmul.f32 %v207_v12, %v199_v2  ;;  %v529_v20 = vrot.slane %v207_v12, %v246_v10 }
  0x1d   : > { %v210_v27 = vsub.f32 %v208_v13, %v209_v19  ;;  %v249_v28 = vmul.f32 %v529_v20, %v211_v14  ;;  %v250_v29 = vmul.f32 %v529_v20, %v212_v15  ;;  %v251_v30 = vmul.f32 %v529_v20, %v213_v16  ;;  %v231_v16 = vld [vmem:[%s516_s24 + $0xa0] sm:$0xff] }
  0x1e   : > { %v252_v34 = vmul.f32 %v529_v20, %v214_v17  ;;  %v253_v35 = vmul.f32 %v529_v20, %v215_v18  ;;  %v254_v36 = vmul.f32 %v529_v20, %v216_v21  ;;  %v255_v37 = vmul.f32 %v529_v20, %v217_v22  ;;  %v232_v17 = vld [vmem:[%s516_s24 + $0xa8] sm:$0xff] }
  0x1f   : > { %v547_v38 = vrot.slane %v210_v27, %v246_v10  ;;  %v256_v39 = vmul.f32 %v529_v20, %v218_v23  ;;  %v257_v40 = vmul.f32 %v529_v20, %v219_v24  ;;  %v258_v41 = vmul.f32 %v529_v20, %v220_v25  ;;  %v229_v10 = vld [vmem:[%s516_s24 + $0x90] sm:$0xff] }
  0x20   : > { %v259_v42 = vmul.f32 %v529_v20, %v221_v26  ;;  %v260_v43 = vmul.f32 %v529_v20, %v222_v31  ;;  %v261_v44 = vmul.f32 %v529_v20, %v223_v32  ;;  %v262_v45 = vmul.f32 %v529_v20, %v224_v33  ;;  %v233_v27 = vld [vmem:[%s516_s24 + $0xb0] sm:$0xff] }
  0x21   : > { %v287_v46 = vadd.f32 %v547_v38, %v249_v28  ;;  %v288_v47 = vadd.f32 %v547_v38, %v250_v29  ;;  %v289_v48 = vadd.f32 %v547_v38, %v251_v30  ;;  %v290_v49 = vadd.f32 %v547_v38, %v252_v34  ;;  %v234_v28 = vld [vmem:[%s516_s24 + $0xb8] sm:$0xff] }
  0x22   : > { %v291_v50 = vadd.f32 %v547_v38, %v253_v35  ;;  %v292_v51 = vadd.f32 %v547_v38, %v254_v36  ;;  %v293_v52 = vadd.f32 %v547_v38, %v255_v37  ;;  %v294_v53 = vadd.f32 %v547_v38, %v256_v39  ;;  %v235_v37 = vld [vmem:[%s516_s24 + $0xc0] sm:$0xff] }
  0x23   : > { %v319_v54 = vmax.f32 %v287_v46, 0.0  ;;  %v320_v55 = vmax.f32 %v288_v47, 0.0  ;;  %v321_v56 = vmax.f32 %v289_v48, 0.0  ;;  %v322_v57 = vmax.f32 %v290_v49, 0.0 }
  0x24   : > { %v323_v60 = vmax.f32 %v291_v50, 0.0  ;;  %v324_v61 = vmax.f32 %v292_v51, 0.0  ;;  %v325_v62 = vmax.f32 %v293_v52, 0.0  ;;  %v326_v63 = vmax.f32 %v294_v53, 0.0  ;;  %v239_v50 = vld [vmem:[%s516_s24 + $0xe0] sm:$0xff]  ;;  %v240_v51 = vld [vmem:[%s516_s24 + $0xe8] sm:$0xff] }
  0x25   : > { %351 = vst [vmem:[%s565_s5] sm:$0xff] %v319_v54  ;;  %352 = vst [vmem:[%s565_s5 + $0x8] sm:$0xff] %v320_v55  ;;  %v295_v0 = vadd.f32 %v547_v38, %v257_v40  ;;  %v296_v1 = vadd.f32 %v547_v38, %v258_v41  ;;  %v297_v2 = vadd.f32 %v547_v38, %v259_v42 }
  0x26   : > { %353 = vst [vmem:[%s565_s5 + $0x10] sm:$0xff] %v321_v56  ;;  %354 = vst [vmem:[%s565_s5 + $0x18] sm:$0xff] %v322_v57  ;;  %v298_v3 = vadd.f32 %v547_v38, %v260_v43  ;;  %v299_v5 = vadd.f32 %v547_v38, %v261_v44  ;;  %v300_v6 = vadd.f32 %v547_v38, %v262_v45  ;;  %v236_v43 = vld [vmem:[%s516_s24 + $0xc8] sm:$0xff]  ;;  %v237_v44 = vld [vmem:[%s516_s24 + $0xd0] sm:$0xff] }
  0x27   : > { %355 = vst [vmem:[%s565_s5 + $0x20] sm:$0xff] %v323_v60  ;;  %356 = vst [vmem:[%s565_s5 + $0x28] sm:$0xff] %v324_v61  ;;  %v263_v7 = vmul.f32 %v529_v20, %v225_v58  ;;  %v264_v8 = vmul.f32 %v529_v20, %v226_v59  ;;  %v327_v12 = vmax.f32 %v295_v0, 0.0  ;;  %v328_v13 = vmax.f32 %v296_v1, 0.0  ;;  %v238_v45 = vld [vmem:[%s516_s24 + $0xd8] sm:$0xff]  ;;  %v241_v60 = vld [vmem:[%s516_s24 + $0xf0] sm:$0xff] }
  0x28   : > { %357 = vst [vmem:[%s565_s5 + $0x30] sm:$0xff] %v325_v62  ;;  %358 = vst [vmem:[%s565_s5 + $0x38] sm:$0xff] %v326_v63  ;;  %v329_v14 = vmax.f32 %v297_v2, 0.0  ;;  %v330_v15 = vmax.f32 %v298_v3, 0.0  ;;  %v331_v18 = vmax.f32 %v299_v5, 0.0  ;;  %v332_v19 = vmax.f32 %v300_v6, 0.0 }
  0x29   : > { %v301_v21 = vadd.f32 %v547_v38, %v263_v7  ;;  %v302_v22 = vadd.f32 %v547_v38, %v264_v8  ;;  %359 = vst [vmem:[%s565_s5 + $0x40] sm:$0xff] %v327_v12  ;;  %360 = vst [vmem:[%s565_s5 + $0x48] sm:$0xff] %v328_v13  ;;  %v265_v23 = vmul.f32 %v529_v20, %v227_v4  ;;  %v242_v61 = vld [vmem:[%s516_s24 + $0xf8] sm:$0xff] }
  0x2a   : > { %361 = vst [vmem:[%s565_s5 + $0x50] sm:$0xff] %v329_v14  ;;  %362 = vst [vmem:[%s565_s5 + $0x58] sm:$0xff] %v330_v15  ;;  %v266_v24 = vmul.f32 %v529_v20, %v228_v9  ;;  %v267_v25 = vmul.f32 %v529_v20, %v229_v10  ;;  %v268_v26 = vmul.f32 %v529_v20, %v230_v11 }
  0x2b   : > { %363 = vst [vmem:[%s565_s5 + $0x60] sm:$0xff] %v331_v18  ;;  %364 = vst [vmem:[%s565_s5 + $0x68] sm:$0xff] %v332_v19  ;;  %v333_v29 = vmax.f32 %v301_v21, 0.0  ;;  %v334_v30 = vmax.f32 %v302_v22, 0.0  ;;  %v269_v31 = vmul.f32 %v529_v20, %v231_v16  ;;  %v270_v32 = vmul.f32 %v529_v20, %v232_v17 }
  0x2c   : > { %v303_v33 = vadd.f32 %v547_v38, %v265_v23  ;;  %v304_v34 = vadd.f32 %v547_v38, %v266_v24  ;;  %v305_v35 = vadd.f32 %v547_v38, %v267_v25  ;;  %v306_v36 = vadd.f32 %v547_v38, %v268_v26 }
  0x2d   : > { %365 = vst [vmem:[%s565_s5 + $0x70] sm:$0xff] %v333_v29  ;;  %366 = vst [vmem:[%s565_s5 + $0x78] sm:$0xff] %v334_v30  ;;  %v307_v39 = vadd.f32 %v547_v38, %v269_v31  ;;  %v308_v40 = vadd.f32 %v547_v38, %v270_v32  ;;  %v271_v41 = vmul.f32 %v529_v20, %v233_v27 }
  0x2e   : > { %v272_v42 = vmul.f32 %v529_v20, %v234_v28  ;;  %v335_v46 = vmax.f32 %v303_v33, 0.0  ;;  %v336_v47 = vmax.f32 %v304_v34, 0.0  ;;  %v337_v48 = vmax.f32 %v305_v35, 0.0 }
  0x2f   : > { %v338_v49 = vmax.f32 %v306_v36, 0.0  ;;  %v339_v52 = vmax.f32 %v307_v39, 0.0  ;;  %v340_v53 = vmax.f32 %v308_v40, 0.0  ;;  %v309_v54 = vadd.f32 %v547_v38, %v271_v41 }
  0x30   : > { %v310_v55 = vadd.f32 %v547_v38, %v272_v42  ;;  %367 = vst [vmem:[%s565_s5 + $0x80] sm:$0xff] %v335_v46  ;;  %368 = vst [vmem:[%s565_s5 + $0x88] sm:$0xff] %v336_v47  ;;  %v273_v56 = vmul.f32 %v529_v20, %v235_v37  ;;  %v274_v57 = vmul.f32 %v529_v20, %v236_v43 }
  0x31   : > { %369 = vst [vmem:[%s565_s5 + $0x90] sm:$0xff] %v337_v48  ;;  %370 = vst [vmem:[%s565_s5 + $0x98] sm:$0xff] %v338_v49  ;;  %v275_v58 = vmul.f32 %v529_v20, %v237_v44  ;;  %v276_v59 = vmul.f32 %v529_v20, %v238_v45  ;;  %v341_v62 = vmax.f32 %v309_v54, 0.0  ;;  %v277_v0 = vmul.f32 %v529_v20, %v239_v50 }
  0x32   : > { %371 = vst [vmem:[%s565_s5 + $0xa0] sm:$0xff] %v339_v52  ;;  %372 = vst [vmem:[%s565_s5 + $0xa8] sm:$0xff] %v340_v53  ;;  %v342_v63 = vmax.f32 %v310_v55, 0.0  ;;  %v278_v1 = vmul.f32 %v529_v20, %v240_v51  ;;  %v311_v2 = vadd.f32 %v547_v38, %v273_v56  ;;  %v312_v3 = vadd.f32 %v547_v38, %v274_v57 }
  0x33   : > { %v313_v4 = vadd.f32 %v547_v38, %v275_v58  ;;  %v314_v5 = vadd.f32 %v547_v38, %v276_v59  ;;  %373 = vst [vmem:[%s565_s5 + $0xb0] sm:$0xff] %v341_v62  ;;  %v315_v6 = vadd.f32 %v547_v38, %v277_v0  ;;  %v279_v8 = vmul.f32 %v529_v20, %v241_v60 }
  0x34   : > { %374 = vst [vmem:[%s565_s5 + $0xb8] sm:$0xff] %v342_v63  ;;  %v316_v7 = vadd.f32 %v547_v38, %v278_v1  ;;  %v280_v9 = vmul.f32 %v529_v20, %v242_v61  ;;  %v343_v10 = vmax.f32 %v311_v2, 0.0  ;;  %v344_v11 = vmax.f32 %v312_v3, 0.0 }
  0x35   : > { %v345_v12 = vmax.f32 %v313_v4, 0.0  ;;  %v346_v13 = vmax.f32 %v314_v5, 0.0  ;;  %v347_v14 = vmax.f32 %v315_v6, 0.0  ;;  %v317_v16 = vadd.f32 %v547_v38, %v279_v8 }
  0x36   : > { %v348_v15 = vmax.f32 %v316_v7, 0.0  ;;  %v318_v17 = vadd.f32 %v547_v38, %v280_v9  ;;  %375 = vst [vmem:[%s565_s5 + $0xc0] sm:$0xff] %v343_v10  ;;  %376 = vst [vmem:[%s565_s5 + $0xc8] sm:$0xff] %v344_v11 }
  0x37   : > { %377 = vst [vmem:[%s565_s5 + $0xd0] sm:$0xff] %v345_v12  ;;  %378 = vst [vmem:[%s565_s5 + $0xd8] sm:$0xff] %v346_v13  ;;  %v349_v18 = vmax.f32 %v317_v16, 0.0 }
  0x38   : > { %379 = vst [vmem:[%s565_s5 + $0xe0] sm:$0xff] %v347_v14  ;;  %380 = vst [vmem:[%s565_s5 + $0xe8] sm:$0xff] %v348_v15  ;;  %v350_v20 = vmax.f32 %v318_v17, 0.0 }
  0x39   : > { %381 = vst [vmem:[%s565_s5 + $0xf0] sm:$0xff] %v349_v18 }
  0x3a   : > { %382 = vst [vmem:[%s565_s5 + $0xf8] sm:$0xff] %v350_v20 }
  0x3b PF: > { %s14_s15 = sadd.s32 1, %s467_s15  }
  0x3c   : > { %p11_p4 = scmp.ge.s32.totalorder %s14_s15, 4  }
  0x3e   :  { %13 = sbr.rel (!%p11_p4) target bundleno = 1 (0x1), region = 66 }

// kernel: baseline_basic_block.5
= control target key start
LH: loop header
LB: loop body
LE: loop exit
PB: predicated region body
PF: predicated region fallthrough
CT: control target
= control target key end

     0   :  { %s781_s15 = smov 0   ;;  %s934_s0 = inlined_call_operand.vmem [shape: f32[2,16,16,128], index: 0, kind: input, shape index: {}]   ;;  %s935_s1 = inlined_call_operand.vmem [shape: f32[2,128], index: 1, kind: input, shape index: {}]   ;;  %s936_s2 = inlined_call_operand.vmem [shape: f32[1,128], index: 2, kind: input, shape index: {}]   ;;  %s937_s3 = inlined_call_operand.vmem [shape: f32[1,128], index: 3, kind: input, shape index: {}]   ;;  %s938_s4 = inlined_call_operand.vmem [shape: bf16[2,16,16,128], index: 4, kind: output, shape index: {}]  }
   0x1 LB: > { %s566_s16 = sadd.s32 4294967295, %s754_s15   ;;  %p570_p0 = scmp.ge.s32.totalorder %s754_s15, 1  ;;  %s754_s15 = sphi %s781_s15, %s14_s15  }
   0x2   : > { %p162_p1 = scmp.lt.s32.totalorder %s754_s15, 3 }
   0x4   : > { %p163_p2 = pnand %p570_p0, %p162_p1 }
   0x5   : > { %v198_v0 = vld [vmem:[%s935_s1] sm:$0x1] (!%p163_p2)  ;;  %v200_v1 = vld [vmem:[%s935_s1 + $0x1] sm:$0x1] (!%p163_p2)  ;;  %p188_p3 = scmp.lt.s32.totalorder (!%p163_p2), %s566_s16, 1  ;;  %v244_v7 = vlaneseq (!%p163_p2) }
   0x6   : > { %166 = sbr.rel (%p163_p2) target bundleno = 63 (0x3f), region = 36  ;;  %v199_v2 = vmul.f32 (!%p163_p2), 0.001953125, %v198_v0  ;;  %v201_v3 = vmul.f32 (!%p163_p2), 0.001953125, %v200_v1  ;;  %v204_v9 = vld [vmem:[%s936_s2] sm:$0x1] (!%p163_p2) }
   0x7   : > { %v245_v8 = vshrl.u32 (!%p163_p2), %v244_v7, 7  ;;  %v208_v13 = vld [vmem:[%s937_s3] sm:$0x1] (!%p163_p2) }
   0x8   : > { %v202_v4 = vmul.f32 (!%p163_p2), %v199_v2, %v199_v2 }
   0x9   : > { %v246_v10 = vsub.s32 (!%p163_p2), 0, %v245_v8 }
   0xa   : > { %v203_v5 = vsub.f32 (!%p163_p2), %v201_v3, %v202_v4 }
   0xc   : > { %v205_v6 = vadd.f32 (!%p163_p2), 1e-05, %v203_v5 }
   0xd   : > { %s940_s16 = smov (!%p188_p3, %s566_s16), 1 }
   0xe   : > { %746 = vrsqrt.f32 %v205_v6  ;;  %s609_s21 = sshll.u32 %s940_s16, 8  ;;  %s610_s29 = sshll.u32 %s940_s16, 7 }
   0xf   : > { %s801_s24 = scalar_lea.vmem %s934_s0, %s609_s21  ;;  %s853_s6 = scalar_lea.vmem %s938_s4, %s610_s29 }
  0x10   : > { %v211_v14 = vld [vmem:[%s801_s24] sm:$0xff]  ;;  %v212_v15 = vld [vmem:[%s801_s24 + $0x8] sm:$0xff]  ;;  %v213_v16 = vld [vmem:[%s801_s24 + $0x10] sm:$0xff] }
  0x11   : > { %v214_v17 = vld [vmem:[%s801_s24 + $0x18] sm:$0xff]  ;;  %v215_v18 = vld [vmem:[%s801_s24 + $0x20] sm:$0xff]  ;;  %v216_v21 = vld [vmem:[%s801_s24 + $0x28] sm:$0xff] }
  0x12   : > { %v217_v22 = vld [vmem:[%s801_s24 + $0x30] sm:$0xff]  ;;  %v218_v23 = vld [vmem:[%s801_s24 + $0x38] sm:$0xff]  ;;  %v219_v24 = vld [vmem:[%s801_s24 + $0x40] sm:$0xff] }
  0x13   : > { %v220_v25 = vld [vmem:[%s801_s24 + $0x48] sm:$0xff]  ;;  %v221_v26 = vld [vmem:[%s801_s24 + $0x50] sm:$0xff]  ;;  %v222_v31 = vld [vmem:[%s801_s24 + $0x58] sm:$0xff] }
  0x14   : > { %v223_v32 = vld [vmem:[%s801_s24 + $0x60] sm:$0xff]  ;;  %v224_v33 = vld [vmem:[%s801_s24 + $0x68] sm:$0xff]  ;;  %v226_v3 = vld [vmem:[%s801_s24 + $0x78] sm:$0xff] }
  0x15   : > { %v227_v8 = vld [vmem:[%s801_s24 + $0x80] sm:$0xff] }
  0x18   : > { %v747_v11 = vpop.eup %746 }
  0x19   : > { %v207_v12 = vmul.f32 %v747_v11, %v204_v9 }
  0x1b   : > { %v209_v19 = vmul.f32 %v207_v12, %v199_v2  ;;  %v814_v20 = vrot.slane %v207_v12, %v246_v10  ;;  %v225_v2 = vld [vmem:[%s801_s24 + $0x70] sm:$0xff] }
  0x1d   : > { %v210_v27 = vsub.f32 %v208_v13, %v209_v19  ;;  %v249_v28 = vmul.f32 %v814_v20, %v211_v14  ;;  %v250_v29 = vmul.f32 %v814_v20, %v212_v15  ;;  %v251_v30 = vmul.f32 %v814_v20, %v213_v16  ;;  %v228_v13 = vld [vmem:[%s801_s24 + $0x88] sm:$0xff]  ;;  %v230_v19 = vld [vmem:[%s801_s24 + $0x98] sm:$0xff] }
  0x1e   : > { %v252_v34 = vmul.f32 %v814_v20, %v214_v17  ;;  %v253_v35 = vmul.f32 %v814_v20, %v215_v18  ;;  %v254_v36 = vmul.f32 %v814_v20, %v216_v21  ;;  %v255_v37 = vmul.f32 %v814_v20, %v217_v22  ;;  %v229_v18 = vld [vmem:[%s801_s24 + $0x90] sm:$0xff] }
  0x1f   : > { %v832_v38 = vrot.slane %v210_v27, %v246_v10  ;;  %v256_v39 = vmul.f32 %v814_v20, %v218_v23  ;;  %v257_v40 = vmul.f32 %v814_v20, %v219_v24  ;;  %v258_v41 = vmul.f32 %v814_v20, %v220_v25  ;;  %v231_v25 = vld [vmem:[%s801_s24 + $0xa0] sm:$0xff] }
  0x20   : > { %v259_v42 = vmul.f32 %v814_v20, %v221_v26  ;;  %v260_v43 = vmul.f32 %v814_v20, %v222_v31  ;;  %v261_v44 = vmul.f32 %v814_v20, %v223_v32  ;;  %v262_v45 = vmul.f32 %v814_v20, %v224_v33 }
  0x21   : > { %v287_v46 = vadd.f32 %v832_v38, %v249_v28  ;;  %v288_v47 = vadd.f32 %v832_v38, %v250_v29  ;;  %v289_v48 = vadd.f32 %v832_v38, %v251_v30  ;;  %v290_v49 = vadd.f32 %v832_v38, %v252_v34  ;;  %v232_v30 = vld [vmem:[%s801_s24 + $0xa8] sm:$0xff] }
  0x22   : > { %v291_v50 = vadd.f32 %v832_v38, %v253_v35  ;;  %v292_v51 = vadd.f32 %v832_v38, %v254_v36  ;;  %v293_v52 = vadd.f32 %v832_v38, %v255_v37  ;;  %v294_v53 = vadd.f32 %v832_v38, %v256_v39  ;;  %v233_v35 = vld [vmem:[%s801_s24 + $0xb0] sm:$0xff] }
  0x23   : > { %v319_v54 = vmax.f32 %v287_v46, 0.0  ;;  %v320_v55 = vmax.f32 %v288_v47, 0.0  ;;  %v321_v56 = vmax.f32 %v289_v48, 0.0  ;;  %v322_v57 = vmax.f32 %v290_v49, 0.0  ;;  %v235_v46 = vld [vmem:[%s801_s24 + $0xc0] sm:$0xff] }
  0x24   : > { %v323_v58 = vmax.f32 %v291_v50, 0.0  ;;  %v324_v59 = vmax.f32 %v292_v51, 0.0  ;;  %v325_v60 = vmax.f32 %v293_v52, 0.0  ;;  %v326_v61 = vmax.f32 %v294_v53, 0.0  ;;  %v236_v51 = vld [vmem:[%s801_s24 + $0xc8] sm:$0xff] }
  0x25   : > { %v646_v62 = vpack.c.bf16 %v320_v55, %v319_v54  ;;  %v651_v63 = vpack.c.bf16 %v322_v57, %v321_v56  ;;  %v295_v0 = vadd.f32 %v832_v38, %v257_v40  ;;  %v296_v1 = vadd.f32 %v832_v38, %v258_v41  ;;  %v234_v41 = vld [vmem:[%s801_s24 + $0xb8] sm:$0xff]  ;;  %v237_v56 = vld [vmem:[%s801_s24 + $0xd0] sm:$0xff] }
  0x26   : > { %v656_v4 = vpack.c.bf16 %v324_v59, %v323_v58  ;;  %v661_v5 = vpack.c.bf16 %v326_v61, %v325_v60  ;;  %v297_v6 = vadd.f32 %v832_v38, %v259_v42  ;;  %v298_v7 = vadd.f32 %v832_v38, %v260_v43  ;;  %v238_v57 = vld [vmem:[%s801_s24 + $0xd8] sm:$0xff] }
  0x27   : > { %647 = vst [vmem:[%s853_s6] sm:$0xff] %v646_v62   ;;  %723 = vst [vmem:[%s853_s6 + $0x8] sm:$0xff] %v651_v63   ;;  %v327_v9 = vmax.f32 %v295_v0, 0.0  ;;  %v328_v10 = vmax.f32 %v296_v1, 0.0  ;;  %v299_v11 = vadd.f32 %v832_v38, %v261_v44  ;;  %v300_v12 = vadd.f32 %v832_v38, %v262_v45  ;;  %v239_v62 = vld [vmem:[%s801_s24 + $0xe0] sm:$0xff] }
  0x28   : > { %724 = vst [vmem:[%s853_s6 + $0x10] sm:$0xff] %v656_v4   ;;  %725 = vst [vmem:[%s853_s6 + $0x18] sm:$0xff] %v661_v5   ;;  %v329_v14 = vmax.f32 %v297_v6, 0.0  ;;  %v330_v15 = vmax.f32 %v298_v7, 0.0  ;;  %v263_v16 = vmul.f32 %v814_v20, %v225_v2  ;;  %v264_v17 = vmul.f32 %v814_v20, %v226_v3  ;;  %v240_v3 = vld [vmem:[%s801_s24 + $0xe8] sm:$0xff] }
  0x29   : > { %v666_v21 = vpack.c.bf16 %v328_v10, %v327_v9  ;;  %v331_v22 = vmax.f32 %v299_v11, 0.0  ;;  %v332_v23 = vmax.f32 %v300_v12, 0.0  ;;  %v265_v24 = vmul.f32 %v814_v20, %v227_v8  ;;  %v241_v8 = vld [vmem:[%s801_s24 + $0xf0] sm:$0xff] }
  0x2a   : > { %v671_v26 = vpack.c.bf16 %v330_v15, %v329_v14  ;;  %v301_v27 = vadd.f32 %v832_v38, %v263_v16  ;;  %v302_v28 = vadd.f32 %v832_v38, %v264_v17  ;;  %v266_v29 = vmul.f32 %v814_v20, %v228_v13  ;;  %v242_v13 = vld [vmem:[%s801_s24 + $0xf8] sm:$0xff] }
  0x2b   : > { %726 = vst [vmem:[%s853_s6 + $0x20] sm:$0xff] %v666_v21   ;;  %v676_v31 = vpack.c.bf16 %v332_v23, %v331_v22  ;;  %v303_v32 = vadd.f32 %v832_v38, %v265_v24  ;;  %v267_v33 = vmul.f32 %v814_v20, %v229_v18  ;;  %v268_v34 = vmul.f32 %v814_v20, %v230_v19 }
  0x2c   : > { %727 = vst [vmem:[%s853_s6 + $0x28] sm:$0xff] %v671_v26   ;;  %v333_v36 = vmax.f32 %v301_v27, 0.0  ;;  %v334_v37 = vmax.f32 %v302_v28, 0.0  ;;  %v304_v39 = vadd.f32 %v832_v38, %v266_v29  ;;  %v269_v40 = vmul.f32 %v814_v20, %v231_v25 }
  0x2d   : > { %728 = vst [vmem:[%s853_s6 + $0x30] sm:$0xff] %v676_v31   ;;  %v335_v42 = vmax.f32 %v303_v32, 0.0  ;;  %v305_v43 = vadd.f32 %v832_v38, %v267_v33  ;;  %v306_v44 = vadd.f32 %v832_v38, %v268_v34  ;;  %v270_v45 = vmul.f32 %v814_v20, %v232_v30 }
  0x2e   : > { %v681_v47 = vpack.c.bf16 %v334_v37, %v333_v36  ;;  %v336_v48 = vmax.f32 %v304_v39, 0.0  ;;  %v307_v49 = vadd.f32 %v832_v38, %v269_v40  ;;  %v271_v50 = vmul.f32 %v814_v20, %v233_v35 }
  0x2f   : > { %v337_v52 = vmax.f32 %v305_v43, 0.0  ;;  %v338_v53 = vmax.f32 %v306_v44, 0.0  ;;  %v308_v54 = vadd.f32 %v832_v38, %v270_v45  ;;  %v272_v55 = vmul.f32 %v814_v20, %v234_v41 }
  0x30   : > { %729 = vst [vmem:[%s853_s6 + $0x38] sm:$0xff] %v681_v47   ;;  %v686_v58 = vpack.c.bf16 %v336_v48, %v335_v42  ;;  %v339_v59 = vmax.f32 %v307_v49, 0.0  ;;  %v309_v60 = vadd.f32 %v832_v38, %v271_v50  ;;  %v273_v61 = vmul.f32 %v814_v20, %v235_v46 }
  0x31   : > { %v691_v63 = vpack.c.bf16 %v338_v53, %v337_v52  ;;  %v340_v0 = vmax.f32 %v308_v54, 0.0  ;;  %v310_v1 = vadd.f32 %v832_v38, %v272_v55  ;;  %v274_v2 = vmul.f32 %v814_v20, %v236_v51 }
  0x32   : > { %730 = vst [vmem:[%s853_s6 + $0x40] sm:$0xff] %v686_v58   ;;  %v341_v4 = vmax.f32 %v309_v60, 0.0  ;;  %v311_v5 = vadd.f32 %v832_v38, %v273_v61  ;;  %v275_v6 = vmul.f32 %v814_v20, %v237_v56  ;;  %v276_v7 = vmul.f32 %v814_v20, %v238_v57 }
  0x33   : > { %731 = vst [vmem:[%s853_s6 + $0x48] sm:$0xff] %v691_v63   ;;  %v696_v9 = vpack.c.bf16 %v340_v0, %v339_v59  ;;  %v342_v10 = vmax.f32 %v310_v1, 0.0  ;;  %v312_v11 = vadd.f32 %v832_v38, %v274_v2  ;;  %v277_v12 = vmul.f32 %v814_v20, %v239_v62 }
  0x34   : > { %v343_v14 = vmax.f32 %v311_v5, 0.0  ;;  %v313_v15 = vadd.f32 %v832_v38, %v275_v6  ;;  %v314_v16 = vadd.f32 %v832_v38, %v276_v7  ;;  %v278_v17 = vmul.f32 %v814_v20, %v240_v3 }
  0x35   : > { %732 = vst [vmem:[%s853_s6 + $0x50] sm:$0xff] %v696_v9   ;;  %v701_v18 = vpack.c.bf16 %v342_v10, %v341_v4  ;;  %v344_v19 = vmax.f32 %v312_v11, 0.0  ;;  %v315_v21 = vadd.f32 %v832_v38, %v277_v12  ;;  %v279_v22 = vmul.f32 %v814_v20, %v241_v8 }
  0x36   : > { %v345_v23 = vmax.f32 %v313_v15, 0.0  ;;  %v346_v24 = vmax.f32 %v314_v16, 0.0  ;;  %v316_v25 = vadd.f32 %v832_v38, %v278_v17  ;;  %v280_v26 = vmul.f32 %v814_v20, %v242_v13 }
  0x37   : > { %733 = vst [vmem:[%s853_s6 + $0x58] sm:$0xff] %v701_v18   ;;  %v706_v27 = vpack.c.bf16 %v344_v19, %v343_v14  ;;  %v347_v28 = vmax.f32 %v315_v21, 0.0  ;;  %v317_v29 = vadd.f32 %v832_v38, %v279_v22 }
  0x38   : > { %v711_v30 = vpack.c.bf16 %v346_v24, %v345_v23  ;;  %v348_v31 = vmax.f32 %v316_v25, 0.0  ;;  %v318_v32 = vadd.f32 %v832_v38, %v280_v26 }
  0x39   : > { %734 = vst [vmem:[%s853_s6 + $0x60] sm:$0xff] %v706_v27   ;;  %v349_v33 = vmax.f32 %v317_v29, 0.0 }
  0x3a   : > { %735 = vst [vmem:[%s853_s6 + $0x68] sm:$0xff] %v711_v30   ;;  %v716_v34 = vpack.c.bf16 %v348_v31, %v347_v28  ;;  %v350_v35 = vmax.f32 %v318_v32, 0.0 }
  0x3c   : > { %736 = vst [vmem:[%s853_s6 + $0x70] sm:$0xff] %v716_v34   ;;  %v721_v36 = vpack.c.bf16 %v350_v35, %v349_v33 }
  0x3e   : > { %737 = vst [vmem:[%s853_s6 + $0x78] sm:$0xff] %v721_v36  }
  0x3f PF: > { %s14_s15 = sadd.s32 1, %s754_s15  }
  0x40   : > { %p11_p4 = scmp.ge.s32.totalorder %s14_s15, 4  }
  0x42   :  { %13 = sbr.rel (!%p11_p4) target bundleno = 1 (0x1), region = 66 }

// kernel: baseline_basic_block.6
= control target key start
LH: loop header
LB: loop body
LE: loop exit
PB: predicated region body
PF: predicated region fallthrough
CT: control target
= control target key end

     0   :  { %s6950_s12 = smov 0   ;;  %s8000_s0 = inlined_call_operand.vmem [shape: bf16[2,16,16,128], index: 0, kind: input, shape index: {}]   ;;  %s8001_s1 = inlined_call_operand.vmem [shape: bf16[9,128,128], index: 1, kind: input, shape index: {}]   ;;  %s8002_s2 = inlined_call_operand.vmem [shape: f32[2,16,16,128], index: 2, kind: output, shape index: {0}]   ;;  %s8003_s3 = inlined_call_operand.vmem [shape: f32[2,128], index: 3, kind: output, shape index: {1}]  }
   0x1 LB: > { %s4583_s13 = sadd.s32 4294967295, %s6925_s12   ;;  %p4587_p0 = scmp.ge.s32.totalorder %s6925_s12, 1  ;;  %s6925_s12 = sphi %s6950_s12, %s14_s12  }
   0x2   : > { %p135_p1 = scmp.lt.s32.totalorder %s6925_s12, 3 }
   0x4   : > { %p136_p2 = pnand %p4587_p0, %p135_p1 }
   0x5   : > { %p159_p3 = scmp.lt.s32.totalorder (!%p136_p2), %s4583_s13, 1  ;;  %p4592_p4 = scmp.ne.s32.totalorder (!%p136_p2), %s4583_s13, 0 }
   0x6   : > { %139 = sbr.rel (%p136_p2) target bundleno = 1044 (0x414), region = 28 }
   0xd   : > { %s160_s14 = scalar_select %p159_p3, %s4583_s13, 1 }
   0xe   : > { %173 = sbr.rel (%p4592_p4) target bundleno = 39 (0x27), region = 32  ;;  %v6927_v0 = vmov (!%p4592_p4), 0.0  }
   0xf   : > { %s4855_s15 = sshll.u32 %s160_s14, 7  ;;  %s4856_s16 = sshll.u32 %s160_s14, 8  ;;  %174 = vst [vmem:[#allocation2] sm:$0xff] (!%p4592_p4), %v6927_v0  ;;  %175 = vst [vmem:[#allocation2 + $0x8] sm:$0xff] (!%p4592_p4), %v6927_v0 }
  0x10   : > { %s6961_s19 = scalar_lea.vmem %s8000_s0, %s4855_s15  ;;  %s6966_s22 = scalar_lea.vmem %s8002_s2, %s4856_s16  ;;  %176 = vst [vmem:[#allocation2 + $0x10] sm:$0xff] (!%p4592_p4), %v6927_v0  ;;  %177 = vst [vmem:[#allocation2 + $0x18] sm:$0xff] (!%p4592_p4), %v6927_v0 }
  0x11   : > { %178 = vst [vmem:[#allocation2 + $0x20] sm:$0xff] (!%p4592_p4), %v6927_v0  ;;  %179 = vst [vmem:[#allocation2 + $0x28] sm:$0xff] (!%p4592_p4), %v6927_v0 }
  0x12   : > { %180 = vst [vmem:[#allocation2 + $0x30] sm:$0xff] (!%p4592_p4), %v6927_v0  ;;  %181 = vst [vmem:[#allocation2 + $0x38] sm:$0xff] (!%p4592_p4), %v6927_v0 }
  0x13   : > { %182 = vst [vmem:[#allocation2 + $0x40] sm:$0xff] (!%p4592_p4), %v6927_v0  ;;  %183 = vst [vmem:[#allocation2 + $0x48] sm:$0xff] (!%p4592_p4), %v6927_v0 }
  0x14   : > { %184 = vst [vmem:[#allocation2 + $0x50] sm:$0xff] (!%p4592_p4), %v6927_v0  ;;  %185 = vst [vmem:[#allocation2 + $0x58] sm:$0xff] (!%p4592_p4), %v6927_v0 }
  0x15   : > { %186 = vst [vmem:[#allocation2 + $0x60] sm:$0xff] %v6927_v0  ;;  %187 = vst [vmem:[#allocation2 + $0x68] sm:$0xff] %v6927_v0 }
  0x16   : > { %188 = vst [vmem:[#allocation2 + $0x70] sm:$0xff] %v6927_v0  ;;  %189 = vst [vmem:[#allocation2 + $0x78] sm:$0xff] %v6927_v0 }
  0x17   : > { %190 = vst [vmem:[#allocation2 + $0x80] sm:$0xff] %v6927_v0  ;;  %191 = vst [vmem:[#allocation2 + $0x88] sm:$0xff] %v6927_v0 }
  0x18   : > { %192 = vst [vmem:[#allocation2 + $0x90] sm:$0xff] %v6927_v0  ;;  %193 = vst [vmem:[#allocation2 + $0x98] sm:$0xff] %v6927_v0 }
  0x19   : > { %194 = vst [vmem:[#allocation2 + $0xa0] sm:$0xff] %v6927_v0  ;;  %195 = vst [vmem:[#allocation2 + $0xa8] sm:$0xff] %v6927_v0 }
  0x1a   : > { %196 = vst [vmem:[#allocation2 + $0xb0] sm:$0xff] %v6927_v0  ;;  %197 = vst [vmem:[#allocation2 + $0xb8] sm:$0xff] %v6927_v0 }
  0x1b   : > { %198 = vst [vmem:[#allocation2 + $0xc0] sm:$0xff] %v6927_v0  ;;  %199 = vst [vmem:[#allocation2 + $0xc8] sm:$0xff] %v6927_v0 }
  0x1c   : > { %200 = vst [vmem:[#allocation2 + $0xd0] sm:$0xff] %v6927_v0  ;;  %201 = vst [vmem:[#allocation2 + $0xd8] sm:$0xff] %v6927_v0 }
  0x1d   : > { %202 = vst [vmem:[#allocation2 + $0xe0] sm:$0xff] %v6927_v0  ;;  %203 = vst [vmem:[#allocation2 + $0xe8] sm:$0xff] %v6927_v0 }
  0x1e   : > { %204 = vst [vmem:[#allocation2 + $0xf0] sm:$0xff] %v6927_v0  ;;  %205 = vst [vmem:[#allocation2 + $0xf8] sm:$0xff] %v6927_v0 }
  0x1f   : > { %206 = vst [vmem:[#allocation2 + $0x100] sm:$0xff] %v6927_v0  ;;  %207 = vst [vmem:[#allocation2 + $0x108] sm:$0xff] %v6927_v0 }
  0x20   : > { %208 = vst [vmem:[#allocation2 + $0x110] sm:$0xff] %v6927_v0  ;;  %209 = vst [vmem:[#allocation2 + $0x118] sm:$0xff] %v6927_v0 }
  0x21   : > { %210 = vst [vmem:[#allocation2 + $0x120] sm:$0xff] %v6927_v0  ;;  %211 = vst [vmem:[#allocation2 + $0x128] sm:$0xff] %v6927_v0 }
  0x22   : > { %212 = vst [vmem:[#allocation2 + $0x130] sm:$0xff] %v6927_v0  ;;  %213 = vst [vmem:[#allocation2 + $0x138] sm:$0xff] %v6927_v0 }
  0x23   : > { %214 = vst [vmem:[#allocation2 + $0x140] sm:$0xff] %v6927_v0  ;;  %215 = vst [vmem:[#allocation2 + $0x148] sm:$0xff] %v6927_v0 }
  0x24   : > { %216 = vst [vmem:[#allocation2 + $0x150] sm:$0xff] %v6927_v0  ;;  %217 = vst [vmem:[#allocation2 + $0x158] sm:$0xff] %v6927_v0 }
  0x25   : > { %218 = vst [vmem:[#allocation2 + $0x160] sm:$0xff] %v6927_v0  ;;  %219 = vst [vmem:[#allocation2 + $0x168] sm:$0xff] %v6927_v0 }
  0x26   : > { %220 = vst [vmem:[%s8003_s3] sm:$0x3] %v6927_v0 }
  0x27 PF: > { %v6835_v1 = vld [vmem:[%s8001_s1] sm:$0xff]   ;;  %v6928_v2 = vmov 0.0   ;;  %v6837_v4 = vld [vmem:[%s8001_s1 + $0x8] sm:$0xff]   ;;  %vm6929_vm0 = vmmov 0   ;;  %v6839_v6 = vld [vmem:[%s8001_s1 + $0x10] sm:$0xff]  }
  0x28   : > { %5197 = vmatprep.subr.bf16.mxu1 %v6928_v2  ;;  %5597 = vmatprep.subr.bf16.mxu0 %v6928_v2  ;;  %v6836_v3 = vld [vmem:[%s8001_s1 + $0x100] sm:$0xff]   ;;  %v6838_v5 = vld [vmem:[%s8001_s1 + $0x108] sm:$0xff]   ;;  %v6840_v7 = vld [vmem:[%s8001_s1 + $0x110] sm:$0xff]  }
  0x29   : > { %5198 = vmatpush3.bf16.msra.mxu1 %v6835_v1  ;;  %5213 = vmatprep.mubr.msk.bf16.mxu1 %vm6929_vm0, %v6928_v2  ;;  %v6841_v8 = vld [vmem:[%s8001_s1 + $0x18] sm:$0xff]   ;;  %v6843_v10 = vld [vmem:[%s8001_s1 + $0x20] sm:$0xff]   ;;  %v6845_v15 = vld [vmem:[%s8001_s1 + $0x28] sm:$0xff]  }
  0x2a   : > { %5598 = vmatpush3.bf16.msra.mxu0 %v6836_v3  ;;  %5199 = vmatprep.subr.bf16.mxu1 %v6928_v2  ;;  %v6842_v9 = vld [vmem:[%s8001_s1 + $0x118] sm:$0xff]   ;;  %v6844_v11 = vld [vmem:[%s8001_s1 + $0x120] sm:$0xff]   ;;  %v6846_v16 = vld [vmem:[%s8001_s1 + $0x128] sm:$0xff]  }
  0x2b   : > { %5599 = vmatprep.subr.bf16.mxu0 %v6928_v2  ;;  %5613 = vmatprep.mubr.msk.bf16.mxu0 %vm6929_vm0, %v6928_v2  ;;  %v4858_v12 = vld [vmem:[%s6961_s19] sm:$0xff]   ;;  %v4921_v17 = vld [vmem:[%s6961_s19 + $0x8] sm:$0xff]   ;;  %v4922_v20 = vld [vmem:[%s6961_s19 + $0x10] sm:$0xff]  }
  0x2c   : > { %v4859_v13 = vunpack.c.l.bf16 %v4858_v12  ;;  %v4860_v14 = vunpack.c.h.bf16 %v4858_v12  ;;  %v4863_v18 = vunpack.c.l.bf16 %v4921_v17  ;;  %v4864_v19 = vunpack.c.h.bf16 %v4921_v17  ;;  %v6847_v21 = vld [vmem:[%s8001_s1 + $0x30] sm:$0xff]   ;;  %v7034_v25 = vld [vmem:[%s6961_s19 + $0x18] sm:$0xff]   ;;  %v7037_v26 = vld [vmem:[%s6961_s19 + $0x20] sm:$0xff]  }
  0x2d   : > { %5200 = vmatpush3.bf16.msra.mxu1 %v6837_v4  ;;  %v4867_v22 = vunpack.c.l.bf16 %v4922_v20  ;;  %v4868_v23 = vunpack.c.h.bf16 %v4922_v20  ;;  %v6848_v24 = vld [vmem:[%s8001_s1 + $0x130] sm:$0xff]   ;;  %v4871_v27 = vunpack.c.l.bf16 %v7034_v25  ;;  %v4872_v28 = vunpack.c.h.bf16 %v7034_v25  ;;  %v4925_v31 = vld [vmem:[%s6961_s19 + $0x28] sm:$0xff]   ;;  %v6849_v32 = vld [vmem:[%s8001_s1 + $0x38] sm:$0xff]  }
  0x2e   : > { %5600 = vmatpush3.bf16.msra.mxu0 %v6838_v5  ;;  %5201 = vmatprep.subr.bf16.mxu1 %v6928_v2  ;;  %225 = vst [vmem:[#allocation2 + $0x13] sm:$0xff] %v4859_v13  ;;  %226 = vst [vmem:[#allocation2 + $0x1b] sm:$0xff] %v4860_v14  ;;  %v4875_v29 = vunpack.c.l.bf16 %v7037_v26  ;;  %v4876_v30 = vunpack.c.h.bf16 %v7037_v26  ;;  %v4879_v33 = vunpack.c.l.bf16 %v4925_v31  ;;  %v4880_v34 = vunpack.c.h.bf16 %v4925_v31  ;;  %v332_v35 = vld [vmem:[#allocation2] sm:$0xff]  ;;  %v333_v36 = vld [vmem:[#allocation2 + $0x8] sm:$0xff] }
  0x2f   : > { %5601 = vmatprep.subr.bf16.mxu0 %v6928_v2  ;;  %232 = vst [vmem:[#allocation2 + $0x25] sm:$0xff] %v4863_v18  ;;  %233 = vst [vmem:[#allocation2 + $0x2d] sm:$0xff] %v4864_v19  ;;  %v6850_v37 = vld [vmem:[%s8001_s1 + $0x138] sm:$0xff]   ;;  %v4926_v38 = vld [vmem:[%s6961_s19 + $0x30] sm:$0xff]   ;;  %v373_v42 = vpack.c.bf16 %v333_v36, %v332_v35 }
  0x30   : > { %239 = vst [vmem:[#allocation2 + $0x37] sm:$0xff] %v4867_v22  ;;  %240 = vst [vmem:[#allocation2 + $0x3f] sm:$0xff] %v4868_v23  ;;  %v4883_v39 = vunpack.c.l.bf16 %v4926_v38  ;;  %v4884_v40 = vunpack.c.h.bf16 %v4926_v38  ;;  %v4927_v41 = vld [vmem:[%s6961_s19 + $0x38] sm:$0xff]   ;;  %v6851_v45 = vld [vmem:[%s6961_s19] sm:$0xff] }
  0x31   : > { %5202 = vmatpush3.bf16.msra.mxu1 %v6839_v6  ;;  %246 = vst [vmem:[#allocation2 + $0x49] sm:$0xff] %v4871_v27  ;;  %247 = vst [vmem:[#allocation2 + $0x51] sm:$0xff] %v4872_v28  ;;  %v4887_v43 = vunpack.c.l.bf16 %v4927_v41  ;;  %v4888_v44 = vunpack.c.h.bf16 %v4927_v41  ;;  %v6852_v46 = vld [vmem:[%s8001_s1 + $0x40] sm:$0xff]   ;;  %v6855_v50 = vld [vmem:[%s8001_s1 + $0x48] sm:$0xff]  }
  0x32   : > { %5602 = vmatpush3.bf16.msra.mxu0 %v6840_v7  ;;  %5203 = vmatprep.subr.bf16.mxu1 %v6928_v2  ;;  %253 = vst [vmem:[#allocation2 + $0x5b] sm:$0xff] %v4875_v29  ;;  %254 = vst [vmem:[#allocation2 + $0x63] sm:$0xff] %v4876_v30  ;;  %v6853_v47 = vld [vmem:[%s8001_s1 + $0x140] sm:$0xff]   ;;  %v6854_v53 = vld [vmem:[%s8001_s1 + $0x148] sm:$0xff]  }
  0x33   : > { %5603 = vmatprep.subr.bf16.mxu0 %v6928_v2  ;;  %260 = vst [vmem:[#allocation2 + $0x6d] sm:$0xff] %v4879_v33  ;;  %261 = vst [vmem:[#allocation2 + $0x75] sm:$0xff] %v4880_v34  ;;  %v6856_v56 = vld [vmem:[%s8001_s1 + $0x150] sm:$0xff]   ;;  %v6857_v61 = vld [vmem:[%s8001_s1 + $0x158] sm:$0xff]  }
  0x34   : > { %267 = vst [vmem:[#allocation2 + $0x7f] sm:$0xff] %v4883_v39  ;;  %268 = vst [vmem:[#allocation2 + $0x87] sm:$0xff] %v4884_v40  ;;  %v6858_v58 = vld [vmem:[%s8001_s1 + $0x50] sm:$0xff]   ;;  %v4928_v62 = vld [vmem:[%s6961_s19 + $0x40] sm:$0xff]  }
  0x35   : > { %5204 = vmatpush3.bf16.msra.mxu1 %v6841_v8  ;;  %274 = vst [vmem:[#allocation2 + $0x91] sm:$0xff] %v4887_v43  ;;  %275 = vst [vmem:[#allocation2 + $0x99] sm:$0xff] %v4888_v44  ;;  %v334_v48 = vld [vmem:[#allocation2 + $0x10] sm:$0xff]  ;;  %v335_v49 = vld [vmem:[#allocation2 + $0x18] sm:$0xff]  ;;  %v4891_v0 = vunpack.c.l.bf16 %v4928_v62  ;;  %v4892_v1 = vunpack.c.h.bf16 %v4928_v62 }
  0x36   : > { %5604 = vmatpush3.bf16.msra.mxu0 %v6842_v9  ;;  %5205 = vmatprep.subr.bf16.mxu1 %v6928_v2  ;;  %v2051_v51 = vld [vmem:[#allocation2 + $0x23] sm:$0xff]  ;;  %v2052_v52 = vld [vmem:[#allocation2 + $0x2b] sm:$0xff]  ;;  %v374_v54 = vpack.c.bf16 %v335_v49, %v334_v48  ;;  %v6861_v4 = vld [vmem:[%s8001_s1 + $0x58] sm:$0xff]  }
  0x37   : > { %5605 = vmatprep.subr.bf16.mxu0 %v6928_v2  ;;  %v2091_v55 = vpack.c.bf16 %v2052_v52, %v2051_v51  ;;  %v336_v57 = vld [vmem:[#allocation2 + $0x20] sm:$0xff]  ;;  %v337_v59 = vld [vmem:[#allocation2 + $0x28] sm:$0xff]  ;;  %v2053_v60 = vld [vmem:[#allocation2 + $0x33] sm:$0xff]  ;;  %281 = vst [vmem:[#allocation2 + $0xa3] sm:$0xff] %v4891_v0 }
  0x38   : > { %v2054_v63 = vld [vmem:[#allocation2 + $0x3b] sm:$0xff]  ;;  %v4929_v3 = vld [vmem:[%s6961_s19 + $0x48] sm:$0xff]   ;;  %282 = vst [vmem:[#allocation2 + $0xab] sm:$0xff] %v4892_v1  ;;  %v375_v7 = vpack.c.bf16 %v337_v59, %v336_v57  ;;  %v4930_v9 = vld [vmem:[%s6961_s19 + $0x50] sm:$0xff]  }
  0x39   : > { %5206 = vmatpush3.bf16.msra.mxu1 %v6843_v10  ;;  %v4895_v5 = vunpack.c.l.bf16 %v4929_v3  ;;  %v4896_v6 = vunpack.c.h.bf16 %v4929_v3  ;;  %v2092_v8 = vpack.c.bf16 %v2054_v63, %v2053_v60  ;;  %v6859_v10 = vld [vmem:[%s8001_s1 + $0x160] sm:$0xff]   ;;  %v4900_v12 = vunpack.c.h.bf16 %v4930_v9  ;;  %v7111_v13 = vld [vmem:[%s6961_s19 + $0x58] sm:$0xff]   ;;  %v338_v17 = vld [vmem:[#allocation2 + $0x30] sm:$0xff] }
  0x3a   : > { %5606 = vmatpush3.bf16.msra.mxu0 %v6844_v11  ;;  %5207 = vmatprep.subr.bf16.mxu1 %v6928_v2  ;;  %v4899_v11 = vunpack.c.l.bf16 %v4930_v9  ;;  %v6865_v14 = vld [vmem:[%s8001_s1 + $0x60] sm:$0xff]   ;;  %v339_v18 = vld [vmem:[#allocation2 + $0x38] sm:$0xff]  ;;  %v6860_v19 = vld [vmem:[%s8001_s1 + $0x168] sm:$0xff]  }
  0x3b   : > { %5607 = vmatprep.subr.bf16.mxu0 %v6928_v2  ;;  %288 = vst [vmem:[#allocation2 + $0xb5] sm:$0xff] %v4895_v5  ;;  %289 = vst [vmem:[#allocation2 + $0xbd] sm:$0xff] %v4896_v6  ;;  %v4932_v20 = vld [vmem:[%s6961_s19 + $0x60] sm:$0xff]   ;;  %v2056_v22 = vld [vmem:[#allocation2 + $0x4b] sm:$0xff]  ;;  %v376_v35 = vpack.c.bf16 %v339_v18, %v338_v17 }
  0x3c   : > { %295 = vst [vmem:[#allocation2 + $0xc7] sm:$0xff] %v4899_v11  ;;  %296 = vst [vmem:[#allocation2 + $0xcf] sm:$0xff] %v4900_v12  ;;  %v4907_v23 = vunpack.c.l.bf16 %v4932_v20  ;;  %v4933_v31 = vld [vmem:[%s6961_s19 + $0x68] sm:$0xff]   ;;  %v4934_v38 = vld [vmem:[%s6961_s19 + $0x70] sm:$0xff]  }
  0x3d   : > { %5208 = vmatpush3.bf16.msra.mxu1 %v6845_v15  ;;  %v4903_v15 = vunpack.c.l.bf16 %v7111_v13  ;;  %v4911_v33 = vunpack.c.l.bf16 %v4933_v31  ;;  %v4912_v34 = vunpack.c.h.bf16 %v4933_v31  ;;  %v6869_v39 = vld [vmem:[%s8001_s1 + $0x70] sm:$0xff]   ;;  %v4915_v40 = vunpack.c.l.bf16 %v4934_v38  ;;  %v341_v43 = vld [vmem:[#allocation2 + $0x48] sm:$0xff]  ;;  %v6871_v51 = vld [vmem:[%s8001_s1 + $0x78] sm:$0xff]  }
  0x3e   : > { %5608 = vmatpush3.bf16.msra.mxu0 %v6846_v16  ;;  %5209 = vmatprep.subr.bf16.mxu1 %v6928_v2  ;;  %v4904_v16 = vunpack.c.h.bf16 %v7111_v13  ;;  %309 = vst [vmem:[#allocation2 + $0xeb] sm:$0xff] %v4907_v23  ;;  %v4916_v41 = vunpack.c.h.bf16 %v4934_v38  ;;  %v2057_v44 = vld [vmem:[#allocation2 + $0x53] sm:$0xff]  ;;  %v345_v57 = vld [vmem:[#allocation2 + $0x68] sm:$0xff]  ;;  %v2062_v59 = vld [vmem:[#allocation2 + $0x7b] sm:$0xff] }
  0x3f   : > { %5609 = vmatprep.subr.bf16.mxu0 %v6928_v2  ;;  %302 = vst [vmem:[#allocation2 + $0xd9] sm:$0xff] %v4903_v15  ;;  %316 = vst [vmem:[#allocation2 + $0xfd] sm:$0xff] %v4911_v33  ;;  %v342_v52 = vld [vmem:[#allocation2 + $0x50] sm:$0xff]  ;;  %v347_v63 = vld [vmem:[#allocation2 + $0x78] sm:$0xff] }
  0x40   : > { %303 = vst [vmem:[#allocation2 + $0xe1] sm:$0xff] %v4904_v16  ;;  %317 = vst [vmem:[#allocation2 + $0x105] sm:$0xff] %v4912_v34  ;;  %v346_v62 = vld [vmem:[#allocation2 + $0x70] sm:$0xff]  ;;  %v2063_v26 = vld [vmem:[#allocation2 + $0x83] sm:$0xff] }
  0x41   : > { %5210 = vmatpush3.bf16.msra.mxu1 %v6847_v21  ;;  %v2055_v21 = vld [vmem:[#allocation2 + $0x43] sm:$0xff]  ;;  %323 = vst [vmem:[#allocation2 + $0x10f] sm:$0xff] %v4915_v40  ;;  %324 = vst [vmem:[#allocation2 + $0x117] sm:$0xff] %v4916_v41  ;;  %v380_v0 = vpack.c.bf16 %v347_v63, %v346_v62  ;;  %v2065_v5 = vld [vmem:[#allocation2 + $0x93] sm:$0xff] }
  0x42   : > { %5610 = vmatpush3.bf16.msra.mxu0 %v6848_v24  ;;  %5211 = vmatprep.subr.bf16.mxu1 %v6928_v2  ;;  %v4908_v24 = vunpack.c.h.bf16 %v4932_v20  ;;  %v2093_v36 = vpack.c.bf16 %v2056_v22, %v2055_v21  ;;  %v348_v3 = vld [vmem:[#allocation2 + $0x80] sm:$0xff]  ;;  %v350_v9 = vld [vmem:[#allocation2 + $0x90] sm:$0xff]  ;;  %v353_v17 = vld [vmem:[#allocation2 + $0xa8] sm:$0xff] }
  0x43   : > { %5611 = vmatprep.subr.bf16.mxu0 %v6928_v2  ;;  %v2066_v6 = vld [vmem:[#allocation2 + $0x9b] sm:$0xff]  ;;  %v2069_v18 = vld [vmem:[#allocation2 + $0xb3] sm:$0xff] }
  0x44   : > { %310 = vst [vmem:[#allocation2 + $0xf3] sm:$0xff] %v4908_v24  ;;  %v6863_v12 = vld [vmem:[%s6961_s19 + $0x40] sm:$0xff]  ;;  %v354_v22 = vld [vmem:[#allocation2 + $0xb0] sm:$0xff]  ;;  %v355_v23 = vld [vmem:[#allocation2 + $0xb8] sm:$0xff] }
  0x45   : > { %5212 = vmatpush3.bf16.msra.mxu1 %v6849_v32  ;;  %v6867_v32 = vld [vmem:[%s8001_s1 + $0x68] sm:$0xff]   ;;  %v2499_v24 = vld [vmem:[#allocation2 + $0x14] sm:$0xff]  ;;  %v2500_v31 = vld [vmem:[#allocation2 + $0x1c] sm:$0xff] }
  0x46   : > { %5612 = vmatpush3.bf16.msra.mxu0 %v6850_v37  ;;  %5297 = vmatprep.subr.bf16.mxu1 %v6928_v2  ;;  %v6862_v37 = vld [vmem:[%s8001_s1 + $0x170] sm:$0xff]   ;;  %v2540_v33 = vpack.c.bf16 %v2500_v31, %v2499_v24  ;;  %v6866_v34 = vld [vmem:[%s8001_s1 + $0x180] sm:$0xff]   ;;  %v6880_v62 = vld [vmem:[%s8001_s1 + $0x1b8] sm:$0xff]  }
  0x47   : > { %5697 = vmatprep.subr.bf16.mxu0 %v6928_v2  ;;  %v2502_v38 = vld [vmem:[#allocation2 + $0x2c] sm:$0xff]  ;;  %v2516_v24 = vld [vmem:[#allocation2 + $0x9c] sm:$0xff] }
  0x48   : > { %5214 = vmatmul.mubr.bf16.vlgmr.msra.gmra.mrb[0].mxu1 %v373_v42  ;;  %v340_v42 = vld [vmem:[#allocation2 + $0x40] sm:$0xff]  ;;  %v713_v25 = vld [vmem:[#allocation2 + $0x71] sm:$0xff] }
  0x49   : > { %5614 = vmatmul.mubr.bf16.vlgmr.msra.gmra.mrb[0].mxu0 %v6851_v45  ;;  %5298 = vmatpush3.bf16.msra.mxu1 %v6852_v46  ;;  %v6864_v45 = vld [vmem:[%s8001_s1 + $0x178] sm:$0xff]   ;;  %v377_v49 = vpack.c.bf16 %v341_v43, %v340_v42  ;;  %v6870_v42 = vld [vmem:[%s8001_s1 + $0x190] sm:$0xff]  }
  0x4a   : > { %5698 = vmatpush3.bf16.msra.mxu0 %v6853_v47  ;;  %5217 = vmatprep.mubr.msk.bf16.mxu1 %vm6929_vm0, %v6928_v2  ;;  %v4935_v46 = vld [vmem:[%s6961_s19 + $0x78] sm:$0xff]   ;;  %v358_v43 = vld [vmem:[#allocation2 + $0xd0] sm:$0xff] }
  0x4b   : > { %5617 = vmatprep.mubr.msk.bf16.mxu0 %vm6929_vm0, %v6928_v2  ;;  %5699 = vmatprep.subr.bf16.mxu0 %v6928_v2  ;;  %v4919_v47 = vunpack.c.l.bf16 %v4935_v46  ;;  %v4920_v48 = vunpack.c.h.bf16 %v4935_v46  ;;  %v2504_v46 = vld [vmem:[#allocation2 + $0x3c] sm:$0xff] }
  0x4c   : > { %5299 = vmatprep.subr.bf16.mxu1 %v6928_v2  ;;  %v6898_v13 = vld [vmem:[%s8001_s1 + $0x1f8] sm:$0xff]  }
  0x4d   : > { %5300 = vmatpush3.bf16.msra.mxu1 %v6855_v50  ;;  %v2094_v50 = vpack.c.bf16 %v4875_v29, %v2057_v44  ;;  %330 = vst [vmem:[#allocation2 + $0x121] sm:$0xff] %v4919_v47  ;;  %331 = vst [vmem:[#allocation2 + $0x129] sm:$0xff] %v4920_v48  ;;  %v2060_v29 = vld [vmem:[#allocation2 + $0x6b] sm:$0xff]  ;;  %v359_v44 = vld [vmem:[#allocation2 + $0xd8] sm:$0xff] }
  0x4e   : > { %5700 = vmatpush3.bf16.msra.mxu0 %v6854_v53  ;;  %5301 = vmatprep.subr.bf16.mxu1 %v6928_v2  ;;  %v343_v53 = vld [vmem:[#allocation2 + $0x58] sm:$0xff]  ;;  %v386_v48 = vpack.c.bf16 %v359_v44, %v358_v43 }
  0x4f   : > { %5701 = vmatprep.subr.bf16.mxu0 %v6928_v2  ;;  %v6872_v47 = vld [vmem:[%s8001_s1 + $0x198] sm:$0xff]  }
  0x50   : > { %5218 = vmatmul.mubr.bf16.gmra.mrb[4].mxu1 %v374_v54  ;;  %v378_v54 = vpack.c.bf16 %v343_v53, %v342_v52  ;;  %v361_v52 = vld [vmem:[#allocation2 + $0xe8] sm:$0xff] }
  0x51   : > { %5618 = vmatmul.mubr.bf16.gmra.mrb[4].mxu0 %v2091_v55  ;;  %5221 = vmatprep.mubr.msk.bf16.mxu1 %vm6929_vm0, %v6928_v2  ;;  %v2095_v55 = vpack.c.bf16 %v2060_v29, %v4876_v30  ;;  %v2064_v30 = vld [vmem:[#allocation2 + $0x8b] sm:$0xff] }
  0x52   : > { %5621 = vmatprep.mubr.msk.bf16.mxu0 %vm6929_vm0, %v6928_v2  ;;  %5702 = vmatpush3.bf16.msra.mxu0 %v6856_v56  ;;  %v344_v56 = vld [vmem:[#allocation2 + $0x60] sm:$0xff]  ;;  %v2097_v1 = vpack.c.bf16 %v2064_v30, %v2063_v26  ;;  %v2506_v29 = vld [vmem:[#allocation2 + $0x4c] sm:$0xff] }
  0x53   : > { %5703 = vmatprep.subr.bf16.mxu0 %v6928_v2  ;;  %5302 = vmatpush3.bf16.msra.mxu1 %v6858_v58  ;;  %v2061_v58 = vld [vmem:[#allocation2 + $0x73] sm:$0xff]  ;;  %v379_v60 = vpack.c.bf16 %v345_v57, %v344_v56  ;;  %v2505_v53 = vld [vmem:[#allocation2 + $0x44] sm:$0xff] }
  0x54   : > { %5303 = vmatprep.subr.bf16.mxu1 %v6928_v2  ;;  %v7236_v56 = vpack.c.bf16 %v2506_v29, %v2505_v53  ;;  %v6878_v57 = vld [vmem:[%s8001_s1 + $0x1b0] sm:$0xff]   ;;  %v364_v30 = vld [vmem:[#allocation2 + $0x100] sm:$0xff] }
  0x55   : > { %v6877_v29 = vld [vmem:[%s8001_s1 + $0x90] sm:$0xff]  }
  0x56   : > { %5704 = vmatpush3.bf16.msra.mxu0 %v6857_v61  ;;  %v2096_v61 = vpack.c.bf16 %v2062_v59, %v2061_v58  ;;  %v362_v58 = vld [vmem:[#allocation2 + $0xf0] sm:$0xff]  ;;  %v363_v59 = vld [vmem:[#allocation2 + $0xf8] sm:$0xff] }
  0x57   : > { %5705 = vmatprep.subr.bf16.mxu0 %v6928_v2  ;;  %5304 = vmatpush3.bf16.msra.mxu1 %v6861_v4  ;;  %v349_v4 = vld [vmem:[#allocation2 + $0x88] sm:$0xff]  ;;  %v388_v63 = vpack.c.bf16 %v363_v59, %v362_v58  ;;  %v2524_v58 = vld [vmem:[#allocation2 + $0xdc] sm:$0xff] }
  0x58   : > { %5222 = vmatmul.mubr.bf16.gmra.mrb[8].mxu1 %v375_v7  ;;  %5305 = vmatprep.subr.bf16.mxu1 %v6928_v2  ;;  %v381_v7 = vpack.c.bf16 %v349_v4, %v348_v3  ;;  %v2510_v3 = vld [vmem:[#allocation2 + $0x6c] sm:$0xff]  ;;  %v6879_v59 = vld [vmem:[%s8001_s1 + $0x98] sm:$0xff]  }
  0x59   : > { %5622 = vmatmul.mubr.bf16.gmra.mrb[8].mxu0 %v2092_v8  ;;  %5225 = vmatprep.mubr.msk.bf16.mxu1 %vm6929_vm0, %v6928_v2  ;;  %v2098_v8 = vpack.c.bf16 %v2066_v6, %v2065_v5  ;;  %v366_v6 = vld [vmem:[#allocation2 + $0x110] sm:$0xff] }
  0x5a   : > { %5625 = vmatprep.mubr.msk.bf16.mxu0 %vm6929_vm0, %v6928_v2  ;;  %5706 = vmatpush3.bf16.msra.mxu0 %v6859_v10  ;;  %v351_v10 = vld [vmem:[#allocation2 + $0x98] sm:$0xff] }
  0x5b   : > { %5707 = vmatprep.subr.bf16.mxu0 %v6928_v2  ;;  %5306 = vmatpush3.bf16.msra.mxu1 %v6865_v14  ;;  %v382_v11 = vpack.c.bf16 %v351_v10, %v350_v9  ;;  %v352_v14 = vld [vmem:[#allocation2 + $0xa0] sm:$0xff] }
  0x5c   : > { %5307 = vmatprep.subr.bf16.mxu1 %v6928_v2  ;;  %v383_v20 = vpack.c.bf16 %v353_v17, %v352_v14  ;;  %v2512_v9 = vld [vmem:[#allocation2 + $0x7c] sm:$0xff]  ;;  %v369_v14 = vld [vmem:[#allocation2 + $0x128] sm:$0xff] }
  0x5d   : > { %v2513_v17 = vld [vmem:[#allocation2 + $0x84] sm:$0xff] }
  0x5e   : > { %5708 = vmatpush3.bf16.msra.mxu0 %v6860_v19  ;;  %v2070_v19 = vld [vmem:[#allocation2 + $0xbb] sm:$0xff] }
  0x5f   : > { %5709 = vmatprep.subr.bf16.mxu0 %v6928_v2  ;;  %5308 = vmatpush3.bf16.msra.mxu1 %v6867_v32  ;;  %v2100_v21 = vpack.c.bf16 %v2070_v19, %v2069_v18  ;;  %v384_v32 = vpack.c.bf16 %v355_v23, %v354_v22  ;;  %v2514_v18 = vld [vmem:[#allocation2 + $0x8c] sm:$0xff]  ;;  %v371_v22 = vld [vmem:[#allocation2 + $0x138] sm:$0xff] }
  0x60   : > { %5226 = vmatmul.mubr.bf16.gmra.mrb[12].mxu1 %v376_v35  ;;  %5309 = vmatprep.subr.bf16.mxu1 %v6928_v2  ;;  %v356_v35 = vld [vmem:[#allocation2 + $0xc0] sm:$0xff]  ;;  %v2515_v23 = vld [vmem:[#allocation2 + $0x94] sm:$0xff] }
  0x61   : > { %5626 = vmatmul.mubr.bf16.gmra.mrb[12].mxu0 %v2093_v36  ;;  %5229 = vmatprep.mubr.msk.bf16.mxu1 %vm6929_vm0, %v6928_v2  ;;  %v357_v36 = vld [vmem:[#allocation2 + $0xc8] sm:$0xff] }
  0x62   : > { %5629 = vmatprep.mubr.msk.bf16.mxu0 %vm6929_vm0, %v6928_v2  ;;  %5710 = vmatpush3.bf16.msra.mxu0 %v6862_v37  ;;  %v2501_v37 = vld [vmem:[#allocation2 + $0x24] sm:$0xff]  ;;  %v385_v40 = vpack.c.bf16 %v357_v36, %v356_v35  ;;  %v2518_v35 = vld [vmem:[#allocation2 + $0xac] sm:$0xff] }
  0x63   : > { %5711 = vmatprep.subr.bf16.mxu0 %v6928_v2  ;;  %5310 = vmatpush3.bf16.msra.mxu1 %v6869_v39  ;;  %v6868_v39 = vld [vmem:[%s8001_s1 + $0x188] sm:$0xff]   ;;  %v7206_v41 = vpack.c.bf16 %v2502_v38, %v2501_v37 }
  0x64   : > { %5311 = vmatprep.subr.bf16.mxu1 %v6928_v2  ;;  %v699_v38 = vld [vmem:[#allocation2 + $0x1] sm:$0xff] }
  0x66   : > { %5712 = vmatpush3.bf16.msra.mxu0 %v6864_v45  ;;  %v2503_v45 = vld [vmem:[#allocation2 + $0x34] sm:$0xff] }
  0x67   : > { %5797 = vmatprep.subr.bf16.mxu0 %v6928_v2  ;;  %5312 = vmatpush3.bf16.msra.mxu1 %v6871_v51  ;;  %v360_v51 = vld [vmem:[#allocation2 + $0xe0] sm:$0xff] }
  0x68   : > { %5230 = vmatmul.mubr.bf16.gmra.mrb[16].mxu1 %v377_v49  ;;  %5397 = vmatprep.subr.bf16.mxu1 %v6928_v2  ;;  %v7221_v49 = vpack.c.bf16 %v2504_v46, %v2503_v45  ;;  %v6873_v45 = vld [vmem:[%s8001_s1 + $0x80] sm:$0xff]   ;;  %v701_v46 = vld [vmem:[#allocation2 + $0x11] sm:$0xff] }
  0x69   : > { %5630 = vmatmul.mubr.bf16.gmra.mrb[16].mxu0 %v2094_v50  ;;  %5233 = vmatprep.mubr.msk.bf16.mxu1 %vm6929_vm0, %v6928_v2  ;;  %v6874_v50 = vld [vmem:[%s8001_s1 + $0x1a0] sm:$0xff]  }
  0x6a   : > { %5633 = vmatprep.mubr.msk.bf16.mxu0 %vm6929_vm0, %v6928_v2 }
  0x70   : > { %5234 = vmatmul.mubr.bf16.gmra.mrb[20].mxu1 %v378_v54  ;;  %v6876_v54 = vld [vmem:[%s8001_s1 + $0x1a8] sm:$0xff]  }
  0x71   : > { %5634 = vmatmul.mubr.bf16.gmra.mrb[20].mxu0 %v2095_v55  ;;  %5237 = vmatprep.mubr.msk.bf16.mxu1 %vm6929_vm0, %v6928_v2  ;;  %v387_v55 = vpack.c.bf16 %v361_v52, %v360_v51  ;;  %v2522_v51 = vld [vmem:[#allocation2 + $0xcc] sm:$0xff] }
  0x72   : > { %5637 = vmatprep.mubr.msk.bf16.mxu0 %vm6929_vm0, %v6928_v2 }
  0x78   : > { %5238 = vmatmul.mubr.bf16.gmra.mrb[24].mxu1 %v379_v60  ;;  %v2507_v60 = vld [vmem:[#allocation2 + $0x54] sm:$0xff] }
  0x79   : > { %5638 = vmatmul.mubr.bf16.gmra.mrb[24].mxu0 %v2096_v61  ;;  %5241 = vmatprep.mubr.msk.bf16.mxu1 %vm6929_vm0, %v6928_v2  ;;  %v2508_v61 = vld [vmem:[#allocation2 + $0x5c] sm:$0xff] }
  0x7a   : > { %5641 = vmatprep.mubr.msk.bf16.mxu0 %vm6929_vm0, %v6928_v2  ;;  %v7251_v26 = vpack.c.bf16 %v2508_v61, %v2507_v60 }
  0x80   : > { %5242 = vmatmul.mubr.bf16.gmra.mrb[28].mxu1 %v380_v0  ;;  %v365_v0 = vld [vmem:[#allocation2 + $0x108] sm:$0xff] }
  0x81   : > { %5642 = vmatmul.mubr.bf16.gmra.mrb[28].mxu0 %v2097_v1  ;;  %5245 = vmatprep.mubr.msk.bf16.mxu1 %vm6929_vm0, %v6928_v2  ;;  %v2509_v1 = vld [vmem:[#allocation2 + $0x64] sm:$0xff]  ;;  %v389_v4 = vpack.c.bf16 %v365_v0, %v364_v30  ;;  %v706_v30 = vld [vmem:[#allocation2 + $0x39] sm:$0xff] }
  0x82   : > { %5645 = vmatprep.mubr.msk.bf16.mxu0 %vm6929_vm0, %v6928_v2  ;;  %v7259_v5 = vpack.c.bf16 %v2510_v3, %v2509_v1  ;;  %v2525_v0 = vld [vmem:[#allocation2 + $0xe4] sm:$0xff]  ;;  %v2526_v1 = vld [vmem:[#allocation2 + $0xec] sm:$0xff] }
  0x83   : > { %v6884_v3 = vld [vmem:[%s8001_s1 + $0xa8] sm:$0xff]  }
  0x88   : > { %5246 = vmatmul.mubr.bf16.gmra.mrb[32].mxu1 %v381_v7  ;;  %v367_v7 = vld [vmem:[#allocation2 + $0x118] sm:$0xff] }
  0x89   : > { %5646 = vmatmul.mubr.bf16.gmra.mrb[32].mxu0 %v2098_v8  ;;  %5249 = vmatprep.mubr.msk.bf16.mxu1 %vm6929_vm0, %v6928_v2  ;;  %v2511_v8 = vld [vmem:[#allocation2 + $0x74] sm:$0xff]  ;;  %v390_v10 = vpack.c.bf16 %v367_v7, %v366_v6  ;;  %v7338_v6 = vpack.c.bf16 %v2526_v1, %v2525_v0  ;;  %v723_v0 = vld [vmem:[#allocation2 + $0xc1] sm:$0xff]  ;;  %v724_v1 = vld [vmem:[#allocation2 + $0xc9] sm:$0xff] }
  0x8a   : > { %5649 = vmatprep.mubr.msk.bf16.mxu0 %vm6929_vm0, %v6928_v2  ;;  %v6886_v7 = vld [vmem:[%s8001_s1 + $0xb0] sm:$0xff]  }
  0x90   : > { %5250 = vmatmul.mubr.bf16.gmra.mrb[36].mxu1 %v382_v11  ;;  %v7266_v11 = vpack.c.bf16 %v2512_v9, %v2511_v8  ;;  %v707_v8 = vld [vmem:[#allocation2 + $0x41] sm:$0xff]  ;;  %v2527_v9 = vld [vmem:[#allocation2 + $0xf4] sm:$0xff] }
  0x91   : > { %5650 = vmatmul.mubr.bf16.gmra.mrb[36].mxu0 %v6863_v12  ;;  %5253 = vmatprep.mubr.msk.bf16.mxu1 %vm6929_vm0, %v6928_v2  ;;  %v368_v12 = vld [vmem:[#allocation2 + $0x120] sm:$0xff] }
  0x92   : > { %5653 = vmatprep.mubr.msk.bf16.mxu0 %vm6929_vm0, %v6928_v2  ;;  %v391_v19 = vpack.c.bf16 %v369_v14, %v368_v12  ;;  %v6889_v12 = vld [vmem:[%s8001_s1 + $0xb8] sm:$0xff]   ;;  %v744_v14 = vpack.c.bf16 %v4871_v27, %v707_v8 }
  0x93   : > { %v6890_v8 = vld [vmem:[%s8001_s1 + $0x1d8] sm:$0xff]  }
  0x98   : > { %5254 = vmatmul.mubr.bf16.gmra.mrb[40].mxu1 %v383_v20  ;;  %v7273_v20 = vpack.c.bf16 %v2514_v18, %v2513_v17  ;;  %v710_v18 = vld [vmem:[#allocation2 + $0x59] sm:$0xff] }
  0x99   : > { %5654 = vmatmul.mubr.bf16.gmra.mrb[40].mxu0 %v2100_v21  ;;  %5257 = vmatprep.mubr.msk.bf16.mxu1 %vm6929_vm0, %v6928_v2  ;;  %v370_v21 = vld [vmem:[#allocation2 + $0x130] sm:$0xff]  ;;  %v745_v27 = vpack.c.bf16 %v710_v18, %v4872_v28  ;;  %v714_v28 = vld [vmem:[#allocation2 + $0x79] sm:$0xff] }
  0x9a   : > { %5713 = vmatprep.mubr.msk.bf16.mxu0 %vm6929_vm0, %v6928_v2  ;;  %v392_v31 = vpack.c.bf16 %v371_v22, %v370_v21  ;;  %v2530_v21 = vld [vmem:[#allocation2 + $0x10c] sm:$0xff]  ;;  %v730_v18 = vld [vmem:[#allocation2 + $0xf9] sm:$0xff] }
  0xa0   : > { %5258 = vmatmul.mubr.bf16.gmra.mrb[44].mxu1 %v384_v32  ;;  %v7280_v32 = vpack.c.bf16 %v2516_v24, %v2515_v23  ;;  %v711_v23 = vld [vmem:[#allocation2 + $0x61] sm:$0xff]  ;;  %v712_v24 = vld [vmem:[#allocation2 + $0x69] sm:$0xff] }
  0xa1   : > { %5714 = vmatmul.mubr.bf16.vlgmr.msra.gmra.mrb[0].mxu0 %v2540_v33  ;;  %5261 = vmatprep.mubr.msk.bf16.mxu1 %vm6929_vm0, %v6928_v2  ;;  %v372_v33 = vld [vmem:[#allocation2 + $0x140] sm:$0xff] }
  0xa2   : > { %5798 = vmatpush3.bf16.msra.mxu0 %v6866_v34  ;;  %5717 = vmatprep.mubr.msk.bf16.mxu0 %vm6929_vm0, %v6928_v2  ;;  %v2517_v34 = vld [vmem:[#allocation2 + $0xa4] sm:$0xff]  ;;  %v393_v36 = vpack.c.bf16 %v372_v33, %v372_v33  ;;  %v2532_v33 = vld [vmem:[#allocation2 + $0x11c] sm:$0xff] }
  0xa3   : > { %5799 = vmatprep.subr.bf16.mxu0 %v6928_v2  ;;  %v7287_v37 = vpack.c.bf16 %v2518_v35, %v2517_v34  ;;  %v746_v34 = vpack.c.bf16 %v712_v24, %v711_v23  ;;  %v734_v23 = vld [vmem:[#allocation2 + $0x119] sm:$0xff] }
  0xa4   : > { %v6888_v24 = vld [vmem:[%s6961_s19 + $0x78] sm:$0xff] }
  0xa6   : > { %5800 = vmatpush3.bf16.msra.mxu0 %v6868_v39  ;;  %v700_v39 = vld [vmem:[#allocation2 + $0x9] sm:$0xff] }
  0xa7   : > { %5801 = vmatprep.subr.bf16.mxu0 %v6928_v2  ;;  %v740_v43 = vpack.c.bf16 %v700_v39, %v699_v38  ;;  %v2534_v38 = vld [vmem:[#allocation2 + $0x12c] sm:$0xff]  ;;  %v747_v39 = vpack.c.bf16 %v714_v28, %v713_v25  ;;  %v6891_v28 = vld [vmem:[%s8001_s1 + $0xc0] sm:$0xff]  }
  0xa8   : > { %5262 = vmatmul.mubr.bf16.gmra.mrb[48].mxu1 %v385_v40  ;;  %v2519_v40 = vld [vmem:[#allocation2 + $0xb4] sm:$0xff]  ;;  %v1150_v25 = vld [vmem:[#allocation2 + $0xa] sm:$0xff] }
  0xa9   : > { %5718 = vmatmul.mubr.bf16.gmra.mrb[4].mxu0 %v7206_v41  ;;  %5265 = vmatprep.mubr.msk.bf16.mxu1 %vm6929_vm0, %v6928_v2 }
  0xaa   : > { %5721 = vmatprep.mubr.msk.bf16.mxu0 %vm6929_vm0, %v6928_v2  ;;  %5802 = vmatpush3.bf16.msra.mxu0 %v6870_v42  ;;  %v2520_v42 = vld [vmem:[#allocation2 + $0xbc] sm:$0xff] }
  0xab   : > { %5803 = vmatprep.subr.bf16.mxu0 %v6928_v2  ;;  %v7294_v44 = vpack.c.bf16 %v2520_v42, %v2519_v40  ;;  %v715_v42 = vld [vmem:[#allocation2 + $0x81] sm:$0xff] }
  0xae   : > { %5804 = vmatpush3.bf16.msra.mxu0 %v6872_v47  ;;  %v702_v47 = vld [vmem:[#allocation2 + $0x19] sm:$0xff] }
  0xaf   : > { %5805 = vmatprep.subr.bf16.mxu0 %v6928_v2  ;;  %v741_v52 = vpack.c.bf16 %v702_v47, %v701_v46  ;;  %v2536_v46 = vld [vmem:[#allocation2 + $0x13c] sm:$0xff] }
  0xb0   : > { %5266 = vmatmul.mubr.bf16.gmra.mrb[52].mxu1 %v386_v48  ;;  %v6875_v48 = vld [vmem:[%s8001_s1 + $0x88] sm:$0xff]  }
  0xb1   : > { %5722 = vmatmul.mubr.bf16.gmra.mrb[8].mxu0 %v7221_v49  ;;  %5269 = vmatprep.mubr.msk.bf16.mxu1 %vm6929_vm0, %v6928_v2 }
  0xb2   : > { %5725 = vmatprep.mubr.msk.bf16.mxu0 %vm6929_vm0, %v6928_v2  ;;  %5806 = vmatpush3.bf16.msra.mxu0 %v6874_v50  ;;  %v2521_v50 = vld [vmem:[#allocation2 + $0xc4] sm:$0xff] }
  0xb3   : > { %5807 = vmatprep.subr.bf16.mxu0 %v6928_v2  ;;  %v7308_v53 = vpack.c.bf16 %v2522_v51, %v2521_v50  ;;  %v2537_v50 = vld [vmem:[#allocation2 + $0x144] sm:$0xff]  ;;  %v2538_v51 = vld [vmem:[#allocation2 + $0x14c] sm:$0xff] }
  0xb6   : > { %5808 = vmatpush3.bf16.msra.mxu0 %v6876_v54  ;;  %v703_v54 = vld [vmem:[#allocation2 + $0x21] sm:$0xff] }
  0xb7   : > { %5809 = vmatprep.subr.bf16.mxu0 %v6928_v2 }
  0xb8   : > { %5270 = vmatmul.mubr.bf16.gmra.mrb[56].mxu1 %v387_v55  ;;  %v704_v55 = vld [vmem:[#allocation2 + $0x29] sm:$0xff] }
  0xb9   : > { %5726 = vmatmul.mubr.bf16.gmra.mrb[12].mxu0 %v7236_v56  ;;  %5273 = vmatprep.mubr.msk.bf16.mxu1 %vm6929_vm0, %v6928_v2  ;;  %v742_v60 = vpack.c.bf16 %v704_v55, %v703_v54  ;;  %v719_v54 = vld [vmem:[#allocation2 + $0xa1] sm:$0xff]  ;;  %v720_v55 = vld [vmem:[#allocation2 + $0xa9] sm:$0xff] }
  0xba   : > { %5729 = vmatprep.mubr.msk.bf16.mxu0 %vm6929_vm0, %v6928_v2  ;;  %5810 = vmatpush3.bf16.msra.mxu0 %v6878_v57  ;;  %v2523_v57 = vld [vmem:[#allocation2 + $0xd4] sm:$0xff] }
  0xbb   : > { %5811 = vmatprep.subr.bf16.mxu0 %v6928_v2  ;;  %v7323_v61 = vpack.c.bf16 %v2524_v58, %v2523_v57  ;;  %v7401_v57 = vld [vmem:[#allocation2 + $0x154] sm:$0xff]  ;;  %v750_v58 = vpack.c.bf16 %v720_v55, %v719_v54  ;;  %v1157_v54 = vld [vmem:[#allocation2 + $0x42] sm:$0xff]  ;;  %v1158_v55 = vld [vmem:[#allocation2 + $0x4a] sm:$0xff] }
  0xbe   : > { %5812 = vmatpush3.bf16.msra.mxu0 %v6880_v62  ;;  %v6882_v62 = vld [vmem:[%s8001_s1 + $0xa0] sm:$0xff]  }
  0xbf   : > { %5897 = vmatprep.subr.bf16.mxu0 %v6928_v2 }
  0xc0   : > { %5274 = vmatmul.mubr.bf16.gmra.mrb[60].mxu1 %v388_v63  ;;  %v705_v63 = vld [vmem:[#allocation2 + $0x31] sm:$0xff] }
  0xc1   : > { %5730 = vmatmul.mubr.bf16.gmra.mrb[16].mxu0 %v7251_v26  ;;  %5277 = vmatprep.mubr.msk.bf16.mxu1 %vm6929_vm0, %v6928_v2 }
  0xc2   : > { %5733 = vmatprep.mubr.msk.bf16.mxu0 %vm6929_vm0, %v6928_v2 }
  0xc8   : > { %5278 = vmatmul.mubr.bf16.gmra.mrb[64].mxu1 %v389_v4  ;;  %v743_v4 = vpack.c.bf16 %v706_v30, %v705_v63  ;;  %v6883_v30 = vld [vmem:[%s8001_s1 + $0x1c0] sm:$0xff]  }
  0xc9   : > { %5734 = vmatmul.mubr.bf16.gmra.mrb[20].mxu0 %v7259_v5  ;;  %5281 = vmatprep.mubr.msk.bf16.mxu1 %vm6929_vm0, %v6928_v2 }
  0xca   : > { %5737 = vmatprep.mubr.msk.bf16.mxu0 %vm6929_vm0, %v6928_v2 }
  0xd0   : > { %5282 = vmatmul.mubr.bf16.gmra.mrb[68].mxu1 %v390_v10  ;;  %v2528_v10 = vld [vmem:[#allocation2 + $0xfc] sm:$0xff] }
  0xd1   : > { %5738 = vmatmul.mubr.bf16.gmra.mrb[24].mxu0 %v7266_v11  ;;  %5285 = vmatprep.mubr.msk.bf16.mxu1 %vm6929_vm0, %v6928_v2  ;;  %v7355_v17 = vpack.c.bf16 %v2528_v10, %v2527_v9  ;;  %v728_v10 = vld [vmem:[#allocation2 + $0xe9] sm:$0xff] }
  0xd2   : > { %5741 = vmatprep.mubr.msk.bf16.mxu0 %vm6929_vm0, %v6928_v2 }
  0xd8   : > { %5286 = vmatmul.mubr.bf16.gmra.mrb[72].mxu1 %v391_v19  ;;  %v2529_v19 = vld [vmem:[#allocation2 + $0x104] sm:$0xff] }
  0xd9   : > { %5742 = vmatmul.mubr.bf16.gmra.mrb[28].mxu0 %v7273_v20  ;;  %5289 = vmatprep.mubr.msk.bf16.mxu1 %vm6929_vm0, %v6928_v2  ;;  %v7365_v22 = vpack.c.bf16 %v2530_v21, %v2529_v19  ;;  %v732_v19 = vld [vmem:[#allocation2 + $0x109] sm:$0xff] }
  0xda   : > { %5745 = vmatprep.mubr.msk.bf16.mxu0 %vm6929_vm0, %v6928_v2 }
  0xe0   : > { %5290 = vmatmul.mubr.bf16.gmra.mrb[76].mxu1 %v392_v31  ;;  %v2531_v31 = vld [vmem:[#allocation2 + $0x114] sm:$0xff] }
  0xe1   : > { %5746 = vmatmul.mubr.bf16.gmra.mrb[32].mxu0 %v7280_v32  ;;  %5293 = vmatprep.mubr.msk.bf16.mxu1 %vm6929_vm0, %v6928_v2  ;;  %v7372_v35 = vpack.c.bf16 %v2532_v33, %v2531_v31  ;;  %v738_v31 = vld [vmem:[#allocation2 + $0x139] sm:$0xff] }
  0xe2   : > { %5749 = vmatprep.mubr.msk.bf16.mxu0 %vm6929_vm0, %v6928_v2 }
  0xe8   : > { %5294 = vmatmul.mubr.bf16.gmra.mrb[80].mxu1 %v393_v36  ;;  %v2533_v36 = vld [vmem:[#allocation2 + $0x124] sm:$0xff] }
  0xe9   : > { %5750 = vmatmul.mubr.bf16.gmra.mrb[36].mxu0 %v7287_v37  ;;  %5313 = vmatprep.mubr.msk.bf16.mxu1 %vm6929_vm0, %v6928_v2  ;;  %v7379_v40 = vpack.c.bf16 %v2534_v38, %v2533_v36  ;;  %v1151_v36 = vld [vmem:[#allocation2 + $0x12] sm:$0xff]  ;;  %v1152_v38 = vld [vmem:[#allocation2 + $0x1a] sm:$0xff] }
  0xea   : > { %5753 = vmatprep.mubr.msk.bf16.mxu0 %vm6929_vm0, %v6928_v2 }
  0xf0   : > { %5314 = vmatmul.mubr.bf16.vlgmr.msra.gmra.mrb[0].mxu1 %v740_v43  ;;  %v716_v43 = vld [vmem:[#allocation2 + $0x89] sm:$0xff] }
  0xf1   : > { %5754 = vmatmul.mubr.bf16.gmra.mrb[40].mxu0 %v7294_v44  ;;  %5398 = vmatpush3.bf16.msra.mxu1 %v6873_v45  ;;  %v2535_v45 = vld [vmem:[#allocation2 + $0x134] sm:$0xff]  ;;  %v748_v47 = vpack.c.bf16 %v716_v43, %v715_v42  ;;  %v1153_v42 = vld [vmem:[#allocation2 + $0x22] sm:$0xff]  ;;  %v1154_v43 = vld [vmem:[#allocation2 + $0x2a] sm:$0xff] }
  0xf2   : > { %5317 = vmatprep.mubr.msk.bf16.mxu1 %vm6929_vm0, %v6928_v2  ;;  %5757 = vmatprep.mubr.msk.bf16.mxu0 %vm6929_vm0, %v6928_v2 }
  0xf3   : > { %5399 = vmatprep.subr.bf16.mxu1 %v6928_v2 }
  0xf5   : > { %5400 = vmatpush3.bf16.msra.mxu1 %v6875_v48  ;;  %v7386_v48 = vpack.c.bf16 %v2536_v46, %v2535_v45  ;;  %v6897_v45 = vld [vmem:[%s8001_s1 + $0xd8] sm:$0xff]   ;;  %v7524_v46 = vpack.c.bf16 %v1154_v43, %v1153_v42  ;;  %v6908_v43 = vld [vmem:[%s8001_s1 + $0x228] sm:$0xff]  }
  0xf6   : > { %5401 = vmatprep.subr.bf16.mxu1 %v6928_v2  ;;  %v3406_v42 = vld [vmem:[#allocation2 + $0x5d] sm:$0xff] }
  0xf8   : > { %5318 = vmatmul.mubr.bf16.gmra.mrb[4].mxu1 %v741_v52  ;;  %v6881_v52 = vld [vmem:[%s6961_s19 + $0x38] sm:$0xff] }
  0xf9   : > { %5758 = vmatmul.mubr.bf16.gmra.mrb[44].mxu0 %v7308_v53  ;;  %5321 = vmatprep.mubr.msk.bf16.mxu1 %vm6929_vm0, %v6928_v2 }
  0xfa   : > { %5761 = vmatprep.mubr.msk.bf16.mxu0 %vm6929_vm0, %v6928_v2  ;;  %5402 = vmatpush3.bf16.msra.mxu1 %v6877_v29  ;;  %v7394_v29 = vpack.c.bf16 %v2538_v51, %v2537_v50  ;;  %v1156_v50 = vld [vmem:[#allocation2 + $0x3a] sm:$0xff]  ;;  %v6901_v51 = vld [vmem:[%s8001_s1 + $0xe8] sm:$0xff]  }
  0xfb   : > { %5403 = vmatprep.subr.bf16.mxu1 %v6928_v2 }
  0xfe   : > { %5404 = vmatpush3.bf16.msra.mxu1 %v6879_v59  ;;  %v2560_v59 = vpack.c.bf16 %v7401_v57, %v7401_v57 }
  0xff   : > { %5405 = vmatprep.subr.bf16.mxu1 %v6928_v2 }
 0x100   : > { %5322 = vmatmul.mubr.bf16.gmra.mrb[8].mxu1 %v742_v60  ;;  %v721_v60 = vld [vmem:[#allocation2 + $0xb1] sm:$0xff] }
 0x101   : > { %5762 = vmatmul.mubr.bf16.gmra.mrb[48].mxu0 %v7323_v61  ;;  %5325 = vmatprep.mubr.msk.bf16.mxu1 %vm6929_vm0, %v6928_v2 }
 0x102   : > { %5765 = vmatprep.mubr.msk.bf16.mxu0 %vm6929_vm0, %v6928_v2  ;;  %5406 = vmatpush3.bf16.msra.mxu1 %v6882_v62  ;;  %v722_v62 = vld [vmem:[#allocation2 + $0xb9] sm:$0xff] }
 0x103   : > { %5407 = vmatprep.subr.bf16.mxu1 %v6928_v2  ;;  %v751_v63 = vpack.c.bf16 %v722_v62, %v721_v60  ;;  %v1160_v60 = vld [vmem:[#allocation2 + $0x5a] sm:$0xff] }
 0x106   : > { %5408 = vmatpush3.bf16.msra.mxu1 %v6884_v3  ;;  %v6885_v3 = vld [vmem:[%s8001_s1 + $0x1c8] sm:$0xff]  }
 0x107   : > { %5409 = vmatprep.subr.bf16.mxu1 %v6928_v2 }
 0x108   : > { %5326 = vmatmul.mubr.bf16.gmra.mrb[12].mxu1 %v743_v4  ;;  %v752_v4 = vpack.c.bf16 %v724_v1, %v723_v0  ;;  %v1163_v0 = vld [vmem:[#allocation2 + $0x72] sm:$0xff]  ;;  %v1164_v1 = vld [vmem:[#allocation2 + $0x7a] sm:$0xff] }
 0x109   : > { %5766 = vmatmul.mubr.bf16.gmra.mrb[52].mxu0 %v7338_v6  ;;  %5329 = vmatprep.mubr.msk.bf16.mxu1 %vm6929_vm0, %v6928_v2 }
 0x10a   : > { %5769 = vmatprep.mubr.msk.bf16.mxu0 %vm6929_vm0, %v6928_v2  ;;  %5410 = vmatpush3.bf16.msra.mxu1 %v6886_v7  ;;  %v725_v7 = vld [vmem:[#allocation2 + $0xd1] sm:$0xff] }
 0x10b   : > { %5411 = vmatprep.subr.bf16.mxu1 %v6928_v2  ;;  %v753_v9 = vpack.c.bf16 %v4903_v15, %v725_v7  ;;  %v6894_v15 = vld [vmem:[%s8001_s1 + $0x1e8] sm:$0xff]   ;;  %v1168_v7 = vld [vmem:[#allocation2 + $0x9a] sm:$0xff] }
 0x10e   : > { %5412 = vmatpush3.bf16.msra.mxu1 %v6889_v12  ;;  %v754_v12 = vpack.c.bf16 %v728_v10, %v4904_v16  ;;  %v2989_v10 = vld [vmem:[#allocation2 + $0x164] sm:$0xff] }
 0x10f   : > { %5497 = vmatprep.subr.bf16.mxu1 %v6928_v2 }
 0x110   : > { %5330 = vmatmul.mubr.bf16.gmra.mrb[16].mxu1 %v744_v14  ;;  %v729_v14 = vld [vmem:[#allocation2 + $0xf1] sm:$0xff] }
 0x111   : > { %5770 = vmatmul.mubr.bf16.gmra.mrb[56].mxu0 %v7355_v17  ;;  %5333 = vmatprep.mubr.msk.bf16.mxu1 %vm6929_vm0, %v6928_v2  ;;  %v755_v16 = vpack.c.bf16 %v730_v18, %v729_v14  ;;  %v3399_v14 = vld [vmem:[#allocation2 + $0x25] sm:$0xff]  ;;  %v3400_v18 = vld [vmem:[#allocation2 + $0x2d] sm:$0xff] }
 0x112   : > { %5773 = vmatprep.mubr.msk.bf16.mxu0 %vm6929_vm0, %v6928_v2 }
 0x118   : > { %5334 = vmatmul.mubr.bf16.gmra.mrb[20].mxu1 %v745_v27  ;;  %v733_v27 = vld [vmem:[#allocation2 + $0x111] sm:$0xff] }
 0x119   : > { %5774 = vmatmul.mubr.bf16.gmra.mrb[60].mxu0 %v7365_v22  ;;  %5337 = vmatprep.mubr.msk.bf16.mxu1 %vm6929_vm0, %v6928_v2 }
 0x11a   : > { %5777 = vmatprep.mubr.msk.bf16.mxu0 %vm6929_vm0, %v6928_v2 }
 0x120   : > { %5338 = vmatmul.mubr.bf16.gmra.mrb[24].mxu1 %v746_v34  ;;  %v1149_v34 = vld [vmem:[#allocation2 + $0x2] sm:$0xff] }
 0x121   : > { %5778 = vmatmul.mubr.bf16.gmra.mrb[64].mxu0 %v7372_v35  ;;  %5341 = vmatprep.mubr.msk.bf16.mxu1 %vm6929_vm0, %v6928_v2 }
 0x122   : > { %5781 = vmatprep.mubr.msk.bf16.mxu0 %vm6929_vm0, %v6928_v2 }
 0x128   : > { %5342 = vmatmul.mubr.bf16.gmra.mrb[28].mxu1 %v747_v39  ;;  %v7508_v39 = vpack.c.bf16 %v1152_v38, %v1151_v36  ;;  %v6907_v36 = vld [vmem:[%s8001_s1 + $0x220] sm:$0xff]  }
 0x129   : > { %5782 = vmatmul.mubr.bf16.gmra.mrb[68].mxu0 %v7379_v40  ;;  %5345 = vmatprep.mubr.msk.bf16.mxu1 %vm6929_vm0, %v6928_v2  ;;  %v1177_v38 = vld [vmem:[#allocation2 + $0xe2] sm:$0xff] }
 0x12a   : > { %5785 = vmatprep.mubr.msk.bf16.mxu0 %vm6929_vm0, %v6928_v2 }
 0x130   : > { %5346 = vmatmul.mubr.bf16.gmra.mrb[32].mxu1 %v748_v47  ;;  %v1155_v47 = vld [vmem:[#allocation2 + $0x32] sm:$0xff] }
 0x131   : > { %5786 = vmatmul.mubr.bf16.gmra.mrb[72].mxu0 %v7386_v48  ;;  %5349 = vmatprep.mubr.msk.bf16.mxu1 %vm6929_vm0, %v6928_v2 }
 0x132   : > { %5789 = vmatprep.mubr.msk.bf16.mxu0 %vm6929_vm0, %v6928_v2 }
 0x138   : > { %5350 = vmatmul.mubr.bf16.gmra.mrb[36].mxu1 %v6881_v52  ;;  %v7540_v52 = vpack.c.bf16 %v1156_v50, %v1155_v47  ;;  %v6909_v47 = vld [vmem:[%s8001_s1 + $0x230] sm:$0xff]  }
 0x139   : > { %5790 = vmatmul.mubr.bf16.gmra.mrb[76].mxu0 %v7394_v29  ;;  %5353 = vmatprep.mubr.msk.bf16.mxu1 %vm6929_vm0, %v6928_v2  ;;  %v1179_v50 = vld [vmem:[#allocation2 + $0xf2] sm:$0xff] }
 0x13a   : > { %5793 = vmatprep.mubr.msk.bf16.mxu0 %vm6929_vm0, %v6928_v2 }
 0x140   : > { %5354 = vmatmul.mubr.bf16.gmra.mrb[40].mxu1 %v750_v58  ;;  %v6905_v58 = vld [vmem:[%s8001_s1 + $0xf8] sm:$0xff]  }
 0x141   : > { %5794 = vmatmul.mubr.bf16.gmra.mrb[80].mxu0 %v2560_v59  ;;  %5357 = vmatprep.mubr.msk.bf16.mxu1 %vm6929_vm0, %v6928_v2  ;;  %v7556_v59 = vpack.c.bf16 %v1158_v55, %v1157_v54  ;;  %v3408_v54 = vld [vmem:[#allocation2 + $0x6d] sm:$0xff]  ;;  %v6910_v55 = vld [vmem:[%s8001_s1 + $0x238] sm:$0xff]  }
 0x142   : > { %5813 = vmatprep.mubr.msk.bf16.mxu0 %vm6929_vm0, %v6928_v2 }
 0x148   : > { %5358 = vmatmul.mubr.bf16.gmra.mrb[44].mxu1 %v751_v63  ;;  %v1161_v63 = vld [vmem:[#allocation2 + $0x62] sm:$0xff] }
 0x149   : > { %5814 = vmatmul.mubr.bf16.vlgmr.msra.gmra.mrb[0].mxu0 %v7206_v41  ;;  %5361 = vmatprep.mubr.msk.bf16.mxu1 %vm6929_vm0, %v6928_v2  ;;  %v6887_v41 = vld [vmem:[%s8001_s1 + $0x1d0] sm:$0xff]  }
 0x14a   : > { %5898 = vmatpush3.bf16.msra.mxu0 %v6883_v30  ;;  %5817 = vmatprep.mubr.msk.bf16.mxu0 %vm6929_vm0, %v6928_v2  ;;  %v1162_v30 = vld [vmem:[#allocation2 + $0x6a] sm:$0xff] }
 0x14b   : > { %5899 = vmatprep.subr.bf16.mxu0 %v6928_v2 }
 0x14e   : > { %5900 = vmatpush3.bf16.msra.mxu0 %v6885_v3  ;;  %v1165_v3 = vld [vmem:[#allocation2 + $0x82] sm:$0xff] }
 0x14f   : > { %5901 = vmatprep.subr.bf16.mxu0 %v6928_v2 }
 0x150   : > { %5362 = vmatmul.mubr.bf16.gmra.mrb[48].mxu1 %v752_v4  ;;  %v1166_v4 = vld [vmem:[#allocation2 + $0x8a] sm:$0xff] }
 0x151   : > { %5818 = vmatmul.mubr.bf16.gmra.mrb[4].mxu0 %v7221_v49  ;;  %5365 = vmatprep.mubr.msk.bf16.mxu1 %vm6929_vm0, %v6928_v2  ;;  %v6892_v49 = vld [vmem:[%s8001_s1 + $0x1e0] sm:$0xff]  }
 0x152   : > { %5821 = vmatprep.mubr.msk.bf16.mxu0 %vm6929_vm0, %v6928_v2  ;;  %5902 = vmatpush3.bf16.msra.mxu0 %v6887_v41  ;;  %v1167_v41 = vld [vmem:[#allocation2 + $0x92] sm:$0xff] }
 0x153   : > { %5903 = vmatprep.subr.bf16.mxu0 %v6928_v2 }
 0x156   : > { %5904 = vmatpush3.bf16.msra.mxu0 %v6890_v8  ;;  %v7597_v8 = vpack.c.bf16 %v1168_v7, %v1167_v41  ;;  %v1184_v41 = vld [vmem:[#allocation2 + $0x11a] sm:$0xff]  ;;  %v3411_v7 = vld [vmem:[#allocation2 + $0x85] sm:$0xff] }
 0x157   : > { %5905 = vmatprep.subr.bf16.mxu0 %v6928_v2 }
 0x158   : > { %5366 = vmatmul.mubr.bf16.gmra.mrb[52].mxu1 %v753_v9 }
 0x159   : > { %5822 = vmatmul.mubr.bf16.gmra.mrb[8].mxu0 %v7236_v56  ;;  %5369 = vmatprep.mubr.msk.bf16.mxu1 %vm6929_vm0, %v6928_v2  ;;  %v6896_v56 = vld [vmem:[%s8001_s1 + $0x1f0] sm:$0xff]  }
 0x15a   : > { %5825 = vmatprep.mubr.msk.bf16.mxu0 %vm6929_vm0, %v6928_v2  ;;  %5906 = vmatpush3.bf16.msra.mxu0 %v6892_v49  ;;  %v1170_v49 = vld [vmem:[#allocation2 + $0xaa] sm:$0xff] }
 0x15b   : > { %5907 = vmatprep.subr.bf16.mxu0 %v6928_v2 }
 0x15e   : > { %5908 = vmatpush3.bf16.msra.mxu0 %v6894_v15 }
 0x15f   : > { %5909 = vmatprep.subr.bf16.mxu0 %v6928_v2 }
 0x160   : > { %5370 = vmatmul.mubr.bf16.gmra.mrb[56].mxu1 %v754_v12  ;;  %v3010_v12 = vpack.c.bf16 %v2989_v10, %v2989_v10  ;;  %v1186_v10 = vld [vmem:[#allocation2 + $0x12a] sm:$0xff] }
 0x161   : > { %5826 = vmatmul.mubr.bf16.gmra.mrb[12].mxu0 %v7251_v26  ;;  %5373 = vmatprep.mubr.msk.bf16.mxu1 %vm6929_vm0, %v6928_v2  ;;  %v731_v26 = vld [vmem:[#allocation2 + $0x101] sm:$0xff] }
 0x162   : > { %5829 = vmatprep.mubr.msk.bf16.mxu0 %vm6929_vm0, %v6928_v2  ;;  %5910 = vmatpush3.bf16.msra.mxu0 %v6896_v56  ;;  %v756_v21 = vpack.c.bf16 %v732_v19, %v731_v26  ;;  %v1172_v56 = vld [vmem:[#allocation2 + $0xba] sm:$0xff]  ;;  %v1173_v19 = vld [vmem:[#allocation2 + $0xc2] sm:$0xff] }
 0x163   : > { %5911 = vmatprep.subr.bf16.mxu0 %v6928_v2  ;;  %v6900_v26 = vld [vmem:[%s8001_s1 + $0x200] sm:$0xff]  }
 0x166   : > { %5912 = vmatpush3.bf16.msra.mxu0 %v6898_v13 }
 0x167   : > { %5997 = vmatprep.subr.bf16.mxu0 %v6928_v2 }
 0x168   : > { %5374 = vmatmul.mubr.bf16.gmra.mrb[60].mxu1 %v755_v16  ;;  %v3440_v16 = vpack.c.bf16 %v3400_v18, %v3399_v14  ;;  %v1187_v18 = vld [vmem:[#allocation2 + $0x132] sm:$0xff] }
 0x169   : > { %5830 = vmatmul.mubr.bf16.gmra.mrb[16].mxu0 %v7259_v5  ;;  %5377 = vmatprep.mubr.msk.bf16.mxu1 %vm6929_vm0, %v6928_v2  ;;  %v757_v5 = vpack.c.bf16 %v734_v23, %v733_v27  ;;  %v3401_v27 = vld [vmem:[#allocation2 + $0x35] sm:$0xff]  ;;  %v3402_v23 = vld [vmem:[#allocation2 + $0x3d] sm:$0xff] }
 0x16a   : > { %5833 = vmatprep.mubr.msk.bf16.mxu0 %vm6929_vm0, %v6928_v2 }
 0x170   : > { %5378 = vmatmul.mubr.bf16.gmra.mrb[64].mxu1 %v756_v21  ;;  %v1174_v21 = vld [vmem:[#allocation2 + $0xca] sm:$0xff] }
 0x171   : > { %5834 = vmatmul.mubr.bf16.gmra.mrb[20].mxu0 %v7266_v11  ;;  %5381 = vmatprep.mubr.msk.bf16.mxu1 %vm6929_vm0, %v6928_v2  ;;  %v737_v11 = vld [vmem:[#allocation2 + $0x131] sm:$0xff] }
 0x172   : > { %5837 = vmatprep.mubr.msk.bf16.mxu0 %vm6929_vm0, %v6928_v2  ;;  %v759_v33 = vpack.c.bf16 %v738_v31, %v737_v11  ;;  %v3441_v11 = vpack.c.bf16 %v3402_v23, %v3401_v27  ;;  %v6904_v31 = vld [vmem:[%s8001_s1 + $0x210] sm:$0xff]   ;;  %v7704_v23 = vld [vmem:[#allocation2 + $0x142] sm:$0xff] }
 0x178   : > { %5382 = vmatmul.mubr.bf16.gmra.mrb[68].mxu1 %v757_v5  ;;  %v6902_v5 = vld [vmem:[%s8001_s1 + $0x208] sm:$0xff]  }
 0x179   : > { %5838 = vmatmul.mubr.bf16.gmra.mrb[24].mxu0 %v7273_v20  ;;  %5385 = vmatprep.mubr.msk.bf16.mxu1 %vm6929_vm0, %v6928_v2  ;;  %v739_v20 = vld [vmem:[#allocation2 + $0x141] sm:$0xff] }
 0x17a   : > { %5841 = vmatprep.mubr.msk.bf16.mxu0 %vm6929_vm0, %v6928_v2 }
 0x180   : > { %5386 = vmatmul.mubr.bf16.gmra.mrb[72].mxu1 %v6888_v24  ;;  %v7626_v24 = vpack.c.bf16 %v1174_v21, %v1173_v19  ;;  %v3416_v19 = vld [vmem:[#allocation2 + $0xad] sm:$0xff] }
 0x181   : > { %5842 = vmatmul.mubr.bf16.gmra.mrb[28].mxu0 %v7280_v32  ;;  %5389 = vmatprep.mubr.msk.bf16.mxu1 %vm6929_vm0, %v6928_v2  ;;  %v760_v32 = vpack.c.bf16 %v739_v20, %v739_v20  ;;  %v1176_v20 = vld [vmem:[#allocation2 + $0xda] sm:$0xff] }
 0x182   : > { %5845 = vmatprep.mubr.msk.bf16.mxu0 %vm6929_vm0, %v6928_v2 }
 0x188   : > { %5390 = vmatmul.mubr.bf16.gmra.mrb[76].mxu1 %v759_v33  ;;  %v1175_v33 = vld [vmem:[#allocation2 + $0xd2] sm:$0xff] }
 0x189   : > { %5846 = vmatmul.mubr.bf16.gmra.mrb[32].mxu0 %v7287_v37  ;;  %5393 = vmatprep.mubr.msk.bf16.mxu1 %vm6929_vm0, %v6928_v2  ;;  %v1190_v37 = vpack.c.bf16 %v1150_v25, %v1149_v34  ;;  %v3404_v34 = vld [vmem:[#allocation2 + $0x4d] sm:$0xff]  ;;  %v6906_v25 = vld [vmem:[%s8001_s1 + $0x218] sm:$0xff]  }
 0x18a   : > { %5849 = vmatprep.mubr.msk.bf16.mxu0 %vm6929_vm0, %v6928_v2 }
 0x190   : > { %5394 = vmatmul.mubr.bf16.gmra.mrb[80].mxu1 %v760_v32  ;;  %v3403_v32 = vld [vmem:[#allocation2 + $0x45] sm:$0xff] }
 0x191   : > { %5850 = vmatmul.mubr.bf16.gmra.mrb[36].mxu0 %v7294_v44  ;;  %5413 = vmatprep.mubr.msk.bf16.mxu1 %vm6929_vm0, %v6928_v2  ;;  %v6893_v44 = vld [vmem:[%s8001_s1 + $0xc8] sm:$0xff]  }
 0x192   : > { %5853 = vmatprep.mubr.msk.bf16.mxu0 %vm6929_vm0, %v6928_v2 }
 0x198   : > { %5414 = vmatmul.mubr.bf16.vlgmr.msra.gmra.mrb[0].mxu1 %v1190_v37  ;;  %v7641_v37 = vpack.c.bf16 %v1176_v20, %v1175_v33  ;;  %v3419_v20 = vld [vmem:[#allocation2 + $0xc5] sm:$0xff] }
 0x199   : > { %5854 = vmatmul.mubr.bf16.gmra.mrb[40].mxu0 %v7308_v53  ;;  %5498 = vmatpush3.bf16.msra.mxu1 %v6891_v28  ;;  %v6895_v53 = vld [vmem:[%s8001_s1 + $0xd0] sm:$0xff]   ;;  %v3442_v28 = vpack.c.bf16 %v3404_v34, %v3403_v32 }
 0x19a   : > { %5417 = vmatprep.mubr.msk.bf16.mxu1 %vm6929_vm0, %v6928_v2  ;;  %5857 = vmatprep.mubr.msk.bf16.mxu0 %vm6929_vm0, %v6928_v2  ;;  %v3420_v32 = vld [vmem:[#allocation2 + $0xcd] sm:$0xff] }
 0x19b   : > { %5499 = vmatprep.subr.bf16.mxu1 %v6928_v2  ;;  %v3450_v34 = vpack.c.bf16 %v3420_v32, %v3419_v20  ;;  %v3862_v20 = vld [vmem:[#allocation2 + $0x8e] sm:$0xff] }
 0x19d   : > { %5500 = vmatpush3.bf16.msra.mxu1 %v6893_v44  ;;  %v1178_v44 = vld [vmem:[#allocation2 + $0xea] sm:$0xff] }
 0x19e   : > { %5501 = vmatprep.subr.bf16.mxu1 %v6928_v2 }
 0x1a0   : > { %5418 = vmatmul.mubr.bf16.gmra.mrb[4].mxu1 %v7508_v39 }
 0x1a1   : > { %5858 = vmatmul.mubr.bf16.gmra.mrb[44].mxu0 %v7323_v61  ;;  %5421 = vmatprep.mubr.msk.bf16.mxu1 %vm6929_vm0, %v6928_v2  ;;  %v6899_v61 = vld [vmem:[%s8001_s1 + $0xe0] sm:$0xff]  }
 0x1a2   : > { %5861 = vmatprep.mubr.msk.bf16.mxu0 %vm6929_vm0, %v6928_v2  ;;  %5502 = vmatpush3.bf16.msra.mxu1 %v6895_v53  ;;  %v3405_v53 = vld [vmem:[#allocation2 + $0x55] sm:$0xff] }
 0x1a3   : > { %5503 = vmatprep.subr.bf16.mxu1 %v6928_v2 }
 0x1a6   : > { %5504 = vmatpush3.bf16.msra.mxu1 %v6897_v45  ;;  %v7656_v45 = vpack.c.bf16 %v1178_v44, %v1177_v38  ;;  %v3423_v44 = vld [vmem:[#allocation2 + $0xe5] sm:$0xff] }
 0x1a7   : > { %5505 = vmatprep.subr.bf16.mxu1 %v6928_v2 }
 0x1a8   : > { %5422 = vmatmul.mubr.bf16.gmra.mrb[8].mxu1 %v7524_v46 }
 0x1a9   : > { %5862 = vmatmul.mubr.bf16.gmra.mrb[48].mxu0 %v7338_v6  ;;  %5425 = vmatprep.mubr.msk.bf16.mxu1 %vm6929_vm0, %v6928_v2  ;;  %v6903_v6 = vld [vmem:[%s8001_s1 + $0xf0] sm:$0xff]  }
 0x1aa   : > { %5865 = vmatprep.mubr.msk.bf16.mxu0 %vm6929_vm0, %v6928_v2  ;;  %5506 = vmatpush3.bf16.msra.mxu1 %v6899_v61  ;;  %v3443_v61 = vpack.c.bf16 %v3406_v42, %v3405_v53  ;;  %v3424_v53 = vld [vmem:[#allocation2 + $0xed] sm:$0xff] }
 0x1ab   : > { %5507 = vmatprep.subr.bf16.mxu1 %v6928_v2  ;;  %v6913_v42 = vld [vmem:[%s8001_s1 + $0x110] sm:$0xff]  }
 0x1ae   : > { %5508 = vmatpush3.bf16.msra.mxu1 %v6901_v51  ;;  %v1180_v51 = vld [vmem:[#allocation2 + $0xfa] sm:$0xff] }
 0x1af   : > { %5509 = vmatprep.subr.bf16.mxu1 %v6928_v2 }
 0x1b0   : > { %5426 = vmatmul.mubr.bf16.gmra.mrb[12].mxu1 %v7540_v52 }
 0x1b1   : > { %5866 = vmatmul.mubr.bf16.gmra.mrb[52].mxu0 %v7355_v17  ;;  %5429 = vmatprep.mubr.msk.bf16.mxu1 %vm6929_vm0, %v6928_v2  ;;  %v1159_v17 = vld [vmem:[#allocation2 + $0x52] sm:$0xff] }
 0x1b2   : > { %5869 = vmatprep.mubr.msk.bf16.mxu0 %vm6929_vm0, %v6928_v2  ;;  %5510 = vmatpush3.bf16.msra.mxu1 %v6903_v6  ;;  %v7565_v62 = vpack.c.bf16 %v1160_v60, %v1159_v17  ;;  %v3407_v6 = vld [vmem:[#allocation2 + $0x65] sm:$0xff] }
 0x1b3   : > { %5511 = vmatprep.subr.bf16.mxu1 %v6928_v2  ;;  %v3444_v17 = vpack.c.bf16 %v3408_v54, %v3407_v6  ;;  %v1181_v60 = vld [vmem:[#allocation2 + $0x102] sm:$0xff]  ;;  %v3428_v54 = vld [vmem:[#allocation2 + $0x10d] sm:$0xff] }
 0x1b4   : > { %v3427_v6 = vld [vmem:[#allocation2 + $0x105] sm:$0xff] }
 0x1b6   : > { %5512 = vmatpush3.bf16.msra.mxu1 %v6905_v58  ;;  %v7671_v58 = vpack.c.bf16 %v1180_v51, %v1179_v50  ;;  %v6915_v50 = vld [vmem:[%s8001_s1 + $0x120] sm:$0xff]  }
 0x1b7   : > { %6097 = vmatprep.subr.bf16.mxu1 %v6928_v2 }
 0x1b8   : > { %5430 = vmatmul.mubr.bf16.gmra.mrb[16].mxu1 %v7556_v59 }
 0x1b9   : > { %5870 = vmatmul.mubr.bf16.gmra.mrb[56].mxu0 %v7365_v22  ;;  %5433 = vmatprep.mubr.msk.bf16.mxu1 %vm6929_vm0, %v6928_v2  ;;  %v7573_v22 = vpack.c.bf16 %v1162_v30, %v1161_v63  ;;  %v1182_v63 = vld [vmem:[#allocation2 + $0x10a] sm:$0xff]  ;;  %v3409_v30 = vld [vmem:[#allocation2 + $0x75] sm:$0xff] }
 0x1ba   : > { %5873 = vmatprep.mubr.msk.bf16.mxu0 %vm6929_vm0, %v6928_v2 }
 0x1c0   : > { %5434 = vmatmul.mubr.bf16.gmra.mrb[20].mxu1 %v7565_v62 }
 0x1c1   : > { %5874 = vmatmul.mubr.bf16.gmra.mrb[60].mxu0 %v7372_v35  ;;  %5437 = vmatprep.mubr.msk.bf16.mxu1 %vm6929_vm0, %v6928_v2  ;;  %v7581_v35 = vpack.c.bf16 %v1164_v1, %v1163_v0  ;;  %v3410_v0 = vld [vmem:[#allocation2 + $0x7d] sm:$0xff]  ;;  %v7678_v1 = vpack.c.bf16 %v1182_v63, %v1181_v60  ;;  %v3429_v60 = vld [vmem:[#allocation2 + $0x115] sm:$0xff] }
 0x1c2   : > { %5877 = vmatprep.mubr.msk.bf16.mxu0 %vm6929_vm0, %v6928_v2  ;;  %v3430_v63 = vld [vmem:[#allocation2 + $0x11d] sm:$0xff] }
 0x1c8   : > { %5438 = vmatmul.mubr.bf16.gmra.mrb[24].mxu1 %v7573_v22 }
 0x1c9   : > { %5878 = vmatmul.mubr.bf16.gmra.mrb[64].mxu0 %v7379_v40  ;;  %5441 = vmatprep.mubr.msk.bf16.mxu1 %vm6929_vm0, %v6928_v2  ;;  %v7589_v40 = vpack.c.bf16 %v1166_v4, %v1165_v3  ;;  %v3445_v3 = vpack.c.bf16 %v3410_v0, %v3409_v30  ;;  %v1183_v4 = vld [vmem:[#allocation2 + $0x112] sm:$0xff]  ;;  %v3455_v30 = vpack.c.bf16 %v3430_v63, %v3429_v60  ;;  %v2075_v60 = vld [vmem:[#allocation2 + $0xe3] sm:$0xff] }
 0x1ca   : > { %5881 = vmatprep.mubr.msk.bf16.mxu0 %vm6929_vm0, %v6928_v2  ;;  %v3432_v0 = vld [vmem:[#allocation2 + $0x12d] sm:$0xff] }
 0x1cb   : > { %v2076_v63 = vld [vmem:[#allocation2 + $0xeb] sm:$0xff] }
 0x1d0   : > { %5442 = vmatmul.mubr.bf16.gmra.mrb[28].mxu1 %v7581_v35 }
 0x1d1   : > { %5882 = vmatmul.mubr.bf16.gmra.mrb[68].mxu0 %v7386_v48  ;;  %5445 = vmatprep.mubr.msk.bf16.mxu1 %vm6929_vm0, %v6928_v2  ;;  %v2988_v48 = vld [vmem:[#allocation2 + $0x15c] sm:$0xff] }
 0x1d2   : > { %5885 = vmatprep.mubr.msk.bf16.mxu0 %vm6929_vm0, %v6928_v2  ;;  %v3009_v9 = vpack.c.bf16 %v2988_v48, %v7401_v57  ;;  %v1171_v57 = vld [vmem:[#allocation2 + $0xb2] sm:$0xff] }
 0x1d3   : > { %v7612_v13 = vpack.c.bf16 %v1172_v56, %v1171_v57  ;;  %v3412_v48 = vld [vmem:[#allocation2 + $0x8d] sm:$0xff]  ;;  %v3414_v57 = vld [vmem:[#allocation2 + $0x9d] sm:$0xff] }
 0x1d8   : > { %5446 = vmatmul.mubr.bf16.gmra.mrb[32].mxu1 %v7589_v40 }
 0x1d9   : > { %5886 = vmatmul.mubr.bf16.gmra.mrb[72].mxu0 %v7394_v29  ;;  %5449 = vmatprep.mubr.msk.bf16.mxu1 %vm6929_vm0, %v6928_v2  ;;  %v1169_v29 = vld [vmem:[#allocation2 + $0xa2] sm:$0xff] }
 0x1da   : > { %5889 = vmatprep.mubr.msk.bf16.mxu0 %vm6929_vm0, %v6928_v2  ;;  %v7605_v15 = vpack.c.bf16 %v1170_v49, %v1169_v29  ;;  %v3446_v29 = vpack.c.bf16 %v3412_v48, %v3411_v7  ;;  %v1185_v49 = vld [vmem:[#allocation2 + $0x122] sm:$0xff]  ;;  %v3436_v7 = vld [vmem:[#allocation2 + $0x14d] sm:$0xff] }
 0x1db   : > { %v7692_v56 = vpack.c.bf16 %v1186_v10, %v1185_v49 }
 0x1e0   : > { %5450 = vmatmul.mubr.bf16.gmra.mrb[36].mxu1 %v7597_v8 }
 0x1e1   : > { %5890 = vmatmul.mubr.bf16.gmra.mrb[76].mxu0 %v3009_v9  ;;  %5453 = vmatprep.mubr.msk.bf16.mxu1 %vm6929_vm0, %v6928_v2  ;;  %v7685_v9 = vpack.c.bf16 %v1184_v41, %v1183_v4  ;;  %v3434_v4 = vld [vmem:[#allocation2 + $0x13d] sm:$0xff] }
 0x1e2   : > { %5893 = vmatprep.mubr.msk.bf16.mxu0 %vm6929_vm0, %v6928_v2 }
 0x1e8   : > { %5454 = vmatmul.mubr.bf16.gmra.mrb[40].mxu1 %v7605_v15 }
 0x1e9   : > { %5894 = vmatmul.mubr.bf16.gmra.mrb[80].mxu0 %v3010_v12  ;;  %5457 = vmatprep.mubr.msk.bf16.mxu1 %vm6929_vm0, %v6928_v2  ;;  %v3413_v12 = vld [vmem:[#allocation2 + $0x95] sm:$0xff] }
 0x1ea   : > { %5913 = vmatprep.mubr.msk.bf16.mxu0 %vm6929_vm0, %v6928_v2  ;;  %v3447_v14 = vpack.c.bf16 %v3414_v57, %v3413_v12  ;;  %v3849_v12 = vld [vmem:[#allocation2 + $0x26] sm:$0xff] }
 0x1f0   : > { %5458 = vmatmul.mubr.bf16.gmra.mrb[44].mxu1 %v7612_v13 }
 0x1f1   : > { %5914 = vmatmul.mubr.bf16.vlgmr.msra.gmra.mrb[0].mxu0 %v3440_v16  ;;  %5461 = vmatprep.mubr.msk.bf16.mxu1 %vm6929_vm0, %v6928_v2  ;;  %v1188_v16 = vld [vmem:[#allocation2 + $0x13a] sm:$0xff] }
 0x1f2   : > { %5998 = vmatpush3.bf16.msra.mxu0 %v6900_v26  ;;  %5917 = vmatprep.mubr.msk.bf16.mxu0 %vm6929_vm0, %v6928_v2  ;;  %v3415_v26 = vld [vmem:[#allocation2 + $0xa5] sm:$0xff]  ;;  %v7699_v21 = vpack.c.bf16 %v1188_v16, %v1187_v18  ;;  %v3854_v16 = vld [vmem:[#allocation2 + $0x4e] sm:$0xff] }
 0x1f3   : > { %5999 = vmatprep.subr.bf16.mxu0 %v6928_v2  ;;  %v3448_v27 = vpack.c.bf16 %v3416_v19, %v3415_v26  ;;  %v3856_v19 = vld [vmem:[#allocation2 + $0x5e] sm:$0xff] }
 0x1f6   : > { %6000 = vmatpush3.bf16.msra.mxu0 %v6902_v5  ;;  %v3417_v5 = vld [vmem:[#allocation2 + $0xb5] sm:$0xff] }
 0x1f7   : > { %6001 = vmatprep.subr.bf16.mxu0 %v6928_v2 }
 0x1f8   : > { %5462 = vmatmul.mubr.bf16.gmra.mrb[48].mxu1 %v7626_v24 }
 0x1f9   : > { %5918 = vmatmul.mubr.bf16.gmra.mrb[4].mxu0 %v3441_v11  ;;  %5465 = vmatprep.mubr.msk.bf16.mxu1 %vm6929_vm0, %v6928_v2  ;;  %v3418_v11 = vld [vmem:[#allocation2 + $0xbd] sm:$0xff] }
 0x1fa   : > { %5921 = vmatprep.mubr.msk.bf16.mxu0 %vm6929_vm0, %v6928_v2  ;;  %6002 = vmatpush3.bf16.msra.mxu0 %v6904_v31  ;;  %v1210_v31 = vpack.c.bf16 %v7704_v23, %v7704_v23  ;;  %v3449_v33 = vpack.c.bf16 %v3418_v11, %v3417_v5  ;;  %v3858_v5 = vld [vmem:[#allocation2 + $0x6e] sm:$0xff] }
 0x1fb   : > { %6003 = vmatprep.subr.bf16.mxu0 %v6928_v2 }
 0x1fe   : > { %6004 = vmatpush3.bf16.msra.mxu0 %v6906_v25  ;;  %v6911_v25 = vld [vmem:[%s8001_s1 + $0x100] sm:$0xff]  }
 0x1ff   : > { %6005 = vmatprep.subr.bf16.mxu0 %v6928_v2 }
 0x200   : > { %5466 = vmatmul.mubr.bf16.gmra.mrb[52].mxu1 %v7641_v37 }
 0x201   : > { %5922 = vmatmul.mubr.bf16.gmra.mrb[8].mxu0 %v3442_v28  ;;  %5469 = vmatprep.mubr.msk.bf16.mxu1 %vm6929_vm0, %v6928_v2  ;;  %v3421_v28 = vld [vmem:[#allocation2 + $0xd5] sm:$0xff] }
 0x202   : > { %5925 = vmatprep.mubr.msk.bf16.mxu0 %vm6929_vm0, %v6928_v2  ;;  %6006 = vmatpush3.bf16.msra.mxu0 %v6907_v36  ;;  %v3422_v36 = vld [vmem:[#allocation2 + $0xdd] sm:$0xff] }
 0x203   : > { %6007 = vmatprep.subr.bf16.mxu0 %v6928_v2  ;;  %v3451_v38 = vpack.c.bf16 %v3422_v36, %v3421_v28  ;;  %v1638_v28 = vld [vmem:[#allocation2 + $0x14a] sm:$0xff] }
 0x204   : > { %v3866_v36 = vld [vmem:[#allocation2 + $0xae] sm:$0xff] }
 0x206   : > { %6008 = vmatpush3.bf16.msra.mxu0 %v6908_v43  ;;  %v3452_v43 = vpack.c.bf16 %v3424_v53, %v3423_v44  ;;  %v1639_v44 = vld [vmem:[#allocation2 + $0x152] sm:$0xff]  ;;  %v3868_v53 = vld [vmem:[#allocation2 + $0xbe] sm:$0xff] }
 0x207   : > { %6009 = vmatprep.subr.bf16.mxu0 %v6928_v2 }
 0x208   : > { %5470 = vmatmul.mubr.bf16.gmra.mrb[56].mxu1 %v7656_v45 }
 0x209   : > { %5926 = vmatmul.mubr.bf16.gmra.mrb[12].mxu0 %v3443_v61  ;;  %5473 = vmatprep.mubr.msk.bf16.mxu1 %vm6929_vm0, %v6928_v2  ;;  %v3425_v61 = vld [vmem:[#allocation2 + $0xf5] sm:$0xff] }
 0x20a   : > { %5929 = vmatprep.mubr.msk.bf16.mxu0 %vm6929_vm0, %v6928_v2  ;;  %6010 = vmatpush3.bf16.msra.mxu0 %v6909_v47  ;;  %v3426_v47 = vld [vmem:[#allocation2 + $0xfd] sm:$0xff] }
 0x20b   : > { %6011 = vmatprep.subr.bf16.mxu0 %v6928_v2  ;;  %v3453_v51 = vpack.c.bf16 %v3426_v47, %v3425_v61  ;;  %v3869_v61 = vld [vmem:[#allocation2 + $0xc6] sm:$0xff]  ;;  %v3870_v47 = vld [vmem:[#allocation2 + $0xce] sm:$0xff] }
 0x20e   : > { %6012 = vmatpush3.bf16.msra.mxu0 %v6910_v55  ;;  %v6917_v55 = vld [vmem:[%s8001_s1 + $0x130] sm:$0xff]  }
 0x210   : > { %5474 = vmatmul.mubr.bf16.gmra.mrb[60].mxu1 %v7671_v58 }
 0x211   : > { %5930 = vmatmul.mubr.bf16.gmra.mrb[16].mxu0 %v3444_v17  ;;  %5477 = vmatprep.mubr.msk.bf16.mxu1 %vm6929_vm0, %v6928_v2  ;;  %v3454_v17 = vpack.c.bf16 %v3428_v54, %v3427_v6  ;;  %v2074_v6 = vld [vmem:[#allocation2 + $0xdb] sm:$0xff] }
 0x212   : > { %5933 = vmatprep.mubr.msk.bf16.mxu0 %vm6929_vm0, %v6928_v2  ;;  %v3871_v54 = vld [vmem:[#allocation2 + $0xd6] sm:$0xff] }
 0x218   : > { %5478 = vmatmul.mubr.bf16.gmra.mrb[64].mxu1 %v7678_v1 }
 0x219   : > { %5934 = vmatmul.mubr.bf16.gmra.mrb[20].mxu0 %v3445_v3  ;;  %5481 = vmatprep.mubr.msk.bf16.mxu1 %vm6929_vm0, %v6928_v2 }
 0x21a   : > { %5937 = vmatprep.mubr.msk.bf16.mxu0 %vm6929_vm0, %v6928_v2 }
 0x220   : > { %5482 = vmatmul.mubr.bf16.gmra.mrb[68].mxu1 %v7685_v9 }
 0x221   : > { %5938 = vmatmul.mubr.bf16.gmra.mrb[24].mxu0 %v3446_v29  ;;  %5485 = vmatprep.mubr.msk.bf16.mxu1 %vm6929_vm0, %v6928_v2  ;;  %v3438_v29 = vld [vmem:[#allocation2 + $0x15d] sm:$0xff] }
 0x222   : > { %5941 = vmatprep.mubr.msk.bf16.mxu0 %vm6929_vm0, %v6928_v2 }
 0x228   : > { %5486 = vmatmul.mubr.bf16.gmra.mrb[72].mxu1 %v7692_v56 }
 0x229   : > { %5942 = vmatmul.mubr.bf16.gmra.mrb[28].mxu0 %v3447_v14  ;;  %5489 = vmatprep.mubr.msk.bf16.mxu1 %vm6929_vm0, %v6928_v2  ;;  %v3852_v14 = vld [vmem:[#allocation2 + $0x3e] sm:$0xff] }
 0x22a   : > { %5945 = vmatprep.mubr.msk.bf16.mxu0 %vm6929_vm0, %v6928_v2 }
 0x230   : > { %5490 = vmatmul.mubr.bf16.gmra.mrb[76].mxu1 %v7699_v21 }
 0x231   : > { %5946 = vmatmul.mubr.bf16.gmra.mrb[32].mxu0 %v3448_v27  ;;  %5493 = vmatprep.mubr.msk.bf16.mxu1 %vm6929_vm0, %v6928_v2 }
 0x232   : > { %5949 = vmatprep.mubr.msk.bf16.mxu0 %vm6929_vm0, %v6928_v2 }
 0x238   : > { %5494 = vmatmul.mubr.bf16.gmra.mrb[80].mxu1 %v1210_v31  ;;  %v3860_v31 = vld [vmem:[#allocation2 + $0x7e] sm:$0xff] }
 0x239   : > { %5950 = vmatmul.mubr.bf16.gmra.mrb[36].mxu0 %v3449_v33  ;;  %5513 = vmatprep.mubr.msk.bf16.mxu1 %vm6929_vm0, %v6928_v2 }
 0x23a   : > { %5953 = vmatprep.mubr.msk.bf16.mxu0 %vm6929_vm0, %v6928_v2 }
 0x240   : > { %5514 = vmatmul.mubr.bf16.vlgmr.msra.gmra.mrb[0].mxu1 %v7508_v39  ;;  %v6912_v39 = vld [vmem:[%s8001_s1 + $0x108] sm:$0xff]  }
 0x241   : > { %5954 = vmatmul.mubr.bf16.gmra.mrb[40].mxu0 %v3450_v34  ;;  %6105 = vmatpush3.bf16.msra.mxu1 %v6911_v25  ;;  %v3864_v34 = vld [vmem:[#allocation2 + $0x9e] sm:$0xff] }
 0x242   : > { %5517 = vmatprep.mubr.msk.bf16.mxu1 %vm6929_vm0, %v6928_v2  ;;  %5957 = vmatprep.mubr.msk.bf16.mxu0 %vm6929_vm0, %v6928_v2 }
 0x243   : > { %6098 = vmatprep.subr.bf16.mxu1 %v6928_v2 }
 0x245   : > { %6106 = vmatpush3.bf16.msra.mxu1 %v6912_v39 }
 0x246   : > { %6099 = vmatprep.subr.bf16.mxu1 %v6928_v2 }
 0x248   : > { %5518 = vmatmul.mubr.bf16.gmra.mrb[4].mxu1 %v7524_v46  ;;  %v6914_v46 = vld [vmem:[%s8001_s1 + $0x118] sm:$0xff]  }
 0x249   : > { %5958 = vmatmul.mubr.bf16.gmra.mrb[44].mxu0 %v3451_v38  ;;  %5521 = vmatprep.mubr.msk.bf16.mxu1 %vm6929_vm0, %v6928_v2  ;;  %v1659_v38 = vpack.c.bf16 %v1638_v28, %v7704_v23  ;;  %v2071_v23 = vld [vmem:[#allocation2 + $0xc3] sm:$0xff] }
 0x24a   : > { %5961 = vmatprep.mubr.msk.bf16.mxu0 %vm6929_vm0, %v6928_v2  ;;  %6107 = vmatpush3.bf16.msra.mxu1 %v6913_v42  ;;  %v1660_v42 = vpack.c.bf16 %v1639_v44, %v1639_v44  ;;  %v3885_v44 = vld [vmem:[#allocation2 + $0x146] sm:$0xff] }
 0x24b   : > { %6100 = vmatprep.subr.bf16.mxu1 %v6928_v2 }
 0x24e   : > { %6108 = vmatpush3.bf16.msra.mxu1 %v6914_v46  ;;  %v2072_v46 = vld [vmem:[#allocation2 + $0xcb] sm:$0xff] }
 0x24f   : > { %6101 = vmatprep.subr.bf16.mxu1 %v6928_v2 }
 0x250   : > { %5522 = vmatmul.mubr.bf16.gmra.mrb[8].mxu1 %v7540_v52  ;;  %v6916_v52 = vld [vmem:[%s8001_s1 + $0x128] sm:$0xff]  }
 0x251   : > { %5962 = vmatmul.mubr.bf16.gmra.mrb[48].mxu0 %v3452_v43  ;;  %5525 = vmatprep.mubr.msk.bf16.mxu1 %vm6929_vm0, %v6928_v2 }
 0x252   : > { %5965 = vmatprep.mubr.msk.bf16.mxu0 %vm6929_vm0, %v6928_v2  ;;  %6109 = vmatpush3.bf16.msra.mxu1 %v6915_v50  ;;  %v2101_v50 = vpack.c.bf16 %v2072_v46, %v2071_v23 }
 0x253   : > { %6102 = vmatprep.subr.bf16.mxu1 %v6928_v2 }
 0x256   : > { %6110 = vmatpush3.bf16.msra.mxu1 %v6916_v52  ;;  %v2073_v52 = vld [vmem:[#allocation2 + $0xd3] sm:$0xff] }
 0x257   : > { %6103 = vmatprep.subr.bf16.mxu1 %v6928_v2 }
 0x258   : > { %5526 = vmatmul.mubr.bf16.gmra.mrb[12].mxu1 %v7556_v59  ;;  %v6918_v59 = vld [vmem:[%s8001_s1 + $0x138] sm:$0xff]  }
 0x259   : > { %5966 = vmatmul.mubr.bf16.gmra.mrb[52].mxu0 %v3453_v51  ;;  %5529 = vmatprep.mubr.msk.bf16.mxu1 %vm6929_vm0, %v6928_v2  ;;  %v3900_v51 = vpack.c.bf16 %v3870_v47, %v3869_v61  ;;  %v2089_v47 = vld [vmem:[#allocation2 + $0x153] sm:$0xff] }
 0x25a   : > { %5969 = vmatprep.mubr.msk.bf16.mxu0 %vm6929_vm0, %v6928_v2  ;;  %6111 = vmatpush3.bf16.msra.mxu1 %v6917_v55  ;;  %v3872_v55 = vld [vmem:[#allocation2 + $0xde] sm:$0xff] }
 0x25b   : > { %6104 = vmatprep.subr.bf16.mxu1 %v6928_v2 }
 0x25e   : > { %6112 = vmatpush3.bf16.msra.mxu1 %v6918_v59  ;;  %v3901_v59 = vpack.c.bf16 %v3872_v55, %v3871_v54  ;;  %v2110_v54 = vpack.c.bf16 %v2089_v47, %v2089_v47 }
 0x260   : > { %5530 = vmatmul.mubr.bf16.gmra.mrb[16].mxu1 %v7565_v62  ;;  %v3431_v62 = vld [vmem:[#allocation2 + $0x125] sm:$0xff] }
 0x261   : > { %5970 = vmatmul.mubr.bf16.gmra.mrb[56].mxu0 %v3454_v17  ;;  %5533 = vmatprep.mubr.msk.bf16.mxu1 %vm6929_vm0, %v6928_v2  ;;  %v3456_v3 = vpack.c.bf16 %v3432_v0, %v3431_v62  ;;  %v2102_v17 = vpack.c.bf16 %v2074_v6, %v2073_v52  ;;  %v3874_v62 = vld [vmem:[#allocation2 + $0xee] sm:$0xff]  ;;  %v2103_v0 = vpack.c.bf16 %v2076_v63, %v2075_v60  ;;  %v3889_v60 = vld [vmem:[#allocation2 + $0x166] sm:$0xff] }
 0x262   : > { %5973 = vmatprep.mubr.msk.bf16.mxu0 %vm6929_vm0, %v6928_v2 }
 0x268   : > { %5534 = vmatmul.mubr.bf16.gmra.mrb[20].mxu1 %v7573_v22  ;;  %v3433_v22 = vld [vmem:[#allocation2 + $0x135] sm:$0xff] }
 0x269   : > { %5974 = vmatmul.mubr.bf16.gmra.mrb[60].mxu0 %v3455_v30  ;;  %5537 = vmatprep.mubr.msk.bf16.mxu1 %vm6929_vm0, %v6928_v2  ;;  %v3457_v41 = vpack.c.bf16 %v3434_v4, %v3433_v22  ;;  %v3873_v30 = vld [vmem:[#allocation2 + $0xe6] sm:$0xff]  ;;  %v2077_v22 = vld [vmem:[#allocation2 + $0xf3] sm:$0xff]  ;;  %v2078_v4 = vld [vmem:[#allocation2 + $0xfb] sm:$0xff] }
 0x26a   : > { %5977 = vmatprep.mubr.msk.bf16.mxu0 %vm6929_vm0, %v6928_v2 }
 0x270   : > { %5538 = vmatmul.mubr.bf16.gmra.mrb[24].mxu1 %v7581_v35  ;;  %v3435_v35 = vld [vmem:[#allocation2 + $0x145] sm:$0xff] }
 0x271   : > { %5978 = vmatmul.mubr.bf16.gmra.mrb[64].mxu0 %v3456_v3  ;;  %5541 = vmatprep.mubr.msk.bf16.mxu1 %vm6929_vm0, %v6928_v2  ;;  %v3458_v48 = vpack.c.bf16 %v3436_v7, %v3435_v35  ;;  %v3902_v3 = vpack.c.bf16 %v3874_v62, %v3873_v30  ;;  %v3876_v35 = vld [vmem:[#allocation2 + $0xfe] sm:$0xff]  ;;  %v2104_v7 = vpack.c.bf16 %v2078_v4, %v2077_v22 }
 0x272   : > { %5981 = vmatprep.mubr.msk.bf16.mxu0 %vm6929_vm0, %v6928_v2 }
 0x278   : > { %5542 = vmatmul.mubr.bf16.gmra.mrb[28].mxu1 %v7589_v40  ;;  %v3437_v40 = vld [vmem:[#allocation2 + $0x155] sm:$0xff] }
 0x279   : > { %5982 = vmatmul.mubr.bf16.gmra.mrb[68].mxu0 %v3457_v41  ;;  %5545 = vmatprep.mubr.msk.bf16.mxu1 %vm6929_vm0, %v6928_v2  ;;  %v3459_v49 = vpack.c.bf16 %v3438_v29, %v3437_v40  ;;  %v3875_v41 = vld [vmem:[#allocation2 + $0xf6] sm:$0xff]  ;;  %v2079_v40 = vld [vmem:[#allocation2 + $0x103] sm:$0xff]  ;;  %v2080_v29 = vld [vmem:[#allocation2 + $0x10b] sm:$0xff] }
 0x27a   : > { %5985 = vmatprep.mubr.msk.bf16.mxu0 %vm6929_vm0, %v6928_v2 }
 0x280   : > { %5546 = vmatmul.mubr.bf16.gmra.mrb[32].mxu1 %v7597_v8  ;;  %v3439_v8 = vld [vmem:[#allocation2 + $0x165] sm:$0xff] }
 0x281   : > { %5986 = vmatmul.mubr.bf16.gmra.mrb[72].mxu0 %v3458_v48  ;;  %5549 = vmatprep.mubr.msk.bf16.mxu1 %vm6929_vm0, %v6928_v2  ;;  %v3460_v10 = vpack.c.bf16 %v3439_v8, %v3439_v8  ;;  %v3903_v48 = vpack.c.bf16 %v3876_v35, %v3875_v41  ;;  %v3878_v8 = vld [vmem:[#allocation2 + $0x10e] sm:$0xff] }
 0x282   : > { %5989 = vmatprep.mubr.msk.bf16.mxu0 %vm6929_vm0, %v6928_v2 }
 0x288   : > { %5550 = vmatmul.mubr.bf16.gmra.mrb[36].mxu1 %v7605_v15  ;;  %v3850_v15 = vld [vmem:[#allocation2 + $0x2e] sm:$0xff] }
 0x289   : > { %5990 = vmatmul.mubr.bf16.gmra.mrb[76].mxu0 %v3459_v49  ;;  %5553 = vmatprep.mubr.msk.bf16.mxu1 %vm6929_vm0, %v6928_v2  ;;  %v3890_v57 = vpack.c.bf16 %v3850_v15, %v3849_v12  ;;  %v3877_v49 = vld [vmem:[#allocation2 + $0x106] sm:$0xff]  ;;  %v2081_v15 = vld [vmem:[#allocation2 + $0x113] sm:$0xff] }
 0x28a   : > { %5993 = vmatprep.mubr.msk.bf16.mxu0 %vm6929_vm0, %v6928_v2  ;;  %v3904_v12 = vpack.c.bf16 %v3878_v8, %v3877_v49 }
 0x290   : > { %5554 = vmatmul.mubr.bf16.gmra.mrb[40].mxu1 %v7612_v13  ;;  %v3851_v13 = vld [vmem:[#allocation2 + $0x36] sm:$0xff] }
 0x291   : > { %5994 = vmatmul.mubr.bf16.gmra.mrb[80].mxu0 %v3460_v10  ;;  %5557 = vmatprep.mubr.msk.bf16.mxu1 %vm6929_vm0, %v6928_v2  ;;  %v3891_v18 = vpack.c.bf16 %v3852_v14, %v3851_v13  ;;  %v2105_v10 = vpack.c.bf16 %v2080_v29, %v2079_v40  ;;  %v3879_v13 = vld [vmem:[#allocation2 + $0x116] sm:$0xff]  ;;  %v3880_v14 = vld [vmem:[#allocation2 + $0x11e] sm:$0xff] }
 0x292   : > { %6013 = vmatprep.mubr.msk.bf16.mxu0 %vm6929_vm0, %v6928_v2 }
 0x298   : > { %5558 = vmatmul.mubr.bf16.gmra.mrb[44].mxu1 %v7626_v24  ;;  %v3853_v24 = vld [vmem:[#allocation2 + $0x46] sm:$0xff] }
 0x299   : > { %6014 = vmatmul.mubr.bf16.vlgmr.msra.gmra.mrb[0].mxu0 %v3890_v57  ;;  %5561 = vmatprep.mubr.msk.bf16.mxu1 %vm6929_vm0, %v6928_v2  ;;  %v3892_v26 = vpack.c.bf16 %v3854_v16, %v3853_v24  ;;  %v2082_v57 = vld [vmem:[#allocation2 + $0x11b] sm:$0xff]  ;;  %v3905_v24 = vpack.c.bf16 %v3880_v14, %v3879_v13  ;;  %v2083_v16 = vld [vmem:[#allocation2 + $0x123] sm:$0xff] }
 0x29a   : > { %6017 = vmatprep.mubr.msk.bf16.mxu0 %vm6929_vm0, %v6928_v2 }
 0x2a0   : > { %5562 = vmatmul.mubr.bf16.gmra.mrb[48].mxu1 %v7641_v37  ;;  %v3855_v37 = vld [vmem:[#allocation2 + $0x56] sm:$0xff] }
 0x2a1   : > { %6018 = vmatmul.mubr.bf16.gmra.mrb[4].mxu0 %v3891_v18  ;;  %5565 = vmatprep.mubr.msk.bf16.mxu1 %vm6929_vm0, %v6928_v2  ;;  %v3893_v27 = vpack.c.bf16 %v3856_v19, %v3855_v37  ;;  %v2106_v18 = vpack.c.bf16 %v2082_v57, %v2081_v15  ;;  %v3881_v37 = vld [vmem:[#allocation2 + $0x126] sm:$0xff]  ;;  %v3882_v19 = vld [vmem:[#allocation2 + $0x12e] sm:$0xff] }
 0x2a2   : > { %6021 = vmatprep.mubr.msk.bf16.mxu0 %vm6929_vm0, %v6928_v2 }
 0x2a8   : > { %5566 = vmatmul.mubr.bf16.gmra.mrb[52].mxu1 %v7656_v45  ;;  %v3857_v45 = vld [vmem:[#allocation2 + $0x66] sm:$0xff] }
 0x2a9   : > { %6022 = vmatmul.mubr.bf16.gmra.mrb[8].mxu0 %v3892_v26  ;;  %5569 = vmatprep.mubr.msk.bf16.mxu1 %vm6929_vm0, %v6928_v2  ;;  %v3894_v11 = vpack.c.bf16 %v3858_v5, %v3857_v45  ;;  %v2084_v26 = vld [vmem:[#allocation2 + $0x12b] sm:$0xff] }
 0x2aa   : > { %6025 = vmatprep.mubr.msk.bf16.mxu0 %vm6929_vm0, %v6928_v2  ;;  %v2107_v5 = vpack.c.bf16 %v2084_v26, %v2083_v16 }
 0x2b0   : > { %5570 = vmatmul.mubr.bf16.gmra.mrb[56].mxu1 %v7671_v58  ;;  %v3859_v58 = vld [vmem:[#allocation2 + $0x76] sm:$0xff] }
 0x2b1   : > { %6026 = vmatmul.mubr.bf16.gmra.mrb[12].mxu0 %v3893_v27  ;;  %5573 = vmatprep.mubr.msk.bf16.mxu1 %vm6929_vm0, %v6928_v2  ;;  %v3895_v33 = vpack.c.bf16 %v3860_v31, %v3859_v58  ;;  %v3906_v58 = vpack.c.bf16 %v3882_v19, %v3881_v37 }
 0x2b2   : > { %6029 = vmatprep.mubr.msk.bf16.mxu0 %vm6929_vm0, %v6928_v2 }
 0x2b8   : > { %5574 = vmatmul.mubr.bf16.gmra.mrb[60].mxu1 %v7678_v1  ;;  %v3861_v1 = vld [vmem:[#allocation2 + $0x86] sm:$0xff] }
 0x2b9   : > { %6030 = vmatmul.mubr.bf16.gmra.mrb[16].mxu0 %v3894_v11  ;;  %5577 = vmatprep.mubr.msk.bf16.mxu1 %vm6929_vm0, %v6928_v2  ;;  %v3896_v32 = vpack.c.bf16 %v3862_v20, %v3861_v1  ;;  %v2086_v1 = vld [vmem:[#allocation2 + $0x13b] sm:$0xff] }
 0x2ba   : > { %6033 = vmatprep.mubr.msk.bf16.mxu0 %vm6929_vm0, %v6928_v2  ;;  %v3883_v20 = vld [vmem:[#allocation2 + $0x136] sm:$0xff] }
 0x2c0   : > { %5578 = vmatmul.mubr.bf16.gmra.mrb[64].mxu1 %v7685_v9  ;;  %v3863_v9 = vld [vmem:[#allocation2 + $0x96] sm:$0xff] }
 0x2c1   : > { %6034 = vmatmul.mubr.bf16.gmra.mrb[20].mxu0 %v3895_v33  ;;  %5581 = vmatprep.mubr.msk.bf16.mxu1 %vm6929_vm0, %v6928_v2  ;;  %v3897_v25 = vpack.c.bf16 %v3864_v34, %v3863_v9  ;;  %v2085_v33 = vld [vmem:[#allocation2 + $0x133] sm:$0xff] }
 0x2c2   : > { %6037 = vmatprep.mubr.msk.bf16.mxu0 %vm6929_vm0, %v6928_v2 }
 0x2c8   : > { %5582 = vmatmul.mubr.bf16.gmra.mrb[68].mxu1 %v7692_v56  ;;  %v3865_v56 = vld [vmem:[#allocation2 + $0xa6] sm:$0xff] }
 0x2c9   : > { %6038 = vmatmul.mubr.bf16.gmra.mrb[24].mxu0 %v3896_v32  ;;  %5585 = vmatprep.mubr.msk.bf16.mxu1 %vm6929_vm0, %v6928_v2  ;;  %v3898_v39 = vpack.c.bf16 %v3866_v36, %v3865_v56  ;;  %v3884_v32 = vld [vmem:[#allocation2 + $0x13e] sm:$0xff] }
 0x2ca   : > { %6041 = vmatprep.mubr.msk.bf16.mxu0 %vm6929_vm0, %v6928_v2  ;;  %v3907_v56 = vpack.c.bf16 %v3884_v32, %v3883_v20 }
 0x2d0   : > { %5586 = vmatmul.mubr.bf16.gmra.mrb[72].mxu1 %v7699_v21  ;;  %v3867_v21 = vld [vmem:[#allocation2 + $0xb6] sm:$0xff] }
 0x2d1   : > { %6042 = vmatmul.mubr.bf16.gmra.mrb[28].mxu0 %v3897_v25  ;;  %5589 = vmatprep.mubr.msk.bf16.mxu1 %vm6929_vm0, %v6928_v2  ;;  %v3899_v43 = vpack.c.bf16 %v3868_v53, %v3867_v21  ;;  %v2108_v25 = vpack.c.bf16 %v2086_v1, %v2085_v33  ;;  %v3886_v21 = vld [vmem:[#allocation2 + $0x14e] sm:$0xff] }
 0x2d2   : > { %6045 = vmatprep.mubr.msk.bf16.mxu0 %vm6929_vm0, %v6928_v2  ;;  %v3908_v46 = vpack.c.bf16 %v3886_v21, %v3885_v44 }
 0x2d8   : > { %5590 = vmatmul.mubr.bf16.gmra.mrb[76].mxu1 %v1659_v38  ;;  %v2087_v38 = vld [vmem:[#allocation2 + $0x143] sm:$0xff] }
 0x2d9   : > { %6046 = vmatmul.mubr.bf16.gmra.mrb[32].mxu0 %v3898_v39  ;;  %5593 = vmatprep.mubr.msk.bf16.mxu1 %vm6929_vm0, %v6928_v2  ;;  %v2088_v39 = vld [vmem:[#allocation2 + $0x14b] sm:$0xff] }
 0x2da   : > { %6049 = vmatprep.mubr.msk.bf16.mxu0 %vm6929_vm0, %v6928_v2 }
 0x2e0   : > { %5594 = vmatmul.mubr.bf16.gmra.mrb[80].mxu1 %v1660_v42 }
 0x2e1   : > { %6050 = vmatmul.mubr.bf16.gmra.mrb[36].mxu0 %v3899_v43  ;;  %5657 = vmatprep.mubr.msk.bf16.mxu1 %vm6929_vm0, %v6928_v2  ;;  %v2109_v43 = vpack.c.bf16 %v2088_v39, %v2087_v38 }
 0x2e2   : > { %6053 = vmatprep.mubr.msk.bf16.mxu0 %vm6929_vm0, %v6928_v2 }
 0x2e8   : > { %5658 = vmatmul.mubr.bf16.vlgmr.msra.gmra.mrb[44].mxu1 %v2101_v50  ;;  %v3887_v50 = vld [vmem:[#allocation2 + $0x156] sm:$0xff] }
 0x2e9   : > { %6054 = vmatmul.mubr.bf16.gmra.mrb[40].mxu0 %v3900_v51  ;;  %5661 = vmatprep.mubr.msk.bf16.mxu1 %vm6929_vm0, %v6928_v2  ;;  %v3888_v51 = vld [vmem:[#allocation2 + $0x15e] sm:$0xff] }
 0x2ea   : > { %6057 = vmatprep.mubr.msk.bf16.mxu0 %vm6929_vm0, %v6928_v2 }
 0x2f0   : > { %5662 = vmatmul.mubr.bf16.gmra.mrb[48].mxu1 %v2102_v17  ;;  %v3909_v17 = vpack.c.bf16 %v3888_v51, %v3887_v50 }
 0x2f1   : > { %6058 = vmatmul.mubr.bf16.gmra.mrb[44].mxu0 %v3901_v59  ;;  %5665 = vmatprep.mubr.msk.bf16.mxu1 %vm6929_vm0, %v6928_v2 }
 0x2f2   : > { %6061 = vmatprep.mubr.msk.bf16.mxu0 %vm6929_vm0, %v6928_v2 }
 0x2f8   : > { %5666 = vmatmul.mubr.bf16.gmra.mrb[52].mxu1 %v2103_v0  ;;  %v3910_v0 = vpack.c.bf16 %v3889_v60, %v3889_v60 }
 0x2f9   : > { %6062 = vmatmul.mubr.bf16.gmra.mrb[48].mxu0 %v3902_v3  ;;  %5669 = vmatprep.mubr.msk.bf16.mxu1 %vm6929_vm0, %v6928_v2 }
 0x2fa   : > { %6065 = vmatprep.mubr.msk.bf16.mxu0 %vm6929_vm0, %v6928_v2 }
 0x300   : > { %5670 = vmatmul.mubr.bf16.gmra.mrb[56].mxu1 %v2104_v7 }
 0x301   : > { %6066 = vmatmul.mubr.bf16.gmra.mrb[52].mxu0 %v3903_v48  ;;  %5673 = vmatprep.mubr.msk.bf16.mxu1 %vm6929_vm0, %v6928_v2 }
 0x302   : > { %6069 = vmatprep.mubr.msk.bf16.mxu0 %vm6929_vm0, %v6928_v2 }
 0x308   : > { %5674 = vmatmul.mubr.bf16.gmra.mrb[60].mxu1 %v2105_v10 }
 0x309   : > { %6070 = vmatmul.mubr.bf16.gmra.mrb[56].mxu0 %v3904_v12  ;;  %5677 = vmatprep.mubr.msk.bf16.mxu1 %vm6929_vm0, %v6928_v2 }
 0x30a   : > { %6073 = vmatprep.mubr.msk.bf16.mxu0 %vm6929_vm0, %v6928_v2 }
 0x310   : > { %5678 = vmatmul.mubr.bf16.gmra.mrb[64].mxu1 %v2106_v18 }
 0x311   : > { %6074 = vmatmul.mubr.bf16.gmra.mrb[60].mxu0 %v3905_v24  ;;  %5681 = vmatprep.mubr.msk.bf16.mxu1 %vm6929_vm0, %v6928_v2 }
 0x312   : > { %6077 = vmatprep.mubr.msk.bf16.mxu0 %vm6929_vm0, %v6928_v2 }
 0x313   : > { %v7873_v27 = vpop.f32.mrb[0].mxu1 }
 0x314   : > { %v5515_v45 = vpop.f32.mrb[1].mxu1 }
 0x315   : > { %v7875_v11 = vpop.f32.mrb[2].mxu1 }
 0x316   : > { %v5516_v31 = vpop.f32.mrb[3].mxu1 }
 0x318   : > { %5682 = vmatmul.mubr.bf16.gmra.mrb[68].mxu1 %v2107_v5 }
 0x319   : > { %6078 = vmatmul.mubr.bf16.gmra.mrb[64].mxu0 %v3906_v58  ;;  %5685 = vmatprep.mubr.msk.bf16.mxu1 %vm6929_vm0, %v6928_v2 }
 0x31a   : > { %6081 = vmatprep.mubr.msk.bf16.mxu0 %vm6929_vm0, %v6928_v2 }
 0x31b   : > { %v7881_v9 = vpop.f32.mrb[4].mxu1 }
 0x31c   : > { %v5519_v34 = vpop.f32.mrb[5].mxu1 }
 0x31d   : > { %v7883_v28 = vpop.f32.mrb[6].mxu1 }
 0x31e   : > { %v5520_v36 = vpop.f32.mrb[7].mxu1 }
 0x320   : > { %5686 = vmatmul.mubr.bf16.gmra.mrb[72].mxu1 %v2108_v25 }
 0x321   : > { %6082 = vmatmul.mubr.bf16.gmra.mrb[68].mxu0 %v3907_v56  ;;  %5689 = vmatprep.mubr.msk.bf16.mxu1 %vm6929_vm0, %v6928_v2 }
 0x322   : > { %6085 = vmatprep.mubr.msk.bf16.mxu0 %vm6929_vm0, %v6928_v2 }
 0x323   : > { %v7889_v53 = vpop.f32.mrb[8].mxu1 }
 0x324   : > { %v5523_v42 = vpop.f32.mrb[9].mxu1 }
 0x325   : > { %v7891_v23 = vpop.f32.mrb[10].mxu1 }
 0x326   : > { %v5524_v61 = vpop.f32.mrb[11].mxu1 }
 0x328   : > { %5690 = vmatmul.mubr.bf16.gmra.mrb[76].mxu1 %v2109_v43 }
 0x329   : > { %6086 = vmatmul.mubr.bf16.gmra.mrb[72].mxu0 %v3908_v46  ;;  %5693 = vmatprep.mubr.msk.bf16.mxu1 %vm6929_vm0, %v6928_v2 }
 0x32a   : > { %6089 = vmatprep.mubr.msk.bf16.mxu0 %vm6929_vm0, %v6928_v2 }
 0x32b   : > { %v7897_v52 = vpop.f32.mrb[12].mxu1 }
 0x32c   : > { %v5527_v6 = vpop.f32.mrb[13].mxu1 }
 0x32d   : > { %v7899_v55 = vpop.f32.mrb[14].mxu1 }
 0x32e   : > { %v5528_v59 = vpop.f32.mrb[15].mxu1 }
 0x330   : > { %5694 = vmatmul.mubr.bf16.gmra.mrb[80].mxu1 %v2110_v54 }
 0x331   : > { %6090 = vmatmul.mubr.bf16.gmra.mrb[76].mxu0 %v3909_v17 }
 0x332   : > { %6093 = vmatprep.mubr.msk.bf16.mxu0 %vm6929_vm0, %v6928_v2 }
 0x333   : > { %v7903_v63 = vpop.f32.mrb[16].mxu1 }
 0x334   : > { %v5531_v30 = vpop.f32.mrb[17].mxu1 }
 0x335   : > { %v7905_v62 = vpop.f32.mrb[18].mxu1 }
 0x336   : > { %v5532_v3 = vpop.f32.mrb[19].mxu1 }
 0x339   : > { %6094 = vmatmul.mubr.bf16.gmra.mrb[80].mxu0 %v3910_v0 }
 0x33b   : > { %v7907_v22 = vpop.f32.mrb[20].mxu1 }
 0x33c   : > { %v5535_v4 = vpop.f32.mrb[21].mxu1 }
 0x33d   : > { %v7909_v41 = vpop.f32.mrb[22].mxu1 }
 0x33e   : > { %v5536_v35 = vpop.f32.mrb[23].mxu1 }
 0x343   : > { %v7911_v7 = vpop.f32.mrb[24].mxu1 }
 0x344   : > { %v5539_v48 = vpop.f32.mrb[25].mxu1 }
 0x345   : > { %v7913_v40 = vpop.f32.mrb[26].mxu1 }
 0x346   : > { %v5540_v2 = vpop.f32.mrb[27].mxu1 }
 0x34b   : > { %v7915_v29 = vpop.f32.mrb[28].mxu1 }
 0x34c   : > { %v5543_v49 = vpop.f32.mrb[29].mxu1 }
 0x34d   : > { %v7917_v8 = vpop.f32.mrb[30].mxu1 }
 0x34e   : > { %v5544_v10 = vpop.f32.mrb[31].mxu1 }
 0x353   : > { %v7919_v12 = vpop.f32.mrb[32].mxu1 }
 0x354   : > { %v5547_v15 = vpop.f32.mrb[33].mxu1 }
 0x355   : > { %v7921_v57 = vpop.f32.mrb[34].mxu1 }
 0x356   : > { %v5548_v13 = vpop.f32.mrb[35].mxu1 }
 0x35b   : > { %v7923_v14 = vpop.f32.mrb[36].mxu1 }
 0x35c   : > { %v5551_v18 = vpop.f32.mrb[37].mxu1 }
 0x35d   : > { %v7925_v24 = vpop.f32.mrb[38].mxu1 }
 0x35e   : > { %v5552_v16 = vpop.f32.mrb[39].mxu1 }
 0x363   : > { %v7927_v26 = vpop.f32.mrb[40].mxu1 }
 0x364   : > { %v5555_v37 = vpop.f32.mrb[41].mxu1 }
 0x365   : > { %v7929_v19 = vpop.f32.mrb[42].mxu1 }
 0x366   : > { %v5556_v45 = vpop.f32.mrb[43].mxu1 }
 0x36c   : > { %v4010_v5 = vpop.f32.mrb[0].mxu0 }
 0x36d   : > { %v6115_v58 = vadd.f32 %v4010_v5, %v7873_v27  ;;  %v6015_v31 = vpop.f32.mrb[1].mxu0 }
 0x36e   : > { %v4013_v33 = vpop.f32.mrb[2].mxu0 }
 0x36f   : > { %4301 = vst [vmem:[%s6966_s22] sm:$0xff] %v6115_v58  ;;  %v6118_v1 = vadd.f32 %v4013_v33, %v7875_v11  ;;  %v6016_v20 = vpop.f32.mrb[3].mxu0  ;;  %v4451_v32 = vmul.f32 %v6115_v58, %v6115_v58 }
 0x371   : > { %4302 = vst [vmem:[%s6966_s22 + $0x8] sm:$0xff] %v6118_v1  ;;  %v4411_v34 = vadd.f32 %v6118_v1, %v6115_v58  ;;  %v4452_v25 = vmul.f32 %v6118_v1, %v6118_v1 }
 0x373   : > { %v4483_v56 = vadd.f32 %v4452_v25, %v4451_v32 }
 0x374   : > { %v4018_v36 = vpop.f32.mrb[4].mxu0 }
 0x375   : > { %v6121_v38 = vadd.f32 %v4018_v36, %v7881_v9  ;;  %v6019_v39 = vpop.f32.mrb[5].mxu0 }
 0x376   : > { %v4021_v44 = vpop.f32.mrb[6].mxu0 }
 0x377   : > { %4260 = vst [vmem:[#allocation3 + $0x10] sm:$0xff] %v6121_v38  ;;  %v6124_v27 = vadd.f32 %v4021_v44, %v7883_v28  ;;  %v6020_v21 = vpop.f32.mrb[7].mxu0 }
 0x379   : > { %4261 = vst [vmem:[#allocation3 + $0x18] sm:$0xff] %v6124_v27 }
 0x37c   : > { %v4026_v42 = vpop.f32.mrb[8].mxu0 }
 0x37d   : > { %v6127_v11 = vadd.f32 %v4026_v42, %v7889_v53  ;;  %v6023_v43 = vpop.f32.mrb[9].mxu0 }
 0x37e   : > { %v4029_v46 = vpop.f32.mrb[10].mxu0 }
 0x37f   : > { %4262 = vst [vmem:[#allocation3 + $0x20] sm:$0xff] %v6127_v11  ;;  %v6130_v61 = vadd.f32 %v4029_v46, %v7891_v23  ;;  %v6024_v47 = vpop.f32.mrb[11].mxu0 }
 0x380   : > { %v4303_v50 = vld [vmem:[#allocation3 + $0x12] sm:$0xff] }
 0x381   : > { %4823 = vst [vmem:[%s6966_s22 + $0x10] sm:$0xff] %v4303_v50  ;;  %v4412_v9 = vadd.f32 %v4411_v34, %v4303_v50  ;;  %v4453_v51 = vmul.f32 %v4303_v50, %v4303_v50  ;;  %4263 = vst [vmem:[#allocation3 + $0x28] sm:$0xff] %v6130_v61 }
 0x383   : > { %v4484_v6 = vadd.f32 %v4483_v56, %v4453_v51 }
 0x384   : > { %v4034_v28 = vpop.f32.mrb[12].mxu0 }
 0x385   : > { %v6133_v54 = vadd.f32 %v4034_v28, %v7897_v52  ;;  %v6027_v17 = vpop.f32.mrb[13].mxu0 }
 0x386   : > { %v4304_v59 = vld [vmem:[#allocation3 + $0x1a] sm:$0xff]  ;;  %v4037_v53 = vpop.f32.mrb[14].mxu0 }
 0x387   : > { %4824 = vst [vmem:[%s6966_s22 + $0x18] sm:$0xff] %v4304_v59  ;;  %v4413_v60 = vadd.f32 %v4412_v9, %v4304_v59  ;;  %v4454_v30 = vmul.f32 %v4304_v59, %v4304_v59  ;;  %4264 = vst [vmem:[#allocation3 + $0x30] sm:$0xff] %v6133_v54  ;;  %v6136_v23 = vadd.f32 %v4037_v53, %v7899_v55  ;;  %v6028_v0 = vpop.f32.mrb[15].mxu0 }
 0x388   : > { %v4308_v3 = vld [vmem:[#allocation3 + $0x24] sm:$0xff] }
 0x389   : > { %v4485_v4 = vadd.f32 %v4484_v6, %v4454_v30  ;;  %4825 = vst [vmem:[%s6966_s22 + $0x20] sm:$0xff] %v4308_v3  ;;  %v4414_v35 = vadd.f32 %v4413_v60, %v4308_v3  ;;  %v4455_v48 = vmul.f32 %v4308_v3, %v4308_v3  ;;  %4265 = vst [vmem:[#allocation3 + $0x38] sm:$0xff] %v6136_v23 }
 0x38b   : > { %v4486_v52 = vadd.f32 %v4485_v4, %v4455_v48 }
 0x38c   : > { %v4042_v2 = vpop.f32.mrb[16].mxu0 }
 0x38d   : > { %v6139_v49 = vadd.f32 %v4042_v2, %v7903_v63  ;;  %v6031_v10 = vpop.f32.mrb[17].mxu0 }
 0x38e   : > { %v4309_v15 = vld [vmem:[#allocation3 + $0x2c] sm:$0xff]  ;;  %v4045_v13 = vpop.f32.mrb[18].mxu0 }
 0x38f   : > { %4826 = vst [vmem:[%s6966_s22 + $0x28] sm:$0xff] %v4309_v15  ;;  %v4456_v18 = vmul.f32 %v4309_v15, %v4309_v15  ;;  %4266 = vst [vmem:[#allocation3 + $0x40] sm:$0xff] %v6139_v49  ;;  %v6142_v55 = vadd.f32 %v4045_v13, %v7905_v62  ;;  %v6032_v16 = vpop.f32.mrb[19].mxu0  ;;  %v4415_v45 = vadd.f32 %v4414_v35, %v4309_v15 }
 0x390   : > { %v4313_v37 = vld [vmem:[#allocation3 + $0x36] sm:$0xff] }
 0x391   : > { %4827 = vst [vmem:[%s6966_s22 + $0x30] sm:$0xff] %v4313_v37  ;;  %4829 = vst [vmem:[%s6966_s22 + $0x40] sm:$0xff] %v6142_v55  ;;  %v4487_v5 = vadd.f32 %v4486_v52, %v4456_v18  ;;  %v4457_v58 = vmul.f32 %v4313_v37, %v4313_v37  ;;  %v4416_v33 = vadd.f32 %v4415_v45, %v4313_v37 }
 0x392   : > { %v4459_v44 = vmul.f32 %v6142_v55, %v6142_v55 }
 0x393   : > { %v4488_v34 = vadd.f32 %v4487_v5, %v4457_v58 }
 0x394   : > { %v4050_v31 = vpop.f32.mrb[20].mxu0 }
 0x395   : > { %v6145_v63 = vadd.f32 %v4050_v31, %v7907_v22  ;;  %v6035_v1 = vpop.f32.mrb[21].mxu0 }
 0x396   : > { %v4314_v20 = vld [vmem:[#allocation3 + $0x3e] sm:$0xff]  ;;  %v4053_v32 = vpop.f32.mrb[22].mxu0 }
 0x397   : > { %4828 = vst [vmem:[%s6966_s22 + $0x38] sm:$0xff] %v4314_v20  ;;  %v4417_v25 = vadd.f32 %v4416_v33, %v4314_v20  ;;  %v4458_v56 = vmul.f32 %v4314_v20, %v4314_v20  ;;  %4830 = vst [vmem:[%s6966_s22 + $0x48] sm:$0xff] %v6145_v63  ;;  %v6148_v62 = vadd.f32 %v4053_v32, %v7909_v41  ;;  %v6036_v36 = vpop.f32.mrb[23].mxu0 }
 0x398   : > { %v4460_v42 = vmul.f32 %v6145_v63, %v6145_v63 }
 0x399   : > { %v4489_v38 = vadd.f32 %v4488_v34, %v4458_v56  ;;  %v4418_v39 = vadd.f32 %v6142_v55, %v4417_v25  ;;  %4269 = vst [vmem:[#allocation3 + $0x58] sm:$0xff] %v6148_v62 }
 0x39b   : > { %v4490_v27 = vadd.f32 %v4489_v38, %v4459_v44  ;;  %v4419_v21 = vadd.f32 %v6145_v63, %v4418_v39 }
 0x39c   : > { %v4058_v22 = vpop.f32.mrb[24].mxu0 }
 0x39d   : > { %v4491_v11 = vadd.f32 %v4490_v27, %v4460_v42  ;;  %v6151_v43 = vadd.f32 %v4058_v22, %v7911_v7  ;;  %v6039_v46 = vpop.f32.mrb[25].mxu0 }
 0x39e   : > { %v4061_v61 = vpop.f32.mrb[26].mxu0 }
 0x39f   : > { %4270 = vst [vmem:[#allocation3 + $0x60] sm:$0xff] %v6151_v43  ;;  %v6154_v47 = vadd.f32 %v4061_v61, %v7913_v40  ;;  %v6040_v41 = vpop.f32.mrb[27].mxu0 }
 0x3a1   : > { %4271 = vst [vmem:[#allocation3 + $0x68] sm:$0xff] %v6154_v47 }
 0x3a4   : > { %v4066_v50 = vpop.f32.mrb[28].mxu0 }
 0x3a5   : > { %v6157_v9 = vadd.f32 %v4066_v50, %v7915_v29  ;;  %v6043_v51 = vpop.f32.mrb[29].mxu0 }
 0x3a6   : > { %v4323_v6 = vld [vmem:[#allocation3 + $0x5a] sm:$0xff]  ;;  %v4069_v28 = vpop.f32.mrb[30].mxu0 }
 0x3a7   : > { %4831 = vst [vmem:[%s6966_s22 + $0x50] sm:$0xff] %v4323_v6  ;;  %4272 = vst [vmem:[#allocation3 + $0x70] sm:$0xff] %v6157_v9  ;;  %v6160_v54 = vadd.f32 %v4069_v28, %v7917_v8  ;;  %v6044_v7 = vpop.f32.mrb[31].mxu0  ;;  %v4461_v59 = vmul.f32 %v4323_v6, %v4323_v6  ;;  %v4420_v53 = vadd.f32 %v4419_v21, %v4323_v6 }
 0x3a8   : > { %v4324_v17 = vld [vmem:[#allocation3 + $0x62] sm:$0xff] }
 0x3a9   : > { %4832 = vst [vmem:[%s6966_s22 + $0x58] sm:$0xff] %v4324_v17  ;;  %4273 = vst [vmem:[#allocation3 + $0x78] sm:$0xff] %v6160_v54  ;;  %v4492_v60 = vadd.f32 %v4491_v11, %v4461_v59  ;;  %v4462_v30 = vmul.f32 %v4324_v17, %v4324_v17  ;;  %v4421_v4 = vadd.f32 %v4420_v53, %v4324_v17 }
 0x3ab   : > { %v4493_v2 = vadd.f32 %v4492_v60, %v4462_v30 }
 0x3ac   : > { %v4074_v40 = vpop.f32.mrb[32].mxu0 }
 0x3ad   : > { %v6163_v29 = vadd.f32 %v4074_v40, %v7919_v12  ;;  %v6047_v23 = vpop.f32.mrb[33].mxu0 }
 0x3ae   : > { %v4328_v0 = vld [vmem:[#allocation3 + $0x6c] sm:$0xff]  ;;  %v4077_v3 = vpop.f32.mrb[34].mxu0 }
 0x3af   : > { %4833 = vst [vmem:[%s6966_s22 + $0x60] sm:$0xff] %v4328_v0  ;;  %v4463_v35 = vmul.f32 %v4328_v0, %v4328_v0  ;;  %4274 = vst [vmem:[#allocation3 + $0x80] sm:$0xff] %v6163_v29  ;;  %v6166_v8 = vadd.f32 %v4077_v3, %v7921_v57  ;;  %v6048_v48 = vpop.f32.mrb[35].mxu0  ;;  %v4422_v49 = vadd.f32 %v4421_v4, %v4328_v0 }
 0x3b0   : > { %v4329_v52 = vld [vmem:[#allocation3 + $0x74] sm:$0xff] }
 0x3b1   : > { %4834 = vst [vmem:[%s6966_s22 + $0x68] sm:$0xff] %v4329_v52  ;;  %4275 = vst [vmem:[#allocation3 + $0x88] sm:$0xff] %v6166_v8  ;;  %v4494_v10 = vadd.f32 %v4493_v2, %v4463_v35  ;;  %v4464_v15 = vmul.f32 %v4329_v52, %v4329_v52  ;;  %v4423_v13 = vadd.f32 %v4422_v49, %v4329_v52 }
 0x3b3   : > { %v4495_v57 = vadd.f32 %v4494_v10, %v4464_v15 }
 0x3b4   : > { %v4082_v12 = vpop.f32.mrb[36].mxu0 }
 0x3b5   : > { %v6169_v18 = vadd.f32 %v4082_v12, %v7923_v14  ;;  %v6051_v55 = vpop.f32.mrb[37].mxu0 }
 0x3b6   : > { %v4333_v16 = vld [vmem:[#allocation3 + $0x7e] sm:$0xff]  ;;  %v4085_v37 = vpop.f32.mrb[38].mxu0 }
 0x3b7   : > { %4835 = vst [vmem:[%s6966_s22 + $0x70] sm:$0xff] %v4333_v16  ;;  %v4424_v45 = vadd.f32 %v4423_v13, %v4333_v16  ;;  %v4465_v5 = vmul.f32 %v4333_v16, %v4333_v16  ;;  %4837 = vst [vmem:[%s6966_s22 + $0x80] sm:$0xff] %v6169_v18  ;;  %v6172_v58 = vadd.f32 %v4085_v37, %v7925_v24  ;;  %v6052_v31 = vpop.f32.mrb[39].mxu0 }
 0x3b8   : > { %v4334_v33 = vld [vmem:[#allocation3 + $0x86] sm:$0xff]  ;;  %v4467_v34 = vmul.f32 %v6169_v18, %v6169_v18 }
 0x3b9   : > { %v4496_v63 = vadd.f32 %v4495_v57, %v4465_v5  ;;  %4836 = vst [vmem:[%s6966_s22 + $0x78] sm:$0xff] %v4334_v33  ;;  %v4425_v1 = vadd.f32 %v4424_v45, %v4334_v33  ;;  %v4466_v20 = vmul.f32 %v4334_v33, %v4334_v33  ;;  %4838 = vst [vmem:[%s6966_s22 + $0x88] sm:$0xff] %v6172_v58 }
 0x3ba   : > { %v4468_v39 = vmul.f32 %v6172_v58, %v6172_v58 }
 0x3bb   : > { %v4497_v32 = vadd.f32 %v4496_v63, %v4466_v20  ;;  %v4426_v14 = vadd.f32 %v6169_v18, %v4425_v1  ;;  %v2298_v25 = vpop.f32.mrb[44].mxu1 }
 0x3bc   : > { %v4090_v56 = vpop.f32.mrb[40].mxu0  ;;  %v5659_v62 = vpop.f32.mrb[45].mxu1 }
 0x3bd   : > { %v4498_v36 = vadd.f32 %v4497_v32, %v4467_v34  ;;  %v4427_v38 = vadd.f32 %v6172_v58, %v4426_v14  ;;  %v6175_v44 = vadd.f32 %v4090_v56, %v7927_v26  ;;  %v6055_v27 = vpop.f32.mrb[41].mxu0  ;;  %v2301_v24 = vpop.f32.mrb[46].mxu1 }
 0x3be   : > { %v4093_v21 = vpop.f32.mrb[42].mxu0  ;;  %v5660_v42 = vpop.f32.mrb[47].mxu1 }
 0x3bf   : > { %v4499_v22 = vadd.f32 %v4498_v36, %v4468_v39  ;;  %4278 = vst [vmem:[#allocation3 + $0xa0] sm:$0xff] %v6175_v44  ;;  %v6178_v11 = vadd.f32 %v4093_v21, %v7929_v19  ;;  %v6056_v43 = vpop.f32.mrb[43].mxu0 }
 0x3c1   : > { %4279 = vst [vmem:[#allocation3 + $0xa8] sm:$0xff] %v6178_v11 }
 0x3c3   : > { %v2306_v46 = vpop.f32.mrb[48].mxu1 }
 0x3c4   : > { %v4098_v61 = vpop.f32.mrb[44].mxu0  ;;  %v5663_v47 = vpop.f32.mrb[49].mxu1 }
 0x3c5   : > { %v6181_v41 = vadd.f32 %v4098_v61, %v2298_v25  ;;  %v6059_v50 = vpop.f32.mrb[45].mxu0  ;;  %v2309_v9 = vpop.f32.mrb[50].mxu1 }
 0x3c6   : > { %v4101_v51 = vpop.f32.mrb[46].mxu0  ;;  %v5664_v6 = vpop.f32.mrb[51].mxu1 }
 0x3c7   : > { %4280 = vst [vmem:[#allocation3 + $0xb0] sm:$0xff] %v6181_v41  ;;  %v6184_v26 = vadd.f32 %v4101_v51, %v2301_v24  ;;  %v6060_v28 = vpop.f32.mrb[47].mxu0 }
 0x3c8   : > { %v4343_v54 = vld [vmem:[#allocation3 + $0xa2] sm:$0xff] }
 0x3c9   : > { %4839 = vst [vmem:[%s6966_s22 + $0x90] sm:$0xff] %v4343_v54  ;;  %4281 = vst [vmem:[#allocation3 + $0xb8] sm:$0xff] %v6184_v26  ;;  %v4469_v23 = vmul.f32 %v4343_v54, %v4343_v54  ;;  %v4428_v35 = vadd.f32 %v4427_v38, %v4343_v54 }
 0x3cb   : > { %v2314_v7 = vpop.f32.mrb[52].mxu1  ;;  %v4500_v48 = vadd.f32 %v4499_v22, %v4469_v23 }
 0x3cc   : > { %v4106_v17 = vpop.f32.mrb[48].mxu0  ;;  %v5667_v19 = vpop.f32.mrb[53].mxu1 }
 0x3cd   : > { %v6187_v59 = vadd.f32 %v4106_v17, %v2306_v46  ;;  %v6063_v53 = vpop.f32.mrb[49].mxu0  ;;  %v2317_v40 = vpop.f32.mrb[54].mxu1 }
 0x3ce   : > { %v4344_v60 = vld [vmem:[#allocation3 + $0xaa] sm:$0xff]  ;;  %v4109_v30 = vpop.f32.mrb[50].mxu0  ;;  %v5668_v29 = vpop.f32.mrb[55].mxu1 }
 0x3cf   : > { %4840 = vst [vmem:[%s6966_s22 + $0x98] sm:$0xff] %v4344_v60  ;;  %4282 = vst [vmem:[#allocation3 + $0xc0] sm:$0xff] %v6187_v59  ;;  %v6190_v0 = vadd.f32 %v4109_v30, %v2309_v9  ;;  %v6064_v3 = vpop.f32.mrb[51].mxu0  ;;  %v4470_v8 = vmul.f32 %v4344_v60, %v4344_v60  ;;  %v4429_v52 = vadd.f32 %v4428_v35, %v4344_v60 }
 0x3d0   : > { %v4348_v4 = vld [vmem:[#allocation3 + $0xb4] sm:$0xff] }
 0x3d1   : > { %4841 = vst [vmem:[%s6966_s22 + $0xa0] sm:$0xff] %v4348_v4  ;;  %4283 = vst [vmem:[#allocation3 + $0xc8] sm:$0xff] %v6190_v0  ;;  %v4501_v15 = vadd.f32 %v4500_v48, %v4470_v8  ;;  %v4471_v12 = vmul.f32 %v4348_v4, %v4348_v4  ;;  %v4430_v45 = vadd.f32 %v4429_v52, %v4348_v4 }
 0x3d3   : > { %v2322_v2 = vpop.f32.mrb[56].mxu1  ;;  %v4502_v63 = vadd.f32 %v4501_v15, %v4471_v12 }
 0x3d4   : > { %v4114_v49 = vpop.f32.mrb[52].mxu0  ;;  %v5671_v10 = vpop.f32.mrb[57].mxu1 }
 0x3d5   : > { %v6193_v13 = vadd.f32 %v4114_v49, %v2314_v7  ;;  %v6067_v18 = vpop.f32.mrb[53].mxu0  ;;  %v2325_v55 = vpop.f32.mrb[58].mxu1 }
 0x3d6   : > { %v4349_v16 = vld [vmem:[#allocation3 + $0xbc] sm:$0xff]  ;;  %v4117_v37 = vpop.f32.mrb[54].mxu0  ;;  %v5672_v57 = vpop.f32.mrb[59].mxu1 }
 0x3d7   : > { %4842 = vst [vmem:[%s6966_s22 + $0xa8] sm:$0xff] %v4349_v16  ;;  %v4472_v5 = vmul.f32 %v4349_v16, %v4349_v16  ;;  %4284 = vst [vmem:[#allocation3 + $0xd0] sm:$0xff] %v6193_v13  ;;  %v6196_v58 = vadd.f32 %v4117_v37, %v2317_v40  ;;  %v6068_v31 = vpop.f32.mrb[55].mxu0  ;;  %v4431_v1 = vadd.f32 %v4430_v45, %v4349_v16 }
 0x3d8   : > { %v4353_v33 = vld [vmem:[#allocation3 + $0xc6] sm:$0xff] }
 0x3d9   : > { %4843 = vst [vmem:[%s6966_s22 + $0xb0] sm:$0xff] %v4353_v33  ;;  %4845 = vst [vmem:[%s6966_s22 + $0xc0] sm:$0xff] %v6196_v58  ;;  %v4503_v20 = vadd.f32 %v4502_v63, %v4472_v5  ;;  %v4473_v32 = vmul.f32 %v4353_v33, %v4353_v33  ;;  %v4432_v56 = vadd.f32 %v4431_v1, %v4353_v33 }
 0x3da   : > { %v4475_v61 = vmul.f32 %v6196_v58, %v6196_v58 }
 0x3db   : > { %v2330_v14 = vpop.f32.mrb[60].mxu1  ;;  %v4504_v24 = vadd.f32 %v4503_v20, %v4473_v32 }
 0x3dc   : > { %v4122_v34 = vpop.f32.mrb[56].mxu0  ;;  %v5675_v25 = vpop.f32.mrb[61].mxu1 }
 0x3dd   : > { %v6199_v62 = vadd.f32 %v4122_v34, %v2322_v2  ;;  %v6071_v36 = vpop.f32.mrb[57].mxu0  ;;  %v2333_v38 = vpop.f32.mrb[62].mxu1 }
 0x3de   : > { %v4354_v39 = vld [vmem:[#allocation3 + $0xce] sm:$0xff]  ;;  %v4125_v44 = vpop.f32.mrb[58].mxu0  ;;  %v5676_v27 = vpop.f32.mrb[63].mxu1 }
 0x3df   : > { %4844 = vst [vmem:[%s6966_s22 + $0xb8] sm:$0xff] %v4354_v39  ;;  %v4433_v21 = vadd.f32 %v4432_v56, %v4354_v39  ;;  %v4474_v42 = vmul.f32 %v4354_v39, %v4354_v39  ;;  %4846 = vst [vmem:[%s6966_s22 + $0xc8] sm:$0xff] %v6199_v62  ;;  %v6202_v22 = vadd.f32 %v4125_v44, %v2325_v55  ;;  %v6072_v11 = vpop.f32.mrb[59].mxu0 }
 0x3e0   : > { %v4476_v50 = vmul.f32 %v6199_v62, %v6199_v62 }
 0x3e1   : > { %v4505_v43 = vadd.f32 %v4504_v24, %v4474_v42  ;;  %v4434_v46 = vadd.f32 %v6196_v58, %v4433_v21  ;;  %4287 = vst [vmem:[#allocation3 + $0xe8] sm:$0xff] %v6202_v22 }
 0x3e3   : > { %v4506_v47 = vadd.f32 %v4505_v43, %v4475_v61  ;;  %v4435_v41 = vadd.f32 %v6199_v62, %v4434_v46  ;;  %v2338_v9 = vpop.f32.mrb[64].mxu1 }
 0x3e4   : > { %v4130_v51 = vpop.f32.mrb[60].mxu0  ;;  %v5679_v6 = vpop.f32.mrb[65].mxu1 }
 0x3e5   : > { %v4507_v26 = vadd.f32 %v4506_v47, %v4476_v50  ;;  %v6205_v28 = vadd.f32 %v4130_v51, %v2330_v14  ;;  %v6075_v54 = vpop.f32.mrb[61].mxu0  ;;  %v2341_v7 = vpop.f32.mrb[66].mxu1 }
 0x3e6   : > { %v4133_v17 = vpop.f32.mrb[62].mxu0  ;;  %v5680_v19 = vpop.f32.mrb[67].mxu1 }
 0x3e7   : > { %4288 = vst [vmem:[#allocation3 + $0xf0] sm:$0xff] %v6205_v28  ;;  %v6208_v59 = vadd.f32 %v4133_v17, %v2333_v38  ;;  %v6076_v53 = vpop.f32.mrb[63].mxu0 }
 0x3e9   : > { %4289 = vst [vmem:[#allocation3 + $0xf8] sm:$0xff] %v6208_v59 }
 0x3eb   : > { %v2346_v40 = vpop.f32.mrb[68].mxu1 }
 0x3ec   : > { %v4138_v60 = vpop.f32.mrb[64].mxu0  ;;  %v5683_v30 = vpop.f32.mrb[69].mxu1 }
 0x3ed   : > { %v6211_v29 = vadd.f32 %v4138_v60, %v2338_v9  ;;  %v6079_v23 = vpop.f32.mrb[65].mxu0  ;;  %v2349_v0 = vpop.f32.mrb[70].mxu1 }
 0x3ee   : > { %v4363_v3 = vld [vmem:[#allocation3 + $0xea] sm:$0xff]  ;;  %v4141_v4 = vpop.f32.mrb[66].mxu0  ;;  %v5684_v35 = vpop.f32.mrb[71].mxu1 }
 0x3ef   : > { %4847 = vst [vmem:[%s6966_s22 + $0xd0] sm:$0xff] %v4363_v3  ;;  %4290 = vst [vmem:[#allocation3 + $0x100] sm:$0xff] %v6211_v29  ;;  %v6214_v8 = vadd.f32 %v4141_v4, %v2341_v7  ;;  %v6080_v48 = vpop.f32.mrb[67].mxu0  ;;  %v4477_v2 = vmul.f32 %v4363_v3, %v4363_v3  ;;  %v4436_v49 = vadd.f32 %v4435_v41, %v4363_v3 }
 0x3f0   : > { %v4364_v52 = vld [vmem:[#allocation3 + $0xf2] sm:$0xff]  ;;  %v4450_v48 = vld [vmem:[%s8003_s3 + $0x1] sm:$0x1] }
 0x3f1   : > { %4848 = vst [vmem:[%s6966_s22 + $0xd8] sm:$0xff] %v4364_v52  ;;  %4291 = vst [vmem:[#allocation3 + $0x108] sm:$0xff] %v6214_v8  ;;  %v4508_v13 = vadd.f32 %v4507_v26, %v4477_v2  ;;  %v4478_v18 = vmul.f32 %v4364_v52, %v4364_v52  ;;  %v4437_v58 = vadd.f32 %v4436_v49, %v4364_v52 }
 0x3f3   : > { %v2354_v10 = vpop.f32.mrb[72].mxu1  ;;  %v4509_v20 = vadd.f32 %v4508_v13, %v4478_v18 }
 0x3f4   : > { %v4146_v15 = vpop.f32.mrb[68].mxu0  ;;  %v5687_v12 = vpop.f32.mrb[73].mxu1 }
 0x3f5   : > { %v6217_v55 = vadd.f32 %v4146_v15, %v2346_v40  ;;  %v6083_v16 = vpop.f32.mrb[69].mxu0  ;;  %v2357_v37 = vpop.f32.mrb[74].mxu1 }
 0x3f6   : > { %v4368_v57 = vld [vmem:[#allocation3 + $0xfc] sm:$0xff]  ;;  %v4149_v45 = vpop.f32.mrb[70].mxu0  ;;  %v5688_v5 = vpop.f32.mrb[75].mxu1 }
 0x3f7   : > { %4849 = vst [vmem:[%s6966_s22 + $0xe0] sm:$0xff] %v4368_v57  ;;  %v4479_v31 = vmul.f32 %v4368_v57, %v4368_v57  ;;  %4292 = vst [vmem:[#allocation3 + $0x110] sm:$0xff] %v6217_v55  ;;  %v6220_v33 = vadd.f32 %v4149_v45, %v2349_v0  ;;  %v6084_v63 = vpop.f32.mrb[71].mxu0  ;;  %v4438_v32 = vadd.f32 %v4437_v58, %v4368_v57  ;;  %v4410_v0 = vld [vmem:[%s8003_s3] sm:$0x1] }
 0x3f8   : > { %v4369_v1 = vld [vmem:[#allocation3 + $0x104] sm:$0xff] }
 0x3f9   : > { %4850 = vst [vmem:[%s6966_s22 + $0xe8] sm:$0xff] %v4369_v1  ;;  %4293 = vst [vmem:[#allocation3 + $0x118] sm:$0xff] %v6220_v33  ;;  %v4510_v14 = vadd.f32 %v4509_v20, %v4479_v31  ;;  %v4480_v34 = vmul.f32 %v4369_v1, %v4369_v1  ;;  %v4439_v36 = vadd.f32 %v4438_v32, %v4369_v1 }
 0x3fb   : > { %v2362_v25 = vpop.f32.mrb[76].mxu1  ;;  %v4511_v21 = vadd.f32 %v4510_v14, %v4480_v34 }
 0x3fc   : > { %v4154_v56 = vpop.f32.mrb[72].mxu0  ;;  %v5691_v62 = vpop.f32.mrb[77].mxu1 }
 0x3fd   : > { %v6087_v38 = vpop.f32.mrb[73].mxu0  ;;  %v2365_v39 = vpop.f32.mrb[78].mxu1 }
 0x3fe   : > { %v4373_v44 = vld [vmem:[#allocation3 + $0x10e] sm:$0xff]  ;;  %v4157_v27 = vpop.f32.mrb[74].mxu0  ;;  %v5692_v24 = vpop.f32.mrb[79].mxu1 }
 0x3ff   : > { %4851 = vst [vmem:[%s6966_s22 + $0xf0] sm:$0xff] %v4373_v44  ;;  %v4440_v42 = vadd.f32 %v4439_v36, %v4373_v44  ;;  %v4481_v22 = vmul.f32 %v4373_v44, %v4373_v44  ;;  %v6088_v11 = vpop.f32.mrb[75].mxu0 }
 0x400   : > { %v4374_v43 = vld [vmem:[#allocation3 + $0x116] sm:$0xff] }
 0x401   : > { %v4512_v46 = vadd.f32 %v4511_v21, %v4481_v22  ;;  %4852 = vst [vmem:[%s6966_s22 + $0xf8] sm:$0xff] %v4374_v43  ;;  %v4441_v61 = vadd.f32 %v4440_v42, %v4374_v43  ;;  %v4482_v47 = vmul.f32 %v4374_v43, %v4374_v43 }
 0x403   : > { %v4442_v41 = vrot.slane %v4441_v61, 4  ;;  %v4513_v50 = vadd.f32 %v4512_v46, %v4482_v47  ;;  %v2370_v9 = vpop.f32.mrb[80].mxu1 }
 0x404   : > { %v4162_v51 = vpop.f32.mrb[76].mxu0  ;;  %v5695_v6 = vpop.f32.mrb[81].mxu1 }
 0x405   : > { %v4443_v26 = vadd.f32 %v4442_v41, %v4441_v61  ;;  %v4514_v28 = vrot.slane %v4513_v50, 4  ;;  %v6091_v54 = vpop.f32.mrb[77].mxu0  ;;  %v2373_v7 = vpop.f32.mrb[82].mxu1 }
 0x406   : > { %v4165_v17 = vpop.f32.mrb[78].mxu0  ;;  %v5696_v19 = vpop.f32.mrb[83].mxu1 }
 0x407   : > { %v4444_v59 = vrot.slane %v4443_v26, 2  ;;  %v4515_v53 = vadd.f32 %v4514_v28, %v4513_v50  ;;  %v6092_v40 = vpop.f32.mrb[79].mxu0 }
 0x409   : > { %v4445_v60 = vadd.f32 %v4444_v59, %v4443_v26  ;;  %v4516_v30 = vrot.slane %v4515_v53, 2 }
 0x40b   : > { %v4446_v29 = vrot.slane %v4445_v60, 1  ;;  %v4517_v23 = vadd.f32 %v4516_v30, %v4515_v53 }
 0x40c   : > { %v4170_v3 = vpop.f32.mrb[80].mxu0 }
 0x40d   : > { %v4447_v4 = vadd.f32 %v4446_v29, %v4445_v60  ;;  %v4518_v35 = vrot.slane %v4517_v23, 1  ;;  %v6095_v8 = vpop.f32.mrb[81].mxu0 }
 0x40e   : > { %v4173_v52 = vpop.f32.mrb[82].mxu0 }
 0x40f   : > { %v4448_v2 = vadd.f32 %v4447_v4, %v4410_v0  ;;  %v4519_v49 = vadd.f32 %v4518_v35, %v4517_v23  ;;  %v6096_v10 = vpop.f32.mrb[83].mxu0 }
 0x411   : > { %4449 = vst [vmem:[%s8003_s3] sm:$0x1] %v4448_v2  ;;  %v4520_v15 = vadd.f32 %v4519_v49, %v4450_v48 }
 0x413   : > { %4521 = vst [vmem:[%s8003_s3 + $0x1] sm:$0x1] %v4520_v15 }
 0x414 PF: > { %s14_s12 = sadd.s32 1, %s6925_s12  }
 0x415   : > { %p11_p5 = scmp.ge.s32.totalorder %s14_s12, 4  }
 0x417   :  { %13 = sbr.rel (!%p11_p5) target bundleno = 1 (0x1), region = 108 }

// kernel: baseline_basic_block.4
= control target key start
LH: loop header
LB: loop body
LE: loop exit
PB: predicated region body
PF: predicated region fallthrough
CT: control target
= control target key end

     0   :  { %s6836_s12 = smov 0   ;;  %s7894_s0 = inlined_call_operand.vmem [shape: f32[2,16,16,4], index: 0, kind: input, shape index: {}]   ;;  %s7895_s1 = inlined_call_operand.vmem [shape: bf16[9,128,128], index: 1, kind: input, shape index: {}]   ;;  %s7896_s2 = inlined_call_operand.vmem [shape: f32[2,16,16,128], index: 2, kind: output, shape index: {0}]   ;;  %s7897_s3 = inlined_call_operand.vmem [shape: f32[2,128], index: 3, kind: output, shape index: {1}]  }
   0x1 LB: > { %s4552_s13 = sadd.s32 4294967295, %s6811_s12   ;;  %p4556_p0 = scmp.ge.s32.totalorder %s6811_s12, 1  ;;  %s6811_s12 = sphi %s6836_s12, %s14_s12  }
   0x2   : > { %p135_p1 = scmp.lt.s32.totalorder %s6811_s12, 3 }
   0x4   : > { %p136_p2 = pnand %p4556_p0, %p135_p1 }
   0x5   : > { %p159_p3 = scmp.lt.s32.totalorder (!%p136_p2), %s4552_s13, 1  ;;  %p4561_p4 = scmp.ne.s32.totalorder (!%p136_p2), %s4552_s13, 0 }
   0x6   : > { %139 = sbr.rel (%p136_p2) target bundleno = 1044 (0x414), region = 28 }
   0xd   : > { %s160_s14 = scalar_select %p159_p3, %s4552_s13, 1 }
   0xe   : > { %173 = sbr.rel (%p4561_p4) target bundleno = 39 (0x27), region = 32  ;;  %v6813_v0 = vmov (!%p4561_p4), 0.0  }
   0xf   : > { %s4824_s15 = sshll.u32 %s160_s14, 8  ;;  %174 = vst [vmem:[#allocation2] sm:$0xff] (!%p4561_p4), %v6813_v0  ;;  %175 = vst [vmem:[#allocation2 + $0x8] sm:$0xff] (!%p4561_p4), %v6813_v0 }
  0x10   : > { %s6847_s18 = scalar_lea.vmem %s7894_s0, %s4824_s15  ;;  %s6852_s21 = scalar_lea.vmem %s7896_s2, %s4824_s15  ;;  %176 = vst [vmem:[#allocation2 + $0x10] sm:$0xff] (!%p4561_p4), %v6813_v0  ;;  %177 = vst [vmem:[#allocation2 + $0x18] sm:$0xff] (!%p4561_p4), %v6813_v0 }
  0x11   : > { %178 = vst [vmem:[#allocation2 + $0x20] sm:$0xff] (!%p4561_p4), %v6813_v0  ;;  %179 = vst [vmem:[#allocation2 + $0x28] sm:$0xff] (!%p4561_p4), %v6813_v0 }
  0x12   : > { %180 = vst [vmem:[#allocation2 + $0x30] sm:$0xff] (!%p4561_p4), %v6813_v0  ;;  %181 = vst [vmem:[#allocation2 + $0x38] sm:$0xff] (!%p4561_p4), %v6813_v0 }
  0x13   : > { %182 = vst [vmem:[#allocation2 + $0x40] sm:$0xff] (!%p4561_p4), %v6813_v0  ;;  %183 = vst [vmem:[#allocation2 + $0x48] sm:$0xff] (!%p4561_p4), %v6813_v0 }
  0x14   : > { %184 = vst [vmem:[#allocation2 + $0x50] sm:$0xff] (!%p4561_p4), %v6813_v0  ;;  %185 = vst [vmem:[#allocation2 + $0x58] sm:$0xff] (!%p4561_p4), %v6813_v0 }
  0x15   : > { %186 = vst [vmem:[#allocation2 + $0x60] sm:$0xff] %v6813_v0  ;;  %187 = vst [vmem:[#allocation2 + $0x68] sm:$0xff] %v6813_v0 }
  0x16   : > { %188 = vst [vmem:[#allocation2 + $0x70] sm:$0xff] %v6813_v0  ;;  %189 = vst [vmem:[#allocation2 + $0x78] sm:$0xff] %v6813_v0 }
  0x17   : > { %190 = vst [vmem:[#allocation2 + $0x80] sm:$0xff] %v6813_v0  ;;  %191 = vst [vmem:[#allocation2 + $0x88] sm:$0xff] %v6813_v0 }
  0x18   : > { %192 = vst [vmem:[#allocation2 + $0x90] sm:$0xff] %v6813_v0  ;;  %193 = vst [vmem:[#allocation2 + $0x98] sm:$0xff] %v6813_v0 }
  0x19   : > { %194 = vst [vmem:[#allocation2 + $0xa0] sm:$0xff] %v6813_v0  ;;  %195 = vst [vmem:[#allocation2 + $0xa8] sm:$0xff] %v6813_v0 }
  0x1a   : > { %196 = vst [vmem:[#allocation2 + $0xb0] sm:$0xff] %v6813_v0  ;;  %197 = vst [vmem:[#allocation2 + $0xb8] sm:$0xff] %v6813_v0 }
  0x1b   : > { %198 = vst [vmem:[#allocation2 + $0xc0] sm:$0xff] %v6813_v0  ;;  %199 = vst [vmem:[#allocation2 + $0xc8] sm:$0xff] %v6813_v0 }
  0x1c   : > { %200 = vst [vmem:[#allocation2 + $0xd0] sm:$0xff] %v6813_v0  ;;  %201 = vst [vmem:[#allocation2 + $0xd8] sm:$0xff] %v6813_v0 }
  0x1d   : > { %202 = vst [vmem:[#allocation2 + $0xe0] sm:$0xff] %v6813_v0  ;;  %203 = vst [vmem:[#allocation2 + $0xe8] sm:$0xff] %v6813_v0 }
  0x1e   : > { %204 = vst [vmem:[#allocation2 + $0xf0] sm:$0xff] %v6813_v0  ;;  %205 = vst [vmem:[#allocation2 + $0xf8] sm:$0xff] %v6813_v0 }
  0x1f   : > { %206 = vst [vmem:[#allocation2 + $0x100] sm:$0xff] %v6813_v0  ;;  %207 = vst [vmem:[#allocation2 + $0x108] sm:$0xff] %v6813_v0 }
  0x20   : > { %208 = vst [vmem:[#allocation2 + $0x110] sm:$0xff] %v6813_v0  ;;  %209 = vst [vmem:[#allocation2 + $0x118] sm:$0xff] %v6813_v0 }
  0x21   : > { %210 = vst [vmem:[#allocation2 + $0x120] sm:$0xff] %v6813_v0  ;;  %211 = vst [vmem:[#allocation2 + $0x128] sm:$0xff] %v6813_v0 }
  0x22   : > { %212 = vst [vmem:[#allocation2 + $0x130] sm:$0xff] %v6813_v0  ;;  %213 = vst [vmem:[#allocation2 + $0x138] sm:$0xff] %v6813_v0 }
  0x23   : > { %214 = vst [vmem:[#allocation2 + $0x140] sm:$0xff] %v6813_v0  ;;  %215 = vst [vmem:[#allocation2 + $0x148] sm:$0xff] %v6813_v0 }
  0x24   : > { %216 = vst [vmem:[#allocation2 + $0x150] sm:$0xff] %v6813_v0  ;;  %217 = vst [vmem:[#allocation2 + $0x158] sm:$0xff] %v6813_v0 }
  0x25   : > { %218 = vst [vmem:[#allocation2 + $0x160] sm:$0xff] %v6813_v0  ;;  %219 = vst [vmem:[#allocation2 + $0x168] sm:$0xff] %v6813_v0 }
  0x26   : > { %220 = vst [vmem:[%s7897_s3] sm:$0x3] %v6813_v0 }
  0x27 PF: > { %v6725_v1 = vld [vmem:[%s7895_s1] sm:$0xff]   ;;  %v6814_v2 = vmov 0.0   ;;  %v6727_v4 = vld [vmem:[%s7895_s1 + $0x8] sm:$0xff]   ;;  %vm6815_vm0 = vmmov 0   ;;  %v6729_v6 = vld [vmem:[%s7895_s1 + $0x10] sm:$0xff]   ;;  %vm223_vm1 = vcmask 31744  }
  0x28   : > { %5087 = vmatprep.subr.bf16.mxu1 %v6814_v2  ;;  %5487 = vmatprep.subr.bf16.mxu0 %v6814_v2  ;;  %v6726_v3 = vld [vmem:[%s7895_s1 + $0x100] sm:$0xff]   ;;  %v6728_v5 = vld [vmem:[%s7895_s1 + $0x108] sm:$0xff]   ;;  %v6730_v7 = vld [vmem:[%s7895_s1 + $0x110] sm:$0xff]  }
  0x29   : > { %5088 = vmatpush3.bf16.msra.mxu1 %v6725_v1  ;;  %5103 = vmatprep.mubr.msk.bf16.mxu1 %vm6815_vm0, %v6814_v2  ;;  %v6731_v8 = vld [vmem:[%s7895_s1 + $0x18] sm:$0xff]   ;;  %v6733_v10 = vld [vmem:[%s7895_s1 + $0x20] sm:$0xff]   ;;  %v222_v13 = vld [vmem:[%s6847_s18 + $0x8] sm:$0xff] }
  0x2a   : > { %5488 = vmatpush3.bf16.msra.mxu0 %v6726_v3  ;;  %5089 = vmatprep.subr.bf16.mxu1 %v6814_v2  ;;  %v6732_v9 = vld [vmem:[%s7895_s1 + $0x118] sm:$0xff]   ;;  %v6734_v11 = vld [vmem:[%s7895_s1 + $0x120] sm:$0xff]   ;;  %v6735_v14 = vld [vmem:[%s7895_s1 + $0x28] sm:$0xff]   ;;  %225 = vst.msk [vmem:[#allocation2 + $0x1b] sm:$0xff] %vm223_vm1, %v222_v13 }
  0x2b   : > { %5489 = vmatprep.subr.bf16.mxu0 %v6814_v2  ;;  %5503 = vmatprep.mubr.msk.bf16.mxu0 %vm6815_vm0, %v6814_v2  ;;  %v221_v12 = vld [vmem:[%s6847_s18] sm:$0xff]  ;;  %v6736_v15 = vld [vmem:[%s7895_s1 + $0x128] sm:$0xff]   ;;  %v4562_v16 = vld [vmem:[%s6847_s18 + $0x10] sm:$0xff] }
  0x2c   : > { %224 = vst.msk [vmem:[#allocation2 + $0x13] sm:$0xff] %vm223_vm1, %v221_v12  ;;  %v4563_v17 = vld [vmem:[%s6847_s18 + $0x18] sm:$0xff]  ;;  %229 = vst.msk [vmem:[#allocation2 + $0x25] sm:$0xff] %vm223_vm1, %v4562_v16  ;;  %v4564_v18 = vld [vmem:[%s6847_s18 + $0x20] sm:$0xff] }
  0x2d   : > { %5090 = vmatpush3.bf16.msra.mxu1 %v6727_v4  ;;  %230 = vst.msk [vmem:[#allocation2 + $0x2d] sm:$0xff] %vm223_vm1, %v4563_v17  ;;  %v4565_v19 = vld [vmem:[%s6847_s18 + $0x28] sm:$0xff]  ;;  %v6737_v20 = vld [vmem:[%s7895_s1 + $0x30] sm:$0xff]   ;;  %234 = vst.msk [vmem:[#allocation2 + $0x37] sm:$0xff] %vm223_vm1, %v4564_v18 }
  0x2e   : > { %5490 = vmatpush3.bf16.msra.mxu0 %v6728_v5  ;;  %5091 = vmatprep.subr.bf16.mxu1 %v6814_v2  ;;  %235 = vst.msk [vmem:[#allocation2 + $0x3f] sm:$0xff] %vm223_vm1, %v4565_v19  ;;  %v6738_v21 = vld [vmem:[%s7895_s1 + $0x130] sm:$0xff]   ;;  %v4567_v23 = vld [vmem:[%s6847_s18 + $0x38] sm:$0xff]  ;;  %v301_v25 = vld [vmem:[#allocation2] sm:$0xff] }
  0x2f   : > { %5491 = vmatprep.subr.bf16.mxu0 %v6814_v2  ;;  %v4566_v22 = vld [vmem:[%s6847_s18 + $0x30] sm:$0xff]  ;;  %v6739_v24 = vld [vmem:[%s7895_s1 + $0x38] sm:$0xff]   ;;  %240 = vst.msk [vmem:[#allocation2 + $0x51] sm:$0xff] %vm223_vm1, %v4567_v23  ;;  %v4568_v26 = vld [vmem:[%s6847_s18 + $0x40] sm:$0xff] }
  0x30   : > { %239 = vst.msk [vmem:[#allocation2 + $0x49] sm:$0xff] %vm223_vm1, %v4566_v22  ;;  %v302_v27 = vld [vmem:[#allocation2 + $0x8] sm:$0xff]  ;;  %244 = vst.msk [vmem:[#allocation2 + $0x5b] sm:$0xff] %vm223_vm1, %v4568_v26  ;;  %v6740_v28 = vld [vmem:[%s7895_s1 + $0x138] sm:$0xff]  }
  0x31   : > { %5092 = vmatpush3.bf16.msra.mxu1 %v6729_v6  ;;  %v2019_v30 = vld [vmem:[#allocation2 + $0x1b] sm:$0xff]  ;;  %v4569_v31 = vld [vmem:[%s6847_s18 + $0x48] sm:$0xff]  ;;  %v4570_v32 = vld [vmem:[%s6847_s18 + $0x50] sm:$0xff]  ;;  %v342_v33 = vpack.c.bf16 %v302_v27, %v301_v25 }
  0x32   : > { %5492 = vmatpush3.bf16.msra.mxu0 %v6730_v7  ;;  %5093 = vmatprep.subr.bf16.mxu1 %v6814_v2  ;;  %245 = vst.msk [vmem:[#allocation2 + $0x63] sm:$0xff] %vm223_vm1, %v4569_v31  ;;  %249 = vst.msk [vmem:[#allocation2 + $0x6d] sm:$0xff] %vm223_vm1, %v4570_v32  ;;  %v6741_v35 = vld [vmem:[%s7895_s1 + $0x40] sm:$0xff]   ;;  %v6744_v37 = vld [vmem:[%s7895_s1 + $0x48] sm:$0xff]  }
  0x33   : > { %5493 = vmatprep.subr.bf16.mxu0 %v6814_v2  ;;  %v2018_v29 = vld [vmem:[#allocation2 + $0x13] sm:$0xff]  ;;  %v6742_v36 = vld [vmem:[%s7895_s1 + $0x140] sm:$0xff]   ;;  %v6743_v41 = vld [vmem:[%s7895_s1 + $0x148] sm:$0xff]  }
  0x34   : > { %v2059_v34 = vpack.c.bf16 %v2019_v30, %v2018_v29  ;;  %v303_v38 = vld [vmem:[#allocation2 + $0x10] sm:$0xff]  ;;  %v304_v39 = vld [vmem:[#allocation2 + $0x18] sm:$0xff]  ;;  %v2020_v40 = vld [vmem:[#allocation2 + $0x23] sm:$0xff] }
  0x35   : > { %5094 = vmatpush3.bf16.msra.mxu1 %v6731_v8  ;;  %v2021_v42 = vld [vmem:[#allocation2 + $0x2b] sm:$0xff]  ;;  %v4571_v43 = vld [vmem:[%s6847_s18 + $0x58] sm:$0xff]  ;;  %v4572_v44 = vld [vmem:[%s6847_s18 + $0x60] sm:$0xff]  ;;  %v343_v46 = vpack.c.bf16 %v304_v39, %v303_v38 }
  0x36   : > { %5494 = vmatpush3.bf16.msra.mxu0 %v6732_v9  ;;  %5095 = vmatprep.subr.bf16.mxu1 %v6814_v2  ;;  %v4573_v45 = vld [vmem:[%s6847_s18 + $0x68] sm:$0xff]  ;;  %250 = vst.msk [vmem:[#allocation2 + $0x75] sm:$0xff] %vm223_vm1, %v4571_v43  ;;  %254 = vst.msk [vmem:[#allocation2 + $0x7f] sm:$0xff] %vm223_vm1, %v4572_v44  ;;  %v4574_v47 = vld [vmem:[%s6847_s18 + $0x70] sm:$0xff]  ;;  %v2060_v48 = vpack.c.bf16 %v2021_v42, %v2020_v40 }
  0x37   : > { %5495 = vmatprep.subr.bf16.mxu0 %v6814_v2  ;;  %255 = vst.msk [vmem:[#allocation2 + $0x87] sm:$0xff] %vm223_vm1, %v4573_v45  ;;  %259 = vst.msk [vmem:[#allocation2 + $0x91] sm:$0xff] %vm223_vm1, %v4574_v47  ;;  %v6745_v49 = vld [vmem:[%s7895_s1 + $0x150] sm:$0xff]   ;;  %v4575_v50 = vld [vmem:[%s6847_s18 + $0x78] sm:$0xff] }
  0x38   : > { %v305_v51 = vld [vmem:[#allocation2 + $0x20] sm:$0xff]  ;;  %v6747_v52 = vld [vmem:[%s7895_s1 + $0x50] sm:$0xff]   ;;  %260 = vst.msk [vmem:[#allocation2 + $0x99] sm:$0xff] %vm223_vm1, %v4575_v50  ;;  %v4577_v54 = vld [vmem:[%s6847_s18 + $0x88] sm:$0xff] }
  0x39   : > { %5096 = vmatpush3.bf16.msra.mxu1 %v6733_v10  ;;  %v4576_v53 = vld [vmem:[%s6847_s18 + $0x80] sm:$0xff]  ;;  %v306_v55 = vld [vmem:[#allocation2 + $0x28] sm:$0xff]  ;;  %265 = vst.msk [vmem:[#allocation2 + $0xab] sm:$0xff] %vm223_vm1, %v4577_v54  ;;  %v4578_v56 = vld [vmem:[%s6847_s18 + $0x90] sm:$0xff] }
  0x3a   : > { %5496 = vmatpush3.bf16.msra.mxu0 %v6734_v11  ;;  %5097 = vmatprep.subr.bf16.mxu1 %v6814_v2  ;;  %264 = vst.msk [vmem:[#allocation2 + $0xa3] sm:$0xff] %vm223_vm1, %v4576_v53  ;;  %v2022_v57 = vld [vmem:[#allocation2 + $0x33] sm:$0xff]  ;;  %v2023_v58 = vld [vmem:[#allocation2 + $0x3b] sm:$0xff]  ;;  %269 = vst.msk [vmem:[#allocation2 + $0xb5] sm:$0xff] %vm223_vm1, %v4578_v56  ;;  %v344_v61 = vpack.c.bf16 %v306_v55, %v305_v51 }
  0x3b   : > { %5497 = vmatprep.subr.bf16.mxu0 %v6814_v2  ;;  %v6746_v59 = vld [vmem:[%s7895_s1 + $0x158] sm:$0xff]   ;;  %v2061_v62 = vpack.c.bf16 %v2023_v58, %v2022_v57  ;;  %v6748_v0 = vld [vmem:[%s7895_s1 + $0x160] sm:$0xff]   ;;  %v307_v3 = vld [vmem:[#allocation2 + $0x30] sm:$0xff] }
  0x3c   : > { %v6750_v60 = vld [vmem:[%s7895_s1 + $0x58] sm:$0xff]   ;;  %v6753_v1 = vld [vmem:[%s7895_s1 + $0x60] sm:$0xff]   ;;  %v2025_v6 = vld [vmem:[#allocation2 + $0x4b] sm:$0xff] }
  0x3d   : > { %5098 = vmatpush3.bf16.msra.mxu1 %v6735_v14  ;;  %v4579_v63 = vld [vmem:[%s6847_s18 + $0x98] sm:$0xff]  ;;  %v2024_v5 = vld [vmem:[#allocation2 + $0x43] sm:$0xff]  ;;  %v4582_v11 = vld [vmem:[%s6847_s18 + $0xb0] sm:$0xff] }
  0x3e   : > { %5498 = vmatpush3.bf16.msra.mxu0 %v6736_v15  ;;  %5099 = vmatprep.subr.bf16.mxu1 %v6814_v2  ;;  %270 = vst.msk [vmem:[#allocation2 + $0xbd] sm:$0xff] %vm223_vm1, %v4579_v63  ;;  %v308_v4 = vld [vmem:[#allocation2 + $0x38] sm:$0xff]  ;;  %v6749_v7 = vld [vmem:[%s7895_s1 + $0x168] sm:$0xff]   ;;  %v4580_v8 = vld [vmem:[%s6847_s18 + $0xa0] sm:$0xff]  ;;  %v2062_v12 = vpack.c.bf16 %v2025_v6, %v2024_v5 }
  0x3f   : > { %5499 = vmatprep.subr.bf16.mxu0 %v6814_v2  ;;  %v4581_v9 = vld [vmem:[%s6847_s18 + $0xa8] sm:$0xff]  ;;  %v345_v10 = vpack.c.bf16 %v308_v4, %v307_v3  ;;  %274 = vst.msk [vmem:[#allocation2 + $0xc7] sm:$0xff] %vm223_vm1, %v4580_v8  ;;  %279 = vst.msk [vmem:[#allocation2 + $0xd9] sm:$0xff] %vm223_vm1, %v4582_v11  ;;  %v6751_v13 = vld [vmem:[%s7895_s1 + $0x170] sm:$0xff]  }
  0x40   : > { %275 = vst.msk [vmem:[#allocation2 + $0xcf] sm:$0xff] %vm223_vm1, %v4581_v9  ;;  %v309_v14 = vld [vmem:[#allocation2 + $0x40] sm:$0xff]  ;;  %v6755_v15 = vld [vmem:[%s7895_s1 + $0x68] sm:$0xff]   ;;  %v4583_v17 = vld [vmem:[%s6847_s18 + $0xb8] sm:$0xff] }
  0x41   : > { %5100 = vmatpush3.bf16.msra.mxu1 %v6737_v20  ;;  %v310_v16 = vld [vmem:[#allocation2 + $0x48] sm:$0xff]  ;;  %v4584_v18 = vld [vmem:[%s6847_s18 + $0xc0] sm:$0xff]  ;;  %v2026_v19 = vld [vmem:[#allocation2 + $0x53] sm:$0xff]  ;;  %280 = vst.msk [vmem:[#allocation2 + $0xe1] sm:$0xff] %vm223_vm1, %v4583_v17 }
  0x42   : > { %5500 = vmatpush3.bf16.msra.mxu0 %v6738_v21  ;;  %5101 = vmatprep.subr.bf16.mxu1 %v6814_v2  ;;  %284 = vst.msk [vmem:[#allocation2 + $0xeb] sm:$0xff] %vm223_vm1, %v4584_v18  ;;  %v4585_v20 = vld [vmem:[%s6847_s18 + $0xc8] sm:$0xff]  ;;  %v4586_v21 = vld [vmem:[%s6847_s18 + $0xd0] sm:$0xff]  ;;  %v2027_v22 = vld [vmem:[#allocation2 + $0x5b] sm:$0xff] }
  0x43   : > { %5501 = vmatprep.subr.bf16.mxu0 %v6814_v2  ;;  %v6752_v23 = vld [vmem:[%s7895_s1 + $0x178] sm:$0xff]   ;;  %285 = vst.msk [vmem:[#allocation2 + $0xf3] sm:$0xff] %vm223_vm1, %v4585_v20  ;;  %289 = vst.msk [vmem:[#allocation2 + $0xfd] sm:$0xff] %vm223_vm1, %v4586_v21  ;;  %v6757_v25 = vld [vmem:[%s7895_s1 + $0x70] sm:$0xff]   ;;  %v2063_v26 = vpack.c.bf16 %v2027_v22, %v2026_v19 }
  0x44   : > { %v4587_v27 = vld [vmem:[%s6847_s18 + $0xd8] sm:$0xff]  ;;  %v4589_v29 = vld [vmem:[%s6847_s18 + $0xe8] sm:$0xff]  ;;  %v311_v30 = vld [vmem:[#allocation2 + $0x50] sm:$0xff] }
  0x45   : > { %5102 = vmatpush3.bf16.msra.mxu1 %v6739_v24  ;;  %v346_v24 = vpack.c.bf16 %v310_v16, %v309_v14  ;;  %290 = vst.msk [vmem:[#allocation2 + $0x105] sm:$0xff] %vm223_vm1, %v4587_v27  ;;  %295 = vst.msk [vmem:[#allocation2 + $0x117] sm:$0xff] %vm223_vm1, %v4589_v29  ;;  %v312_v31 = vld [vmem:[#allocation2 + $0x58] sm:$0xff]  ;;  %v4590_v32 = vld [vmem:[%s6847_s18 + $0xf0] sm:$0xff] }
  0x46   : > { %5502 = vmatpush3.bf16.msra.mxu0 %v6740_v28  ;;  %5187 = vmatprep.subr.bf16.mxu1 %v6814_v2  ;;  %v4588_v28 = vld [vmem:[%s6847_s18 + $0xe0] sm:$0xff]  ;;  %299 = vst.msk [vmem:[#allocation2 + $0x121] sm:$0xff] %vm223_vm1, %v4590_v32  ;;  %v314_v40 = vld [vmem:[#allocation2 + $0x68] sm:$0xff]  ;;  %v315_v45 = vld [vmem:[#allocation2 + $0x70] sm:$0xff] }
  0x47   : > { %5587 = vmatprep.subr.bf16.mxu0 %v6814_v2  ;;  %294 = vst.msk [vmem:[#allocation2 + $0x10f] sm:$0xff] %vm223_vm1, %v4588_v28  ;;  %v313_v39 = vld [vmem:[#allocation2 + $0x60] sm:$0xff]  ;;  %v2034_v53 = vld [vmem:[#allocation2 + $0x93] sm:$0xff]  ;;  %v326_v14 = vld [vmem:[#allocation2 + $0xc8] sm:$0xff] }
  0x48   : > { %5104 = vmatmul.mubr.bf16.vlgmr.msra.gmra.mrb[0].mxu1 %v342_v33  ;;  %v2028_v33 = vld [vmem:[#allocation2 + $0x63] sm:$0xff]  ;;  %v2031_v42 = vld [vmem:[#allocation2 + $0x7b] sm:$0xff]  ;;  %v348_v43 = vpack.c.bf16 %v314_v40, %v313_v39  ;;  %v319_v57 = vld [vmem:[#allocation2 + $0x90] sm:$0xff] }
  0x49   : > { %5504 = vmatmul.mubr.bf16.vlgmr.msra.gmra.mrb[0].mxu0 %v2059_v34  ;;  %5188 = vmatpush3.bf16.msra.mxu1 %v6741_v35  ;;  %v2029_v34 = vld [vmem:[#allocation2 + $0x6b] sm:$0xff]  ;;  %v4591_v35 = vld [vmem:[%s6847_s18 + $0xf8] sm:$0xff]  ;;  %v2032_v47 = vld [vmem:[#allocation2 + $0x83] sm:$0xff] }
  0x4a   : > { %5588 = vmatpush3.bf16.msra.mxu0 %v6742_v36  ;;  %5107 = vmatprep.mubr.msk.bf16.mxu1 %vm6815_vm0, %v6814_v2  ;;  %300 = vst.msk [vmem:[#allocation2 + $0x129] sm:$0xff] %vm223_vm1, %v4591_v35  ;;  %v6759_v36 = vld [vmem:[%s7895_s1 + $0x78] sm:$0xff]   ;;  %v2064_v38 = vpack.c.bf16 %v2029_v34, %v2028_v33  ;;  %v317_v51 = vld [vmem:[#allocation2 + $0x80] sm:$0xff]  ;;  %v323_v6 = vld [vmem:[#allocation2 + $0xb0] sm:$0xff] }
  0x4b   : > { %5507 = vmatprep.mubr.msk.bf16.mxu0 %vm6815_vm0, %v6814_v2  ;;  %5589 = vmatprep.subr.bf16.mxu0 %v6814_v2  ;;  %v2035_v54 = vld [vmem:[#allocation2 + $0x9b] sm:$0xff]  ;;  %v2471_v16 = vld [vmem:[#allocation2 + $0x2c] sm:$0xff] }
  0x4c   : > { %5189 = vmatprep.subr.bf16.mxu1 %v6814_v2  ;;  %v2067_v56 = vpack.c.bf16 %v2035_v54, %v2034_v53  ;;  %v320_v58 = vld [vmem:[#allocation2 + $0x98] sm:$0xff]  ;;  %v321_v63 = vld [vmem:[#allocation2 + $0xa0] sm:$0xff]  ;;  %v6756_v17 = vld [vmem:[%s7895_s1 + $0x188] sm:$0xff]  }
  0x4d   : > { %5190 = vmatpush3.bf16.msra.mxu1 %v6744_v37  ;;  %v347_v37 = vpack.c.bf16 %v312_v31, %v311_v30  ;;  %v2039_v3 = vld [vmem:[#allocation2 + $0xbb] sm:$0xff]  ;;  %v6758_v20 = vld [vmem:[%s7895_s1 + $0x190] sm:$0xff]   ;;  %v330_v30 = vld [vmem:[#allocation2 + $0xe8] sm:$0xff] }
  0x4e   : > { %5590 = vmatpush3.bf16.msra.mxu0 %v6743_v41  ;;  %5191 = vmatprep.subr.bf16.mxu1 %v6814_v2  ;;  %v2030_v41 = vld [vmem:[#allocation2 + $0x73] sm:$0xff]  ;;  %v2469_v9 = vld [vmem:[#allocation2 + $0x1c] sm:$0xff]  ;;  %v2474_v31 = vld [vmem:[#allocation2 + $0x44] sm:$0xff] }
  0x4f   : > { %5591 = vmatprep.subr.bf16.mxu0 %v6814_v2  ;;  %v2065_v44 = vpack.c.bf16 %v2031_v42, %v2030_v41  ;;  %v2468_v8 = vld [vmem:[#allocation2 + $0x14] sm:$0xff]  ;;  %v6762_v28 = vld [vmem:[%s7895_s1 + $0x1a0] sm:$0xff]   ;;  %v2475_v32 = vld [vmem:[#allocation2 + $0x4c] sm:$0xff] }
  0x50   : > { %5108 = vmatmul.mubr.bf16.gmra.mrb[4].mxu1 %v343_v46  ;;  %v316_v46 = vld [vmem:[#allocation2 + $0x78] sm:$0xff]  ;;  %v2509_v11 = vpack.c.bf16 %v2469_v9, %v2468_v8  ;;  %v327_v21 = vld [vmem:[#allocation2 + $0xd0] sm:$0xff]  ;;  %v329_v29 = vld [vmem:[#allocation2 + $0xe0] sm:$0xff]  ;;  %v7140_v35 = vpack.c.bf16 %v2475_v32, %v2474_v31 }
  0x51   : > { %5508 = vmatmul.mubr.bf16.gmra.mrb[4].mxu0 %v2060_v48  ;;  %5111 = vmatprep.mubr.msk.bf16.mxu1 %vm6815_vm0, %v6814_v2  ;;  %v2033_v48 = vld [vmem:[#allocation2 + $0x8b] sm:$0xff]  ;;  %v328_v22 = vld [vmem:[#allocation2 + $0xd8] sm:$0xff]  ;;  %v356_v34 = vpack.c.bf16 %v330_v30, %v329_v29 }
  0x52   : > { %5511 = vmatprep.mubr.msk.bf16.mxu0 %vm6815_vm0, %v6814_v2  ;;  %5592 = vmatpush3.bf16.msra.mxu0 %v6745_v49  ;;  %v349_v49 = vpack.c.bf16 %v316_v46, %v315_v45  ;;  %v2066_v50 = vpack.c.bf16 %v2033_v48, %v2032_v47  ;;  %v6764_v33 = vld [vmem:[%s7895_s1 + $0x1a8] sm:$0xff]   ;;  %v2476_v39 = vld [vmem:[#allocation2 + $0x54] sm:$0xff]  ;;  %v2477_v40 = vld [vmem:[#allocation2 + $0x5c] sm:$0xff] }
  0x53   : > { %5593 = vmatprep.subr.bf16.mxu0 %v6814_v2  ;;  %5192 = vmatpush3.bf16.msra.mxu1 %v6747_v52  ;;  %v318_v52 = vld [vmem:[#allocation2 + $0x88] sm:$0xff]  ;;  %v6768_v41 = vld [vmem:[%s7895_s1 + $0x1b8] sm:$0xff]  }
  0x54   : > { %5193 = vmatprep.subr.bf16.mxu1 %v6814_v2  ;;  %v350_v55 = vpack.c.bf16 %v318_v52, %v317_v51  ;;  %v334_v45 = vld [vmem:[#allocation2 + $0x108] sm:$0xff]  ;;  %v336_v51 = vld [vmem:[#allocation2 + $0x118] sm:$0xff] }
  0x55   : > { %v2478_v46 = vld [vmem:[#allocation2 + $0x64] sm:$0xff]  ;;  %v2479_v47 = vld [vmem:[#allocation2 + $0x6c] sm:$0xff]  ;;  %v2480_v52 = vld [vmem:[#allocation2 + $0x74] sm:$0xff] }
  0x56   : > { %5594 = vmatpush3.bf16.msra.mxu0 %v6746_v59  ;;  %v2036_v59 = vld [vmem:[#allocation2 + $0xa3] sm:$0xff]  ;;  %v2492_v29 = vld [vmem:[#allocation2 + $0xd4] sm:$0xff] }
  0x57   : > { %5595 = vmatprep.subr.bf16.mxu0 %v6814_v2  ;;  %5194 = vmatpush3.bf16.msra.mxu1 %v6750_v60  ;;  %v2037_v60 = vld [vmem:[#allocation2 + $0xab] sm:$0xff]  ;;  %v2481_v53 = vld [vmem:[#allocation2 + $0x7c] sm:$0xff] }
  0x58   : > { %5112 = vmatmul.mubr.bf16.gmra.mrb[8].mxu1 %v344_v61  ;;  %5195 = vmatprep.subr.bf16.mxu1 %v6814_v2  ;;  %v351_v61 = vpack.c.bf16 %v320_v58, %v319_v57  ;;  %v338_v57 = vld [vmem:[#allocation2 + $0x128] sm:$0xff]  ;;  %v2493_v30 = vld [vmem:[#allocation2 + $0xdc] sm:$0xff] }
  0x59   : > { %5512 = vmatmul.mubr.bf16.gmra.mrb[8].mxu0 %v2061_v62  ;;  %5115 = vmatprep.mubr.msk.bf16.mxu1 %vm6815_vm0, %v6814_v2  ;;  %v2068_v62 = vpack.c.bf16 %v2037_v60, %v2036_v59  ;;  %v2482_v58 = vld [vmem:[#allocation2 + $0x84] sm:$0xff]  ;;  %v2483_v59 = vld [vmem:[#allocation2 + $0x8c] sm:$0xff]  ;;  %v6767_v31 = vld [vmem:[%s7895_s1 + $0x98] sm:$0xff]  }
  0x5a   : > { %5515 = vmatprep.mubr.msk.bf16.mxu0 %vm6815_vm0, %v6814_v2  ;;  %5596 = vmatpush3.bf16.msra.mxu0 %v6748_v0  ;;  %v322_v0 = vld [vmem:[#allocation2 + $0xa8] sm:$0xff] }
  0x5b   : > { %5597 = vmatprep.subr.bf16.mxu0 %v6814_v2  ;;  %5196 = vmatpush3.bf16.msra.mxu1 %v6753_v1  ;;  %v2038_v1 = vld [vmem:[#allocation2 + $0xb3] sm:$0xff]  ;;  %v352_v4 = vpack.c.bf16 %v322_v0, %v321_v63 }
  0x5c   : > { %5197 = vmatprep.subr.bf16.mxu1 %v6814_v2  ;;  %v2069_v5 = vpack.c.bf16 %v2039_v3, %v2038_v1  ;;  %v340_v63 = vld [vmem:[#allocation2 + $0x138] sm:$0xff] }
  0x5d   : > { %v2484_v0 = vld [vmem:[#allocation2 + $0x94] sm:$0xff]  ;;  %v2485_v1 = vld [vmem:[#allocation2 + $0x9c] sm:$0xff] }
  0x5e   : > { %5598 = vmatpush3.bf16.msra.mxu0 %v6749_v7  ;;  %v324_v7 = vld [vmem:[#allocation2 + $0xb8] sm:$0xff] }
  0x5f   : > { %5599 = vmatprep.subr.bf16.mxu0 %v6814_v2  ;;  %5198 = vmatpush3.bf16.msra.mxu1 %v6755_v15  ;;  %v2470_v15 = vld [vmem:[#allocation2 + $0x24] sm:$0xff] }
  0x60   : > { %5116 = vmatmul.mubr.bf16.gmra.mrb[12].mxu1 %v345_v10  ;;  %5199 = vmatprep.subr.bf16.mxu1 %v6814_v2  ;;  %v353_v10 = vpack.c.bf16 %v324_v7, %v323_v6  ;;  %v7110_v19 = vpack.c.bf16 %v2471_v16, %v2470_v15  ;;  %v2486_v6 = vld [vmem:[#allocation2 + $0xa4] sm:$0xff]  ;;  %v2487_v7 = vld [vmem:[#allocation2 + $0xac] sm:$0xff] }
  0x61   : > { %5516 = vmatmul.mubr.bf16.gmra.mrb[12].mxu0 %v2062_v12  ;;  %5119 = vmatprep.mubr.msk.bf16.mxu1 %vm6815_vm0, %v6814_v2  ;;  %v6754_v12 = vld [vmem:[%s7895_s1 + $0x180] sm:$0xff]   ;;  %v7191_v9 = vpack.c.bf16 %v2487_v7, %v2486_v6 }
  0x62   : > { %5519 = vmatprep.mubr.msk.bf16.mxu0 %vm6815_vm0, %v6814_v2  ;;  %5600 = vmatpush3.bf16.msra.mxu0 %v6751_v13  ;;  %v325_v13 = vld [vmem:[#allocation2 + $0xc0] sm:$0xff] }
  0x63   : > { %5601 = vmatprep.subr.bf16.mxu0 %v6814_v2  ;;  %5200 = vmatpush3.bf16.msra.mxu1 %v6757_v25  ;;  %v354_v18 = vpack.c.bf16 %v326_v14, %v325_v13  ;;  %v6760_v25 = vld [vmem:[%s7895_s1 + $0x198] sm:$0xff]   ;;  %v6761_v16 = vld [vmem:[%s7895_s1 + $0x80] sm:$0xff]  }
  0x64   : > { %5201 = vmatprep.subr.bf16.mxu1 %v6814_v2  ;;  %v2489_v13 = vld [vmem:[#allocation2 + $0xbc] sm:$0xff]  ;;  %v2502_v7 = vld [vmem:[#allocation2 + $0x124] sm:$0xff] }
  0x65   : > { %v683_v6 = vld [vmem:[#allocation2 + $0x79] sm:$0xff] }
  0x66   : > { %5602 = vmatpush3.bf16.msra.mxu0 %v6752_v23  ;;  %v2472_v23 = vld [vmem:[#allocation2 + $0x34] sm:$0xff] }
  0x67   : > { %5687 = vmatprep.subr.bf16.mxu0 %v6814_v2  ;;  %5202 = vmatpush3.bf16.msra.mxu1 %v6759_v36  ;;  %v6766_v36 = vld [vmem:[%s7895_s1 + $0x1b0] sm:$0xff]  }
  0x68   : > { %5120 = vmatmul.mubr.bf16.gmra.mrb[16].mxu1 %v346_v24  ;;  %5287 = vmatprep.subr.bf16.mxu1 %v6814_v2  ;;  %v2473_v24 = vld [vmem:[#allocation2 + $0x3c] sm:$0xff] }
  0x69   : > { %5520 = vmatmul.mubr.bf16.gmra.mrb[16].mxu0 %v2063_v26  ;;  %5123 = vmatprep.mubr.msk.bf16.mxu1 %vm6815_vm0, %v6814_v2  ;;  %v355_v26 = vpack.c.bf16 %v328_v22, %v327_v21  ;;  %v7125_v27 = vpack.c.bf16 %v2473_v24, %v2472_v23  ;;  %v2490_v21 = vld [vmem:[#allocation2 + $0xc4] sm:$0xff]  ;;  %v2491_v22 = vld [vmem:[#allocation2 + $0xcc] sm:$0xff] }
  0x6a   : > { %5523 = vmatprep.mubr.msk.bf16.mxu0 %vm6815_vm0, %v6814_v2  ;;  %v7212_v24 = vpack.c.bf16 %v2491_v22, %v2490_v21  ;;  %v687_v21 = vld [vmem:[#allocation2 + $0x99] sm:$0xff]  ;;  %v2506_v22 = vld [vmem:[#allocation2 + $0x144] sm:$0xff] }
  0x70   : > { %5124 = vmatmul.mubr.bf16.gmra.mrb[20].mxu1 %v347_v37  ;;  %v331_v37 = vld [vmem:[#allocation2 + $0xf0] sm:$0xff] }
  0x71   : > { %5524 = vmatmul.mubr.bf16.gmra.mrb[20].mxu0 %v2064_v38  ;;  %5127 = vmatprep.mubr.msk.bf16.mxu1 %vm6815_vm0, %v6814_v2  ;;  %v332_v38 = vld [vmem:[#allocation2 + $0xf8] sm:$0xff] }
  0x72   : > { %5527 = vmatprep.mubr.msk.bf16.mxu0 %vm6815_vm0, %v6814_v2  ;;  %v357_v42 = vpack.c.bf16 %v332_v38, %v331_v37  ;;  %v675_v37 = vld [vmem:[#allocation2 + $0x39] sm:$0xff]  ;;  %v2494_v38 = vld [vmem:[#allocation2 + $0xe4] sm:$0xff] }
  0x78   : > { %5128 = vmatmul.mubr.bf16.gmra.mrb[24].mxu1 %v348_v43  ;;  %v7155_v43 = vpack.c.bf16 %v2477_v40, %v2476_v39  ;;  %v2495_v39 = vld [vmem:[#allocation2 + $0xec] sm:$0xff] }
  0x79   : > { %5528 = vmatmul.mubr.bf16.gmra.mrb[24].mxu0 %v2065_v44  ;;  %5131 = vmatprep.mubr.msk.bf16.mxu1 %vm6815_vm0, %v6814_v2  ;;  %v333_v44 = vld [vmem:[#allocation2 + $0x100] sm:$0xff]  ;;  %v6771_v40 = vld [vmem:[%s7895_s1 + $0xa8] sm:$0xff]  }
  0x7a   : > { %5531 = vmatprep.mubr.msk.bf16.mxu0 %vm6815_vm0, %v6814_v2  ;;  %v358_v48 = vpack.c.bf16 %v334_v45, %v333_v44  ;;  %v6773_v44 = vld [vmem:[%s7895_s1 + $0xb0] sm:$0xff]   ;;  %v676_v45 = vld [vmem:[#allocation2 + $0x41] sm:$0xff] }
  0x80   : > { %5132 = vmatmul.mubr.bf16.gmra.mrb[28].mxu1 %v349_v49  ;;  %v7163_v49 = vpack.c.bf16 %v2479_v47, %v2478_v46  ;;  %v677_v46 = vld [vmem:[#allocation2 + $0x49] sm:$0xff]  ;;  %v2496_v47 = vld [vmem:[#allocation2 + $0xf4] sm:$0xff] }
  0x81   : > { %5532 = vmatmul.mubr.bf16.gmra.mrb[28].mxu0 %v2066_v50  ;;  %5135 = vmatprep.mubr.msk.bf16.mxu1 %vm6815_vm0, %v6814_v2  ;;  %v335_v50 = vld [vmem:[#allocation2 + $0x110] sm:$0xff] }
  0x82   : > { %5535 = vmatprep.mubr.msk.bf16.mxu0 %vm6815_vm0, %v6814_v2  ;;  %v359_v54 = vpack.c.bf16 %v336_v51, %v335_v50  ;;  %v6775_v50 = vld [vmem:[%s7895_s1 + $0xb8] sm:$0xff]   ;;  %v713_v51 = vpack.c.bf16 %v677_v46, %v676_v45 }
  0x83   : > { %v694_v45 = vld [vmem:[#allocation2 + $0xd1] sm:$0xff]  ;;  %v695_v46 = vld [vmem:[#allocation2 + $0xd9] sm:$0xff] }
  0x88   : > { %5136 = vmatmul.mubr.bf16.gmra.mrb[32].mxu1 %v350_v55  ;;  %v7170_v55 = vpack.c.bf16 %v2481_v53, %v2480_v52  ;;  %v678_v53 = vld [vmem:[#allocation2 + $0x51] sm:$0xff] }
  0x89   : > { %5536 = vmatmul.mubr.bf16.gmra.mrb[32].mxu0 %v2067_v56  ;;  %5139 = vmatprep.mubr.msk.bf16.mxu1 %vm6815_vm0, %v6814_v2  ;;  %v337_v56 = vld [vmem:[#allocation2 + $0x120] sm:$0xff] }
  0x8a   : > { %5539 = vmatprep.mubr.msk.bf16.mxu0 %vm6815_vm0, %v6814_v2  ;;  %v360_v60 = vpack.c.bf16 %v338_v57, %v337_v56  ;;  %v2498_v56 = vld [vmem:[#allocation2 + $0x104] sm:$0xff]  ;;  %v2499_v57 = vld [vmem:[#allocation2 + $0x10c] sm:$0xff] }
  0x90   : > { %5140 = vmatmul.mubr.bf16.gmra.mrb[36].mxu1 %v351_v61  ;;  %v7177_v61 = vpack.c.bf16 %v2483_v59, %v2482_v58  ;;  %v7265_v59 = vpack.c.bf16 %v2499_v57, %v2498_v56  ;;  %v698_v56 = vld [vmem:[#allocation2 + $0xf1] sm:$0xff]  ;;  %v699_v57 = vld [vmem:[#allocation2 + $0xf9] sm:$0xff] }
  0x91   : > { %5540 = vmatmul.mubr.bf16.gmra.mrb[36].mxu0 %v2068_v62  ;;  %5143 = vmatprep.mubr.msk.bf16.mxu1 %vm6815_vm0, %v6814_v2  ;;  %v339_v62 = vld [vmem:[#allocation2 + $0x130] sm:$0xff] }
  0x92   : > { %5543 = vmatprep.mubr.msk.bf16.mxu0 %vm6815_vm0, %v6814_v2  ;;  %v361_v3 = vpack.c.bf16 %v340_v63, %v339_v62  ;;  %v681_v62 = vld [vmem:[#allocation2 + $0x69] sm:$0xff]  ;;  %v2500_v63 = vld [vmem:[#allocation2 + $0x114] sm:$0xff] }
  0x98   : > { %5144 = vmatmul.mubr.bf16.gmra.mrb[40].mxu1 %v352_v4  ;;  %v7184_v4 = vpack.c.bf16 %v2485_v1, %v2484_v0  ;;  %v2501_v0 = vld [vmem:[#allocation2 + $0x11c] sm:$0xff] }
  0x99   : > { %5544 = vmatmul.mubr.bf16.gmra.mrb[40].mxu0 %v2069_v5  ;;  %5147 = vmatprep.mubr.msk.bf16.mxu1 %vm6815_vm0, %v6814_v2  ;;  %v341_v5 = vld [vmem:[#allocation2 + $0x140] sm:$0xff] }
  0x9a   : > { %5603 = vmatprep.mubr.msk.bf16.mxu0 %vm6815_vm0, %v6814_v2  ;;  %v362_v8 = vpack.c.bf16 %v341_v5, %v341_v5  ;;  %v682_v5 = vld [vmem:[#allocation2 + $0x71] sm:$0xff] }
  0xa0   : > { %5148 = vmatmul.mubr.bf16.gmra.mrb[44].mxu1 %v353_v10  ;;  %v668_v10 = vld [vmem:[#allocation2 + $0x1] sm:$0xff] }
  0xa1   : > { %5604 = vmatmul.mubr.bf16.vlgmr.msra.gmra.mrb[0].mxu0 %v2509_v11  ;;  %5151 = vmatprep.mubr.msk.bf16.mxu1 %vm6815_vm0, %v6814_v2  ;;  %v669_v11 = vld [vmem:[#allocation2 + $0x9] sm:$0xff] }
  0xa2   : > { %5688 = vmatpush3.bf16.msra.mxu0 %v6754_v12  ;;  %5607 = vmatprep.mubr.msk.bf16.mxu0 %vm6815_vm0, %v6814_v2  ;;  %v2488_v12 = vld [vmem:[#allocation2 + $0xb4] sm:$0xff]  ;;  %v709_v14 = vpack.c.bf16 %v669_v11, %v668_v10  ;;  %v716_v10 = vpack.c.bf16 %v683_v6, %v682_v5  ;;  %v704_v5 = vld [vmem:[#allocation2 + $0x121] sm:$0xff]  ;;  %v705_v6 = vld [vmem:[#allocation2 + $0x129] sm:$0xff] }
  0xa3   : > { %5689 = vmatprep.subr.bf16.mxu0 %v6814_v2  ;;  %v7198_v15 = vpack.c.bf16 %v2489_v13, %v2488_v12  ;;  %v684_v12 = vld [vmem:[#allocation2 + $0x81] sm:$0xff]  ;;  %v685_v13 = vld [vmem:[#allocation2 + $0x89] sm:$0xff] }
  0xa6   : > { %5690 = vmatpush3.bf16.msra.mxu0 %v6756_v17  ;;  %v670_v17 = vld [vmem:[#allocation2 + $0x11] sm:$0xff] }
  0xa7   : > { %5691 = vmatprep.subr.bf16.mxu0 %v6814_v2 }
  0xa8   : > { %5152 = vmatmul.mubr.bf16.gmra.mrb[48].mxu1 %v354_v18  ;;  %v671_v18 = vld [vmem:[#allocation2 + $0x19] sm:$0xff] }
  0xa9   : > { %5608 = vmatmul.mubr.bf16.gmra.mrb[4].mxu0 %v7110_v19  ;;  %5155 = vmatprep.mubr.msk.bf16.mxu1 %vm6815_vm0, %v6814_v2  ;;  %v710_v23 = vpack.c.bf16 %v671_v18, %v670_v17  ;;  %v717_v17 = vpack.c.bf16 %v685_v13, %v684_v12  ;;  %v1118_v12 = vld [vmem:[#allocation2 + $0x2] sm:$0xff]  ;;  %v1119_v13 = vld [vmem:[#allocation2 + $0xa] sm:$0xff] }
  0xaa   : > { %5611 = vmatprep.mubr.msk.bf16.mxu0 %vm6815_vm0, %v6814_v2  ;;  %5692 = vmatpush3.bf16.msra.mxu0 %v6758_v20  ;;  %v6763_v20 = vld [vmem:[%s7895_s1 + $0x88] sm:$0xff]  }
  0xab   : > { %5693 = vmatprep.subr.bf16.mxu0 %v6814_v2 }
  0xae   : > { %5694 = vmatpush3.bf16.msra.mxu0 %v6760_v25  ;;  %v6765_v25 = vld [vmem:[%s7895_s1 + $0x90] sm:$0xff]  }
  0xaf   : > { %5695 = vmatprep.subr.bf16.mxu0 %v6814_v2 }
  0xb0   : > { %5156 = vmatmul.mubr.bf16.gmra.mrb[52].mxu1 %v355_v26  ;;  %v672_v26 = vld [vmem:[#allocation2 + $0x21] sm:$0xff] }
  0xb1   : > { %5612 = vmatmul.mubr.bf16.gmra.mrb[8].mxu0 %v7125_v27  ;;  %5159 = vmatprep.mubr.msk.bf16.mxu1 %vm6815_vm0, %v6814_v2 }
  0xb2   : > { %5615 = vmatprep.mubr.msk.bf16.mxu0 %vm6815_vm0, %v6814_v2  ;;  %5696 = vmatpush3.bf16.msra.mxu0 %v6762_v28  ;;  %v673_v28 = vld [vmem:[#allocation2 + $0x29] sm:$0xff] }
  0xb3   : > { %5697 = vmatprep.subr.bf16.mxu0 %v6814_v2  ;;  %v711_v32 = vpack.c.bf16 %v673_v28, %v672_v26  ;;  %v688_v28 = vld [vmem:[#allocation2 + $0xa1] sm:$0xff] }
  0xb6   : > { %5698 = vmatpush3.bf16.msra.mxu0 %v6764_v33  ;;  %v7227_v33 = vpack.c.bf16 %v2493_v30, %v2492_v29  ;;  %v689_v29 = vld [vmem:[#allocation2 + $0xa9] sm:$0xff]  ;;  %v7300_v30 = vld [vmem:[#allocation2 + $0x154] sm:$0xff] }
  0xb7   : > { %5699 = vmatprep.subr.bf16.mxu0 %v6814_v2 }
  0xb8   : > { %5160 = vmatmul.mubr.bf16.gmra.mrb[56].mxu1 %v356_v34  ;;  %v6769_v34 = vld [vmem:[%s7895_s1 + $0xa0] sm:$0xff]  }
  0xb9   : > { %5616 = vmatmul.mubr.bf16.gmra.mrb[12].mxu0 %v7140_v35  ;;  %5163 = vmatprep.mubr.msk.bf16.mxu1 %vm6815_vm0, %v6814_v2 }
  0xba   : > { %5619 = vmatprep.mubr.msk.bf16.mxu0 %vm6815_vm0, %v6814_v2  ;;  %5700 = vmatpush3.bf16.msra.mxu0 %v6766_v36  ;;  %v674_v36 = vld [vmem:[#allocation2 + $0x31] sm:$0xff] }
  0xbb   : > { %5701 = vmatprep.subr.bf16.mxu0 %v6814_v2 }
  0xbe   : > { %5702 = vmatpush3.bf16.msra.mxu0 %v6768_v41  ;;  %v712_v41 = vpack.c.bf16 %v675_v37, %v674_v36  ;;  %v691_v36 = vld [vmem:[#allocation2 + $0xb9] sm:$0xff] }
  0xbf   : > { %5787 = vmatprep.subr.bf16.mxu0 %v6814_v2 }
  0xc0   : > { %5164 = vmatmul.mubr.bf16.gmra.mrb[60].mxu1 %v357_v42  ;;  %v7242_v42 = vpack.c.bf16 %v2495_v39, %v2494_v38  ;;  %v6770_v38 = vld [vmem:[%s7895_s1 + $0x1c0] sm:$0xff]  }
  0xc1   : > { %5620 = vmatmul.mubr.bf16.gmra.mrb[16].mxu0 %v7155_v43  ;;  %5167 = vmatprep.mubr.msk.bf16.mxu1 %vm6815_vm0, %v6814_v2  ;;  %v692_v39 = vld [vmem:[#allocation2 + $0xc1] sm:$0xff] }
  0xc2   : > { %5623 = vmatprep.mubr.msk.bf16.mxu0 %vm6815_vm0, %v6814_v2 }
  0xc8   : > { %5168 = vmatmul.mubr.bf16.gmra.mrb[64].mxu1 %v358_v48  ;;  %v2497_v48 = vld [vmem:[#allocation2 + $0xfc] sm:$0xff] }
  0xc9   : > { %5624 = vmatmul.mubr.bf16.gmra.mrb[20].mxu0 %v7163_v49  ;;  %5171 = vmatprep.mubr.msk.bf16.mxu1 %vm6815_vm0, %v6814_v2  ;;  %v7257_v52 = vpack.c.bf16 %v2497_v48, %v2496_v47  ;;  %v6776_v47 = vld [vmem:[%s7895_s1 + $0x1d8] sm:$0xff]   ;;  %v722_v48 = vpack.c.bf16 %v695_v46, %v694_v45  ;;  %v1134_v46 = vld [vmem:[#allocation2 + $0x82] sm:$0xff] }
  0xca   : > { %5627 = vmatprep.mubr.msk.bf16.mxu0 %vm6815_vm0, %v6814_v2  ;;  %v1133_v45 = vld [vmem:[#allocation2 + $0x7a] sm:$0xff] }
  0xd0   : > { %5172 = vmatmul.mubr.bf16.gmra.mrb[68].mxu1 %v359_v54  ;;  %v679_v54 = vld [vmem:[#allocation2 + $0x59] sm:$0xff] }
  0xd1   : > { %5628 = vmatmul.mubr.bf16.gmra.mrb[24].mxu0 %v7170_v55  ;;  %5175 = vmatprep.mubr.msk.bf16.mxu1 %vm6815_vm0, %v6814_v2  ;;  %v714_v58 = vpack.c.bf16 %v679_v54, %v678_v53  ;;  %v6780_v53 = vld [vmem:[%s7895_s1 + $0x1e8] sm:$0xff]  }
  0xd2   : > { %5631 = vmatprep.mubr.msk.bf16.mxu0 %vm6815_vm0, %v6814_v2 }
  0xd8   : > { %5176 = vmatmul.mubr.bf16.gmra.mrb[72].mxu1 %v360_v60  ;;  %v680_v60 = vld [vmem:[#allocation2 + $0x61] sm:$0xff] }
  0xd9   : > { %5632 = vmatmul.mubr.bf16.gmra.mrb[28].mxu0 %v7177_v61  ;;  %5179 = vmatprep.mubr.msk.bf16.mxu1 %vm6815_vm0, %v6814_v2  ;;  %v715_v1 = vpack.c.bf16 %v681_v62, %v680_v60  ;;  %v724_v60 = vpack.c.bf16 %v699_v57, %v698_v56  ;;  %v701_v62 = vld [vmem:[#allocation2 + $0x109] sm:$0xff]  ;;  %v1141_v57 = vld [vmem:[#allocation2 + $0xba] sm:$0xff] }
  0xda   : > { %5635 = vmatprep.mubr.msk.bf16.mxu0 %vm6815_vm0, %v6814_v2 }
  0xe0   : > { %5180 = vmatmul.mubr.bf16.gmra.mrb[76].mxu1 %v361_v3  ;;  %v7272_v3 = vpack.c.bf16 %v2501_v0, %v2500_v63  ;;  %v702_v0 = vld [vmem:[#allocation2 + $0x111] sm:$0xff] }
  0xe1   : > { %5636 = vmatmul.mubr.bf16.gmra.mrb[32].mxu0 %v7184_v4  ;;  %5183 = vmatprep.mubr.msk.bf16.mxu1 %vm6815_vm0, %v6814_v2 }
  0xe2   : > { %5639 = vmatprep.mubr.msk.bf16.mxu0 %vm6815_vm0, %v6814_v2 }
  0xe8   : > { %5184 = vmatmul.mubr.bf16.gmra.mrb[80].mxu1 %v362_v8  ;;  %v2503_v8 = vld [vmem:[#allocation2 + $0x12c] sm:$0xff] }
  0xe9   : > { %5640 = vmatmul.mubr.bf16.gmra.mrb[36].mxu0 %v7191_v9  ;;  %5203 = vmatprep.mubr.msk.bf16.mxu1 %vm6815_vm0, %v6814_v2  ;;  %v7279_v11 = vpack.c.bf16 %v2503_v8, %v2502_v7  ;;  %v706_v7 = vld [vmem:[#allocation2 + $0x131] sm:$0xff]  ;;  %v707_v8 = vld [vmem:[#allocation2 + $0x139] sm:$0xff] }
  0xea   : > { %5643 = vmatprep.mubr.msk.bf16.mxu0 %vm6815_vm0, %v6814_v2 }
  0xf0   : > { %5204 = vmatmul.mubr.bf16.vlgmr.msra.gmra.mrb[0].mxu1 %v709_v14  ;;  %v2504_v14 = vld [vmem:[#allocation2 + $0x134] sm:$0xff] }
  0xf1   : > { %5644 = vmatmul.mubr.bf16.gmra.mrb[40].mxu0 %v7198_v15  ;;  %5288 = vmatpush3.bf16.msra.mxu1 %v6761_v16  ;;  %v2505_v16 = vld [vmem:[#allocation2 + $0x13c] sm:$0xff] }
  0xf2   : > { %5207 = vmatprep.mubr.msk.bf16.mxu1 %vm6815_vm0, %v6814_v2  ;;  %5647 = vmatprep.mubr.msk.bf16.mxu0 %vm6815_vm0, %v6814_v2  ;;  %v7286_v18 = vpack.c.bf16 %v2505_v16, %v2504_v14  ;;  %v6777_v14 = vld [vmem:[%s7895_s1 + $0xc0] sm:$0xff]   ;;  %v1120_v16 = vld [vmem:[#allocation2 + $0x12] sm:$0xff] }
  0xf3   : > { %5289 = vmatprep.subr.bf16.mxu1 %v6814_v2 }
  0xf5   : > { %5290 = vmatpush3.bf16.msra.mxu1 %v6763_v20  ;;  %v686_v20 = vld [vmem:[#allocation2 + $0x91] sm:$0xff] }
  0xf6   : > { %5291 = vmatprep.subr.bf16.mxu1 %v6814_v2 }
  0xf8   : > { %5208 = vmatmul.mubr.bf16.gmra.mrb[4].mxu1 %v710_v23  ;;  %v2507_v23 = vld [vmem:[#allocation2 + $0x14c] sm:$0xff] }
  0xf9   : > { %5648 = vmatmul.mubr.bf16.gmra.mrb[44].mxu0 %v7212_v24  ;;  %5211 = vmatprep.mubr.msk.bf16.mxu1 %vm6815_vm0, %v6814_v2  ;;  %v7293_v26 = vpack.c.bf16 %v2507_v23, %v2506_v22  ;;  %v1123_v22 = vld [vmem:[#allocation2 + $0x2a] sm:$0xff]  ;;  %v6783_v23 = vld [vmem:[%s7895_s1 + $0xd8] sm:$0xff]  }
  0xfa   : > { %5651 = vmatprep.mubr.msk.bf16.mxu0 %vm6815_vm0, %v6814_v2  ;;  %5292 = vmatpush3.bf16.msra.mxu1 %v6765_v25  ;;  %v718_v25 = vpack.c.bf16 %v687_v21, %v686_v20  ;;  %v1122_v21 = vld [vmem:[#allocation2 + $0x22] sm:$0xff] }
  0xfb   : > { %5293 = vmatprep.subr.bf16.mxu1 %v6814_v2 }
  0xfe   : > { %5294 = vmatpush3.bf16.msra.mxu1 %v6767_v31  ;;  %v719_v31 = vpack.c.bf16 %v689_v29, %v688_v28  ;;  %v1124_v28 = vld [vmem:[#allocation2 + $0x32] sm:$0xff]  ;;  %v1125_v29 = vld [vmem:[#allocation2 + $0x3a] sm:$0xff] }
  0xff   : > { %5295 = vmatprep.subr.bf16.mxu1 %v6814_v2 }
 0x100   : > { %5212 = vmatmul.mubr.bf16.gmra.mrb[8].mxu1 %v711_v32  ;;  %v2529_v32 = vpack.c.bf16 %v7300_v30, %v7300_v30 }
 0x101   : > { %5652 = vmatmul.mubr.bf16.gmra.mrb[48].mxu0 %v7227_v33  ;;  %5215 = vmatprep.mubr.msk.bf16.mxu1 %vm6815_vm0, %v6814_v2 }
 0x102   : > { %5655 = vmatprep.mubr.msk.bf16.mxu0 %vm6815_vm0, %v6814_v2  ;;  %5296 = vmatpush3.bf16.msra.mxu1 %v6769_v34  ;;  %v690_v34 = vld [vmem:[#allocation2 + $0xb1] sm:$0xff] }
 0x103   : > { %5297 = vmatprep.subr.bf16.mxu1 %v6814_v2  ;;  %v720_v37 = vpack.c.bf16 %v691_v36, %v690_v34  ;;  %v1126_v34 = vld [vmem:[#allocation2 + $0x42] sm:$0xff]  ;;  %v1127_v36 = vld [vmem:[#allocation2 + $0x4a] sm:$0xff] }
 0x106   : > { %5298 = vmatpush3.bf16.msra.mxu1 %v6771_v40  ;;  %v693_v40 = vld [vmem:[#allocation2 + $0xc9] sm:$0xff] }
 0x107   : > { %5299 = vmatprep.subr.bf16.mxu1 %v6814_v2 }
 0x108   : > { %5216 = vmatmul.mubr.bf16.gmra.mrb[12].mxu1 %v712_v41  ;;  %v6772_v41 = vld [vmem:[%s7895_s1 + $0x1c8] sm:$0xff]  }
 0x109   : > { %5656 = vmatmul.mubr.bf16.gmra.mrb[52].mxu0 %v7242_v42  ;;  %5219 = vmatprep.mubr.msk.bf16.mxu1 %vm6815_vm0, %v6814_v2 }
 0x10a   : > { %5659 = vmatprep.mubr.msk.bf16.mxu0 %vm6815_vm0, %v6814_v2  ;;  %5300 = vmatpush3.bf16.msra.mxu1 %v6773_v44  ;;  %v721_v44 = vpack.c.bf16 %v693_v40, %v692_v39  ;;  %v1129_v39 = vld [vmem:[#allocation2 + $0x5a] sm:$0xff] }
 0x10b   : > { %5301 = vmatprep.subr.bf16.mxu1 %v6814_v2 }
 0x10e   : > { %5302 = vmatpush3.bf16.msra.mxu1 %v6775_v50  ;;  %v696_v50 = vld [vmem:[#allocation2 + $0xe1] sm:$0xff] }
 0x10f   : > { %5387 = vmatprep.subr.bf16.mxu1 %v6814_v2 }
 0x110   : > { %5220 = vmatmul.mubr.bf16.gmra.mrb[16].mxu1 %v713_v51  ;;  %v697_v51 = vld [vmem:[#allocation2 + $0xe9] sm:$0xff] }
 0x111   : > { %5660 = vmatmul.mubr.bf16.gmra.mrb[56].mxu0 %v7257_v52  ;;  %5223 = vmatprep.mubr.msk.bf16.mxu1 %vm6815_vm0, %v6814_v2  ;;  %v723_v54 = vpack.c.bf16 %v697_v51, %v696_v50 }
 0x112   : > { %5663 = vmatprep.mubr.msk.bf16.mxu0 %vm6815_vm0, %v6814_v2 }
 0x118   : > { %5224 = vmatmul.mubr.bf16.gmra.mrb[20].mxu1 %v714_v58  ;;  %v6784_v58 = vld [vmem:[%s7895_s1 + $0x1f8] sm:$0xff]  }
 0x119   : > { %5664 = vmatmul.mubr.bf16.gmra.mrb[60].mxu0 %v7265_v59  ;;  %5227 = vmatprep.mubr.msk.bf16.mxu1 %vm6815_vm0, %v6814_v2 }
 0x11a   : > { %5667 = vmatprep.mubr.msk.bf16.mxu0 %vm6815_vm0, %v6814_v2 }
 0x120   : > { %5228 = vmatmul.mubr.bf16.gmra.mrb[24].mxu1 %v715_v1  ;;  %v703_v1 = vld [vmem:[#allocation2 + $0x119] sm:$0xff] }
 0x121   : > { %5668 = vmatmul.mubr.bf16.gmra.mrb[64].mxu0 %v7272_v3  ;;  %5231 = vmatprep.mubr.msk.bf16.mxu1 %vm6815_vm0, %v6814_v2 }
 0x122   : > { %5671 = vmatprep.mubr.msk.bf16.mxu0 %vm6815_vm0, %v6814_v2 }
 0x128   : > { %5232 = vmatmul.mubr.bf16.gmra.mrb[28].mxu1 %v716_v10  ;;  %v708_v10 = vld [vmem:[#allocation2 + $0x141] sm:$0xff] }
 0x129   : > { %5672 = vmatmul.mubr.bf16.gmra.mrb[68].mxu0 %v7279_v11  ;;  %5235 = vmatprep.mubr.msk.bf16.mxu1 %vm6815_vm0, %v6814_v2 }
 0x12a   : > { %5675 = vmatprep.mubr.msk.bf16.mxu0 %vm6815_vm0, %v6814_v2 }
 0x130   : > { %5236 = vmatmul.mubr.bf16.gmra.mrb[32].mxu1 %v717_v17  ;;  %v1121_v17 = vld [vmem:[#allocation2 + $0x1a] sm:$0xff] }
 0x131   : > { %5676 = vmatmul.mubr.bf16.gmra.mrb[72].mxu0 %v7286_v18  ;;  %5239 = vmatprep.mubr.msk.bf16.mxu1 %vm6815_vm0, %v6814_v2  ;;  %v7402_v20 = vpack.c.bf16 %v1121_v17, %v1120_v16  ;;  %v6793_v16 = vld [vmem:[%s7895_s1 + $0x220] sm:$0xff]  }
 0x132   : > { %5679 = vmatprep.mubr.msk.bf16.mxu0 %vm6815_vm0, %v6814_v2  ;;  %v1146_v17 = vld [vmem:[#allocation2 + $0xe2] sm:$0xff] }
 0x138   : > { %5240 = vmatmul.mubr.bf16.gmra.mrb[36].mxu1 %v718_v25  ;;  %v7418_v25 = vpack.c.bf16 %v1123_v22, %v1122_v21  ;;  %v3375_v21 = vld [vmem:[#allocation2 + $0x5d] sm:$0xff]  ;;  %v6794_v22 = vld [vmem:[%s7895_s1 + $0x228] sm:$0xff]  }
 0x139   : > { %5680 = vmatmul.mubr.bf16.gmra.mrb[76].mxu0 %v7293_v26  ;;  %5243 = vmatprep.mubr.msk.bf16.mxu1 %vm6815_vm0, %v6814_v2 }
 0x13a   : > { %5683 = vmatprep.mubr.msk.bf16.mxu0 %vm6815_vm0, %v6814_v2 }
 0x140   : > { %5244 = vmatmul.mubr.bf16.gmra.mrb[40].mxu1 %v719_v31  ;;  %v6787_v31 = vld [vmem:[%s7895_s1 + $0xe8] sm:$0xff]  }
 0x141   : > { %5684 = vmatmul.mubr.bf16.gmra.mrb[80].mxu0 %v2529_v32  ;;  %5247 = vmatprep.mubr.msk.bf16.mxu1 %vm6815_vm0, %v6814_v2  ;;  %v7434_v32 = vpack.c.bf16 %v1125_v29, %v1124_v28  ;;  %v6795_v28 = vld [vmem:[%s7895_s1 + $0x230] sm:$0xff]  }
 0x142   : > { %5703 = vmatprep.mubr.msk.bf16.mxu0 %vm6815_vm0, %v6814_v2  ;;  %v1148_v29 = vld [vmem:[#allocation2 + $0xf2] sm:$0xff] }
 0x148   : > { %5248 = vmatmul.mubr.bf16.gmra.mrb[44].mxu1 %v720_v37  ;;  %v6791_v37 = vld [vmem:[%s7895_s1 + $0xf8] sm:$0xff]  }
 0x149   : > { %5704 = vmatmul.mubr.bf16.vlgmr.msra.gmra.mrb[0].mxu0 %v7110_v19  ;;  %5251 = vmatprep.mubr.msk.bf16.mxu1 %vm6815_vm0, %v6814_v2  ;;  %v6774_v19 = vld [vmem:[%s7895_s1 + $0x1d0] sm:$0xff]  }
 0x14a   : > { %5788 = vmatpush3.bf16.msra.mxu0 %v6770_v38  ;;  %5707 = vmatprep.mubr.msk.bf16.mxu0 %vm6815_vm0, %v6814_v2  ;;  %v7450_v38 = vpack.c.bf16 %v1127_v36, %v1126_v34  ;;  %v3377_v34 = vld [vmem:[#allocation2 + $0x6d] sm:$0xff]  ;;  %v6796_v36 = vld [vmem:[%s7895_s1 + $0x238] sm:$0xff]  }
 0x14b   : > { %5789 = vmatprep.subr.bf16.mxu0 %v6814_v2 }
 0x14e   : > { %5790 = vmatpush3.bf16.msra.mxu0 %v6772_v41  ;;  %v1130_v41 = vld [vmem:[#allocation2 + $0x62] sm:$0xff] }
 0x14f   : > { %5791 = vmatprep.subr.bf16.mxu0 %v6814_v2 }
 0x150   : > { %5252 = vmatmul.mubr.bf16.gmra.mrb[48].mxu1 %v721_v44  ;;  %v1131_v44 = vld [vmem:[#allocation2 + $0x6a] sm:$0xff] }
 0x151   : > { %5708 = vmatmul.mubr.bf16.gmra.mrb[4].mxu0 %v7125_v27  ;;  %5255 = vmatprep.mubr.msk.bf16.mxu1 %vm6815_vm0, %v6814_v2  ;;  %v6778_v27 = vld [vmem:[%s7895_s1 + $0x1e0] sm:$0xff]  }
 0x152   : > { %5711 = vmatprep.mubr.msk.bf16.mxu0 %vm6815_vm0, %v6814_v2  ;;  %5792 = vmatpush3.bf16.msra.mxu0 %v6774_v19  ;;  %v1132_v19 = vld [vmem:[#allocation2 + $0x72] sm:$0xff] }
 0x153   : > { %5793 = vmatprep.subr.bf16.mxu0 %v6814_v2 }
 0x156   : > { %5794 = vmatpush3.bf16.msra.mxu0 %v6776_v47  ;;  %v1135_v47 = vld [vmem:[#allocation2 + $0x8a] sm:$0xff] }
 0x157   : > { %5795 = vmatprep.subr.bf16.mxu0 %v6814_v2 }
 0x158   : > { %5256 = vmatmul.mubr.bf16.gmra.mrb[52].mxu1 %v722_v48  ;;  %v1136_v48 = vld [vmem:[#allocation2 + $0x92] sm:$0xff] }
 0x159   : > { %5712 = vmatmul.mubr.bf16.gmra.mrb[8].mxu0 %v7140_v35  ;;  %5259 = vmatprep.mubr.msk.bf16.mxu1 %vm6815_vm0, %v6814_v2  ;;  %v6782_v35 = vld [vmem:[%s7895_s1 + $0x1f0] sm:$0xff]  }
 0x15a   : > { %5715 = vmatprep.mubr.msk.bf16.mxu0 %vm6815_vm0, %v6814_v2  ;;  %5796 = vmatpush3.bf16.msra.mxu0 %v6778_v27  ;;  %v1137_v27 = vld [vmem:[#allocation2 + $0x9a] sm:$0xff] }
 0x15b   : > { %5797 = vmatprep.subr.bf16.mxu0 %v6814_v2  ;;  %v7491_v50 = vpack.c.bf16 %v1137_v27, %v1136_v48  ;;  %v1153_v48 = vld [vmem:[#allocation2 + $0x11a] sm:$0xff]  ;;  %v3380_v27 = vld [vmem:[#allocation2 + $0x85] sm:$0xff] }
 0x15e   : > { %5798 = vmatpush3.bf16.msra.mxu0 %v6780_v53  ;;  %v1139_v53 = vld [vmem:[#allocation2 + $0xaa] sm:$0xff] }
 0x15f   : > { %5799 = vmatprep.subr.bf16.mxu0 %v6814_v2 }
 0x160   : > { %5260 = vmatmul.mubr.bf16.gmra.mrb[56].mxu1 %v723_v54  ;;  %v2958_v54 = vld [vmem:[#allocation2 + $0x164] sm:$0xff] }
 0x161   : > { %5716 = vmatmul.mubr.bf16.gmra.mrb[12].mxu0 %v7155_v43  ;;  %5263 = vmatprep.mubr.msk.bf16.mxu1 %vm6815_vm0, %v6814_v2  ;;  %v700_v43 = vld [vmem:[#allocation2 + $0x101] sm:$0xff]  ;;  %v2979_v56 = vpack.c.bf16 %v2958_v54, %v2958_v54  ;;  %v1155_v54 = vld [vmem:[#allocation2 + $0x12a] sm:$0xff] }
 0x162   : > { %5719 = vmatprep.mubr.msk.bf16.mxu0 %vm6815_vm0, %v6814_v2  ;;  %5800 = vmatpush3.bf16.msra.mxu0 %v6782_v35  ;;  %v725_v63 = vpack.c.bf16 %v701_v62, %v700_v43 }
 0x163   : > { %5801 = vmatprep.subr.bf16.mxu0 %v6814_v2 }
 0x166   : > { %5802 = vmatpush3.bf16.msra.mxu0 %v6784_v58  ;;  %v3368_v58 = vld [vmem:[#allocation2 + $0x25] sm:$0xff] }
 0x167   : > { %5887 = vmatprep.subr.bf16.mxu0 %v6814_v2 }
 0x168   : > { %5264 = vmatmul.mubr.bf16.gmra.mrb[60].mxu1 %v724_v60  ;;  %v3369_v60 = vld [vmem:[#allocation2 + $0x2d] sm:$0xff] }
 0x169   : > { %5720 = vmatmul.mubr.bf16.gmra.mrb[16].mxu0 %v7163_v49  ;;  %5267 = vmatprep.mubr.msk.bf16.mxu1 %vm6815_vm0, %v6814_v2  ;;  %v726_v49 = vpack.c.bf16 %v703_v1, %v702_v0  ;;  %v3409_v62 = vpack.c.bf16 %v3369_v60, %v3368_v58  ;;  %v1142_v0 = vld [vmem:[#allocation2 + $0xc2] sm:$0xff]  ;;  %v1143_v1 = vld [vmem:[#allocation2 + $0xca] sm:$0xff]  ;;  %v1156_v60 = vld [vmem:[#allocation2 + $0x132] sm:$0xff] }
 0x16a   : > { %5723 = vmatprep.mubr.msk.bf16.mxu0 %vm6815_vm0, %v6814_v2 }
 0x170   : > { %5268 = vmatmul.mubr.bf16.gmra.mrb[64].mxu1 %v725_v63  ;;  %v6786_v63 = vld [vmem:[%s7895_s1 + $0x200] sm:$0xff]  }
 0x171   : > { %5724 = vmatmul.mubr.bf16.gmra.mrb[20].mxu0 %v7170_v55  ;;  %5271 = vmatprep.mubr.msk.bf16.mxu1 %vm6815_vm0, %v6814_v2  ;;  %v727_v55 = vpack.c.bf16 %v705_v6, %v704_v5  ;;  %v3371_v5 = vld [vmem:[#allocation2 + $0x3d] sm:$0xff]  ;;  %v6788_v6 = vld [vmem:[%s7895_s1 + $0x208] sm:$0xff]  }
 0x172   : > { %5727 = vmatprep.mubr.msk.bf16.mxu0 %vm6815_vm0, %v6814_v2 }
 0x178   : > { %5272 = vmatmul.mubr.bf16.gmra.mrb[68].mxu1 %v726_v49  ;;  %v3370_v49 = vld [vmem:[#allocation2 + $0x35] sm:$0xff] }
 0x179   : > { %5728 = vmatmul.mubr.bf16.gmra.mrb[24].mxu0 %v7177_v61  ;;  %5275 = vmatprep.mubr.msk.bf16.mxu1 %vm6815_vm0, %v6814_v2  ;;  %v728_v61 = vpack.c.bf16 %v707_v8, %v706_v7  ;;  %v3410_v7 = vpack.c.bf16 %v3371_v5, %v3370_v49  ;;  %v6790_v8 = vld [vmem:[%s7895_s1 + $0x210] sm:$0xff]   ;;  %v7598_v5 = vld [vmem:[#allocation2 + $0x142] sm:$0xff] }
 0x17a   : > { %5731 = vmatprep.mubr.msk.bf16.mxu0 %vm6815_vm0, %v6814_v2 }
 0x180   : > { %5276 = vmatmul.mubr.bf16.gmra.mrb[72].mxu1 %v727_v55  ;;  %v7520_v55 = vpack.c.bf16 %v1143_v1, %v1142_v0  ;;  %v3385_v0 = vld [vmem:[#allocation2 + $0xad] sm:$0xff] }
 0x181   : > { %5732 = vmatmul.mubr.bf16.gmra.mrb[28].mxu0 %v7184_v4  ;;  %5279 = vmatprep.mubr.msk.bf16.mxu1 %vm6815_vm0, %v6814_v2  ;;  %v729_v4 = vpack.c.bf16 %v708_v10, %v708_v10  ;;  %v1145_v10 = vld [vmem:[#allocation2 + $0xda] sm:$0xff] }
 0x182   : > { %5735 = vmatprep.mubr.msk.bf16.mxu0 %vm6815_vm0, %v6814_v2 }
 0x188   : > { %5280 = vmatmul.mubr.bf16.gmra.mrb[76].mxu1 %v728_v61  ;;  %v1144_v61 = vld [vmem:[#allocation2 + $0xd2] sm:$0xff] }
 0x189   : > { %5736 = vmatmul.mubr.bf16.gmra.mrb[32].mxu0 %v7191_v9  ;;  %5283 = vmatprep.mubr.msk.bf16.mxu1 %vm6815_vm0, %v6814_v2  ;;  %v1159_v9 = vpack.c.bf16 %v1119_v13, %v1118_v12  ;;  %v3373_v12 = vld [vmem:[#allocation2 + $0x4d] sm:$0xff]  ;;  %v6792_v13 = vld [vmem:[%s7895_s1 + $0x218] sm:$0xff]  }
 0x18a   : > { %5739 = vmatprep.mubr.msk.bf16.mxu0 %vm6815_vm0, %v6814_v2 }
 0x190   : > { %5284 = vmatmul.mubr.bf16.gmra.mrb[80].mxu1 %v729_v4  ;;  %v3372_v4 = vld [vmem:[#allocation2 + $0x45] sm:$0xff] }
 0x191   : > { %5740 = vmatmul.mubr.bf16.gmra.mrb[36].mxu0 %v7198_v15  ;;  %5303 = vmatprep.mubr.msk.bf16.mxu1 %vm6815_vm0, %v6814_v2  ;;  %v6779_v15 = vld [vmem:[%s7895_s1 + $0xc8] sm:$0xff]  }
 0x192   : > { %5743 = vmatprep.mubr.msk.bf16.mxu0 %vm6815_vm0, %v6814_v2 }
 0x198   : > { %5304 = vmatmul.mubr.bf16.vlgmr.msra.gmra.mrb[0].mxu1 %v1159_v9  ;;  %v7535_v9 = vpack.c.bf16 %v1145_v10, %v1144_v61  ;;  %v3388_v10 = vld [vmem:[#allocation2 + $0xc5] sm:$0xff] }
 0x199   : > { %5744 = vmatmul.mubr.bf16.gmra.mrb[40].mxu0 %v7212_v24  ;;  %5388 = vmatpush3.bf16.msra.mxu1 %v6777_v14  ;;  %v6781_v24 = vld [vmem:[%s7895_s1 + $0xd0] sm:$0xff]   ;;  %v3411_v14 = vpack.c.bf16 %v3373_v12, %v3372_v4 }
 0x19a   : > { %5307 = vmatprep.mubr.msk.bf16.mxu1 %vm6815_vm0, %v6814_v2  ;;  %5747 = vmatprep.mubr.msk.bf16.mxu0 %vm6815_vm0, %v6814_v2  ;;  %v3389_v4 = vld [vmem:[#allocation2 + $0xcd] sm:$0xff] }
 0x19b   : > { %5389 = vmatprep.subr.bf16.mxu1 %v6814_v2  ;;  %v3419_v12 = vpack.c.bf16 %v3389_v4, %v3388_v10  ;;  %v3831_v10 = vld [vmem:[#allocation2 + $0x8e] sm:$0xff] }
 0x19d   : > { %5390 = vmatpush3.bf16.msra.mxu1 %v6779_v15  ;;  %v1147_v15 = vld [vmem:[#allocation2 + $0xea] sm:$0xff] }
 0x19e   : > { %5391 = vmatprep.subr.bf16.mxu1 %v6814_v2 }
 0x1a0   : > { %5308 = vmatmul.mubr.bf16.gmra.mrb[4].mxu1 %v7402_v20 }
 0x1a1   : > { %5748 = vmatmul.mubr.bf16.gmra.mrb[44].mxu0 %v7227_v33  ;;  %5311 = vmatprep.mubr.msk.bf16.mxu1 %vm6815_vm0, %v6814_v2  ;;  %v6785_v33 = vld [vmem:[%s7895_s1 + $0xe0] sm:$0xff]  }
 0x1a2   : > { %5751 = vmatprep.mubr.msk.bf16.mxu0 %vm6815_vm0, %v6814_v2  ;;  %5392 = vmatpush3.bf16.msra.mxu1 %v6781_v24  ;;  %v3374_v24 = vld [vmem:[#allocation2 + $0x55] sm:$0xff] }
 0x1a3   : > { %5393 = vmatprep.subr.bf16.mxu1 %v6814_v2 }
 0x1a6   : > { %5394 = vmatpush3.bf16.msra.mxu1 %v6783_v23  ;;  %v7550_v23 = vpack.c.bf16 %v1147_v15, %v1146_v17  ;;  %v3392_v15 = vld [vmem:[#allocation2 + $0xe5] sm:$0xff] }
 0x1a7   : > { %5395 = vmatprep.subr.bf16.mxu1 %v6814_v2 }
 0x1a8   : > { %5312 = vmatmul.mubr.bf16.gmra.mrb[8].mxu1 %v7418_v25 }
 0x1a9   : > { %5752 = vmatmul.mubr.bf16.gmra.mrb[48].mxu0 %v7242_v42  ;;  %5315 = vmatprep.mubr.msk.bf16.mxu1 %vm6815_vm0, %v6814_v2  ;;  %v6789_v42 = vld [vmem:[%s7895_s1 + $0xf0] sm:$0xff]  }
 0x1aa   : > { %5755 = vmatprep.mubr.msk.bf16.mxu0 %vm6815_vm0, %v6814_v2  ;;  %5396 = vmatpush3.bf16.msra.mxu1 %v6785_v33  ;;  %v3412_v33 = vpack.c.bf16 %v3375_v21, %v3374_v24  ;;  %v3393_v24 = vld [vmem:[#allocation2 + $0xed] sm:$0xff] }
 0x1ab   : > { %5397 = vmatprep.subr.bf16.mxu1 %v6814_v2  ;;  %v6799_v21 = vld [vmem:[%s7895_s1 + $0x110] sm:$0xff]  }
 0x1ae   : > { %5398 = vmatpush3.bf16.msra.mxu1 %v6787_v31  ;;  %v1149_v31 = vld [vmem:[#allocation2 + $0xfa] sm:$0xff] }
 0x1af   : > { %5399 = vmatprep.subr.bf16.mxu1 %v6814_v2 }
 0x1b0   : > { %5316 = vmatmul.mubr.bf16.gmra.mrb[12].mxu1 %v7434_v32 }
 0x1b1   : > { %5756 = vmatmul.mubr.bf16.gmra.mrb[52].mxu0 %v7257_v52  ;;  %5319 = vmatprep.mubr.msk.bf16.mxu1 %vm6815_vm0, %v6814_v2  ;;  %v1128_v52 = vld [vmem:[#allocation2 + $0x52] sm:$0xff] }
 0x1b2   : > { %5759 = vmatprep.mubr.msk.bf16.mxu0 %vm6815_vm0, %v6814_v2  ;;  %5400 = vmatpush3.bf16.msra.mxu1 %v6789_v42  ;;  %v7459_v40 = vpack.c.bf16 %v1129_v39, %v1128_v52  ;;  %v3376_v42 = vld [vmem:[#allocation2 + $0x65] sm:$0xff] }
 0x1b3   : > { %5401 = vmatprep.subr.bf16.mxu1 %v6814_v2  ;;  %v3413_v52 = vpack.c.bf16 %v3377_v34, %v3376_v42  ;;  %v1150_v39 = vld [vmem:[#allocation2 + $0x102] sm:$0xff]  ;;  %v3397_v34 = vld [vmem:[#allocation2 + $0x10d] sm:$0xff] }
 0x1b4   : > { %v3396_v42 = vld [vmem:[#allocation2 + $0x105] sm:$0xff] }
 0x1b6   : > { %5402 = vmatpush3.bf16.msra.mxu1 %v6791_v37  ;;  %v7565_v37 = vpack.c.bf16 %v1149_v31, %v1148_v29  ;;  %v6801_v29 = vld [vmem:[%s7895_s1 + $0x120] sm:$0xff]  }
 0x1b7   : > { %5987 = vmatprep.subr.bf16.mxu1 %v6814_v2 }
 0x1b8   : > { %5320 = vmatmul.mubr.bf16.gmra.mrb[16].mxu1 %v7450_v38 }
 0x1b9   : > { %5760 = vmatmul.mubr.bf16.gmra.mrb[56].mxu0 %v7265_v59  ;;  %5323 = vmatprep.mubr.msk.bf16.mxu1 %vm6815_vm0, %v6814_v2  ;;  %v7467_v59 = vpack.c.bf16 %v1131_v44, %v1130_v41  ;;  %v1151_v41 = vld [vmem:[#allocation2 + $0x10a] sm:$0xff]  ;;  %v3378_v44 = vld [vmem:[#allocation2 + $0x75] sm:$0xff] }
 0x1ba   : > { %5763 = vmatprep.mubr.msk.bf16.mxu0 %vm6815_vm0, %v6814_v2 }
 0x1c0   : > { %5324 = vmatmul.mubr.bf16.gmra.mrb[20].mxu1 %v7459_v40 }
 0x1c1   : > { %5764 = vmatmul.mubr.bf16.gmra.mrb[60].mxu0 %v7272_v3  ;;  %5327 = vmatprep.mubr.msk.bf16.mxu1 %vm6815_vm0, %v6814_v2  ;;  %v7475_v3 = vpack.c.bf16 %v1133_v45, %v1132_v19  ;;  %v3379_v19 = vld [vmem:[#allocation2 + $0x7d] sm:$0xff]  ;;  %v7572_v45 = vpack.c.bf16 %v1151_v41, %v1150_v39  ;;  %v3398_v39 = vld [vmem:[#allocation2 + $0x115] sm:$0xff] }
 0x1c2   : > { %5767 = vmatprep.mubr.msk.bf16.mxu0 %vm6815_vm0, %v6814_v2  ;;  %v3399_v41 = vld [vmem:[#allocation2 + $0x11d] sm:$0xff] }
 0x1c8   : > { %5328 = vmatmul.mubr.bf16.gmra.mrb[24].mxu1 %v7467_v59 }
 0x1c9   : > { %5768 = vmatmul.mubr.bf16.gmra.mrb[64].mxu0 %v7279_v11  ;;  %5331 = vmatprep.mubr.msk.bf16.mxu1 %vm6815_vm0, %v6814_v2  ;;  %v7483_v11 = vpack.c.bf16 %v1135_v47, %v1134_v46  ;;  %v3414_v46 = vpack.c.bf16 %v3379_v19, %v3378_v44  ;;  %v1152_v47 = vld [vmem:[#allocation2 + $0x112] sm:$0xff]  ;;  %v3424_v44 = vpack.c.bf16 %v3399_v41, %v3398_v39  ;;  %v2044_v39 = vld [vmem:[#allocation2 + $0xe3] sm:$0xff] }
 0x1ca   : > { %5771 = vmatprep.mubr.msk.bf16.mxu0 %vm6815_vm0, %v6814_v2  ;;  %v3401_v19 = vld [vmem:[#allocation2 + $0x12d] sm:$0xff] }
 0x1cb   : > { %v2045_v41 = vld [vmem:[#allocation2 + $0xeb] sm:$0xff] }
 0x1d0   : > { %5332 = vmatmul.mubr.bf16.gmra.mrb[28].mxu1 %v7475_v3 }
 0x1d1   : > { %5772 = vmatmul.mubr.bf16.gmra.mrb[68].mxu0 %v7286_v18  ;;  %5335 = vmatprep.mubr.msk.bf16.mxu1 %vm6815_vm0, %v6814_v2  ;;  %v2957_v18 = vld [vmem:[#allocation2 + $0x15c] sm:$0xff] }
 0x1d2   : > { %5775 = vmatprep.mubr.msk.bf16.mxu0 %vm6815_vm0, %v6814_v2  ;;  %v2978_v51 = vpack.c.bf16 %v2957_v18, %v7300_v30  ;;  %v1140_v30 = vld [vmem:[#allocation2 + $0xb2] sm:$0xff] }
 0x1d3   : > { %v7506_v43 = vpack.c.bf16 %v1141_v57, %v1140_v30  ;;  %v3381_v18 = vld [vmem:[#allocation2 + $0x8d] sm:$0xff]  ;;  %v3383_v30 = vld [vmem:[#allocation2 + $0x9d] sm:$0xff] }
 0x1d8   : > { %5336 = vmatmul.mubr.bf16.gmra.mrb[32].mxu1 %v7483_v11 }
 0x1d9   : > { %5776 = vmatmul.mubr.bf16.gmra.mrb[72].mxu0 %v7293_v26  ;;  %5339 = vmatprep.mubr.msk.bf16.mxu1 %vm6815_vm0, %v6814_v2  ;;  %v1138_v26 = vld [vmem:[#allocation2 + $0xa2] sm:$0xff] }
 0x1da   : > { %5779 = vmatprep.mubr.msk.bf16.mxu0 %vm6815_vm0, %v6814_v2  ;;  %v7499_v35 = vpack.c.bf16 %v1139_v53, %v1138_v26  ;;  %v3415_v26 = vpack.c.bf16 %v3381_v18, %v3380_v27  ;;  %v1154_v53 = vld [vmem:[#allocation2 + $0x122] sm:$0xff]  ;;  %v3405_v27 = vld [vmem:[#allocation2 + $0x14d] sm:$0xff] }
 0x1db   : > { %v7586_v57 = vpack.c.bf16 %v1155_v54, %v1154_v53 }
 0x1e0   : > { %5340 = vmatmul.mubr.bf16.gmra.mrb[36].mxu1 %v7491_v50 }
 0x1e1   : > { %5780 = vmatmul.mubr.bf16.gmra.mrb[76].mxu0 %v2978_v51  ;;  %5343 = vmatprep.mubr.msk.bf16.mxu1 %vm6815_vm0, %v6814_v2  ;;  %v7579_v51 = vpack.c.bf16 %v1153_v48, %v1152_v47  ;;  %v3403_v47 = vld [vmem:[#allocation2 + $0x13d] sm:$0xff] }
 0x1e2   : > { %5783 = vmatprep.mubr.msk.bf16.mxu0 %vm6815_vm0, %v6814_v2 }
 0x1e8   : > { %5344 = vmatmul.mubr.bf16.gmra.mrb[40].mxu1 %v7499_v35 }
 0x1e9   : > { %5784 = vmatmul.mubr.bf16.gmra.mrb[80].mxu0 %v2979_v56  ;;  %5347 = vmatprep.mubr.msk.bf16.mxu1 %vm6815_vm0, %v6814_v2  ;;  %v3382_v56 = vld [vmem:[#allocation2 + $0x95] sm:$0xff] }
 0x1ea   : > { %5803 = vmatprep.mubr.msk.bf16.mxu0 %vm6815_vm0, %v6814_v2  ;;  %v3416_v58 = vpack.c.bf16 %v3383_v30, %v3382_v56  ;;  %v3818_v56 = vld [vmem:[#allocation2 + $0x26] sm:$0xff] }
 0x1f0   : > { %5348 = vmatmul.mubr.bf16.gmra.mrb[44].mxu1 %v7506_v43 }
 0x1f1   : > { %5804 = vmatmul.mubr.bf16.vlgmr.msra.gmra.mrb[0].mxu0 %v3409_v62  ;;  %5351 = vmatprep.mubr.msk.bf16.mxu1 %vm6815_vm0, %v6814_v2  ;;  %v1157_v62 = vld [vmem:[#allocation2 + $0x13a] sm:$0xff] }
 0x1f2   : > { %5888 = vmatpush3.bf16.msra.mxu0 %v6786_v63  ;;  %5807 = vmatprep.mubr.msk.bf16.mxu0 %vm6815_vm0, %v6814_v2  ;;  %v3384_v63 = vld [vmem:[#allocation2 + $0xa5] sm:$0xff]  ;;  %v7593_v1 = vpack.c.bf16 %v1157_v62, %v1156_v60  ;;  %v3823_v62 = vld [vmem:[#allocation2 + $0x4e] sm:$0xff] }
 0x1f3   : > { %5889 = vmatprep.subr.bf16.mxu0 %v6814_v2  ;;  %v3417_v49 = vpack.c.bf16 %v3385_v0, %v3384_v63  ;;  %v3825_v0 = vld [vmem:[#allocation2 + $0x5e] sm:$0xff] }
 0x1f6   : > { %5890 = vmatpush3.bf16.msra.mxu0 %v6788_v6  ;;  %v3386_v6 = vld [vmem:[#allocation2 + $0xb5] sm:$0xff] }
 0x1f7   : > { %5891 = vmatprep.subr.bf16.mxu0 %v6814_v2 }
 0x1f8   : > { %5352 = vmatmul.mubr.bf16.gmra.mrb[48].mxu1 %v7520_v55 }
 0x1f9   : > { %5808 = vmatmul.mubr.bf16.gmra.mrb[4].mxu0 %v3410_v7  ;;  %5355 = vmatprep.mubr.msk.bf16.mxu1 %vm6815_vm0, %v6814_v2  ;;  %v3387_v7 = vld [vmem:[#allocation2 + $0xbd] sm:$0xff] }
 0x1fa   : > { %5811 = vmatprep.mubr.msk.bf16.mxu0 %vm6815_vm0, %v6814_v2  ;;  %5892 = vmatpush3.bf16.msra.mxu0 %v6790_v8  ;;  %v1179_v8 = vpack.c.bf16 %v7598_v5, %v7598_v5  ;;  %v3418_v61 = vpack.c.bf16 %v3387_v7, %v3386_v6  ;;  %v3827_v6 = vld [vmem:[#allocation2 + $0x6e] sm:$0xff] }
 0x1fb   : > { %5893 = vmatprep.subr.bf16.mxu0 %v6814_v2 }
 0x1fe   : > { %5894 = vmatpush3.bf16.msra.mxu0 %v6792_v13  ;;  %v6797_v13 = vld [vmem:[%s7895_s1 + $0x100] sm:$0xff]  }
 0x1ff   : > { %5895 = vmatprep.subr.bf16.mxu0 %v6814_v2 }
 0x200   : > { %5356 = vmatmul.mubr.bf16.gmra.mrb[52].mxu1 %v7535_v9 }
 0x201   : > { %5812 = vmatmul.mubr.bf16.gmra.mrb[8].mxu0 %v3411_v14  ;;  %5359 = vmatprep.mubr.msk.bf16.mxu1 %vm6815_vm0, %v6814_v2  ;;  %v3390_v14 = vld [vmem:[#allocation2 + $0xd5] sm:$0xff] }
 0x202   : > { %5815 = vmatprep.mubr.msk.bf16.mxu0 %vm6815_vm0, %v6814_v2  ;;  %5896 = vmatpush3.bf16.msra.mxu0 %v6793_v16  ;;  %v3391_v16 = vld [vmem:[#allocation2 + $0xdd] sm:$0xff] }
 0x203   : > { %5897 = vmatprep.subr.bf16.mxu0 %v6814_v2  ;;  %v3420_v17 = vpack.c.bf16 %v3391_v16, %v3390_v14  ;;  %v1607_v14 = vld [vmem:[#allocation2 + $0x14a] sm:$0xff] }
 0x204   : > { %v3835_v16 = vld [vmem:[#allocation2 + $0xae] sm:$0xff] }
 0x206   : > { %5898 = vmatpush3.bf16.msra.mxu0 %v6794_v22  ;;  %v3421_v22 = vpack.c.bf16 %v3393_v24, %v3392_v15  ;;  %v1608_v15 = vld [vmem:[#allocation2 + $0x152] sm:$0xff]  ;;  %v3837_v24 = vld [vmem:[#allocation2 + $0xbe] sm:$0xff] }
 0x207   : > { %5899 = vmatprep.subr.bf16.mxu0 %v6814_v2 }
 0x208   : > { %5360 = vmatmul.mubr.bf16.gmra.mrb[56].mxu1 %v7550_v23 }
 0x209   : > { %5816 = vmatmul.mubr.bf16.gmra.mrb[12].mxu0 %v3412_v33  ;;  %5363 = vmatprep.mubr.msk.bf16.mxu1 %vm6815_vm0, %v6814_v2  ;;  %v3394_v33 = vld [vmem:[#allocation2 + $0xf5] sm:$0xff] }
 0x20a   : > { %5819 = vmatprep.mubr.msk.bf16.mxu0 %vm6815_vm0, %v6814_v2  ;;  %5900 = vmatpush3.bf16.msra.mxu0 %v6795_v28  ;;  %v3395_v28 = vld [vmem:[#allocation2 + $0xfd] sm:$0xff] }
 0x20b   : > { %5901 = vmatprep.subr.bf16.mxu0 %v6814_v2  ;;  %v3422_v31 = vpack.c.bf16 %v3395_v28, %v3394_v33  ;;  %v3838_v33 = vld [vmem:[#allocation2 + $0xc6] sm:$0xff]  ;;  %v3839_v28 = vld [vmem:[#allocation2 + $0xce] sm:$0xff] }
 0x20e   : > { %5902 = vmatpush3.bf16.msra.mxu0 %v6796_v36  ;;  %v6803_v36 = vld [vmem:[%s7895_s1 + $0x130] sm:$0xff]  }
 0x210   : > { %5364 = vmatmul.mubr.bf16.gmra.mrb[60].mxu1 %v7565_v37 }
 0x211   : > { %5820 = vmatmul.mubr.bf16.gmra.mrb[16].mxu0 %v3413_v52  ;;  %5367 = vmatprep.mubr.msk.bf16.mxu1 %vm6815_vm0, %v6814_v2  ;;  %v3423_v52 = vpack.c.bf16 %v3397_v34, %v3396_v42  ;;  %v2043_v42 = vld [vmem:[#allocation2 + $0xdb] sm:$0xff] }
 0x212   : > { %5823 = vmatprep.mubr.msk.bf16.mxu0 %vm6815_vm0, %v6814_v2  ;;  %v3840_v34 = vld [vmem:[#allocation2 + $0xd6] sm:$0xff] }
 0x218   : > { %5368 = vmatmul.mubr.bf16.gmra.mrb[64].mxu1 %v7572_v45 }
 0x219   : > { %5824 = vmatmul.mubr.bf16.gmra.mrb[20].mxu0 %v3414_v46  ;;  %5371 = vmatprep.mubr.msk.bf16.mxu1 %vm6815_vm0, %v6814_v2 }
 0x21a   : > { %5827 = vmatprep.mubr.msk.bf16.mxu0 %vm6815_vm0, %v6814_v2 }
 0x220   : > { %5372 = vmatmul.mubr.bf16.gmra.mrb[68].mxu1 %v7579_v51 }
 0x221   : > { %5828 = vmatmul.mubr.bf16.gmra.mrb[24].mxu0 %v3415_v26  ;;  %5375 = vmatprep.mubr.msk.bf16.mxu1 %vm6815_vm0, %v6814_v2  ;;  %v3407_v26 = vld [vmem:[#allocation2 + $0x15d] sm:$0xff] }
 0x222   : > { %5831 = vmatprep.mubr.msk.bf16.mxu0 %vm6815_vm0, %v6814_v2 }
 0x228   : > { %5376 = vmatmul.mubr.bf16.gmra.mrb[72].mxu1 %v7586_v57 }
 0x229   : > { %5832 = vmatmul.mubr.bf16.gmra.mrb[28].mxu0 %v3416_v58  ;;  %5379 = vmatprep.mubr.msk.bf16.mxu1 %vm6815_vm0, %v6814_v2  ;;  %v3821_v58 = vld [vmem:[#allocation2 + $0x3e] sm:$0xff] }
 0x22a   : > { %5835 = vmatprep.mubr.msk.bf16.mxu0 %vm6815_vm0, %v6814_v2 }
 0x230   : > { %5380 = vmatmul.mubr.bf16.gmra.mrb[76].mxu1 %v7593_v1 }
 0x231   : > { %5836 = vmatmul.mubr.bf16.gmra.mrb[32].mxu0 %v3417_v49  ;;  %5383 = vmatprep.mubr.msk.bf16.mxu1 %vm6815_vm0, %v6814_v2 }
 0x232   : > { %5839 = vmatprep.mubr.msk.bf16.mxu0 %vm6815_vm0, %v6814_v2 }
 0x238   : > { %5384 = vmatmul.mubr.bf16.gmra.mrb[80].mxu1 %v1179_v8  ;;  %v3829_v8 = vld [vmem:[#allocation2 + $0x7e] sm:$0xff] }
 0x239   : > { %5840 = vmatmul.mubr.bf16.gmra.mrb[36].mxu0 %v3418_v61  ;;  %5403 = vmatprep.mubr.msk.bf16.mxu1 %vm6815_vm0, %v6814_v2 }
 0x23a   : > { %5843 = vmatprep.mubr.msk.bf16.mxu0 %vm6815_vm0, %v6814_v2 }
 0x240   : > { %5404 = vmatmul.mubr.bf16.vlgmr.msra.gmra.mrb[0].mxu1 %v7402_v20  ;;  %v6798_v20 = vld [vmem:[%s7895_s1 + $0x108] sm:$0xff]  }
 0x241   : > { %5844 = vmatmul.mubr.bf16.gmra.mrb[40].mxu0 %v3419_v12  ;;  %5995 = vmatpush3.bf16.msra.mxu1 %v6797_v13  ;;  %v3833_v12 = vld [vmem:[#allocation2 + $0x9e] sm:$0xff] }
 0x242   : > { %5407 = vmatprep.mubr.msk.bf16.mxu1 %vm6815_vm0, %v6814_v2  ;;  %5847 = vmatprep.mubr.msk.bf16.mxu0 %vm6815_vm0, %v6814_v2 }
 0x243   : > { %5988 = vmatprep.subr.bf16.mxu1 %v6814_v2 }
 0x245   : > { %5996 = vmatpush3.bf16.msra.mxu1 %v6798_v20 }
 0x246   : > { %5989 = vmatprep.subr.bf16.mxu1 %v6814_v2 }
 0x248   : > { %5408 = vmatmul.mubr.bf16.gmra.mrb[4].mxu1 %v7418_v25  ;;  %v6800_v25 = vld [vmem:[%s7895_s1 + $0x118] sm:$0xff]  }
 0x249   : > { %5848 = vmatmul.mubr.bf16.gmra.mrb[44].mxu0 %v3420_v17  ;;  %5411 = vmatprep.mubr.msk.bf16.mxu1 %vm6815_vm0, %v6814_v2  ;;  %v1628_v17 = vpack.c.bf16 %v1607_v14, %v7598_v5  ;;  %v2040_v5 = vld [vmem:[#allocation2 + $0xc3] sm:$0xff] }
 0x24a   : > { %5851 = vmatprep.mubr.msk.bf16.mxu0 %vm6815_vm0, %v6814_v2  ;;  %5997 = vmatpush3.bf16.msra.mxu1 %v6799_v21  ;;  %v1629_v21 = vpack.c.bf16 %v1608_v15, %v1608_v15  ;;  %v3854_v15 = vld [vmem:[#allocation2 + $0x146] sm:$0xff] }
 0x24b   : > { %5990 = vmatprep.subr.bf16.mxu1 %v6814_v2 }
 0x24e   : > { %5998 = vmatpush3.bf16.msra.mxu1 %v6800_v25  ;;  %v2041_v25 = vld [vmem:[#allocation2 + $0xcb] sm:$0xff] }
 0x24f   : > { %5991 = vmatprep.subr.bf16.mxu1 %v6814_v2 }
 0x250   : > { %5412 = vmatmul.mubr.bf16.gmra.mrb[8].mxu1 %v7434_v32  ;;  %v6802_v32 = vld [vmem:[%s7895_s1 + $0x128] sm:$0xff]  }
 0x251   : > { %5852 = vmatmul.mubr.bf16.gmra.mrb[48].mxu0 %v3421_v22  ;;  %5415 = vmatprep.mubr.msk.bf16.mxu1 %vm6815_vm0, %v6814_v2 }
 0x252   : > { %5855 = vmatprep.mubr.msk.bf16.mxu0 %vm6815_vm0, %v6814_v2  ;;  %5999 = vmatpush3.bf16.msra.mxu1 %v6801_v29  ;;  %v2070_v29 = vpack.c.bf16 %v2041_v25, %v2040_v5 }
 0x253   : > { %5992 = vmatprep.subr.bf16.mxu1 %v6814_v2 }
 0x256   : > { %6000 = vmatpush3.bf16.msra.mxu1 %v6802_v32  ;;  %v2042_v32 = vld [vmem:[#allocation2 + $0xd3] sm:$0xff] }
 0x257   : > { %5993 = vmatprep.subr.bf16.mxu1 %v6814_v2 }
 0x258   : > { %5416 = vmatmul.mubr.bf16.gmra.mrb[12].mxu1 %v7450_v38  ;;  %v6804_v38 = vld [vmem:[%s7895_s1 + $0x138] sm:$0xff]  }
 0x259   : > { %5856 = vmatmul.mubr.bf16.gmra.mrb[52].mxu0 %v3422_v31  ;;  %5419 = vmatprep.mubr.msk.bf16.mxu1 %vm6815_vm0, %v6814_v2  ;;  %v3869_v31 = vpack.c.bf16 %v3839_v28, %v3838_v33  ;;  %v2058_v28 = vld [vmem:[#allocation2 + $0x153] sm:$0xff] }
 0x25a   : > { %5859 = vmatprep.mubr.msk.bf16.mxu0 %vm6815_vm0, %v6814_v2  ;;  %6001 = vmatpush3.bf16.msra.mxu1 %v6803_v36  ;;  %v3841_v36 = vld [vmem:[#allocation2 + $0xde] sm:$0xff] }
 0x25b   : > { %5994 = vmatprep.subr.bf16.mxu1 %v6814_v2 }
 0x25e   : > { %6002 = vmatpush3.bf16.msra.mxu1 %v6804_v38  ;;  %v3870_v38 = vpack.c.bf16 %v3841_v36, %v3840_v34  ;;  %v2079_v34 = vpack.c.bf16 %v2058_v28, %v2058_v28 }
 0x260   : > { %5420 = vmatmul.mubr.bf16.gmra.mrb[16].mxu1 %v7459_v40  ;;  %v3400_v40 = vld [vmem:[#allocation2 + $0x125] sm:$0xff] }
 0x261   : > { %5860 = vmatmul.mubr.bf16.gmra.mrb[56].mxu0 %v3423_v52  ;;  %5423 = vmatprep.mubr.msk.bf16.mxu1 %vm6815_vm0, %v6814_v2  ;;  %v3425_v46 = vpack.c.bf16 %v3401_v19, %v3400_v40  ;;  %v2071_v52 = vpack.c.bf16 %v2043_v42, %v2042_v32  ;;  %v3843_v40 = vld [vmem:[#allocation2 + $0xee] sm:$0xff]  ;;  %v2072_v19 = vpack.c.bf16 %v2045_v41, %v2044_v39  ;;  %v3858_v39 = vld [vmem:[#allocation2 + $0x166] sm:$0xff] }
 0x262   : > { %5863 = vmatprep.mubr.msk.bf16.mxu0 %vm6815_vm0, %v6814_v2 }
 0x268   : > { %5424 = vmatmul.mubr.bf16.gmra.mrb[20].mxu1 %v7467_v59  ;;  %v3402_v59 = vld [vmem:[#allocation2 + $0x135] sm:$0xff] }
 0x269   : > { %5864 = vmatmul.mubr.bf16.gmra.mrb[60].mxu0 %v3424_v44  ;;  %5427 = vmatprep.mubr.msk.bf16.mxu1 %vm6815_vm0, %v6814_v2  ;;  %v3426_v48 = vpack.c.bf16 %v3403_v47, %v3402_v59  ;;  %v3842_v44 = vld [vmem:[#allocation2 + $0xe6] sm:$0xff]  ;;  %v2046_v59 = vld [vmem:[#allocation2 + $0xf3] sm:$0xff]  ;;  %v2047_v47 = vld [vmem:[#allocation2 + $0xfb] sm:$0xff] }
 0x26a   : > { %5867 = vmatprep.mubr.msk.bf16.mxu0 %vm6815_vm0, %v6814_v2 }
 0x270   : > { %5428 = vmatmul.mubr.bf16.gmra.mrb[24].mxu1 %v7475_v3  ;;  %v3404_v3 = vld [vmem:[#allocation2 + $0x145] sm:$0xff] }
 0x271   : > { %5868 = vmatmul.mubr.bf16.gmra.mrb[64].mxu0 %v3425_v46  ;;  %5431 = vmatprep.mubr.msk.bf16.mxu1 %vm6815_vm0, %v6814_v2  ;;  %v3427_v18 = vpack.c.bf16 %v3405_v27, %v3404_v3  ;;  %v3871_v46 = vpack.c.bf16 %v3843_v40, %v3842_v44  ;;  %v3845_v3 = vld [vmem:[#allocation2 + $0xfe] sm:$0xff]  ;;  %v2073_v27 = vpack.c.bf16 %v2047_v47, %v2046_v59 }
 0x272   : > { %5871 = vmatprep.mubr.msk.bf16.mxu0 %vm6815_vm0, %v6814_v2 }
 0x278   : > { %5432 = vmatmul.mubr.bf16.gmra.mrb[28].mxu1 %v7483_v11  ;;  %v3406_v11 = vld [vmem:[#allocation2 + $0x155] sm:$0xff] }
 0x279   : > { %5872 = vmatmul.mubr.bf16.gmra.mrb[68].mxu0 %v3426_v48  ;;  %5435 = vmatprep.mubr.msk.bf16.mxu1 %vm6815_vm0, %v6814_v2  ;;  %v3428_v53 = vpack.c.bf16 %v3407_v26, %v3406_v11  ;;  %v3844_v48 = vld [vmem:[#allocation2 + $0xf6] sm:$0xff]  ;;  %v2048_v11 = vld [vmem:[#allocation2 + $0x103] sm:$0xff]  ;;  %v2049_v26 = vld [vmem:[#allocation2 + $0x10b] sm:$0xff] }
 0x27a   : > { %5875 = vmatprep.mubr.msk.bf16.mxu0 %vm6815_vm0, %v6814_v2 }
 0x280   : > { %5436 = vmatmul.mubr.bf16.gmra.mrb[32].mxu1 %v7491_v50  ;;  %v3408_v50 = vld [vmem:[#allocation2 + $0x165] sm:$0xff] }
 0x281   : > { %5876 = vmatmul.mubr.bf16.gmra.mrb[72].mxu0 %v3427_v18  ;;  %5439 = vmatprep.mubr.msk.bf16.mxu1 %vm6815_vm0, %v6814_v2  ;;  %v3429_v54 = vpack.c.bf16 %v3408_v50, %v3408_v50  ;;  %v3872_v18 = vpack.c.bf16 %v3845_v3, %v3844_v48  ;;  %v3847_v50 = vld [vmem:[#allocation2 + $0x10e] sm:$0xff] }
 0x282   : > { %5879 = vmatprep.mubr.msk.bf16.mxu0 %vm6815_vm0, %v6814_v2 }
 0x288   : > { %5440 = vmatmul.mubr.bf16.gmra.mrb[36].mxu1 %v7499_v35  ;;  %v3819_v35 = vld [vmem:[#allocation2 + $0x2e] sm:$0xff] }
 0x289   : > { %5880 = vmatmul.mubr.bf16.gmra.mrb[76].mxu0 %v3428_v53  ;;  %5443 = vmatprep.mubr.msk.bf16.mxu1 %vm6815_vm0, %v6814_v2  ;;  %v3859_v30 = vpack.c.bf16 %v3819_v35, %v3818_v56  ;;  %v3846_v53 = vld [vmem:[#allocation2 + $0x106] sm:$0xff]  ;;  %v2050_v35 = vld [vmem:[#allocation2 + $0x113] sm:$0xff] }
 0x28a   : > { %5883 = vmatprep.mubr.msk.bf16.mxu0 %vm6815_vm0, %v6814_v2  ;;  %v3873_v56 = vpack.c.bf16 %v3847_v50, %v3846_v53 }
 0x290   : > { %5444 = vmatmul.mubr.bf16.gmra.mrb[40].mxu1 %v7506_v43  ;;  %v3820_v43 = vld [vmem:[#allocation2 + $0x36] sm:$0xff] }
 0x291   : > { %5884 = vmatmul.mubr.bf16.gmra.mrb[80].mxu0 %v3429_v54  ;;  %5447 = vmatprep.mubr.msk.bf16.mxu1 %vm6815_vm0, %v6814_v2  ;;  %v3860_v60 = vpack.c.bf16 %v3821_v58, %v3820_v43  ;;  %v2074_v54 = vpack.c.bf16 %v2049_v26, %v2048_v11  ;;  %v3848_v43 = vld [vmem:[#allocation2 + $0x116] sm:$0xff]  ;;  %v3849_v58 = vld [vmem:[#allocation2 + $0x11e] sm:$0xff] }
 0x292   : > { %5903 = vmatprep.mubr.msk.bf16.mxu0 %vm6815_vm0, %v6814_v2 }
 0x298   : > { %5448 = vmatmul.mubr.bf16.gmra.mrb[44].mxu1 %v7520_v55  ;;  %v3822_v55 = vld [vmem:[#allocation2 + $0x46] sm:$0xff] }
 0x299   : > { %5904 = vmatmul.mubr.bf16.vlgmr.msra.gmra.mrb[0].mxu0 %v3859_v30  ;;  %5451 = vmatprep.mubr.msk.bf16.mxu1 %vm6815_vm0, %v6814_v2  ;;  %v3861_v63 = vpack.c.bf16 %v3823_v62, %v3822_v55  ;;  %v2051_v30 = vld [vmem:[#allocation2 + $0x11b] sm:$0xff]  ;;  %v3874_v55 = vpack.c.bf16 %v3849_v58, %v3848_v43  ;;  %v2052_v62 = vld [vmem:[#allocation2 + $0x123] sm:$0xff] }
 0x29a   : > { %5907 = vmatprep.mubr.msk.bf16.mxu0 %vm6815_vm0, %v6814_v2 }
 0x2a0   : > { %5452 = vmatmul.mubr.bf16.gmra.mrb[48].mxu1 %v7535_v9  ;;  %v3824_v9 = vld [vmem:[#allocation2 + $0x56] sm:$0xff] }
 0x2a1   : > { %5908 = vmatmul.mubr.bf16.gmra.mrb[4].mxu0 %v3860_v60  ;;  %5455 = vmatprep.mubr.msk.bf16.mxu1 %vm6815_vm0, %v6814_v2  ;;  %v3862_v49 = vpack.c.bf16 %v3825_v0, %v3824_v9  ;;  %v2075_v60 = vpack.c.bf16 %v2051_v30, %v2050_v35  ;;  %v3850_v9 = vld [vmem:[#allocation2 + $0x126] sm:$0xff]  ;;  %v3851_v0 = vld [vmem:[#allocation2 + $0x12e] sm:$0xff] }
 0x2a2   : > { %5911 = vmatprep.mubr.msk.bf16.mxu0 %vm6815_vm0, %v6814_v2 }
 0x2a8   : > { %5456 = vmatmul.mubr.bf16.gmra.mrb[52].mxu1 %v7550_v23  ;;  %v3826_v23 = vld [vmem:[#allocation2 + $0x66] sm:$0xff] }
 0x2a9   : > { %5912 = vmatmul.mubr.bf16.gmra.mrb[8].mxu0 %v3861_v63  ;;  %5459 = vmatprep.mubr.msk.bf16.mxu1 %vm6815_vm0, %v6814_v2  ;;  %v3863_v7 = vpack.c.bf16 %v3827_v6, %v3826_v23  ;;  %v2053_v63 = vld [vmem:[#allocation2 + $0x12b] sm:$0xff] }
 0x2aa   : > { %5915 = vmatprep.mubr.msk.bf16.mxu0 %vm6815_vm0, %v6814_v2  ;;  %v2076_v6 = vpack.c.bf16 %v2053_v63, %v2052_v62 }
 0x2b0   : > { %5460 = vmatmul.mubr.bf16.gmra.mrb[56].mxu1 %v7565_v37  ;;  %v3828_v37 = vld [vmem:[#allocation2 + $0x76] sm:$0xff] }
 0x2b1   : > { %5916 = vmatmul.mubr.bf16.gmra.mrb[12].mxu0 %v3862_v49  ;;  %5463 = vmatprep.mubr.msk.bf16.mxu1 %vm6815_vm0, %v6814_v2  ;;  %v3864_v61 = vpack.c.bf16 %v3829_v8, %v3828_v37  ;;  %v3875_v37 = vpack.c.bf16 %v3851_v0, %v3850_v9 }
 0x2b2   : > { %5919 = vmatprep.mubr.msk.bf16.mxu0 %vm6815_vm0, %v6814_v2 }
 0x2b8   : > { %5464 = vmatmul.mubr.bf16.gmra.mrb[60].mxu1 %v7572_v45  ;;  %v3830_v45 = vld [vmem:[#allocation2 + $0x86] sm:$0xff] }
 0x2b9   : > { %5920 = vmatmul.mubr.bf16.gmra.mrb[16].mxu0 %v3863_v7  ;;  %5467 = vmatprep.mubr.msk.bf16.mxu1 %vm6815_vm0, %v6814_v2  ;;  %v3865_v4 = vpack.c.bf16 %v3831_v10, %v3830_v45  ;;  %v2055_v45 = vld [vmem:[#allocation2 + $0x13b] sm:$0xff] }
 0x2ba   : > { %5923 = vmatprep.mubr.msk.bf16.mxu0 %vm6815_vm0, %v6814_v2  ;;  %v3852_v10 = vld [vmem:[#allocation2 + $0x136] sm:$0xff] }
 0x2c0   : > { %5468 = vmatmul.mubr.bf16.gmra.mrb[64].mxu1 %v7579_v51  ;;  %v3832_v51 = vld [vmem:[#allocation2 + $0x96] sm:$0xff] }
 0x2c1   : > { %5924 = vmatmul.mubr.bf16.gmra.mrb[20].mxu0 %v3864_v61  ;;  %5471 = vmatprep.mubr.msk.bf16.mxu1 %vm6815_vm0, %v6814_v2  ;;  %v3866_v13 = vpack.c.bf16 %v3833_v12, %v3832_v51  ;;  %v2054_v61 = vld [vmem:[#allocation2 + $0x133] sm:$0xff] }
 0x2c2   : > { %5927 = vmatprep.mubr.msk.bf16.mxu0 %vm6815_vm0, %v6814_v2 }
 0x2c8   : > { %5472 = vmatmul.mubr.bf16.gmra.mrb[68].mxu1 %v7586_v57  ;;  %v3834_v57 = vld [vmem:[#allocation2 + $0xa6] sm:$0xff] }
 0x2c9   : > { %5928 = vmatmul.mubr.bf16.gmra.mrb[24].mxu0 %v3865_v4  ;;  %5475 = vmatprep.mubr.msk.bf16.mxu1 %vm6815_vm0, %v6814_v2  ;;  %v3867_v20 = vpack.c.bf16 %v3835_v16, %v3834_v57  ;;  %v3853_v4 = vld [vmem:[#allocation2 + $0x13e] sm:$0xff] }
 0x2ca   : > { %5931 = vmatprep.mubr.msk.bf16.mxu0 %vm6815_vm0, %v6814_v2  ;;  %v3876_v57 = vpack.c.bf16 %v3853_v4, %v3852_v10 }
 0x2d0   : > { %5476 = vmatmul.mubr.bf16.gmra.mrb[72].mxu1 %v7593_v1  ;;  %v3836_v1 = vld [vmem:[#allocation2 + $0xb6] sm:$0xff] }
 0x2d1   : > { %5932 = vmatmul.mubr.bf16.gmra.mrb[28].mxu0 %v3866_v13  ;;  %5479 = vmatprep.mubr.msk.bf16.mxu1 %vm6815_vm0, %v6814_v2  ;;  %v3868_v22 = vpack.c.bf16 %v3837_v24, %v3836_v1  ;;  %v2077_v13 = vpack.c.bf16 %v2055_v45, %v2054_v61  ;;  %v3855_v1 = vld [vmem:[#allocation2 + $0x14e] sm:$0xff] }
 0x2d2   : > { %5935 = vmatprep.mubr.msk.bf16.mxu0 %vm6815_vm0, %v6814_v2  ;;  %v3877_v25 = vpack.c.bf16 %v3855_v1, %v3854_v15 }
 0x2d8   : > { %5480 = vmatmul.mubr.bf16.gmra.mrb[76].mxu1 %v1628_v17  ;;  %v2056_v17 = vld [vmem:[#allocation2 + $0x143] sm:$0xff] }
 0x2d9   : > { %5936 = vmatmul.mubr.bf16.gmra.mrb[32].mxu0 %v3867_v20  ;;  %5483 = vmatprep.mubr.msk.bf16.mxu1 %vm6815_vm0, %v6814_v2  ;;  %v2057_v20 = vld [vmem:[#allocation2 + $0x14b] sm:$0xff] }
 0x2da   : > { %5939 = vmatprep.mubr.msk.bf16.mxu0 %vm6815_vm0, %v6814_v2 }
 0x2e0   : > { %5484 = vmatmul.mubr.bf16.gmra.mrb[80].mxu1 %v1629_v21 }
 0x2e1   : > { %5940 = vmatmul.mubr.bf16.gmra.mrb[36].mxu0 %v3868_v22  ;;  %5547 = vmatprep.mubr.msk.bf16.mxu1 %vm6815_vm0, %v6814_v2  ;;  %v2078_v22 = vpack.c.bf16 %v2057_v20, %v2056_v17 }
 0x2e2   : > { %5943 = vmatprep.mubr.msk.bf16.mxu0 %vm6815_vm0, %v6814_v2 }
 0x2e8   : > { %5548 = vmatmul.mubr.bf16.vlgmr.msra.gmra.mrb[44].mxu1 %v2070_v29  ;;  %v3856_v29 = vld [vmem:[#allocation2 + $0x156] sm:$0xff] }
 0x2e9   : > { %5944 = vmatmul.mubr.bf16.gmra.mrb[40].mxu0 %v3869_v31  ;;  %5551 = vmatprep.mubr.msk.bf16.mxu1 %vm6815_vm0, %v6814_v2  ;;  %v3857_v31 = vld [vmem:[#allocation2 + $0x15e] sm:$0xff] }
 0x2ea   : > { %5947 = vmatprep.mubr.msk.bf16.mxu0 %vm6815_vm0, %v6814_v2 }
 0x2f0   : > { %5552 = vmatmul.mubr.bf16.gmra.mrb[48].mxu1 %v2071_v52  ;;  %v3878_v52 = vpack.c.bf16 %v3857_v31, %v3856_v29 }
 0x2f1   : > { %5948 = vmatmul.mubr.bf16.gmra.mrb[44].mxu0 %v3870_v38  ;;  %5555 = vmatprep.mubr.msk.bf16.mxu1 %vm6815_vm0, %v6814_v2 }
 0x2f2   : > { %5951 = vmatprep.mubr.msk.bf16.mxu0 %vm6815_vm0, %v6814_v2 }
 0x2f8   : > { %5556 = vmatmul.mubr.bf16.gmra.mrb[52].mxu1 %v2072_v19  ;;  %v3879_v19 = vpack.c.bf16 %v3858_v39, %v3858_v39 }
 0x2f9   : > { %5952 = vmatmul.mubr.bf16.gmra.mrb[48].mxu0 %v3871_v46  ;;  %5559 = vmatprep.mubr.msk.bf16.mxu1 %vm6815_vm0, %v6814_v2 }
 0x2fa   : > { %5955 = vmatprep.mubr.msk.bf16.mxu0 %vm6815_vm0, %v6814_v2 }
 0x300   : > { %5560 = vmatmul.mubr.bf16.gmra.mrb[56].mxu1 %v2073_v27 }
 0x301   : > { %5956 = vmatmul.mubr.bf16.gmra.mrb[52].mxu0 %v3872_v18  ;;  %5563 = vmatprep.mubr.msk.bf16.mxu1 %vm6815_vm0, %v6814_v2 }
 0x302   : > { %5959 = vmatprep.mubr.msk.bf16.mxu0 %vm6815_vm0, %v6814_v2 }
 0x308   : > { %5564 = vmatmul.mubr.bf16.gmra.mrb[60].mxu1 %v2074_v54 }
 0x309   : > { %5960 = vmatmul.mubr.bf16.gmra.mrb[56].mxu0 %v3873_v56  ;;  %5567 = vmatprep.mubr.msk.bf16.mxu1 %vm6815_vm0, %v6814_v2 }
 0x30a   : > { %5963 = vmatprep.mubr.msk.bf16.mxu0 %vm6815_vm0, %v6814_v2 }
 0x310   : > { %5568 = vmatmul.mubr.bf16.gmra.mrb[64].mxu1 %v2075_v60 }
 0x311   : > { %5964 = vmatmul.mubr.bf16.gmra.mrb[60].mxu0 %v3874_v55  ;;  %5571 = vmatprep.mubr.msk.bf16.mxu1 %vm6815_vm0, %v6814_v2 }
 0x312   : > { %5967 = vmatprep.mubr.msk.bf16.mxu0 %vm6815_vm0, %v6814_v2 }
 0x313   : > { %v7767_v49 = vpop.f32.mrb[0].mxu1 }
 0x314   : > { %v5405_v23 = vpop.f32.mrb[1].mxu1 }
 0x315   : > { %v7769_v7 = vpop.f32.mrb[2].mxu1 }
 0x316   : > { %v5406_v8 = vpop.f32.mrb[3].mxu1 }
 0x318   : > { %5572 = vmatmul.mubr.bf16.gmra.mrb[68].mxu1 %v2076_v6 }
 0x319   : > { %5968 = vmatmul.mubr.bf16.gmra.mrb[64].mxu0 %v3875_v37  ;;  %5575 = vmatprep.mubr.msk.bf16.mxu1 %vm6815_vm0, %v6814_v2 }
 0x31a   : > { %5971 = vmatprep.mubr.msk.bf16.mxu0 %vm6815_vm0, %v6814_v2 }
 0x31b   : > { %v7775_v51 = vpop.f32.mrb[4].mxu1 }
 0x31c   : > { %v5409_v12 = vpop.f32.mrb[5].mxu1 }
 0x31d   : > { %v7777_v14 = vpop.f32.mrb[6].mxu1 }
 0x31e   : > { %v5410_v16 = vpop.f32.mrb[7].mxu1 }
 0x320   : > { %5576 = vmatmul.mubr.bf16.gmra.mrb[72].mxu1 %v2077_v13 }
 0x321   : > { %5972 = vmatmul.mubr.bf16.gmra.mrb[68].mxu0 %v3876_v57  ;;  %5579 = vmatprep.mubr.msk.bf16.mxu1 %vm6815_vm0, %v6814_v2 }
 0x322   : > { %5975 = vmatprep.mubr.msk.bf16.mxu0 %vm6815_vm0, %v6814_v2 }
 0x323   : > { %v7783_v24 = vpop.f32.mrb[8].mxu1 }
 0x324   : > { %v5413_v21 = vpop.f32.mrb[9].mxu1 }
 0x325   : > { %v7785_v5 = vpop.f32.mrb[10].mxu1 }
 0x326   : > { %v5414_v33 = vpop.f32.mrb[11].mxu1 }
 0x328   : > { %5580 = vmatmul.mubr.bf16.gmra.mrb[76].mxu1 %v2078_v22 }
 0x329   : > { %5976 = vmatmul.mubr.bf16.gmra.mrb[72].mxu0 %v3877_v25  ;;  %5583 = vmatprep.mubr.msk.bf16.mxu1 %vm6815_vm0, %v6814_v2 }
 0x32a   : > { %5979 = vmatprep.mubr.msk.bf16.mxu0 %vm6815_vm0, %v6814_v2 }
 0x32b   : > { %v7791_v32 = vpop.f32.mrb[12].mxu1 }
 0x32c   : > { %v5417_v42 = vpop.f32.mrb[13].mxu1 }
 0x32d   : > { %v7793_v36 = vpop.f32.mrb[14].mxu1 }
 0x32e   : > { %v5418_v38 = vpop.f32.mrb[15].mxu1 }
 0x330   : > { %5584 = vmatmul.mubr.bf16.gmra.mrb[80].mxu1 %v2079_v34 }
 0x331   : > { %5980 = vmatmul.mubr.bf16.gmra.mrb[76].mxu0 %v3878_v52 }
 0x332   : > { %5983 = vmatprep.mubr.msk.bf16.mxu0 %vm6815_vm0, %v6814_v2 }
 0x333   : > { %v7797_v41 = vpop.f32.mrb[16].mxu1 }
 0x334   : > { %v5421_v44 = vpop.f32.mrb[17].mxu1 }
 0x335   : > { %v7799_v40 = vpop.f32.mrb[18].mxu1 }
 0x336   : > { %v5422_v46 = vpop.f32.mrb[19].mxu1 }
 0x339   : > { %5984 = vmatmul.mubr.bf16.gmra.mrb[80].mxu0 %v3879_v19 }
 0x33b   : > { %v7801_v59 = vpop.f32.mrb[20].mxu1 }
 0x33c   : > { %v5425_v47 = vpop.f32.mrb[21].mxu1 }
 0x33d   : > { %v7803_v48 = vpop.f32.mrb[22].mxu1 }
 0x33e   : > { %v5426_v3 = vpop.f32.mrb[23].mxu1 }
 0x343   : > { %v7805_v27 = vpop.f32.mrb[24].mxu1 }
 0x344   : > { %v5429_v18 = vpop.f32.mrb[25].mxu1 }
 0x345   : > { %v7807_v11 = vpop.f32.mrb[26].mxu1 }
 0x346   : > { %v5430_v2 = vpop.f32.mrb[27].mxu1 }
 0x34b   : > { %v7809_v26 = vpop.f32.mrb[28].mxu1 }
 0x34c   : > { %v5433_v53 = vpop.f32.mrb[29].mxu1 }
 0x34d   : > { %v7811_v50 = vpop.f32.mrb[30].mxu1 }
 0x34e   : > { %v5434_v54 = vpop.f32.mrb[31].mxu1 }
 0x353   : > { %v7813_v56 = vpop.f32.mrb[32].mxu1 }
 0x354   : > { %v5437_v35 = vpop.f32.mrb[33].mxu1 }
 0x355   : > { %v7815_v30 = vpop.f32.mrb[34].mxu1 }
 0x356   : > { %v5438_v43 = vpop.f32.mrb[35].mxu1 }
 0x35b   : > { %v7817_v58 = vpop.f32.mrb[36].mxu1 }
 0x35c   : > { %v5441_v60 = vpop.f32.mrb[37].mxu1 }
 0x35d   : > { %v7819_v55 = vpop.f32.mrb[38].mxu1 }
 0x35e   : > { %v5442_v62 = vpop.f32.mrb[39].mxu1 }
 0x363   : > { %v7821_v63 = vpop.f32.mrb[40].mxu1 }
 0x364   : > { %v5445_v9 = vpop.f32.mrb[41].mxu1 }
 0x365   : > { %v7823_v0 = vpop.f32.mrb[42].mxu1 }
 0x366   : > { %v5446_v23 = vpop.f32.mrb[43].mxu1 }
 0x36c   : > { %v3979_v6 = vpop.f32.mrb[0].mxu0 }
 0x36d   : > { %v6005_v37 = vadd.f32 %v3979_v6, %v7767_v49  ;;  %v5905_v8 = vpop.f32.mrb[1].mxu0 }
 0x36e   : > { %v3982_v61 = vpop.f32.mrb[2].mxu0 }
 0x36f   : > { %4270 = vst [vmem:[%s6852_s21] sm:$0xff] %v6005_v37  ;;  %v6008_v45 = vadd.f32 %v3982_v61, %v7769_v7  ;;  %v5906_v10 = vpop.f32.mrb[3].mxu0  ;;  %v4420_v4 = vmul.f32 %v6005_v37, %v6005_v37 }
 0x371   : > { %4271 = vst [vmem:[%s6852_s21 + $0x8] sm:$0xff] %v6008_v45  ;;  %v4380_v12 = vadd.f32 %v6008_v45, %v6005_v37  ;;  %v4421_v13 = vmul.f32 %v6008_v45, %v6008_v45 }
 0x373   : > { %v4452_v57 = vadd.f32 %v4421_v13, %v4420_v4 }
 0x374   : > { %v3987_v16 = vpop.f32.mrb[4].mxu0 }
 0x375   : > { %v6011_v17 = vadd.f32 %v3987_v16, %v7775_v51  ;;  %v5909_v20 = vpop.f32.mrb[5].mxu0 }
 0x376   : > { %v3990_v15 = vpop.f32.mrb[6].mxu0 }
 0x377   : > { %4229 = vst [vmem:[#allocation3 + $0x10] sm:$0xff] %v6011_v17  ;;  %v6014_v49 = vadd.f32 %v3990_v15, %v7777_v14  ;;  %v5910_v1 = vpop.f32.mrb[7].mxu0 }
 0x379   : > { %4230 = vst [vmem:[#allocation3 + $0x18] sm:$0xff] %v6014_v49 }
 0x37c   : > { %v3995_v21 = vpop.f32.mrb[8].mxu0 }
 0x37d   : > { %v6017_v7 = vadd.f32 %v3995_v21, %v7783_v24  ;;  %v5913_v22 = vpop.f32.mrb[9].mxu0 }
 0x37e   : > { %v3998_v25 = vpop.f32.mrb[10].mxu0 }
 0x37f   : > { %4231 = vst [vmem:[#allocation3 + $0x20] sm:$0xff] %v6017_v7  ;;  %v6020_v33 = vadd.f32 %v3998_v25, %v7785_v5  ;;  %v5914_v28 = vpop.f32.mrb[11].mxu0 }
 0x380   : > { %v4272_v29 = vld [vmem:[#allocation3 + $0x12] sm:$0xff] }
 0x381   : > { %4792 = vst [vmem:[%s6852_s21 + $0x10] sm:$0xff] %v4272_v29  ;;  %v4381_v51 = vadd.f32 %v4380_v12, %v4272_v29  ;;  %v4422_v31 = vmul.f32 %v4272_v29, %v4272_v29  ;;  %4232 = vst [vmem:[#allocation3 + $0x28] sm:$0xff] %v6020_v33 }
 0x383   : > { %v4453_v42 = vadd.f32 %v4452_v57, %v4422_v31 }
 0x384   : > { %v4003_v14 = vpop.f32.mrb[12].mxu0 }
 0x385   : > { %v6023_v34 = vadd.f32 %v4003_v14, %v7791_v32  ;;  %v5917_v52 = vpop.f32.mrb[13].mxu0 }
 0x386   : > { %v4273_v38 = vld [vmem:[#allocation3 + $0x1a] sm:$0xff]  ;;  %v4006_v24 = vpop.f32.mrb[14].mxu0 }
 0x387   : > { %4793 = vst [vmem:[%s6852_s21 + $0x18] sm:$0xff] %v4273_v38  ;;  %v4382_v39 = vadd.f32 %v4381_v51, %v4273_v38  ;;  %v4423_v44 = vmul.f32 %v4273_v38, %v4273_v38  ;;  %4233 = vst [vmem:[#allocation3 + $0x30] sm:$0xff] %v6023_v34  ;;  %v6026_v5 = vadd.f32 %v4006_v24, %v7793_v36  ;;  %v5918_v19 = vpop.f32.mrb[15].mxu0 }
 0x388   : > { %v4277_v46 = vld [vmem:[#allocation3 + $0x24] sm:$0xff] }
 0x389   : > { %v4454_v47 = vadd.f32 %v4453_v42, %v4423_v44  ;;  %4794 = vst [vmem:[%s6852_s21 + $0x20] sm:$0xff] %v4277_v46  ;;  %v4383_v3 = vadd.f32 %v4382_v39, %v4277_v46  ;;  %v4424_v18 = vmul.f32 %v4277_v46, %v4277_v46  ;;  %4234 = vst [vmem:[#allocation3 + $0x38] sm:$0xff] %v6026_v5 }
 0x38b   : > { %v4455_v32 = vadd.f32 %v4454_v47, %v4424_v18 }
 0x38c   : > { %v4011_v2 = vpop.f32.mrb[16].mxu0 }
 0x38d   : > { %v6029_v53 = vadd.f32 %v4011_v2, %v7797_v41  ;;  %v5921_v54 = vpop.f32.mrb[17].mxu0 }
 0x38e   : > { %v4278_v35 = vld [vmem:[#allocation3 + $0x2c] sm:$0xff]  ;;  %v4014_v43 = vpop.f32.mrb[18].mxu0 }
 0x38f   : > { %4795 = vst [vmem:[%s6852_s21 + $0x28] sm:$0xff] %v4278_v35  ;;  %v4425_v60 = vmul.f32 %v4278_v35, %v4278_v35  ;;  %4235 = vst [vmem:[#allocation3 + $0x40] sm:$0xff] %v6029_v53  ;;  %v6032_v36 = vadd.f32 %v4014_v43, %v7799_v40  ;;  %v5922_v62 = vpop.f32.mrb[19].mxu0  ;;  %v4384_v23 = vadd.f32 %v4383_v3, %v4278_v35 }
 0x390   : > { %v4282_v9 = vld [vmem:[#allocation3 + $0x36] sm:$0xff] }
 0x391   : > { %4796 = vst [vmem:[%s6852_s21 + $0x30] sm:$0xff] %v4282_v9  ;;  %4798 = vst [vmem:[%s6852_s21 + $0x40] sm:$0xff] %v6032_v36  ;;  %v4456_v6 = vadd.f32 %v4455_v32, %v4425_v60  ;;  %v4426_v37 = vmul.f32 %v4282_v9, %v4282_v9  ;;  %v4385_v61 = vadd.f32 %v4384_v23, %v4282_v9 }
 0x392   : > { %v4428_v15 = vmul.f32 %v6032_v36, %v6032_v36 }
 0x393   : > { %v4457_v12 = vadd.f32 %v4456_v6, %v4426_v37 }
 0x394   : > { %v4019_v8 = vpop.f32.mrb[20].mxu0 }
 0x395   : > { %v6035_v41 = vadd.f32 %v4019_v8, %v7801_v59  ;;  %v5925_v45 = vpop.f32.mrb[21].mxu0 }
 0x396   : > { %v4283_v10 = vld [vmem:[#allocation3 + $0x3e] sm:$0xff]  ;;  %v4022_v4 = vpop.f32.mrb[22].mxu0 }
 0x397   : > { %4797 = vst [vmem:[%s6852_s21 + $0x38] sm:$0xff] %v4283_v10  ;;  %v4386_v13 = vadd.f32 %v4385_v61, %v4283_v10  ;;  %v4427_v57 = vmul.f32 %v4283_v10, %v4283_v10  ;;  %4799 = vst [vmem:[%s6852_s21 + $0x48] sm:$0xff] %v6035_v41  ;;  %v6038_v40 = vadd.f32 %v4022_v4, %v7803_v48  ;;  %v5926_v16 = vpop.f32.mrb[23].mxu0 }
 0x398   : > { %v4429_v21 = vmul.f32 %v6035_v41, %v6035_v41 }
 0x399   : > { %v4458_v17 = vadd.f32 %v4457_v12, %v4427_v57  ;;  %v4387_v20 = vadd.f32 %v6032_v36, %v4386_v13  ;;  %4238 = vst [vmem:[#allocation3 + $0x58] sm:$0xff] %v6038_v40 }
 0x39b   : > { %v4459_v49 = vadd.f32 %v4458_v17, %v4428_v15  ;;  %v4388_v1 = vadd.f32 %v6035_v41, %v4387_v20 }
 0x39c   : > { %v4027_v59 = vpop.f32.mrb[24].mxu0 }
 0x39d   : > { %v4460_v7 = vadd.f32 %v4459_v49, %v4429_v21  ;;  %v6041_v22 = vadd.f32 %v4027_v59, %v7805_v27  ;;  %v5929_v25 = vpop.f32.mrb[25].mxu0 }
 0x39e   : > { %v4030_v33 = vpop.f32.mrb[26].mxu0 }
 0x39f   : > { %4239 = vst [vmem:[#allocation3 + $0x60] sm:$0xff] %v6041_v22  ;;  %v6044_v28 = vadd.f32 %v4030_v33, %v7807_v11  ;;  %v5930_v48 = vpop.f32.mrb[27].mxu0 }
 0x3a1   : > { %4240 = vst [vmem:[#allocation3 + $0x68] sm:$0xff] %v6044_v28 }
 0x3a4   : > { %v4035_v29 = vpop.f32.mrb[28].mxu0 }
 0x3a5   : > { %v6047_v51 = vadd.f32 %v4035_v29, %v7809_v26  ;;  %v5933_v31 = vpop.f32.mrb[29].mxu0 }
 0x3a6   : > { %v4292_v42 = vld [vmem:[#allocation3 + $0x5a] sm:$0xff]  ;;  %v4038_v14 = vpop.f32.mrb[30].mxu0 }
 0x3a7   : > { %4800 = vst [vmem:[%s6852_s21 + $0x50] sm:$0xff] %v4292_v42  ;;  %4241 = vst [vmem:[#allocation3 + $0x70] sm:$0xff] %v6047_v51  ;;  %v6050_v34 = vadd.f32 %v4038_v14, %v7811_v50  ;;  %v5934_v27 = vpop.f32.mrb[31].mxu0  ;;  %v4430_v38 = vmul.f32 %v4292_v42, %v4292_v42  ;;  %v4389_v24 = vadd.f32 %v4388_v1, %v4292_v42 }
 0x3a8   : > { %v4293_v52 = vld [vmem:[#allocation3 + $0x62] sm:$0xff] }
 0x3a9   : > { %4801 = vst [vmem:[%s6852_s21 + $0x58] sm:$0xff] %v4293_v52  ;;  %4242 = vst [vmem:[#allocation3 + $0x78] sm:$0xff] %v6050_v34  ;;  %v4461_v39 = vadd.f32 %v4460_v7, %v4430_v38  ;;  %v4431_v44 = vmul.f32 %v4293_v52, %v4293_v52  ;;  %v4390_v47 = vadd.f32 %v4389_v24, %v4293_v52 }
 0x3ab   : > { %v4462_v2 = vadd.f32 %v4461_v39, %v4431_v44 }
 0x3ac   : > { %v4043_v11 = vpop.f32.mrb[32].mxu0 }
 0x3ad   : > { %v6053_v26 = vadd.f32 %v4043_v11, %v7813_v56  ;;  %v5937_v5 = vpop.f32.mrb[33].mxu0 }
 0x3ae   : > { %v4297_v19 = vld [vmem:[#allocation3 + $0x6c] sm:$0xff]  ;;  %v4046_v46 = vpop.f32.mrb[34].mxu0 }
 0x3af   : > { %4802 = vst [vmem:[%s6852_s21 + $0x60] sm:$0xff] %v4297_v19  ;;  %v4432_v3 = vmul.f32 %v4297_v19, %v4297_v19  ;;  %4243 = vst [vmem:[#allocation3 + $0x80] sm:$0xff] %v6053_v26  ;;  %v6056_v50 = vadd.f32 %v4046_v46, %v7815_v30  ;;  %v5938_v18 = vpop.f32.mrb[35].mxu0  ;;  %v4391_v53 = vadd.f32 %v4390_v47, %v4297_v19 }
 0x3b0   : > { %v4298_v32 = vld [vmem:[#allocation3 + $0x74] sm:$0xff] }
 0x3b1   : > { %4803 = vst [vmem:[%s6852_s21 + $0x68] sm:$0xff] %v4298_v32  ;;  %4244 = vst [vmem:[#allocation3 + $0x88] sm:$0xff] %v6056_v50  ;;  %v4463_v54 = vadd.f32 %v4462_v2, %v4432_v3  ;;  %v4433_v35 = vmul.f32 %v4298_v32, %v4298_v32  ;;  %v4392_v43 = vadd.f32 %v4391_v53, %v4298_v32 }
 0x3b3   : > { %v4464_v30 = vadd.f32 %v4463_v54, %v4433_v35 }
 0x3b4   : > { %v4051_v56 = vpop.f32.mrb[36].mxu0 }
 0x3b5   : > { %v6059_v60 = vadd.f32 %v4051_v56, %v7817_v58  ;;  %v5941_v36 = vpop.f32.mrb[37].mxu0 }
 0x3b6   : > { %v4302_v62 = vld [vmem:[#allocation3 + $0x7e] sm:$0xff]  ;;  %v4054_v9 = vpop.f32.mrb[38].mxu0 }
 0x3b7   : > { %4804 = vst [vmem:[%s6852_s21 + $0x70] sm:$0xff] %v4302_v62  ;;  %v4393_v23 = vadd.f32 %v4392_v43, %v4302_v62  ;;  %v4434_v6 = vmul.f32 %v4302_v62, %v4302_v62  ;;  %4806 = vst [vmem:[%s6852_s21 + $0x80] sm:$0xff] %v6059_v60  ;;  %v6062_v37 = vadd.f32 %v4054_v9, %v7819_v55  ;;  %v5942_v8 = vpop.f32.mrb[39].mxu0 }
 0x3b8   : > { %v4303_v61 = vld [vmem:[#allocation3 + $0x86] sm:$0xff]  ;;  %v4436_v12 = vmul.f32 %v6059_v60, %v6059_v60 }
 0x3b9   : > { %v4465_v41 = vadd.f32 %v4464_v30, %v4434_v6  ;;  %4805 = vst [vmem:[%s6852_s21 + $0x78] sm:$0xff] %v4303_v61  ;;  %v4394_v45 = vadd.f32 %v4393_v23, %v4303_v61  ;;  %v4435_v10 = vmul.f32 %v4303_v61, %v4303_v61  ;;  %4807 = vst [vmem:[%s6852_s21 + $0x88] sm:$0xff] %v6062_v37 }
 0x3ba   : > { %v4437_v20 = vmul.f32 %v6062_v37, %v6062_v37 }
 0x3bb   : > { %v4466_v4 = vadd.f32 %v4465_v41, %v4435_v10  ;;  %v4395_v58 = vadd.f32 %v6059_v60, %v4394_v45  ;;  %v2267_v13 = vpop.f32.mrb[44].mxu1 }
 0x3bc   : > { %v4059_v57 = vpop.f32.mrb[40].mxu0  ;;  %v5549_v40 = vpop.f32.mrb[45].mxu1 }
 0x3bd   : > { %v4467_v16 = vadd.f32 %v4466_v4, %v4436_v12  ;;  %v4396_v17 = vadd.f32 %v6062_v37, %v4395_v58  ;;  %v6065_v15 = vadd.f32 %v4059_v57, %v7821_v63  ;;  %v5945_v49 = vpop.f32.mrb[41].mxu0  ;;  %v2270_v55 = vpop.f32.mrb[46].mxu1 }
 0x3be   : > { %v4062_v1 = vpop.f32.mrb[42].mxu0  ;;  %v5550_v21 = vpop.f32.mrb[47].mxu1 }
 0x3bf   : > { %v4468_v59 = vadd.f32 %v4467_v16, %v4437_v20  ;;  %4247 = vst [vmem:[#allocation3 + $0xa0] sm:$0xff] %v6065_v15  ;;  %v6068_v7 = vadd.f32 %v4062_v1, %v7823_v0  ;;  %v5946_v22 = vpop.f32.mrb[43].mxu0 }
 0x3c1   : > { %4248 = vst [vmem:[#allocation3 + $0xa8] sm:$0xff] %v6068_v7 }
 0x3c3   : > { %v2275_v25 = vpop.f32.mrb[48].mxu1 }
 0x3c4   : > { %v4067_v33 = vpop.f32.mrb[44].mxu0  ;;  %v5553_v28 = vpop.f32.mrb[49].mxu1 }
 0x3c5   : > { %v6071_v48 = vadd.f32 %v4067_v33, %v2267_v13  ;;  %v5949_v29 = vpop.f32.mrb[45].mxu0  ;;  %v2278_v51 = vpop.f32.mrb[50].mxu1 }
 0x3c6   : > { %v4070_v31 = vpop.f32.mrb[46].mxu0  ;;  %v5554_v42 = vpop.f32.mrb[51].mxu1 }
 0x3c7   : > { %4249 = vst [vmem:[#allocation3 + $0xb0] sm:$0xff] %v6071_v48  ;;  %v6074_v63 = vadd.f32 %v4070_v31, %v2270_v55  ;;  %v5950_v14 = vpop.f32.mrb[47].mxu0 }
 0x3c8   : > { %v4312_v34 = vld [vmem:[#allocation3 + $0xa2] sm:$0xff] }
 0x3c9   : > { %4808 = vst [vmem:[%s6852_s21 + $0x90] sm:$0xff] %v4312_v34  ;;  %4250 = vst [vmem:[#allocation3 + $0xb8] sm:$0xff] %v6074_v63  ;;  %v4438_v5 = vmul.f32 %v4312_v34, %v4312_v34  ;;  %v4397_v3 = vadd.f32 %v4396_v17, %v4312_v34 }
 0x3cb   : > { %v2283_v27 = vpop.f32.mrb[52].mxu1  ;;  %v4469_v18 = vadd.f32 %v4468_v59, %v4438_v5 }
 0x3cc   : > { %v4075_v52 = vpop.f32.mrb[48].mxu0  ;;  %v5557_v0 = vpop.f32.mrb[53].mxu1 }
 0x3cd   : > { %v6077_v38 = vadd.f32 %v4075_v52, %v2275_v25  ;;  %v5953_v24 = vpop.f32.mrb[49].mxu0  ;;  %v2286_v11 = vpop.f32.mrb[54].mxu1 }
 0x3ce   : > { %v4313_v39 = vld [vmem:[#allocation3 + $0xaa] sm:$0xff]  ;;  %v4078_v44 = vpop.f32.mrb[50].mxu0  ;;  %v5558_v26 = vpop.f32.mrb[55].mxu1 }
 0x3cf   : > { %4809 = vst [vmem:[%s6852_s21 + $0x98] sm:$0xff] %v4313_v39  ;;  %4251 = vst [vmem:[#allocation3 + $0xc0] sm:$0xff] %v6077_v38  ;;  %v6080_v19 = vadd.f32 %v4078_v44, %v2278_v51  ;;  %v5954_v46 = vpop.f32.mrb[51].mxu0  ;;  %v4439_v50 = vmul.f32 %v4313_v39, %v4313_v39  ;;  %v4398_v32 = vadd.f32 %v4397_v3, %v4313_v39 }
 0x3d0   : > { %v4317_v47 = vld [vmem:[#allocation3 + $0xb4] sm:$0xff] }
 0x3d1   : > { %4810 = vst [vmem:[%s6852_s21 + $0xa0] sm:$0xff] %v4317_v47  ;;  %4252 = vst [vmem:[#allocation3 + $0xc8] sm:$0xff] %v6080_v19  ;;  %v4470_v35 = vadd.f32 %v4469_v18, %v4439_v50  ;;  %v4440_v56 = vmul.f32 %v4317_v47, %v4317_v47  ;;  %v4399_v23 = vadd.f32 %v4398_v32, %v4317_v47 }
 0x3d3   : > { %v2291_v2 = vpop.f32.mrb[56].mxu1  ;;  %v4471_v41 = vadd.f32 %v4470_v35, %v4440_v56 }
 0x3d4   : > { %v4083_v53 = vpop.f32.mrb[52].mxu0  ;;  %v5561_v54 = vpop.f32.mrb[57].mxu1 }
 0x3d5   : > { %v6083_v43 = vadd.f32 %v4083_v53, %v2283_v27  ;;  %v5957_v60 = vpop.f32.mrb[53].mxu0  ;;  %v2294_v36 = vpop.f32.mrb[58].mxu1 }
 0x3d6   : > { %v4318_v62 = vld [vmem:[#allocation3 + $0xbc] sm:$0xff]  ;;  %v4086_v9 = vpop.f32.mrb[54].mxu0  ;;  %v5562_v30 = vpop.f32.mrb[59].mxu1 }
 0x3d7   : > { %4811 = vst [vmem:[%s6852_s21 + $0xa8] sm:$0xff] %v4318_v62  ;;  %v4441_v6 = vmul.f32 %v4318_v62, %v4318_v62  ;;  %4253 = vst [vmem:[#allocation3 + $0xd0] sm:$0xff] %v6083_v43  ;;  %v6086_v37 = vadd.f32 %v4086_v9, %v2286_v11  ;;  %v5958_v8 = vpop.f32.mrb[55].mxu0  ;;  %v4400_v45 = vadd.f32 %v4399_v23, %v4318_v62 }
 0x3d8   : > { %v4322_v61 = vld [vmem:[#allocation3 + $0xc6] sm:$0xff] }
 0x3d9   : > { %4812 = vst [vmem:[%s6852_s21 + $0xb0] sm:$0xff] %v4322_v61  ;;  %4814 = vst [vmem:[%s6852_s21 + $0xc0] sm:$0xff] %v6086_v37  ;;  %v4472_v10 = vadd.f32 %v4471_v41, %v4441_v6  ;;  %v4442_v4 = vmul.f32 %v4322_v61, %v4322_v61  ;;  %v4401_v57 = vadd.f32 %v4400_v45, %v4322_v61 }
 0x3da   : > { %v4444_v33 = vmul.f32 %v6086_v37, %v6086_v37 }
 0x3db   : > { %v2299_v58 = vpop.f32.mrb[60].mxu1  ;;  %v4473_v55 = vadd.f32 %v4472_v10, %v4442_v4 }
 0x3dc   : > { %v4091_v12 = vpop.f32.mrb[56].mxu0  ;;  %v5565_v13 = vpop.f32.mrb[61].mxu1 }
 0x3dd   : > { %v6089_v40 = vadd.f32 %v4091_v12, %v2291_v2  ;;  %v5961_v16 = vpop.f32.mrb[57].mxu0  ;;  %v2302_v17 = vpop.f32.mrb[62].mxu1 }
 0x3de   : > { %v4323_v20 = vld [vmem:[#allocation3 + $0xce] sm:$0xff]  ;;  %v4094_v15 = vpop.f32.mrb[58].mxu0  ;;  %v5566_v49 = vpop.f32.mrb[63].mxu1 }
 0x3df   : > { %4813 = vst [vmem:[%s6852_s21 + $0xb8] sm:$0xff] %v4323_v20  ;;  %v4402_v1 = vadd.f32 %v4401_v57, %v4323_v20  ;;  %v4443_v21 = vmul.f32 %v4323_v20, %v4323_v20  ;;  %4815 = vst [vmem:[%s6852_s21 + $0xc8] sm:$0xff] %v6089_v40  ;;  %v6092_v59 = vadd.f32 %v4094_v15, %v2294_v36  ;;  %v5962_v7 = vpop.f32.mrb[59].mxu0 }
 0x3e0   : > { %v4445_v29 = vmul.f32 %v6089_v40, %v6089_v40 }
 0x3e1   : > { %v4474_v22 = vadd.f32 %v4473_v55, %v4443_v21  ;;  %v4403_v25 = vadd.f32 %v6086_v37, %v4402_v1  ;;  %4256 = vst [vmem:[#allocation3 + $0xe8] sm:$0xff] %v6092_v59 }
 0x3e3   : > { %v4475_v28 = vadd.f32 %v4474_v22, %v4444_v33  ;;  %v4404_v48 = vadd.f32 %v6089_v40, %v4403_v25  ;;  %v2307_v51 = vpop.f32.mrb[64].mxu1 }
 0x3e4   : > { %v4099_v31 = vpop.f32.mrb[60].mxu0  ;;  %v5569_v42 = vpop.f32.mrb[65].mxu1 }
 0x3e5   : > { %v4476_v63 = vadd.f32 %v4475_v28, %v4445_v29  ;;  %v6095_v14 = vadd.f32 %v4099_v31, %v2299_v58  ;;  %v5965_v34 = vpop.f32.mrb[61].mxu0  ;;  %v2310_v27 = vpop.f32.mrb[66].mxu1 }
 0x3e6   : > { %v4102_v52 = vpop.f32.mrb[62].mxu0  ;;  %v5570_v0 = vpop.f32.mrb[67].mxu1 }
 0x3e7   : > { %4257 = vst [vmem:[#allocation3 + $0xf0] sm:$0xff] %v6095_v14  ;;  %v6098_v38 = vadd.f32 %v4102_v52, %v2302_v17  ;;  %v5966_v24 = vpop.f32.mrb[63].mxu0 }
 0x3e9   : > { %4258 = vst [vmem:[#allocation3 + $0xf8] sm:$0xff] %v6098_v38 }
 0x3eb   : > { %v2315_v11 = vpop.f32.mrb[68].mxu1 }
 0x3ec   : > { %v4107_v39 = vpop.f32.mrb[64].mxu0  ;;  %v5573_v44 = vpop.f32.mrb[69].mxu1 }
 0x3ed   : > { %v6101_v26 = vadd.f32 %v4107_v39, %v2307_v51  ;;  %v5969_v5 = vpop.f32.mrb[65].mxu0  ;;  %v2318_v19 = vpop.f32.mrb[70].mxu1 }
 0x3ee   : > { %v4332_v46 = vld [vmem:[#allocation3 + $0xea] sm:$0xff]  ;;  %v4110_v47 = vpop.f32.mrb[66].mxu0  ;;  %v5574_v3 = vpop.f32.mrb[71].mxu1 }
 0x3ef   : > { %4816 = vst [vmem:[%s6852_s21 + $0xd0] sm:$0xff] %v4332_v46  ;;  %4259 = vst [vmem:[#allocation3 + $0x100] sm:$0xff] %v6101_v26  ;;  %v6104_v50 = vadd.f32 %v4110_v47, %v2310_v27  ;;  %v5970_v18 = vpop.f32.mrb[67].mxu0  ;;  %v4446_v2 = vmul.f32 %v4332_v46, %v4332_v46  ;;  %v4405_v53 = vadd.f32 %v4404_v48, %v4332_v46 }
 0x3f0   : > { %v4333_v32 = vld [vmem:[#allocation3 + $0xf2] sm:$0xff]  ;;  %v4419_v18 = vld [vmem:[%s7897_s3 + $0x1] sm:$0x1] }
 0x3f1   : > { %4817 = vst [vmem:[%s6852_s21 + $0xd8] sm:$0xff] %v4333_v32  ;;  %4260 = vst [vmem:[#allocation3 + $0x108] sm:$0xff] %v6104_v50  ;;  %v4477_v43 = vadd.f32 %v4476_v63, %v4446_v2  ;;  %v4447_v60 = vmul.f32 %v4333_v32, %v4333_v32  ;;  %v4406_v37 = vadd.f32 %v4405_v53, %v4333_v32 }
 0x3f3   : > { %v2323_v54 = vpop.f32.mrb[72].mxu1  ;;  %v4478_v10 = vadd.f32 %v4477_v43, %v4447_v60 }
 0x3f4   : > { %v4115_v35 = vpop.f32.mrb[68].mxu0  ;;  %v5577_v56 = vpop.f32.mrb[73].mxu1 }
 0x3f5   : > { %v6107_v36 = vadd.f32 %v4115_v35, %v2315_v11  ;;  %v5973_v62 = vpop.f32.mrb[69].mxu0  ;;  %v2326_v9 = vpop.f32.mrb[74].mxu1 }
 0x3f6   : > { %v4337_v30 = vld [vmem:[#allocation3 + $0xfc] sm:$0xff]  ;;  %v4118_v23 = vpop.f32.mrb[70].mxu0  ;;  %v5578_v6 = vpop.f32.mrb[75].mxu1 }
 0x3f7   : > { %4818 = vst [vmem:[%s6852_s21 + $0xe0] sm:$0xff] %v4337_v30  ;;  %v4448_v8 = vmul.f32 %v4337_v30, %v4337_v30  ;;  %4261 = vst [vmem:[#allocation3 + $0x110] sm:$0xff] %v6107_v36  ;;  %v6110_v61 = vadd.f32 %v4118_v23, %v2318_v19  ;;  %v5974_v41 = vpop.f32.mrb[71].mxu0  ;;  %v4407_v4 = vadd.f32 %v4406_v37, %v4337_v30  ;;  %v4379_v19 = vld [vmem:[%s7897_s3] sm:$0x1] }
 0x3f8   : > { %v4338_v45 = vld [vmem:[#allocation3 + $0x104] sm:$0xff] }
 0x3f9   : > { %4819 = vst [vmem:[%s6852_s21 + $0xe8] sm:$0xff] %v4338_v45  ;;  %4262 = vst [vmem:[#allocation3 + $0x118] sm:$0xff] %v6110_v61  ;;  %v4479_v58 = vadd.f32 %v4478_v10, %v4448_v8  ;;  %v4449_v12 = vmul.f32 %v4338_v45, %v4338_v45  ;;  %v4408_v16 = vadd.f32 %v4407_v4, %v4338_v45 }
 0x3fb   : > { %v2331_v13 = vpop.f32.mrb[76].mxu1  ;;  %v4480_v1 = vadd.f32 %v4479_v58, %v4449_v12 }
 0x3fc   : > { %v4123_v57 = vpop.f32.mrb[72].mxu0  ;;  %v5581_v40 = vpop.f32.mrb[77].mxu1 }
 0x3fd   : > { %v5977_v17 = vpop.f32.mrb[73].mxu0  ;;  %v2334_v20 = vpop.f32.mrb[78].mxu1 }
 0x3fe   : > { %v4342_v15 = vld [vmem:[#allocation3 + $0x10e] sm:$0xff]  ;;  %v4126_v49 = vpop.f32.mrb[74].mxu0  ;;  %v5582_v55 = vpop.f32.mrb[79].mxu1 }
 0x3ff   : > { %4820 = vst [vmem:[%s6852_s21 + $0xf0] sm:$0xff] %v4342_v15  ;;  %v4409_v21 = vadd.f32 %v4408_v16, %v4342_v15  ;;  %v4450_v59 = vmul.f32 %v4342_v15, %v4342_v15  ;;  %v5978_v7 = vpop.f32.mrb[75].mxu0 }
 0x400   : > { %v4343_v22 = vld [vmem:[#allocation3 + $0x116] sm:$0xff] }
 0x401   : > { %v4481_v25 = vadd.f32 %v4480_v1, %v4450_v59  ;;  %4821 = vst [vmem:[%s6852_s21 + $0xf8] sm:$0xff] %v4343_v22  ;;  %v4410_v33 = vadd.f32 %v4409_v21, %v4343_v22  ;;  %v4451_v28 = vmul.f32 %v4343_v22, %v4343_v22 }
 0x403   : > { %v4411_v48 = vrot.slane %v4410_v33, 4  ;;  %v4482_v29 = vadd.f32 %v4481_v25, %v4451_v28  ;;  %v2339_v51 = vpop.f32.mrb[80].mxu1 }
 0x404   : > { %v4131_v31 = vpop.f32.mrb[76].mxu0  ;;  %v5585_v42 = vpop.f32.mrb[81].mxu1 }
 0x405   : > { %v4412_v63 = vadd.f32 %v4411_v48, %v4410_v33  ;;  %v4483_v14 = vrot.slane %v4482_v29, 4  ;;  %v5981_v34 = vpop.f32.mrb[77].mxu0  ;;  %v2342_v27 = vpop.f32.mrb[82].mxu1 }
 0x406   : > { %v4134_v52 = vpop.f32.mrb[78].mxu0  ;;  %v5586_v0 = vpop.f32.mrb[83].mxu1 }
 0x407   : > { %v4413_v38 = vrot.slane %v4412_v63, 2  ;;  %v4484_v24 = vadd.f32 %v4483_v14, %v4482_v29  ;;  %v5982_v11 = vpop.f32.mrb[79].mxu0 }
 0x409   : > { %v4414_v39 = vadd.f32 %v4413_v38, %v4412_v63  ;;  %v4485_v44 = vrot.slane %v4484_v24, 2 }
 0x40b   : > { %v4415_v26 = vrot.slane %v4414_v39, 1  ;;  %v4486_v5 = vadd.f32 %v4485_v44, %v4484_v24 }
 0x40c   : > { %v4139_v46 = vpop.f32.mrb[80].mxu0 }
 0x40d   : > { %v4416_v47 = vadd.f32 %v4415_v26, %v4414_v39  ;;  %v4487_v3 = vrot.slane %v4486_v5, 1  ;;  %v5985_v50 = vpop.f32.mrb[81].mxu0 }
 0x40e   : > { %v4142_v32 = vpop.f32.mrb[82].mxu0 }
 0x40f   : > { %v4417_v2 = vadd.f32 %v4416_v47, %v4379_v19  ;;  %v4488_v53 = vadd.f32 %v4487_v3, %v4486_v5  ;;  %v5986_v54 = vpop.f32.mrb[83].mxu0 }
 0x411   : > { %4418 = vst [vmem:[%s7897_s3] sm:$0x1] %v4417_v2  ;;  %v4489_v35 = vadd.f32 %v4488_v53, %v4419_v18 }
 0x413   : > { %4490 = vst [vmem:[%s7897_s3 + $0x1] sm:$0x1] %v4489_v35 }
 0x414 PF: > { %s14_s12 = sadd.s32 1, %s6811_s12  }
 0x415   : > { %p11_p5 = scmp.ge.s32.totalorder %s14_s12, 4  }
 0x417   :  { %13 = sbr.rel (!%p11_p5) target bundleno = 1 (0x1), region = 108 }

</bundles_post_ra>
